<compile_context>
chip_gen: v5e
topology: v5e:2x2
jax: 0.10.0
libtpu: 0.0.40
codegen_flags: <defaults>
</compile_context>

<pallas_src>
import numpy as np
import jax
import jax.numpy as jnp
from jax.experimental import pallas as pl
from jax.experimental.pallas import tpu as pltpu


def up_forward(x1_ncdhw, x2_ncdhw, p):
    N, C2, D1, H1, W1 = x1_ncdhw.shape
    Nb, C2b, D, H, W = x2_ncdhw.shape
    assert N == Nb and C2 == C2b
    Cin1 = 2 * C2                         # concat channels feeding conv1
    Cout = p["c1_w"].shape[0]
    groups = 8
    gs = Cout // groups
    S1 = D1 * H1 * W1                     # x1 spatial, flattened (lane axis)
    S2 = D * H * W                        # x2 / output spatial, flattened (lane axis)
    dz, dy, dx = D - 2 * D1, H - 2 * H1, W - 2 * W1
    assert dz >= 0 and dy >= 0 and dx >= 0, "crop (x2 smaller than up(x1)) unsupported"
    pz0, py0, px0 = dz // 2, dy // 2, dx // 2
    eps = 1e-5
    inv_cnt = 1.0 / float(gs * S2)

    # ---------- static, shape-only constants (numpy, baked at trace time) ----------
    # ConvTranspose(k=2,s=2) + F.pad: every padded-output voxel s2 inside the upsampled
    # region receives exactly ONE (tap t, source voxel s1) contribution.  Precompute:
    #   Psum  (S1, S2) 0/1 column-gather matrix  (x1 @ Psum gathers each voxel's source)
    #   t_idx (S2,)    which 2x2x2 tap feeds s2  (selects the weight slice per voxel)
    #   reg   (S2,)    1 inside the up-region, 0 in the F.pad zeros
    dg, hg, wg = np.meshgrid(np.arange(D), np.arange(H), np.arange(W), indexing="ij")
    zd, zh, zw = dg - pz0, hg - py0, wg - px0
    in_reg = ((zd >= 0) & (zd < 2 * D1) & (zh >= 0) & (zh < 2 * H1)
              & (zw >= 0) & (zw < 2 * W1))
    zdc = np.clip(zd, 0, 2 * D1 - 1)
    zhc = np.clip(zh, 0, 2 * H1 - 1)
    zwc = np.clip(zw, 0, 2 * W1 - 1)
    s1_idx = ((zdc // 2) * (H1 * W1) + (zhc // 2) * W1 + (zwc // 2)).ravel()
    t_idx = ((zdc % 2) * 4 + (zhc % 2) * 2 + (zwc % 2)).ravel()
    reg = in_reg.ravel()
    Psum_np = np.zeros((S1, S2), np.float32)
    cols = np.nonzero(reg)[0]
    Psum_np[s1_idx[cols], cols] = 1.0
    t_idx = np.where(reg, t_idx, 0).astype(np.int32)
    reg_f = reg.astype(np.float32)

    # 3x3x3 "same" conv as 27 lane-rolls of the flattened volume + boundary masks.
    mask_np = np.zeros((27, 1, S2), np.float32)
    offs = []
    for kd in range(3):
        for kh in range(3):
            for kw in range(3):
                t = kd * 9 + kh * 3 + kw
                offs.append((kd - 1) * H * W + (kh - 1) * W + (kw - 1))
                valid = ((dg + kd - 1 >= 0) & (dg + kd - 1 < D)
                         & (hg + kh - 1 >= 0) & (hg + kh - 1 < H)
                         & (wg + kw - 1 >= 0) & (wg + kw - 1 < W))
                mask_np[t, 0, :] = valid.ravel().astype(np.float32)

    # GroupNorm group-indicator matrix (no per-grid-step iota rebuild).
    mm_np = (np.arange(Cout)[:, None] // gs == np.arange(Cout)[None, :] // gs).astype(np.float32)

    Psum = jnp.asarray(Psum_np)
    masks = jnp.asarray(mask_np).astype(jnp.bfloat16)     # 0/1 values -> exact in bf16
    Mm = jnp.asarray(mm_np)
    regj = jnp.asarray(reg_f)

    # ---------- tiny parameter repacking (negligible wrapper work) ----------
    # ConvTranspose3d weight (Cin, Cout, 2,2,2) -> per-voxel selected weight slice:
    #   wsel[cin, cout, s2] = W[tap(s2)][cout, cin] inside the region, 0 in the padding.
    wtap = jnp.transpose(p["up_w"], (2, 3, 4, 1, 0)).reshape(8, C2, C2)        # (tap,cout,cin)
    wsel = (jnp.transpose(jnp.take(wtap, jnp.asarray(t_idx), axis=0), (2, 1, 0))
            * regj[None, None, :])                                             # (cin,cout,S2)
    bsel = p["up_b"][:, None] * regj[None, :]                                  # (C2, S2)
    # Conv3d weights (Cout, Cin, 3,3,3) -> (Cout, 27*Cin) bf16, columns ordered (tap, cin):
    # native MXU bf16 operands, half the VMEM / operand-reload of f32.
    w1m = jnp.transpose(p["c1_w"], (0, 2, 3, 4, 1)).reshape(Cout, 27 * Cin1).astype(jnp.bfloat16)
    w2m = jnp.transpose(p["c2_w"], (0, 2, 3, 4, 1)).reshape(Cout, 27 * Cout).astype(jnp.bfloat16)
    b1 = p["c1_b"].reshape(Cout, 1)
    g1 = p["gn1_g"].reshape(Cout, 1)
    be1 = p["gn1_b"].reshape(Cout, 1)
    b2 = p["c2_b"].reshape(Cout, 1)
    g2 = p["gn2_g"].reshape(Cout, 1)
    be2 = p["gn2_b"].reshape(Cout, 1)

    # Keep native NCDHW channel order; only flatten spatial onto the lane axis
    # (contiguous reshape == free, no transpose).
    x1r = x1_ncdhw.reshape(N, C2, S1)
    x2r = x2_ncdhw.reshape(N, C2, S2)

    def kernel(x1_ref, x2_ref, psum_ref, wsel_ref, bsel_ref, mask_ref,
               w1_ref, b1_ref, g1_ref, be1_ref,
               w2_ref, b2_ref, g2_ref, be2_ref, mm_ref,
               o_ref, patch_ref):

        def conv_gn_relu(x_in, cin, w_ref_, b_ref_, g_ref_, be_ref_):
            # im2col: 27 XLU lane-rolls (pltpu.roll) + boundary masks.  Rolls/masks run in
            # f32 (sources are f32 anyway); the cast to bf16 happens at the store, so every
            # patch write is a full (16,128)-tile-aligned bf16 store (half the vst count of
            # the old f32 patch).
            for t in range(27):
                off = offs[t]
                if off == 0:
                    src = x_in.astype(jnp.bfloat16)            # center tap, mask all-ones
                else:
                    rolled = pltpu.roll(x_in, shift=(-off) % S2, axis=1)
                    src = rolled.astype(jnp.bfloat16) * mask_ref[t]
                patch_ref[t * cin:(t + 1) * cin, :] = src
            # single MXU bf16 matmul: (Cout, 27*cin) @ (27*cin, S2), f32 accumulation
            a = jnp.dot(w_ref_[...], patch_ref[0:27 * cin, :],
                        preferred_element_type=jnp.float32) + b_ref_[...]
            # GroupNorm(8): two-pass (mean, then E[(x-mean)^2]) to avoid cancellation;
            # lane reductions + tiny group-indicator matmuls.
            s = jnp.sum(a, axis=1, keepdims=True)                               # (Cout, 1)
            mean = jnp.dot(mm_ref[...], s, preferred_element_type=jnp.float32) * inv_cnt
            c = a - mean
            q = jnp.sum(c * c, axis=1, keepdims=True)                           # (Cout, 1)
            var = jnp.dot(mm_ref[...], q, preferred_element_type=jnp.float32) * inv_cnt
            y = c * (jax.lax.rsqrt(var + eps) * g_ref_[...]) + be_ref_[...]
            # Dropout3d(0.3) == eval-mode identity; then ReLU.
            return jnp.maximum(y, 0.0)

        # --- ConvTranspose3d(C/2 -> C/2, k=2, s=2) + F.pad --------------------------------
        # One gather matmul brings each output voxel's source x1 voxel into place; the
        # 2x2x2 tap weights are then applied as a short per-cin VPU FMA chain against the
        # per-voxel selected weight slabs (replaces the old 8-matmul + P-scatter chain).
        xg = jnp.dot(x1_ref[0, :, :].astype(jnp.float32), psum_ref[...],
                     preferred_element_type=jnp.float32)                        # (C2, S2)
        upf = bsel_ref[...]
        for ci in range(C2):
            upf = upf + wsel_ref[ci] * xg[ci:ci + 1, :]                         # (C2, S2)

        # --- concat([x2, up(x1)]) along channels (rows) ------------------------------------
        # One (Cin1, S2) f32 copy.  (Writing the two slabs straight into the patch buffer
        # would save it but turns every bf16 patch store into a half-tile 8-row masked
        # store; the aligned-store layout wins.)
        xcat = jnp.concatenate([x2_ref[0, :, :].astype(jnp.float32), upf], axis=0)

        # --- DoubleConv, fully fused; intermediate never leaves VMEM -----------------------
        h1 = conv_gn_relu(xcat, Cin1, w1_ref, b1_ref, g1_ref, be1_ref)
        h2 = conv_gn_relu(h1, Cout, w2_ref, b2_ref, g2_ref, be2_ref)

        o_ref[0, :, :] = h2.astype(o_ref.dtype)               # lane-dense (Cout, S2) store

    def const_spec(shape):
        # Block index never changes across the grid -> single buffer: no wasted VMEM,
        # fetched exactly once (never re-DMAed per grid step).
        zeros = (0,) * len(shape)
        return pl.BlockSpec(shape, lambda n: zeros, pipeline_mode=pl.Buffered(1))

    Cmax = max(Cin1, Cout)
    out = pl.pallas_call(
        kernel,
        out_shape=jax.ShapeDtypeStruct((N, Cout, S2), x2_ncdhw.dtype),
        grid=(N,),
        in_specs=[
            pl.BlockSpec((1, C2, S1), lambda n: (n, 0, 0)),   # x1
            pl.BlockSpec((1, C2, S2), lambda n: (n, 0, 0)),   # x2
            const_spec((S1, S2)),                             # Psum gather matrix
            const_spec((C2, C2, S2)),                         # wsel (per-voxel up weights)
            const_spec((C2, S2)),                             # bsel (masked up bias)
            const_spec((27, 1, S2)),                          # conv boundary masks (bf16)
            const_spec((Cout, 27 * Cin1)),                    # conv1 weight (bf16)
            const_spec((Cout, 1)),                            # conv1 bias
            const_spec((Cout, 1)),                            # gn1 gamma
            const_spec((Cout, 1)),                            # gn1 beta
            const_spec((Cout, 27 * Cout)),                    # conv2 weight (bf16)
            const_spec((Cout, 1)),                            # conv2 bias
            const_spec((Cout, 1)),                            # gn2 gamma
            const_spec((Cout, 1)),                            # gn2 beta
            const_spec((Cout, Cout)),                         # GroupNorm group indicator
        ],
        out_specs=pl.BlockSpec((1, Cout, S2), lambda n: (n, 0, 0)),
        scratch_shapes=[pltpu.VMEM((27 * Cmax, S2), jnp.bfloat16)],   # bf16 im2col buffer
        compiler_params=pltpu.CompilerParams(
            # batch axis -> v7x's 2 TensorCores; on v5e/v6e (1 TC) it is a serial loop and
            # each extra step only costs ~0.35us at these sizes.
            dimension_semantics=("parallel",),
            vmem_limit_bytes=32 * 1024 * 1024,
        ),
    )(x1r, x2r, Psum, wsel, bsel, masks, w1m, b1, g1, be1, w2m, b2, g2, be2, Mm)

    # free contiguous un-flatten back to NCDHW
    return out.reshape(N, Cout, D, H, W)


# ----------------------------- pure-JAX reference (for verification) -----------------------
def _ref_up_forward(x1, x2, p):
    Cup = p["up_w"].shape[1]
    N, _, D1, H1, W1 = x1.shape
    up = jnp.einsum("ncdhw,ckabe->nkdahbwe", x1, p["up_w"])
    up = up.reshape(N, Cup, 2 * D1, 2 * H1, 2 * W1) + p["up_b"][None, :, None, None, None]
    dz = x2.shape[2] - up.shape[2]
    dy = x2.shape[3] - up.shape[3]
    dx = x2.shape[4] - up.shape[4]
    up = jnp.pad(up, ((0, 0), (0, 0),
                      (dz // 2, dz - dz // 2),
                      (dy // 2, dy - dy // 2),
                      (dx // 2, dx - dx // 2)))
    x = jnp.concatenate([x2, up], axis=1)

    def conv(x, w, b):
        y = jax.lax.conv_general_dilated(
            x, w, (1, 1, 1), ((1, 1), (1, 1), (1, 1)),
            dimension_numbers=("NCDHW", "OIDHW", "NCDHW"))
        return y + b[None, :, None, None, None]

    def gn(x, g, bt, eps=1e-5):
        n, c = x.shape[:2]
        xg = x.reshape(n, 8, -1)
        mu = xg.mean(axis=2, keepdims=True)
        va = xg.var(axis=2, keepdims=True)
        xn = ((xg - mu) * jax.lax.rsqrt(va + eps)).reshape(x.shape)
        return xn * g[None, :, None, None, None] + bt[None, :, None, None, None]

    x = jnp.maximum(gn(conv(x, p["c1_w"], p["c1_b"]), p["gn1_g"], p["gn1_b"]), 0.0)
    x = jnp.maximum(gn(conv(x, p["c2_w"], p["c2_b"]), p["gn2_g"], p["gn2_b"]), 0.0)
    return x


if __name__ == "__main__":
    in_channels = 16      # concat channels; x1 and x2 each carry in_channels // 2
    out_channels = 16     # divisible by 8 (GroupNorm groups)
    c_half = in_channels // 2
    N, D1 = 2, 4          # x1 spatial = 4, upsampled to 8 to match x2

    key = jax.random.PRNGKey(0)
    ks = jax.random.split(key, 12)

    x1 = jax.random.normal(ks[0], (N, c_half, D1, D1, D1), jnp.float32)
    x2 = jax.random.normal(ks[1], (N, c_half, 2 * D1, 2 * D1, 2 * D1), jnp.float32)

    params = {
        # ConvTranspose3d(c_half, c_half, k=2, s=2): weight (Cin, Cout, 2, 2, 2)
        "up_w": 0.1 * jax.random.normal(ks[2], (c_half, c_half, 2, 2, 2), jnp.float32),
        "up_b": 0.1 * jax.random.normal(ks[3], (c_half,), jnp.float32),
        # Conv3d(in_channels, out_channels, 3): weight (Cout, Cin, 3, 3, 3)
        "c1_w": 0.1 * jax.random.normal(ks[4], (out_channels, in_channels, 3, 3, 3), jnp.float32),
        "c1_b": 0.1 * jax.random.normal(ks[5], (out_channels,), jnp.float32),
        "gn1_g": 1.0 + 0.1 * jax.random.normal(ks[6], (out_channels,), jnp.float32),
        "gn1_b": 0.1 * jax.random.normal(ks[7], (out_channels,), jnp.float32),
        # Conv3d(out_channels, out_channels, 3)
        "c2_w": 0.1 * jax.random.normal(ks[8], (out_channels, out_channels, 3, 3, 3), jnp.float32),
        "c2_b": 0.1 * jax.random.normal(ks[9], (out_channels,), jnp.float32),
        "gn2_g": 1.0 + 0.1 * jax.random.normal(ks[10], (out_channels,), jnp.float32),
        "gn2_b": 0.1 * jax.random.normal(ks[11], (out_channels,), jnp.float32),
    }

    out = jax.jit(up_forward)(x1, x2, params)
    out = jax.block_until_ready(out)
    assert out.shape == (N, out_channels, 2 * D1, 2 * D1, 2 * D1), out.shape
    assert bool(jnp.all(jnp.isfinite(out)))

    # f32 reference.  Tolerance covers the bf16 im2col/weight quantization (~0.2% per
    # operand through two convs); any structural bug (wrong tap/mask/scatter) shows up
    # as O(1) error and still trips this check.
    ref = _ref_up_forward(x1, x2, params)
    max_err = float(jnp.max(jnp.abs(out - ref)))
    assert max_err < 5e-2, f"mismatch vs reference: {max_err}"

    print("KERNEL_OK")
</pallas_src>

<mosaic_0001>
module attributes {stable_mosaic.version = 11 : i64} {
  func.func @kernel(%arg0: i32, %arg1: memref<1x8x64xf32, #tpu.memory_space<vmem>>, %arg2: memref<1x8x512xf32, #tpu.memory_space<vmem>>, %arg3: memref<64x512xf32, #tpu.memory_space<vmem>>, %arg4: memref<8x8x512xf32, #tpu.memory_space<vmem>>, %arg5: memref<8x512xf32, #tpu.memory_space<vmem>>, %arg6: memref<27x1x512xbf16, #tpu.memory_space<vmem>>, %arg7: memref<16x432xbf16, #tpu.memory_space<vmem>>, %arg8: memref<16x1xf32, #tpu.memory_space<vmem>>, %arg9: memref<16x1xf32, #tpu.memory_space<vmem>>, %arg10: memref<16x1xf32, #tpu.memory_space<vmem>>, %arg11: memref<16x432xbf16, #tpu.memory_space<vmem>>, %arg12: memref<16x1xf32, #tpu.memory_space<vmem>>, %arg13: memref<16x1xf32, #tpu.memory_space<vmem>>, %arg14: memref<16x1xf32, #tpu.memory_space<vmem>>, %arg15: memref<16x16xf32, #tpu.memory_space<vmem>>, %arg16: memref<1x16x512xf32, #tpu.memory_space<vmem>>, %arg17: memref<432x512xbf16, #tpu.memory_space<vmem>>) attributes {dimension_semantics = [#tpu.dimension_semantics<parallel>], iteration_bounds = array<i64: 2>, scalar_prefetch = 0 : i64, scratch_operands = 1 : i64, tpu.core_type = #tpu.core_type<tc>, window_params = [{transform_indices = @transform_0, window_bounds = array<i64: 1, 8, 64>}, {transform_indices = @transform_1, window_bounds = array<i64: 1, 8, 512>}, {pipeline_mode = #tpu.pipeline_mode<synchronous>, transform_indices = @transform_2, window_bounds = array<i64: 64, 512>}, {pipeline_mode = #tpu.pipeline_mode<synchronous>, transform_indices = @transform_3, window_bounds = array<i64: 8, 8, 512>}, {pipeline_mode = #tpu.pipeline_mode<synchronous>, transform_indices = @transform_4, window_bounds = array<i64: 8, 512>}, {pipeline_mode = #tpu.pipeline_mode<synchronous>, transform_indices = @transform_5, window_bounds = array<i64: 27, 1, 512>}, {pipeline_mode = #tpu.pipeline_mode<synchronous>, transform_indices = @transform_6, window_bounds = array<i64: 16, 432>}, {pipeline_mode = #tpu.pipeline_mode<synchronous>, transform_indices = @transform_7, window_bounds = array<i64: 16, 1>}, {pipeline_mode = #tpu.pipeline_mode<synchronous>, transform_indices = @transform_8, window_bounds = array<i64: 16, 1>}, {pipeline_mode = #tpu.pipeline_mode<synchronous>, transform_indices = @transform_9, window_bounds = array<i64: 16, 1>}, {pipeline_mode = #tpu.pipeline_mode<synchronous>, transform_indices = @transform_10, window_bounds = array<i64: 16, 432>}, {pipeline_mode = #tpu.pipeline_mode<synchronous>, transform_indices = @transform_11, window_bounds = array<i64: 16, 1>}, {pipeline_mode = #tpu.pipeline_mode<synchronous>, transform_indices = @transform_12, window_bounds = array<i64: 16, 1>}, {pipeline_mode = #tpu.pipeline_mode<synchronous>, transform_indices = @transform_13, window_bounds = array<i64: 16, 1>}, {pipeline_mode = #tpu.pipeline_mode<synchronous>, transform_indices = @transform_14, window_bounds = array<i64: 16, 16>}, {transform_indices = @transform_15, window_bounds = array<i64: 1, 16, 512>}]} {
    %c0 = arith.constant 0 : index
    %c0_0 = arith.constant 0 : index
    %c0_1 = arith.constant 0 : index
    %0 = vector.load %arg1[%c0, %c0_0, %c0_1] : memref<1x8x64xf32, #tpu.memory_space<vmem>>, vector<1x8x64xf32>
    %1 = vector.shape_cast %0 : vector<1x8x64xf32> to vector<8x64xf32>
    %c0_2 = arith.constant 0 : index
    %c0_3 = arith.constant 0 : index
    %2 = vector.load %arg3[%c0_2, %c0_3] : memref<64x512xf32, #tpu.memory_space<vmem>>, vector<64x512xf32>
    %cst = arith.constant dense<0.000000e+00> : vector<8x512xf32>
    %3 = tpu.matmul %1, %2, %cst {dimension_numbers = #tpu.dot_dimension_numbers<[1], [0], [0], [1], [0, 0, 1, 1], [], []>} : vector<8x64xf32>, vector<64x512xf32>, vector<8x512xf32> -> vector<8x512xf32>
    %c0_4 = arith.constant 0 : index
    %c0_5 = arith.constant 0 : index
    %4 = vector.load %arg5[%c0_4, %c0_5] : memref<8x512xf32, #tpu.memory_space<vmem>>, vector<8x512xf32>
    %c0_6 = arith.constant 0 : index
    %c0_7 = arith.constant 0 : index
    %c0_8 = arith.constant 0 : index
    %5 = vector.load %arg4[%c0_6, %c0_7, %c0_8] : memref<8x8x512xf32, #tpu.memory_space<vmem>>, vector<1x8x512xf32>
    %6 = vector.shape_cast %5 : vector<1x8x512xf32> to vector<8x512xf32>
    %7 = vector.extract_strided_slice %3 {offsets = [0, 0], sizes = [1, 512], strides = [1, 1]} : vector<8x512xf32> to vector<1x512xf32>
    %8 = vector.broadcast %7 : vector<1x512xf32> to vector<8x512xf32>
    %9 = arith.mulf %6, %8 : vector<8x512xf32>
    %10 = arith.addf %4, %9 : vector<8x512xf32>
    %c1 = arith.constant 1 : index
    %c0_9 = arith.constant 0 : index
    %c0_10 = arith.constant 0 : index
    %11 = vector.load %arg4[%c1, %c0_9, %c0_10] : memref<8x8x512xf32, #tpu.memory_space<vmem>>, vector<1x8x512xf32>
    %12 = vector.shape_cast %11 : vector<1x8x512xf32> to vector<8x512xf32>
    %13 = vector.extract_strided_slice %3 {offsets = [1, 0], sizes = [1, 512], strides = [1, 1]} : vector<8x512xf32> to vector<1x512xf32>
    %14 = vector.broadcast %13 : vector<1x512xf32> to vector<8x512xf32>
    %15 = arith.mulf %12, %14 : vector<8x512xf32>
    %16 = arith.addf %10, %15 : vector<8x512xf32>
    %c2 = arith.constant 2 : index
    %c0_11 = arith.constant 0 : index
    %c0_12 = arith.constant 0 : index
    %17 = vector.load %arg4[%c2, %c0_11, %c0_12] : memref<8x8x512xf32, #tpu.memory_space<vmem>>, vector<1x8x512xf32>
    %18 = vector.shape_cast %17 : vector<1x8x512xf32> to vector<8x512xf32>
    %19 = vector.extract_strided_slice %3 {offsets = [2, 0], sizes = [1, 512], strides = [1, 1]} : vector<8x512xf32> to vector<1x512xf32>
    %20 = vector.broadcast %19 : vector<1x512xf32> to vector<8x512xf32>
    %21 = arith.mulf %18, %20 : vector<8x512xf32>
    %22 = arith.addf %16, %21 : vector<8x512xf32>
    %c3 = arith.constant 3 : index
    %c0_13 = arith.constant 0 : index
    %c0_14 = arith.constant 0 : index
    %23 = vector.load %arg4[%c3, %c0_13, %c0_14] : memref<8x8x512xf32, #tpu.memory_space<vmem>>, vector<1x8x512xf32>
    %24 = vector.shape_cast %23 : vector<1x8x512xf32> to vector<8x512xf32>
    %25 = vector.extract_strided_slice %3 {offsets = [3, 0], sizes = [1, 512], strides = [1, 1]} : vector<8x512xf32> to vector<1x512xf32>
    %26 = vector.broadcast %25 : vector<1x512xf32> to vector<8x512xf32>
    %27 = arith.mulf %24, %26 : vector<8x512xf32>
    %28 = arith.addf %22, %27 : vector<8x512xf32>
    %c4 = arith.constant 4 : index
    %c0_15 = arith.constant 0 : index
    %c0_16 = arith.constant 0 : index
    %29 = vector.load %arg4[%c4, %c0_15, %c0_16] : memref<8x8x512xf32, #tpu.memory_space<vmem>>, vector<1x8x512xf32>
    %30 = vector.shape_cast %29 : vector<1x8x512xf32> to vector<8x512xf32>
    %31 = vector.extract_strided_slice %3 {offsets = [4, 0], sizes = [1, 512], strides = [1, 1]} : vector<8x512xf32> to vector<1x512xf32>
    %32 = vector.broadcast %31 : vector<1x512xf32> to vector<8x512xf32>
    %33 = arith.mulf %30, %32 : vector<8x512xf32>
    %34 = arith.addf %28, %33 : vector<8x512xf32>
    %c5 = arith.constant 5 : index
    %c0_17 = arith.constant 0 : index
    %c0_18 = arith.constant 0 : index
    %35 = vector.load %arg4[%c5, %c0_17, %c0_18] : memref<8x8x512xf32, #tpu.memory_space<vmem>>, vector<1x8x512xf32>
    %36 = vector.shape_cast %35 : vector<1x8x512xf32> to vector<8x512xf32>
    %37 = vector.extract_strided_slice %3 {offsets = [5, 0], sizes = [1, 512], strides = [1, 1]} : vector<8x512xf32> to vector<1x512xf32>
    %38 = vector.broadcast %37 : vector<1x512xf32> to vector<8x512xf32>
    %39 = arith.mulf %36, %38 : vector<8x512xf32>
    %40 = arith.addf %34, %39 : vector<8x512xf32>
    %c6 = arith.constant 6 : index
    %c0_19 = arith.constant 0 : index
    %c0_20 = arith.constant 0 : index
    %41 = vector.load %arg4[%c6, %c0_19, %c0_20] : memref<8x8x512xf32, #tpu.memory_space<vmem>>, vector<1x8x512xf32>
    %42 = vector.shape_cast %41 : vector<1x8x512xf32> to vector<8x512xf32>
    %43 = vector.extract_strided_slice %3 {offsets = [6, 0], sizes = [1, 512], strides = [1, 1]} : vector<8x512xf32> to vector<1x512xf32>
    %44 = vector.broadcast %43 : vector<1x512xf32> to vector<8x512xf32>
    %45 = arith.mulf %42, %44 : vector<8x512xf32>
    %46 = arith.addf %40, %45 : vector<8x512xf32>
    %c7 = arith.constant 7 : index
    %c0_21 = arith.constant 0 : index
    %c0_22 = arith.constant 0 : index
    %47 = vector.load %arg4[%c7, %c0_21, %c0_22] : memref<8x8x512xf32, #tpu.memory_space<vmem>>, vector<1x8x512xf32>
    %48 = vector.shape_cast %47 : vector<1x8x512xf32> to vector<8x512xf32>
    %49 = vector.extract_strided_slice %3 {offsets = [7, 0], sizes = [1, 512], strides = [1, 1]} : vector<8x512xf32> to vector<1x512xf32>
    %50 = vector.broadcast %49 : vector<1x512xf32> to vector<8x512xf32>
    %51 = arith.mulf %48, %50 : vector<8x512xf32>
    %52 = arith.addf %46, %51 : vector<8x512xf32>
    %c0_23 = arith.constant 0 : index
    %c0_24 = arith.constant 0 : index
    %c0_25 = arith.constant 0 : index
    %53 = vector.load %arg2[%c0_23, %c0_24, %c0_25] : memref<1x8x512xf32, #tpu.memory_space<vmem>>, vector<1x8x512xf32>
    %54 = vector.shape_cast %53 : vector<1x8x512xf32> to vector<8x512xf32>
    %55 = tpu.concatenate %54, %52 in 0 : vector<8x512xf32>, vector<8x512xf32> -> vector<16x512xf32>
    %c73_i32 = arith.constant 73 : i32
    %56 = tpu.dynamic_rotate %55 by %c73_i32 dim 1 : vector<16x512xf32>, i32 -> vector<16x512xf32>
    %57 = arith.truncf %56 : vector<16x512xf32> to vector<16x512xbf16>
    %c0_26 = arith.constant 0 : index
    %c0_27 = arith.constant 0 : index
    %c0_28 = arith.constant 0 : index
    %58 = vector.load %arg6[%c0_26, %c0_27, %c0_28] : memref<27x1x512xbf16, #tpu.memory_space<vmem>>, vector<1x1x512xbf16>
    %59 = vector.shape_cast %58 : vector<1x1x512xbf16> to vector<1x512xbf16>
    %60 = vector.broadcast %59 : vector<1x512xbf16> to vector<16x512xbf16>
    %61 = arith.mulf %57, %60 : vector<16x512xbf16>
    %c0_29 = arith.constant 0 : index
    %c0_30 = arith.constant 0 : index
    %62 = vector.load %arg17[%c0_29, %c0_30] : memref<432x512xbf16, #tpu.memory_space<vmem>>, vector<16x512xbf16>
    tpu.vector_store %arg17[%c0_29, %c0_30], %61 {strides = array<i32>} : memref<432x512xbf16, #tpu.memory_space<vmem>>, vector<16x512xbf16>,
    %c72_i32 = arith.constant 72 : i32
    %63 = tpu.dynamic_rotate %55 by %c72_i32 dim 1 : vector<16x512xf32>, i32 -> vector<16x512xf32>
    %64 = arith.truncf %63 : vector<16x512xf32> to vector<16x512xbf16>
    %c1_31 = arith.constant 1 : index
    %c0_32 = arith.constant 0 : index
    %c0_33 = arith.constant 0 : index
    %65 = vector.load %arg6[%c1_31, %c0_32, %c0_33] : memref<27x1x512xbf16, #tpu.memory_space<vmem>>, vector<1x1x512xbf16>
    %66 = vector.shape_cast %65 : vector<1x1x512xbf16> to vector<1x512xbf16>
    %67 = vector.broadcast %66 : vector<1x512xbf16> to vector<16x512xbf16>
    %68 = arith.mulf %64, %67 : vector<16x512xbf16>
    %c16 = arith.constant 16 : index
    %c0_34 = arith.constant 0 : index
    %69 = vector.load %arg17[%c16, %c0_34] : memref<432x512xbf16, #tpu.memory_space<vmem>>, vector<16x512xbf16>
    tpu.vector_store %arg17[%c16, %c0_34], %68 {strides = array<i32>} : memref<432x512xbf16, #tpu.memory_space<vmem>>, vector<16x512xbf16>,
    %c71_i32 = arith.constant 71 : i32
    %70 = tpu.dynamic_rotate %55 by %c71_i32 dim 1 : vector<16x512xf32>, i32 -> vector<16x512xf32>
    %71 = arith.truncf %70 : vector<16x512xf32> to vector<16x512xbf16>
    %c2_35 = arith.constant 2 : index
    %c0_36 = arith.constant 0 : index
    %c0_37 = arith.constant 0 : index
    %72 = vector.load %arg6[%c2_35, %c0_36, %c0_37] : memref<27x1x512xbf16, #tpu.memory_space<vmem>>, vector<1x1x512xbf16>
    %73 = vector.shape_cast %72 : vector<1x1x512xbf16> to vector<1x512xbf16>
    %74 = vector.broadcast %73 : vector<1x512xbf16> to vector<16x512xbf16>
    %75 = arith.mulf %71, %74 : vector<16x512xbf16>
    %c32 = arith.constant 32 : index
    %c0_38 = arith.constant 0 : index
    %76 = vector.load %arg17[%c32, %c0_38] : memref<432x512xbf16, #tpu.memory_space<vmem>>, vector<16x512xbf16>
    tpu.vector_store %arg17[%c32, %c0_38], %75 {strides = array<i32>} : memref<432x512xbf16, #tpu.memory_space<vmem>>, vector<16x512xbf16>,
    %c65_i32 = arith.constant 65 : i32
    %77 = tpu.dynamic_rotate %55 by %c65_i32 dim 1 : vector<16x512xf32>, i32 -> vector<16x512xf32>
    %78 = arith.truncf %77 : vector<16x512xf32> to vector<16x512xbf16>
    %c3_39 = arith.constant 3 : index
    %c0_40 = arith.constant 0 : index
    %c0_41 = arith.constant 0 : index
    %79 = vector.load %arg6[%c3_39, %c0_40, %c0_41] : memref<27x1x512xbf16, #tpu.memory_space<vmem>>, vector<1x1x512xbf16>
    %80 = vector.shape_cast %79 : vector<1x1x512xbf16> to vector<1x512xbf16>
    %81 = vector.broadcast %80 : vector<1x512xbf16> to vector<16x512xbf16>
    %82 = arith.mulf %78, %81 : vector<16x512xbf16>
    %c48 = arith.constant 48 : index
    %c0_42 = arith.constant 0 : index
    %83 = vector.load %arg17[%c48, %c0_42] : memref<432x512xbf16, #tpu.memory_space<vmem>>, vector<16x512xbf16>
    tpu.vector_store %arg17[%c48, %c0_42], %82 {strides = array<i32>} : memref<432x512xbf16, #tpu.memory_space<vmem>>, vector<16x512xbf16>,
    %c64_i32 = arith.constant 64 : i32
    %84 = tpu.dynamic_rotate %55 by %c64_i32 dim 1 : vector<16x512xf32>, i32 -> vector<16x512xf32>
    %85 = arith.truncf %84 : vector<16x512xf32> to vector<16x512xbf16>
    %c4_43 = arith.constant 4 : index
    %c0_44 = arith.constant 0 : index
    %c0_45 = arith.constant 0 : index
    %86 = vector.load %arg6[%c4_43, %c0_44, %c0_45] : memref<27x1x512xbf16, #tpu.memory_space<vmem>>, vector<1x1x512xbf16>
    %87 = vector.shape_cast %86 : vector<1x1x512xbf16> to vector<1x512xbf16>
    %88 = vector.broadcast %87 : vector<1x512xbf16> to vector<16x512xbf16>
    %89 = arith.mulf %85, %88 : vector<16x512xbf16>
    %c64 = arith.constant 64 : index
    %c0_46 = arith.constant 0 : index
    %90 = vector.load %arg17[%c64, %c0_46] : memref<432x512xbf16, #tpu.memory_space<vmem>>, vector<16x512xbf16>
    tpu.vector_store %arg17[%c64, %c0_46], %89 {strides = array<i32>} : memref<432x512xbf16, #tpu.memory_space<vmem>>, vector<16x512xbf16>,
    %c63_i32 = arith.constant 63 : i32
    %91 = tpu.dynamic_rotate %55 by %c63_i32 dim 1 : vector<16x512xf32>, i32 -> vector<16x512xf32>
    %92 = arith.truncf %91 : vector<16x512xf32> to vector<16x512xbf16>
    %c5_47 = arith.constant 5 : index
    %c0_48 = arith.constant 0 : index
    %c0_49 = arith.constant 0 : index
    %93 = vector.load %arg6[%c5_47, %c0_48, %c0_49] : memref<27x1x512xbf16, #tpu.memory_space<vmem>>, vector<1x1x512xbf16>
    %94 = vector.shape_cast %93 : vector<1x1x512xbf16> to vector<1x512xbf16>
    %95 = vector.broadcast %94 : vector<1x512xbf16> to vector<16x512xbf16>
    %96 = arith.mulf %92, %95 : vector<16x512xbf16>
    %c80 = arith.constant 80 : index
    %c0_50 = arith.constant 0 : index
    %97 = vector.load %arg17[%c80, %c0_50] : memref<432x512xbf16, #tpu.memory_space<vmem>>, vector<16x512xbf16>
    tpu.vector_store %arg17[%c80, %c0_50], %96 {strides = array<i32>} : memref<432x512xbf16, #tpu.memory_space<vmem>>, vector<16x512xbf16>,
    %c57_i32 = arith.constant 57 : i32
    %98 = tpu.dynamic_rotate %55 by %c57_i32 dim 1 : vector<16x512xf32>, i32 -> vector<16x512xf32>
    %99 = arith.truncf %98 : vector<16x512xf32> to vector<16x512xbf16>
    %c6_51 = arith.constant 6 : index
    %c0_52 = arith.constant 0 : index
    %c0_53 = arith.constant 0 : index
    %100 = vector.load %arg6[%c6_51, %c0_52, %c0_53] : memref<27x1x512xbf16, #tpu.memory_space<vmem>>, vector<1x1x512xbf16>
    %101 = vector.shape_cast %100 : vector<1x1x512xbf16> to vector<1x512xbf16>
    %102 = vector.broadcast %101 : vector<1x512xbf16> to vector<16x512xbf16>
    %103 = arith.mulf %99, %102 : vector<16x512xbf16>
    %c96 = arith.constant 96 : index
    %c0_54 = arith.constant 0 : index
    %104 = vector.load %arg17[%c96, %c0_54] : memref<432x512xbf16, #tpu.memory_space<vmem>>, vector<16x512xbf16>
    tpu.vector_store %arg17[%c96, %c0_54], %103 {strides = array<i32>} : memref<432x512xbf16, #tpu.memory_space<vmem>>, vector<16x512xbf16>,
    %c56_i32 = arith.constant 56 : i32
    %105 = tpu.dynamic_rotate %55 by %c56_i32 dim 1 : vector<16x512xf32>, i32 -> vector<16x512xf32>
    %106 = arith.truncf %105 : vector<16x512xf32> to vector<16x512xbf16>
    %c7_55 = arith.constant 7 : index
    %c0_56 = arith.constant 0 : index
    %c0_57 = arith.constant 0 : index
    %107 = vector.load %arg6[%c7_55, %c0_56, %c0_57] : memref<27x1x512xbf16, #tpu.memory_space<vmem>>, vector<1x1x512xbf16>
    %108 = vector.shape_cast %107 : vector<1x1x512xbf16> to vector<1x512xbf16>
    %109 = vector.broadcast %108 : vector<1x512xbf16> to vector<16x512xbf16>
    %110 = arith.mulf %106, %109 : vector<16x512xbf16>
    %c112 = arith.constant 112 : index
    %c0_58 = arith.constant 0 : index
    %111 = vector.load %arg17[%c112, %c0_58] : memref<432x512xbf16, #tpu.memory_space<vmem>>, vector<16x512xbf16>
    tpu.vector_store %arg17[%c112, %c0_58], %110 {strides = array<i32>} : memref<432x512xbf16, #tpu.memory_space<vmem>>, vector<16x512xbf16>,
    %c55_i32 = arith.constant 55 : i32
    %112 = tpu.dynamic_rotate %55 by %c55_i32 dim 1 : vector<16x512xf32>, i32 -> vector<16x512xf32>
    %113 = arith.truncf %112 : vector<16x512xf32> to vector<16x512xbf16>
    %c8 = arith.constant 8 : index
    %c0_59 = arith.constant 0 : index
    %c0_60 = arith.constant 0 : index
    %114 = vector.load %arg6[%c8, %c0_59, %c0_60] : memref<27x1x512xbf16, #tpu.memory_space<vmem>>, vector<1x1x512xbf16>
    %115 = vector.shape_cast %114 : vector<1x1x512xbf16> to vector<1x512xbf16>
    %116 = vector.broadcast %115 : vector<1x512xbf16> to vector<16x512xbf16>
    %117 = arith.mulf %113, %116 : vector<16x512xbf16>
    %c128 = arith.constant 128 : index
    %c0_61 = arith.constant 0 : index
    %118 = vector.load %arg17[%c128, %c0_61] : memref<432x512xbf16, #tpu.memory_space<vmem>>, vector<16x512xbf16>
    tpu.vector_store %arg17[%c128, %c0_61], %117 {strides = array<i32>} : memref<432x512xbf16, #tpu.memory_space<vmem>>, vector<16x512xbf16>,
    %c9_i32 = arith.constant 9 : i32
    %119 = tpu.dynamic_rotate %55 by %c9_i32 dim 1 : vector<16x512xf32>, i32 -> vector<16x512xf32>
    %120 = arith.truncf %119 : vector<16x512xf32> to vector<16x512xbf16>
    %c9 = arith.constant 9 : index
    %c0_62 = arith.constant 0 : index
    %c0_63 = arith.constant 0 : index
    %121 = vector.load %arg6[%c9, %c0_62, %c0_63] : memref<27x1x512xbf16, #tpu.memory_space<vmem>>, vector<1x1x512xbf16>
    %122 = vector.shape_cast %121 : vector<1x1x512xbf16> to vector<1x512xbf16>
    %123 = vector.broadcast %122 : vector<1x512xbf16> to vector<16x512xbf16>
    %124 = arith.mulf %120, %123 : vector<16x512xbf16>
    %c144 = arith.constant 144 : index
    %c0_64 = arith.constant 0 : index
    %125 = vector.load %arg17[%c144, %c0_64] : memref<432x512xbf16, #tpu.memory_space<vmem>>, vector<16x512xbf16>
    tpu.vector_store %arg17[%c144, %c0_64], %124 {strides = array<i32>} : memref<432x512xbf16, #tpu.memory_space<vmem>>, vector<16x512xbf16>,
    %c8_i32 = arith.constant 8 : i32
    %126 = tpu.dynamic_rotate %55 by %c8_i32 dim 1 : vector<16x512xf32>, i32 -> vector<16x512xf32>
    %127 = arith.truncf %126 : vector<16x512xf32> to vector<16x512xbf16>
    %c10 = arith.constant 10 : index
    %c0_65 = arith.constant 0 : index
    %c0_66 = arith.constant 0 : index
    %128 = vector.load %arg6[%c10, %c0_65, %c0_66] : memref<27x1x512xbf16, #tpu.memory_space<vmem>>, vector<1x1x512xbf16>
    %129 = vector.shape_cast %128 : vector<1x1x512xbf16> to vector<1x512xbf16>
    %130 = vector.broadcast %129 : vector<1x512xbf16> to vector<16x512xbf16>
    %131 = arith.mulf %127, %130 : vector<16x512xbf16>
    %c160 = arith.constant 160 : index
    %c0_67 = arith.constant 0 : index
    %132 = vector.load %arg17[%c160, %c0_67] : memref<432x512xbf16, #tpu.memory_space<vmem>>, vector<16x512xbf16>
    tpu.vector_store %arg17[%c160, %c0_67], %131 {strides = array<i32>} : memref<432x512xbf16, #tpu.memory_space<vmem>>, vector<16x512xbf16>,
    %c7_i32 = arith.constant 7 : i32
    %133 = tpu.dynamic_rotate %55 by %c7_i32 dim 1 : vector<16x512xf32>, i32 -> vector<16x512xf32>
    %134 = arith.truncf %133 : vector<16x512xf32> to vector<16x512xbf16>
    %c11 = arith.constant 11 : index
    %c0_68 = arith.constant 0 : index
    %c0_69 = arith.constant 0 : index
    %135 = vector.load %arg6[%c11, %c0_68, %c0_69] : memref<27x1x512xbf16, #tpu.memory_space<vmem>>, vector<1x1x512xbf16>
    %136 = vector.shape_cast %135 : vector<1x1x512xbf16> to vector<1x512xbf16>
    %137 = vector.broadcast %136 : vector<1x512xbf16> to vector<16x512xbf16>
    %138 = arith.mulf %134, %137 : vector<16x512xbf16>
    %c176 = arith.constant 176 : index
    %c0_70 = arith.constant 0 : index
    %139 = vector.load %arg17[%c176, %c0_70] : memref<432x512xbf16, #tpu.memory_space<vmem>>, vector<16x512xbf16>
    tpu.vector_store %arg17[%c176, %c0_70], %138 {strides = array<i32>} : memref<432x512xbf16, #tpu.memory_space<vmem>>, vector<16x512xbf16>,
    %c1_i32 = arith.constant 1 : i32
    %140 = tpu.dynamic_rotate %55 by %c1_i32 dim 1 : vector<16x512xf32>, i32 -> vector<16x512xf32>
    %141 = arith.truncf %140 : vector<16x512xf32> to vector<16x512xbf16>
    %c12 = arith.constant 12 : index
    %c0_71 = arith.constant 0 : index
    %c0_72 = arith.constant 0 : index
    %142 = vector.load %arg6[%c12, %c0_71, %c0_72] : memref<27x1x512xbf16, #tpu.memory_space<vmem>>, vector<1x1x512xbf16>
    %143 = vector.shape_cast %142 : vector<1x1x512xbf16> to vector<1x512xbf16>
    %144 = vector.broadcast %143 : vector<1x512xbf16> to vector<16x512xbf16>
    %145 = arith.mulf %141, %144 : vector<16x512xbf16>
    %c192 = arith.constant 192 : index
    %c0_73 = arith.constant 0 : index
    %146 = vector.load %arg17[%c192, %c0_73] : memref<432x512xbf16, #tpu.memory_space<vmem>>, vector<16x512xbf16>
    tpu.vector_store %arg17[%c192, %c0_73], %145 {strides = array<i32>} : memref<432x512xbf16, #tpu.memory_space<vmem>>, vector<16x512xbf16>,
    %147 = arith.truncf %55 : vector<16x512xf32> to vector<16x512xbf16>
    %c208 = arith.constant 208 : index
    %c0_74 = arith.constant 0 : index
    %148 = vector.load %arg17[%c208, %c0_74] : memref<432x512xbf16, #tpu.memory_space<vmem>>, vector<16x512xbf16>
    tpu.vector_store %arg17[%c208, %c0_74], %147 {strides = array<i32>} : memref<432x512xbf16, #tpu.memory_space<vmem>>, vector<16x512xbf16>,
    %c511_i32 = arith.constant 511 : i32
    %149 = tpu.dynamic_rotate %55 by %c511_i32 dim 1 : vector<16x512xf32>, i32 -> vector<16x512xf32>
    %150 = arith.truncf %149 : vector<16x512xf32> to vector<16x512xbf16>
    %c14 = arith.constant 14 : index
    %c0_75 = arith.constant 0 : index
    %c0_76 = arith.constant 0 : index
    %151 = vector.load %arg6[%c14, %c0_75, %c0_76] : memref<27x1x512xbf16, #tpu.memory_space<vmem>>, vector<1x1x512xbf16>
    %152 = vector.shape_cast %151 : vector<1x1x512xbf16> to vector<1x512xbf16>
    %153 = vector.broadcast %152 : vector<1x512xbf16> to vector<16x512xbf16>
    %154 = arith.mulf %150, %153 : vector<16x512xbf16>
    %c224 = arith.constant 224 : index
    %c0_77 = arith.constant 0 : index
    %155 = vector.load %arg17[%c224, %c0_77] : memref<432x512xbf16, #tpu.memory_space<vmem>>, vector<16x512xbf16>
    tpu.vector_store %arg17[%c224, %c0_77], %154 {strides = array<i32>} : memref<432x512xbf16, #tpu.memory_space<vmem>>, vector<16x512xbf16>,
    %c505_i32 = arith.constant 505 : i32
    %156 = tpu.dynamic_rotate %55 by %c505_i32 dim 1 : vector<16x512xf32>, i32 -> vector<16x512xf32>
    %157 = arith.truncf %156 : vector<16x512xf32> to vector<16x512xbf16>
    %c15 = arith.constant 15 : index
    %c0_78 = arith.constant 0 : index
    %c0_79 = arith.constant 0 : index
    %158 = vector.load %arg6[%c15, %c0_78, %c0_79] : memref<27x1x512xbf16, #tpu.memory_space<vmem>>, vector<1x1x512xbf16>
    %159 = vector.shape_cast %158 : vector<1x1x512xbf16> to vector<1x512xbf16>
    %160 = vector.broadcast %159 : vector<1x512xbf16> to vector<16x512xbf16>
    %161 = arith.mulf %157, %160 : vector<16x512xbf16>
    %c240 = arith.constant 240 : index
    %c0_80 = arith.constant 0 : index
    %162 = vector.load %arg17[%c240, %c0_80] : memref<432x512xbf16, #tpu.memory_space<vmem>>, vector<16x512xbf16>
    tpu.vector_store %arg17[%c240, %c0_80], %161 {strides = array<i32>} : memref<432x512xbf16, #tpu.memory_space<vmem>>, vector<16x512xbf16>,
    %c504_i32 = arith.constant 504 : i32
    %163 = tpu.dynamic_rotate %55 by %c504_i32 dim 1 : vector<16x512xf32>, i32 -> vector<16x512xf32>
    %164 = arith.truncf %163 : vector<16x512xf32> to vector<16x512xbf16>
    %c16_81 = arith.constant 16 : index
    %c0_82 = arith.constant 0 : index
    %c0_83 = arith.constant 0 : index
    %165 = vector.load %arg6[%c16_81, %c0_82, %c0_83] : memref<27x1x512xbf16, #tpu.memory_space<vmem>>, vector<1x1x512xbf16>
    %166 = vector.shape_cast %165 : vector<1x1x512xbf16> to vector<1x512xbf16>
    %167 = vector.broadcast %166 : vector<1x512xbf16> to vector<16x512xbf16>
    %168 = arith.mulf %164, %167 : vector<16x512xbf16>
    %c256 = arith.constant 256 : index
    %c0_84 = arith.constant 0 : index
    %169 = vector.load %arg17[%c256, %c0_84] : memref<432x512xbf16, #tpu.memory_space<vmem>>, vector<16x512xbf16>
    tpu.vector_store %arg17[%c256, %c0_84], %168 {strides = array<i32>} : memref<432x512xbf16, #tpu.memory_space<vmem>>, vector<16x512xbf16>,
    %c503_i32 = arith.constant 503 : i32
    %170 = tpu.dynamic_rotate %55 by %c503_i32 dim 1 : vector<16x512xf32>, i32 -> vector<16x512xf32>
    %171 = arith.truncf %170 : vector<16x512xf32> to vector<16x512xbf16>
    %c17 = arith.constant 17 : index
    %c0_85 = arith.constant 0 : index
    %c0_86 = arith.constant 0 : index
    %172 = vector.load %arg6[%c17, %c0_85, %c0_86] : memref<27x1x512xbf16, #tpu.memory_space<vmem>>, vector<1x1x512xbf16>
    %173 = vector.shape_cast %172 : vector<1x1x512xbf16> to vector<1x512xbf16>
    %174 = vector.broadcast %173 : vector<1x512xbf16> to vector<16x512xbf16>
    %175 = arith.mulf %171, %174 : vector<16x512xbf16>
    %c272 = arith.constant 272 : index
    %c0_87 = arith.constant 0 : index
    %176 = vector.load %arg17[%c272, %c0_87] : memref<432x512xbf16, #tpu.memory_space<vmem>>, vector<16x512xbf16>
    tpu.vector_store %arg17[%c272, %c0_87], %175 {strides = array<i32>} : memref<432x512xbf16, #tpu.memory_space<vmem>>, vector<16x512xbf16>,
    %c457_i32 = arith.constant 457 : i32
    %177 = tpu.dynamic_rotate %55 by %c457_i32 dim 1 : vector<16x512xf32>, i32 -> vector<16x512xf32>
    %178 = arith.truncf %177 : vector<16x512xf32> to vector<16x512xbf16>
    %c18 = arith.constant 18 : index
    %c0_88 = arith.constant 0 : index
    %c0_89 = arith.constant 0 : index
    %179 = vector.load %arg6[%c18, %c0_88, %c0_89] : memref<27x1x512xbf16, #tpu.memory_space<vmem>>, vector<1x1x512xbf16>
    %180 = vector.shape_cast %179 : vector<1x1x512xbf16> to vector<1x512xbf16>
    %181 = vector.broadcast %180 : vector<1x512xbf16> to vector<16x512xbf16>
    %182 = arith.mulf %178, %181 : vector<16x512xbf16>
    %c288 = arith.constant 288 : index
    %c0_90 = arith.constant 0 : index
    %183 = vector.load %arg17[%c288, %c0_90] : memref<432x512xbf16, #tpu.memory_space<vmem>>, vector<16x512xbf16>
    tpu.vector_store %arg17[%c288, %c0_90], %182 {strides = array<i32>} : memref<432x512xbf16, #tpu.memory_space<vmem>>, vector<16x512xbf16>,
    %c456_i32 = arith.constant 456 : i32
    %184 = tpu.dynamic_rotate %55 by %c456_i32 dim 1 : vector<16x512xf32>, i32 -> vector<16x512xf32>
    %185 = arith.truncf %184 : vector<16x512xf32> to vector<16x512xbf16>
    %c19 = arith.constant 19 : index
    %c0_91 = arith.constant 0 : index
    %c0_92 = arith.constant 0 : index
    %186 = vector.load %arg6[%c19, %c0_91, %c0_92] : memref<27x1x512xbf16, #tpu.memory_space<vmem>>, vector<1x1x512xbf16>
    %187 = vector.shape_cast %186 : vector<1x1x512xbf16> to vector<1x512xbf16>
    %188 = vector.broadcast %187 : vector<1x512xbf16> to vector<16x512xbf16>
    %189 = arith.mulf %185, %188 : vector<16x512xbf16>
    %c304 = arith.constant 304 : index
    %c0_93 = arith.constant 0 : index
    %190 = vector.load %arg17[%c304, %c0_93] : memref<432x512xbf16, #tpu.memory_space<vmem>>, vector<16x512xbf16>
    tpu.vector_store %arg17[%c304, %c0_93], %189 {strides = array<i32>} : memref<432x512xbf16, #tpu.memory_space<vmem>>, vector<16x512xbf16>,
    %c455_i32 = arith.constant 455 : i32
    %191 = tpu.dynamic_rotate %55 by %c455_i32 dim 1 : vector<16x512xf32>, i32 -> vector<16x512xf32>
    %192 = arith.truncf %191 : vector<16x512xf32> to vector<16x512xbf16>
    %c20 = arith.constant 20 : index
    %c0_94 = arith.constant 0 : index
    %c0_95 = arith.constant 0 : index
    %193 = vector.load %arg6[%c20, %c0_94, %c0_95] : memref<27x1x512xbf16, #tpu.memory_space<vmem>>, vector<1x1x512xbf16>
    %194 = vector.shape_cast %193 : vector<1x1x512xbf16> to vector<1x512xbf16>
    %195 = vector.broadcast %194 : vector<1x512xbf16> to vector<16x512xbf16>
    %196 = arith.mulf %192, %195 : vector<16x512xbf16>
    %c320 = arith.constant 320 : index
    %c0_96 = arith.constant 0 : index
    %197 = vector.load %arg17[%c320, %c0_96] : memref<432x512xbf16, #tpu.memory_space<vmem>>, vector<16x512xbf16>
    tpu.vector_store %arg17[%c320, %c0_96], %196 {strides = array<i32>} : memref<432x512xbf16, #tpu.memory_space<vmem>>, vector<16x512xbf16>,
    %c449_i32 = arith.constant 449 : i32
    %198 = tpu.dynamic_rotate %55 by %c449_i32 dim 1 : vector<16x512xf32>, i32 -> vector<16x512xf32>
    %199 = arith.truncf %198 : vector<16x512xf32> to vector<16x512xbf16>
    %c21 = arith.constant 21 : index
    %c0_97 = arith.constant 0 : index
    %c0_98 = arith.constant 0 : index
    %200 = vector.load %arg6[%c21, %c0_97, %c0_98] : memref<27x1x512xbf16, #tpu.memory_space<vmem>>, vector<1x1x512xbf16>
    %201 = vector.shape_cast %200 : vector<1x1x512xbf16> to vector<1x512xbf16>
    %202 = vector.broadcast %201 : vector<1x512xbf16> to vector<16x512xbf16>
    %203 = arith.mulf %199, %202 : vector<16x512xbf16>
    %c336 = arith.constant 336 : index
    %c0_99 = arith.constant 0 : index
    %204 = vector.load %arg17[%c336, %c0_99] : memref<432x512xbf16, #tpu.memory_space<vmem>>, vector<16x512xbf16>
    tpu.vector_store %arg17[%c336, %c0_99], %203 {strides = array<i32>} : memref<432x512xbf16, #tpu.memory_space<vmem>>, vector<16x512xbf16>,
    %c448_i32 = arith.constant 448 : i32
    %205 = tpu.dynamic_rotate %55 by %c448_i32 dim 1 : vector<16x512xf32>, i32 -> vector<16x512xf32>
    %206 = arith.truncf %205 : vector<16x512xf32> to vector<16x512xbf16>
    %c22 = arith.constant 22 : index
    %c0_100 = arith.constant 0 : index
    %c0_101 = arith.constant 0 : index
    %207 = vector.load %arg6[%c22, %c0_100, %c0_101] : memref<27x1x512xbf16, #tpu.memory_space<vmem>>, vector<1x1x512xbf16>
    %208 = vector.shape_cast %207 : vector<1x1x512xbf16> to vector<1x512xbf16>
    %209 = vector.broadcast %208 : vector<1x512xbf16> to vector<16x512xbf16>
    %210 = arith.mulf %206, %209 : vector<16x512xbf16>
    %c352 = arith.constant 352 : index
    %c0_102 = arith.constant 0 : index
    %211 = vector.load %arg17[%c352, %c0_102] : memref<432x512xbf16, #tpu.memory_space<vmem>>, vector<16x512xbf16>
    tpu.vector_store %arg17[%c352, %c0_102], %210 {strides = array<i32>} : memref<432x512xbf16, #tpu.memory_space<vmem>>, vector<16x512xbf16>,
    %c447_i32 = arith.constant 447 : i32
    %212 = tpu.dynamic_rotate %55 by %c447_i32 dim 1 : vector<16x512xf32>, i32 -> vector<16x512xf32>
    %213 = arith.truncf %212 : vector<16x512xf32> to vector<16x512xbf16>
    %c23 = arith.constant 23 : index
    %c0_103 = arith.constant 0 : index
    %c0_104 = arith.constant 0 : index
    %214 = vector.load %arg6[%c23, %c0_103, %c0_104] : memref<27x1x512xbf16, #tpu.memory_space<vmem>>, vector<1x1x512xbf16>
    %215 = vector.shape_cast %214 : vector<1x1x512xbf16> to vector<1x512xbf16>
    %216 = vector.broadcast %215 : vector<1x512xbf16> to vector<16x512xbf16>
    %217 = arith.mulf %213, %216 : vector<16x512xbf16>
    %c368 = arith.constant 368 : index
    %c0_105 = arith.constant 0 : index
    %218 = vector.load %arg17[%c368, %c0_105] : memref<432x512xbf16, #tpu.memory_space<vmem>>, vector<16x512xbf16>
    tpu.vector_store %arg17[%c368, %c0_105], %217 {strides = array<i32>} : memref<432x512xbf16, #tpu.memory_space<vmem>>, vector<16x512xbf16>,
    %c441_i32 = arith.constant 441 : i32
    %219 = tpu.dynamic_rotate %55 by %c441_i32 dim 1 : vector<16x512xf32>, i32 -> vector<16x512xf32>
    %220 = arith.truncf %219 : vector<16x512xf32> to vector<16x512xbf16>
    %c24 = arith.constant 24 : index
    %c0_106 = arith.constant 0 : index
    %c0_107 = arith.constant 0 : index
    %221 = vector.load %arg6[%c24, %c0_106, %c0_107] : memref<27x1x512xbf16, #tpu.memory_space<vmem>>, vector<1x1x512xbf16>
    %222 = vector.shape_cast %221 : vector<1x1x512xbf16> to vector<1x512xbf16>
    %223 = vector.broadcast %222 : vector<1x512xbf16> to vector<16x512xbf16>
    %224 = arith.mulf %220, %223 : vector<16x512xbf16>
    %c384 = arith.constant 384 : index
    %c0_108 = arith.constant 0 : index
    %225 = vector.load %arg17[%c384, %c0_108] : memref<432x512xbf16, #tpu.memory_space<vmem>>, vector<16x512xbf16>
    tpu.vector_store %arg17[%c384, %c0_108], %224 {strides = array<i32>} : memref<432x512xbf16, #tpu.memory_space<vmem>>, vector<16x512xbf16>,
    %c440_i32 = arith.constant 440 : i32
    %226 = tpu.dynamic_rotate %55 by %c440_i32 dim 1 : vector<16x512xf32>, i32 -> vector<16x512xf32>
    %227 = arith.truncf %226 : vector<16x512xf32> to vector<16x512xbf16>
    %c25 = arith.constant 25 : index
    %c0_109 = arith.constant 0 : index
    %c0_110 = arith.constant 0 : index
    %228 = vector.load %arg6[%c25, %c0_109, %c0_110] : memref<27x1x512xbf16, #tpu.memory_space<vmem>>, vector<1x1x512xbf16>
    %229 = vector.shape_cast %228 : vector<1x1x512xbf16> to vector<1x512xbf16>
    %230 = vector.broadcast %229 : vector<1x512xbf16> to vector<16x512xbf16>
    %231 = arith.mulf %227, %230 : vector<16x512xbf16>
    %c400 = arith.constant 400 : index
    %c0_111 = arith.constant 0 : index
    %232 = vector.load %arg17[%c400, %c0_111] : memref<432x512xbf16, #tpu.memory_space<vmem>>, vector<16x512xbf16>
    tpu.vector_store %arg17[%c400, %c0_111], %231 {strides = array<i32>} : memref<432x512xbf16, #tpu.memory_space<vmem>>, vector<16x512xbf16>,
    %c439_i32 = arith.constant 439 : i32
    %233 = tpu.dynamic_rotate %55 by %c439_i32 dim 1 : vector<16x512xf32>, i32 -> vector<16x512xf32>
    %234 = arith.truncf %233 : vector<16x512xf32> to vector<16x512xbf16>
    %c26 = arith.constant 26 : index
    %c0_112 = arith.constant 0 : index
    %c0_113 = arith.constant 0 : index
    %235 = vector.load %arg6[%c26, %c0_112, %c0_113] : memref<27x1x512xbf16, #tpu.memory_space<vmem>>, vector<1x1x512xbf16>
    %236 = vector.shape_cast %235 : vector<1x1x512xbf16> to vector<1x512xbf16>
    %237 = vector.broadcast %236 : vector<1x512xbf16> to vector<16x512xbf16>
    %238 = arith.mulf %234, %237 : vector<16x512xbf16>
    %c416 = arith.constant 416 : index
    %c0_114 = arith.constant 0 : index
    %239 = vector.load %arg17[%c416, %c0_114] : memref<432x512xbf16, #tpu.memory_space<vmem>>, vector<16x512xbf16>
    tpu.vector_store %arg17[%c416, %c0_114], %238 {strides = array<i32>} : memref<432x512xbf16, #tpu.memory_space<vmem>>, vector<16x512xbf16>,
    %c0_115 = arith.constant 0 : index
    %c0_116 = arith.constant 0 : index
    %240 = vector.load %arg7[%c0_115, %c0_116] : memref<16x432xbf16, #tpu.memory_space<vmem>>, vector<16x432xbf16>
    %c0_117 = arith.constant 0 : index
    %c0_118 = arith.constant 0 : index
    %241 = vector.load %arg17[%c0_117, %c0_118] : memref<432x512xbf16, #tpu.memory_space<vmem>>, vector<432x512xbf16>
    %cst_119 = arith.constant dense<0.000000e+00> : vector<16x512xf32>
    %242 = tpu.matmul %240, %241, %cst_119 {dimension_numbers = #tpu.dot_dimension_numbers<[1], [0], [0], [1], [0, 0, 1, 1], [], []>} : vector<16x432xbf16>, vector<432x512xbf16>, vector<16x512xf32> -> vector<16x512xf32>
    %c0_120 = arith.constant 0 : index
    %c0_121 = arith.constant 0 : index
    %243 = vector.load %arg8[%c0_120, %c0_121] : memref<16x1xf32, #tpu.memory_space<vmem>>, vector<16x1xf32>
    %244 = vector.broadcast %243 : vector<16x1xf32> to vector<16x512xf32>
    %245 = arith.addf %242, %244 : vector<16x512xf32>
    %cst_122 = arith.constant dense<0.000000e+00> : vector<16xf32>
    %246 = vector.multi_reduction <add>, %245, %cst_122 [1] : vector<16x512xf32> to vector<16xf32>
    %247 = vector.shape_cast %246 : vector<16xf32> to vector<16x1xf32>
    %c0_123 = arith.constant 0 : index
    %c0_124 = arith.constant 0 : index
    %248 = vector.load %arg15[%c0_123, %c0_124] : memref<16x16xf32, #tpu.memory_space<vmem>>, vector<16x16xf32>
    %cst_125 = arith.constant dense<0.000000e+00> : vector<16x1xf32>
    %249 = tpu.matmul %248, %247, %cst_125 {dimension_numbers = #tpu.dot_dimension_numbers<[1], [0], [0], [1], [0, 0, 1, 1], [], []>} : vector<16x16xf32>, vector<16x1xf32>, vector<16x1xf32> -> vector<16x1xf32>
    %cst_126 = arith.constant 9.765625E-4 : f32
    %250 = vector.broadcast %cst_126 : f32 to vector<16x1xf32>
    %251 = arith.mulf %249, %250 : vector<16x1xf32>
    %252 = vector.broadcast %251 : vector<16x1xf32> to vector<16x512xf32>
    %253 = arith.subf %245, %252 : vector<16x512xf32>
    %254 = arith.mulf %253, %253 : vector<16x512xf32>
    %cst_127 = arith.constant dense<0.000000e+00> : vector<16xf32>
    %255 = vector.multi_reduction <add>, %254, %cst_127 [1] : vector<16x512xf32> to vector<16xf32>
    %256 = vector.shape_cast %255 : vector<16xf32> to vector<16x1xf32>
    %c0_128 = arith.constant 0 : index
    %c0_129 = arith.constant 0 : index
    %257 = vector.load %arg15[%c0_128, %c0_129] : memref<16x16xf32, #tpu.memory_space<vmem>>, vector<16x16xf32>
    %cst_130 = arith.constant dense<0.000000e+00> : vector<16x1xf32>
    %258 = tpu.matmul %257, %256, %cst_130 {dimension_numbers = #tpu.dot_dimension_numbers<[1], [0], [0], [1], [0, 0, 1, 1], [], []>} : vector<16x16xf32>, vector<16x1xf32>, vector<16x1xf32> -> vector<16x1xf32>
    %cst_131 = arith.constant 9.765625E-4 : f32
    %259 = vector.broadcast %cst_131 : f32 to vector<16x1xf32>
    %260 = arith.mulf %258, %259 : vector<16x1xf32>
    %cst_132 = arith.constant 9.99999974E-6 : f32
    %261 = vector.broadcast %cst_132 : f32 to vector<16x1xf32>
    %262 = arith.addf %260, %261 : vector<16x1xf32>
    %263 = math.rsqrt %262 : vector<16x1xf32>
    %c0_133 = arith.constant 0 : index
    %c0_134 = arith.constant 0 : index
    %264 = vector.load %arg9[%c0_133, %c0_134] : memref<16x1xf32, #tpu.memory_space<vmem>>, vector<16x1xf32>
    %265 = arith.mulf %263, %264 : vector<16x1xf32>
    %266 = vector.broadcast %265 : vector<16x1xf32> to vector<16x512xf32>
    %267 = arith.mulf %253, %266 : vector<16x512xf32>
    %c0_135 = arith.constant 0 : index
    %c0_136 = arith.constant 0 : index
    %268 = vector.load %arg10[%c0_135, %c0_136] : memref<16x1xf32, #tpu.memory_space<vmem>>, vector<16x1xf32>
    %269 = vector.broadcast %268 : vector<16x1xf32> to vector<16x512xf32>
    %270 = arith.addf %267, %269 : vector<16x512xf32>
    %cst_137 = arith.constant 0.000000e+00 : f32
    %271 = vector.broadcast %cst_137 : f32 to vector<16x512xf32>
    %272 = arith.maximumf %270, %271 : vector<16x512xf32>
    %c73_i32_138 = arith.constant 73 : i32
    %273 = tpu.dynamic_rotate %272 by %c73_i32_138 dim 1 : vector<16x512xf32>, i32 -> vector<16x512xf32>
    %274 = arith.truncf %273 : vector<16x512xf32> to vector<16x512xbf16>
    %c0_139 = arith.constant 0 : index
    %c0_140 = arith.constant 0 : index
    %c0_141 = arith.constant 0 : index
    %275 = vector.load %arg6[%c0_139, %c0_140, %c0_141] : memref<27x1x512xbf16, #tpu.memory_space<vmem>>, vector<1x1x512xbf16>
    %276 = vector.shape_cast %275 : vector<1x1x512xbf16> to vector<1x512xbf16>
    %277 = vector.broadcast %276 : vector<1x512xbf16> to vector<16x512xbf16>
    %278 = arith.mulf %274, %277 : vector<16x512xbf16>
    %c0_142 = arith.constant 0 : index
    %c0_143 = arith.constant 0 : index
    %279 = vector.load %arg17[%c0_142, %c0_143] : memref<432x512xbf16, #tpu.memory_space<vmem>>, vector<16x512xbf16>
    tpu.vector_store %arg17[%c0_142, %c0_143], %278 {strides = array<i32>} : memref<432x512xbf16, #tpu.memory_space<vmem>>, vector<16x512xbf16>,
    %c72_i32_144 = arith.constant 72 : i32
    %280 = tpu.dynamic_rotate %272 by %c72_i32_144 dim 1 : vector<16x512xf32>, i32 -> vector<16x512xf32>
    %281 = arith.truncf %280 : vector<16x512xf32> to vector<16x512xbf16>
    %c1_145 = arith.constant 1 : index
    %c0_146 = arith.constant 0 : index
    %c0_147 = arith.constant 0 : index
    %282 = vector.load %arg6[%c1_145, %c0_146, %c0_147] : memref<27x1x512xbf16, #tpu.memory_space<vmem>>, vector<1x1x512xbf16>
    %283 = vector.shape_cast %282 : vector<1x1x512xbf16> to vector<1x512xbf16>
    %284 = vector.broadcast %283 : vector<1x512xbf16> to vector<16x512xbf16>
    %285 = arith.mulf %281, %284 : vector<16x512xbf16>
    %c16_148 = arith.constant 16 : index
    %c0_149 = arith.constant 0 : index
    %286 = vector.load %arg17[%c16_148, %c0_149] : memref<432x512xbf16, #tpu.memory_space<vmem>>, vector<16x512xbf16>
    tpu.vector_store %arg17[%c16_148, %c0_149], %285 {strides = array<i32>} : memref<432x512xbf16, #tpu.memory_space<vmem>>, vector<16x512xbf16>,
    %c71_i32_150 = arith.constant 71 : i32
    %287 = tpu.dynamic_rotate %272 by %c71_i32_150 dim 1 : vector<16x512xf32>, i32 -> vector<16x512xf32>
    %288 = arith.truncf %287 : vector<16x512xf32> to vector<16x512xbf16>
    %c2_151 = arith.constant 2 : index
    %c0_152 = arith.constant 0 : index
    %c0_153 = arith.constant 0 : index
    %289 = vector.load %arg6[%c2_151, %c0_152, %c0_153] : memref<27x1x512xbf16, #tpu.memory_space<vmem>>, vector<1x1x512xbf16>
    %290 = vector.shape_cast %289 : vector<1x1x512xbf16> to vector<1x512xbf16>
    %291 = vector.broadcast %290 : vector<1x512xbf16> to vector<16x512xbf16>
    %292 = arith.mulf %288, %291 : vector<16x512xbf16>
    %c32_154 = arith.constant 32 : index
    %c0_155 = arith.constant 0 : index
    %293 = vector.load %arg17[%c32_154, %c0_155] : memref<432x512xbf16, #tpu.memory_space<vmem>>, vector<16x512xbf16>
    tpu.vector_store %arg17[%c32_154, %c0_155], %292 {strides = array<i32>} : memref<432x512xbf16, #tpu.memory_space<vmem>>, vector<16x512xbf16>,
    %c65_i32_156 = arith.constant 65 : i32
    %294 = tpu.dynamic_rotate %272 by %c65_i32_156 dim 1 : vector<16x512xf32>, i32 -> vector<16x512xf32>
    %295 = arith.truncf %294 : vector<16x512xf32> to vector<16x512xbf16>
    %c3_157 = arith.constant 3 : index
    %c0_158 = arith.constant 0 : index
    %c0_159 = arith.constant 0 : index
    %296 = vector.load %arg6[%c3_157, %c0_158, %c0_159] : memref<27x1x512xbf16, #tpu.memory_space<vmem>>, vector<1x1x512xbf16>
    %297 = vector.shape_cast %296 : vector<1x1x512xbf16> to vector<1x512xbf16>
    %298 = vector.broadcast %297 : vector<1x512xbf16> to vector<16x512xbf16>
    %299 = arith.mulf %295, %298 : vector<16x512xbf16>
    %c48_160 = arith.constant 48 : index
    %c0_161 = arith.constant 0 : index
    %300 = vector.load %arg17[%c48_160, %c0_161] : memref<432x512xbf16, #tpu.memory_space<vmem>>, vector<16x512xbf16>
    tpu.vector_store %arg17[%c48_160, %c0_161], %299 {strides = array<i32>} : memref<432x512xbf16, #tpu.memory_space<vmem>>, vector<16x512xbf16>,
    %c64_i32_162 = arith.constant 64 : i32
    %301 = tpu.dynamic_rotate %272 by %c64_i32_162 dim 1 : vector<16x512xf32>, i32 -> vector<16x512xf32>
    %302 = arith.truncf %301 : vector<16x512xf32> to vector<16x512xbf16>
    %c4_163 = arith.constant 4 : index
    %c0_164 = arith.constant 0 : index
    %c0_165 = arith.constant 0 : index
    %303 = vector.load %arg6[%c4_163, %c0_164, %c0_165] : memref<27x1x512xbf16, #tpu.memory_space<vmem>>, vector<1x1x512xbf16>
    %304 = vector.shape_cast %303 : vector<1x1x512xbf16> to vector<1x512xbf16>
    %305 = vector.broadcast %304 : vector<1x512xbf16> to vector<16x512xbf16>
    %306 = arith.mulf %302, %305 : vector<16x512xbf16>
    %c64_166 = arith.constant 64 : index
    %c0_167 = arith.constant 0 : index
    %307 = vector.load %arg17[%c64_166, %c0_167] : memref<432x512xbf16, #tpu.memory_space<vmem>>, vector<16x512xbf16>
    tpu.vector_store %arg17[%c64_166, %c0_167], %306 {strides = array<i32>} : memref<432x512xbf16, #tpu.memory_space<vmem>>, vector<16x512xbf16>,
    %c63_i32_168 = arith.constant 63 : i32
    %308 = tpu.dynamic_rotate %272 by %c63_i32_168 dim 1 : vector<16x512xf32>, i32 -> vector<16x512xf32>
    %309 = arith.truncf %308 : vector<16x512xf32> to vector<16x512xbf16>
    %c5_169 = arith.constant 5 : index
    %c0_170 = arith.constant 0 : index
    %c0_171 = arith.constant 0 : index
    %310 = vector.load %arg6[%c5_169, %c0_170, %c0_171] : memref<27x1x512xbf16, #tpu.memory_space<vmem>>, vector<1x1x512xbf16>
    %311 = vector.shape_cast %310 : vector<1x1x512xbf16> to vector<1x512xbf16>
    %312 = vector.broadcast %311 : vector<1x512xbf16> to vector<16x512xbf16>
    %313 = arith.mulf %309, %312 : vector<16x512xbf16>
    %c80_172 = arith.constant 80 : index
    %c0_173 = arith.constant 0 : index
    %314 = vector.load %arg17[%c80_172, %c0_173] : memref<432x512xbf16, #tpu.memory_space<vmem>>, vector<16x512xbf16>
    tpu.vector_store %arg17[%c80_172, %c0_173], %313 {strides = array<i32>} : memref<432x512xbf16, #tpu.memory_space<vmem>>, vector<16x512xbf16>,
    %c57_i32_174 = arith.constant 57 : i32
    %315 = tpu.dynamic_rotate %272 by %c57_i32_174 dim 1 : vector<16x512xf32>, i32 -> vector<16x512xf32>
    %316 = arith.truncf %315 : vector<16x512xf32> to vector<16x512xbf16>
    %c6_175 = arith.constant 6 : index
    %c0_176 = arith.constant 0 : index
    %c0_177 = arith.constant 0 : index
    %317 = vector.load %arg6[%c6_175, %c0_176, %c0_177] : memref<27x1x512xbf16, #tpu.memory_space<vmem>>, vector<1x1x512xbf16>
    %318 = vector.shape_cast %317 : vector<1x1x512xbf16> to vector<1x512xbf16>
    %319 = vector.broadcast %318 : vector<1x512xbf16> to vector<16x512xbf16>
    %320 = arith.mulf %316, %319 : vector<16x512xbf16>
    %c96_178 = arith.constant 96 : index
    %c0_179 = arith.constant 0 : index
    %321 = vector.load %arg17[%c96_178, %c0_179] : memref<432x512xbf16, #tpu.memory_space<vmem>>, vector<16x512xbf16>
    tpu.vector_store %arg17[%c96_178, %c0_179], %320 {strides = array<i32>} : memref<432x512xbf16, #tpu.memory_space<vmem>>, vector<16x512xbf16>,
    %c56_i32_180 = arith.constant 56 : i32
    %322 = tpu.dynamic_rotate %272 by %c56_i32_180 dim 1 : vector<16x512xf32>, i32 -> vector<16x512xf32>
    %323 = arith.truncf %322 : vector<16x512xf32> to vector<16x512xbf16>
    %c7_181 = arith.constant 7 : index
    %c0_182 = arith.constant 0 : index
    %c0_183 = arith.constant 0 : index
    %324 = vector.load %arg6[%c7_181, %c0_182, %c0_183] : memref<27x1x512xbf16, #tpu.memory_space<vmem>>, vector<1x1x512xbf16>
    %325 = vector.shape_cast %324 : vector<1x1x512xbf16> to vector<1x512xbf16>
    %326 = vector.broadcast %325 : vector<1x512xbf16> to vector<16x512xbf16>
    %327 = arith.mulf %323, %326 : vector<16x512xbf16>
    %c112_184 = arith.constant 112 : index
    %c0_185 = arith.constant 0 : index
    %328 = vector.load %arg17[%c112_184, %c0_185] : memref<432x512xbf16, #tpu.memory_space<vmem>>, vector<16x512xbf16>
    tpu.vector_store %arg17[%c112_184, %c0_185], %327 {strides = array<i32>} : memref<432x512xbf16, #tpu.memory_space<vmem>>, vector<16x512xbf16>,
    %c55_i32_186 = arith.constant 55 : i32
    %329 = tpu.dynamic_rotate %272 by %c55_i32_186 dim 1 : vector<16x512xf32>, i32 -> vector<16x512xf32>
    %330 = arith.truncf %329 : vector<16x512xf32> to vector<16x512xbf16>
    %c8_187 = arith.constant 8 : index
    %c0_188 = arith.constant 0 : index
    %c0_189 = arith.constant 0 : index
    %331 = vector.load %arg6[%c8_187, %c0_188, %c0_189] : memref<27x1x512xbf16, #tpu.memory_space<vmem>>, vector<1x1x512xbf16>
    %332 = vector.shape_cast %331 : vector<1x1x512xbf16> to vector<1x512xbf16>
    %333 = vector.broadcast %332 : vector<1x512xbf16> to vector<16x512xbf16>
    %334 = arith.mulf %330, %333 : vector<16x512xbf16>
    %c128_190 = arith.constant 128 : index
    %c0_191 = arith.constant 0 : index
    %335 = vector.load %arg17[%c128_190, %c0_191] : memref<432x512xbf16, #tpu.memory_space<vmem>>, vector<16x512xbf16>
    tpu.vector_store %arg17[%c128_190, %c0_191], %334 {strides = array<i32>} : memref<432x512xbf16, #tpu.memory_space<vmem>>, vector<16x512xbf16>,
    %c9_i32_192 = arith.constant 9 : i32
    %336 = tpu.dynamic_rotate %272 by %c9_i32_192 dim 1 : vector<16x512xf32>, i32 -> vector<16x512xf32>
    %337 = arith.truncf %336 : vector<16x512xf32> to vector<16x512xbf16>
    %c9_193 = arith.constant 9 : index
    %c0_194 = arith.constant 0 : index
    %c0_195 = arith.constant 0 : index
    %338 = vector.load %arg6[%c9_193, %c0_194, %c0_195] : memref<27x1x512xbf16, #tpu.memory_space<vmem>>, vector<1x1x512xbf16>
    %339 = vector.shape_cast %338 : vector<1x1x512xbf16> to vector<1x512xbf16>
    %340 = vector.broadcast %339 : vector<1x512xbf16> to vector<16x512xbf16>
    %341 = arith.mulf %337, %340 : vector<16x512xbf16>
    %c144_196 = arith.constant 144 : index
    %c0_197 = arith.constant 0 : index
    %342 = vector.load %arg17[%c144_196, %c0_197] : memref<432x512xbf16, #tpu.memory_space<vmem>>, vector<16x512xbf16>
    tpu.vector_store %arg17[%c144_196, %c0_197], %341 {strides = array<i32>} : memref<432x512xbf16, #tpu.memory_space<vmem>>, vector<16x512xbf16>,
    %c8_i32_198 = arith.constant 8 : i32
    %343 = tpu.dynamic_rotate %272 by %c8_i32_198 dim 1 : vector<16x512xf32>, i32 -> vector<16x512xf32>
    %344 = arith.truncf %343 : vector<16x512xf32> to vector<16x512xbf16>
    %c10_199 = arith.constant 10 : index
    %c0_200 = arith.constant 0 : index
    %c0_201 = arith.constant 0 : index
    %345 = vector.load %arg6[%c10_199, %c0_200, %c0_201] : memref<27x1x512xbf16, #tpu.memory_space<vmem>>, vector<1x1x512xbf16>
    %346 = vector.shape_cast %345 : vector<1x1x512xbf16> to vector<1x512xbf16>
    %347 = vector.broadcast %346 : vector<1x512xbf16> to vector<16x512xbf16>
    %348 = arith.mulf %344, %347 : vector<16x512xbf16>
    %c160_202 = arith.constant 160 : index
    %c0_203 = arith.constant 0 : index
    %349 = vector.load %arg17[%c160_202, %c0_203] : memref<432x512xbf16, #tpu.memory_space<vmem>>, vector<16x512xbf16>
    tpu.vector_store %arg17[%c160_202, %c0_203], %348 {strides = array<i32>} : memref<432x512xbf16, #tpu.memory_space<vmem>>, vector<16x512xbf16>,
    %c7_i32_204 = arith.constant 7 : i32
    %350 = tpu.dynamic_rotate %272 by %c7_i32_204 dim 1 : vector<16x512xf32>, i32 -> vector<16x512xf32>
    %351 = arith.truncf %350 : vector<16x512xf32> to vector<16x512xbf16>
    %c11_205 = arith.constant 11 : index
    %c0_206 = arith.constant 0 : index
    %c0_207 = arith.constant 0 : index
    %352 = vector.load %arg6[%c11_205, %c0_206, %c0_207] : memref<27x1x512xbf16, #tpu.memory_space<vmem>>, vector<1x1x512xbf16>
    %353 = vector.shape_cast %352 : vector<1x1x512xbf16> to vector<1x512xbf16>
    %354 = vector.broadcast %353 : vector<1x512xbf16> to vector<16x512xbf16>
    %355 = arith.mulf %351, %354 : vector<16x512xbf16>
    %c176_208 = arith.constant 176 : index
    %c0_209 = arith.constant 0 : index
    %356 = vector.load %arg17[%c176_208, %c0_209] : memref<432x512xbf16, #tpu.memory_space<vmem>>, vector<16x512xbf16>
    tpu.vector_store %arg17[%c176_208, %c0_209], %355 {strides = array<i32>} : memref<432x512xbf16, #tpu.memory_space<vmem>>, vector<16x512xbf16>,
    %c1_i32_210 = arith.constant 1 : i32
    %357 = tpu.dynamic_rotate %272 by %c1_i32_210 dim 1 : vector<16x512xf32>, i32 -> vector<16x512xf32>
    %358 = arith.truncf %357 : vector<16x512xf32> to vector<16x512xbf16>
    %c12_211 = arith.constant 12 : index
    %c0_212 = arith.constant 0 : index
    %c0_213 = arith.constant 0 : index
    %359 = vector.load %arg6[%c12_211, %c0_212, %c0_213] : memref<27x1x512xbf16, #tpu.memory_space<vmem>>, vector<1x1x512xbf16>
    %360 = vector.shape_cast %359 : vector<1x1x512xbf16> to vector<1x512xbf16>
    %361 = vector.broadcast %360 : vector<1x512xbf16> to vector<16x512xbf16>
    %362 = arith.mulf %358, %361 : vector<16x512xbf16>
    %c192_214 = arith.constant 192 : index
    %c0_215 = arith.constant 0 : index
    %363 = vector.load %arg17[%c192_214, %c0_215] : memref<432x512xbf16, #tpu.memory_space<vmem>>, vector<16x512xbf16>
    tpu.vector_store %arg17[%c192_214, %c0_215], %362 {strides = array<i32>} : memref<432x512xbf16, #tpu.memory_space<vmem>>, vector<16x512xbf16>,
    %364 = arith.truncf %272 : vector<16x512xf32> to vector<16x512xbf16>
    %c208_216 = arith.constant 208 : index
    %c0_217 = arith.constant 0 : index
    %365 = vector.load %arg17[%c208_216, %c0_217] : memref<432x512xbf16, #tpu.memory_space<vmem>>, vector<16x512xbf16>
    tpu.vector_store %arg17[%c208_216, %c0_217], %364 {strides = array<i32>} : memref<432x512xbf16, #tpu.memory_space<vmem>>, vector<16x512xbf16>,
    %c511_i32_218 = arith.constant 511 : i32
    %366 = tpu.dynamic_rotate %272 by %c511_i32_218 dim 1 : vector<16x512xf32>, i32 -> vector<16x512xf32>
    %367 = arith.truncf %366 : vector<16x512xf32> to vector<16x512xbf16>
    %c14_219 = arith.constant 14 : index
    %c0_220 = arith.constant 0 : index
    %c0_221 = arith.constant 0 : index
    %368 = vector.load %arg6[%c14_219, %c0_220, %c0_221] : memref<27x1x512xbf16, #tpu.memory_space<vmem>>, vector<1x1x512xbf16>
    %369 = vector.shape_cast %368 : vector<1x1x512xbf16> to vector<1x512xbf16>
    %370 = vector.broadcast %369 : vector<1x512xbf16> to vector<16x512xbf16>
    %371 = arith.mulf %367, %370 : vector<16x512xbf16>
    %c224_222 = arith.constant 224 : index
    %c0_223 = arith.constant 0 : index
    %372 = vector.load %arg17[%c224_222, %c0_223] : memref<432x512xbf16, #tpu.memory_space<vmem>>, vector<16x512xbf16>
    tpu.vector_store %arg17[%c224_222, %c0_223], %371 {strides = array<i32>} : memref<432x512xbf16, #tpu.memory_space<vmem>>, vector<16x512xbf16>,
    %c505_i32_224 = arith.constant 505 : i32
    %373 = tpu.dynamic_rotate %272 by %c505_i32_224 dim 1 : vector<16x512xf32>, i32 -> vector<16x512xf32>
    %374 = arith.truncf %373 : vector<16x512xf32> to vector<16x512xbf16>
    %c15_225 = arith.constant 15 : index
    %c0_226 = arith.constant 0 : index
    %c0_227 = arith.constant 0 : index
    %375 = vector.load %arg6[%c15_225, %c0_226, %c0_227] : memref<27x1x512xbf16, #tpu.memory_space<vmem>>, vector<1x1x512xbf16>
    %376 = vector.shape_cast %375 : vector<1x1x512xbf16> to vector<1x512xbf16>
    %377 = vector.broadcast %376 : vector<1x512xbf16> to vector<16x512xbf16>
    %378 = arith.mulf %374, %377 : vector<16x512xbf16>
    %c240_228 = arith.constant 240 : index
    %c0_229 = arith.constant 0 : index
    %379 = vector.load %arg17[%c240_228, %c0_229] : memref<432x512xbf16, #tpu.memory_space<vmem>>, vector<16x512xbf16>
    tpu.vector_store %arg17[%c240_228, %c0_229], %378 {strides = array<i32>} : memref<432x512xbf16, #tpu.memory_space<vmem>>, vector<16x512xbf16>,
    %c504_i32_230 = arith.constant 504 : i32
    %380 = tpu.dynamic_rotate %272 by %c504_i32_230 dim 1 : vector<16x512xf32>, i32 -> vector<16x512xf32>
    %381 = arith.truncf %380 : vector<16x512xf32> to vector<16x512xbf16>
    %c16_231 = arith.constant 16 : index
    %c0_232 = arith.constant 0 : index
    %c0_233 = arith.constant 0 : index
    %382 = vector.load %arg6[%c16_231, %c0_232, %c0_233] : memref<27x1x512xbf16, #tpu.memory_space<vmem>>, vector<1x1x512xbf16>
    %383 = vector.shape_cast %382 : vector<1x1x512xbf16> to vector<1x512xbf16>
    %384 = vector.broadcast %383 : vector<1x512xbf16> to vector<16x512xbf16>
    %385 = arith.mulf %381, %384 : vector<16x512xbf16>
    %c256_234 = arith.constant 256 : index
    %c0_235 = arith.constant 0 : index
    %386 = vector.load %arg17[%c256_234, %c0_235] : memref<432x512xbf16, #tpu.memory_space<vmem>>, vector<16x512xbf16>
    tpu.vector_store %arg17[%c256_234, %c0_235], %385 {strides = array<i32>} : memref<432x512xbf16, #tpu.memory_space<vmem>>, vector<16x512xbf16>,
    %c503_i32_236 = arith.constant 503 : i32
    %387 = tpu.dynamic_rotate %272 by %c503_i32_236 dim 1 : vector<16x512xf32>, i32 -> vector<16x512xf32>
    %388 = arith.truncf %387 : vector<16x512xf32> to vector<16x512xbf16>
    %c17_237 = arith.constant 17 : index
    %c0_238 = arith.constant 0 : index
    %c0_239 = arith.constant 0 : index
    %389 = vector.load %arg6[%c17_237, %c0_238, %c0_239] : memref<27x1x512xbf16, #tpu.memory_space<vmem>>, vector<1x1x512xbf16>
    %390 = vector.shape_cast %389 : vector<1x1x512xbf16> to vector<1x512xbf16>
    %391 = vector.broadcast %390 : vector<1x512xbf16> to vector<16x512xbf16>
    %392 = arith.mulf %388, %391 : vector<16x512xbf16>
    %c272_240 = arith.constant 272 : index
    %c0_241 = arith.constant 0 : index
    %393 = vector.load %arg17[%c272_240, %c0_241] : memref<432x512xbf16, #tpu.memory_space<vmem>>, vector<16x512xbf16>
    tpu.vector_store %arg17[%c272_240, %c0_241], %392 {strides = array<i32>} : memref<432x512xbf16, #tpu.memory_space<vmem>>, vector<16x512xbf16>,
    %c457_i32_242 = arith.constant 457 : i32
    %394 = tpu.dynamic_rotate %272 by %c457_i32_242 dim 1 : vector<16x512xf32>, i32 -> vector<16x512xf32>
    %395 = arith.truncf %394 : vector<16x512xf32> to vector<16x512xbf16>
    %c18_243 = arith.constant 18 : index
    %c0_244 = arith.constant 0 : index
    %c0_245 = arith.constant 0 : index
    %396 = vector.load %arg6[%c18_243, %c0_244, %c0_245] : memref<27x1x512xbf16, #tpu.memory_space<vmem>>, vector<1x1x512xbf16>
    %397 = vector.shape_cast %396 : vector<1x1x512xbf16> to vector<1x512xbf16>
    %398 = vector.broadcast %397 : vector<1x512xbf16> to vector<16x512xbf16>
    %399 = arith.mulf %395, %398 : vector<16x512xbf16>
    %c288_246 = arith.constant 288 : index
    %c0_247 = arith.constant 0 : index
    %400 = vector.load %arg17[%c288_246, %c0_247] : memref<432x512xbf16, #tpu.memory_space<vmem>>, vector<16x512xbf16>
    tpu.vector_store %arg17[%c288_246, %c0_247], %399 {strides = array<i32>} : memref<432x512xbf16, #tpu.memory_space<vmem>>, vector<16x512xbf16>,
    %c456_i32_248 = arith.constant 456 : i32
    %401 = tpu.dynamic_rotate %272 by %c456_i32_248 dim 1 : vector<16x512xf32>, i32 -> vector<16x512xf32>
    %402 = arith.truncf %401 : vector<16x512xf32> to vector<16x512xbf16>
    %c19_249 = arith.constant 19 : index
    %c0_250 = arith.constant 0 : index
    %c0_251 = arith.constant 0 : index
    %403 = vector.load %arg6[%c19_249, %c0_250, %c0_251] : memref<27x1x512xbf16, #tpu.memory_space<vmem>>, vector<1x1x512xbf16>
    %404 = vector.shape_cast %403 : vector<1x1x512xbf16> to vector<1x512xbf16>
    %405 = vector.broadcast %404 : vector<1x512xbf16> to vector<16x512xbf16>
    %406 = arith.mulf %402, %405 : vector<16x512xbf16>
    %c304_252 = arith.constant 304 : index
    %c0_253 = arith.constant 0 : index
    %407 = vector.load %arg17[%c304_252, %c0_253] : memref<432x512xbf16, #tpu.memory_space<vmem>>, vector<16x512xbf16>
    tpu.vector_store %arg17[%c304_252, %c0_253], %406 {strides = array<i32>} : memref<432x512xbf16, #tpu.memory_space<vmem>>, vector<16x512xbf16>,
    %c455_i32_254 = arith.constant 455 : i32
    %408 = tpu.dynamic_rotate %272 by %c455_i32_254 dim 1 : vector<16x512xf32>, i32 -> vector<16x512xf32>
    %409 = arith.truncf %408 : vector<16x512xf32> to vector<16x512xbf16>
    %c20_255 = arith.constant 20 : index
    %c0_256 = arith.constant 0 : index
    %c0_257 = arith.constant 0 : index
    %410 = vector.load %arg6[%c20_255, %c0_256, %c0_257] : memref<27x1x512xbf16, #tpu.memory_space<vmem>>, vector<1x1x512xbf16>
    %411 = vector.shape_cast %410 : vector<1x1x512xbf16> to vector<1x512xbf16>
    %412 = vector.broadcast %411 : vector<1x512xbf16> to vector<16x512xbf16>
    %413 = arith.mulf %409, %412 : vector<16x512xbf16>
    %c320_258 = arith.constant 320 : index
    %c0_259 = arith.constant 0 : index
    %414 = vector.load %arg17[%c320_258, %c0_259] : memref<432x512xbf16, #tpu.memory_space<vmem>>, vector<16x512xbf16>
    tpu.vector_store %arg17[%c320_258, %c0_259], %413 {strides = array<i32>} : memref<432x512xbf16, #tpu.memory_space<vmem>>, vector<16x512xbf16>,
    %c449_i32_260 = arith.constant 449 : i32
    %415 = tpu.dynamic_rotate %272 by %c449_i32_260 dim 1 : vector<16x512xf32>, i32 -> vector<16x512xf32>
    %416 = arith.truncf %415 : vector<16x512xf32> to vector<16x512xbf16>
    %c21_261 = arith.constant 21 : index
    %c0_262 = arith.constant 0 : index
    %c0_263 = arith.constant 0 : index
    %417 = vector.load %arg6[%c21_261, %c0_262, %c0_263] : memref<27x1x512xbf16, #tpu.memory_space<vmem>>, vector<1x1x512xbf16>
    %418 = vector.shape_cast %417 : vector<1x1x512xbf16> to vector<1x512xbf16>
    %419 = vector.broadcast %418 : vector<1x512xbf16> to vector<16x512xbf16>
    %420 = arith.mulf %416, %419 : vector<16x512xbf16>
    %c336_264 = arith.constant 336 : index
    %c0_265 = arith.constant 0 : index
    %421 = vector.load %arg17[%c336_264, %c0_265] : memref<432x512xbf16, #tpu.memory_space<vmem>>, vector<16x512xbf16>
    tpu.vector_store %arg17[%c336_264, %c0_265], %420 {strides = array<i32>} : memref<432x512xbf16, #tpu.memory_space<vmem>>, vector<16x512xbf16>,
    %c448_i32_266 = arith.constant 448 : i32
    %422 = tpu.dynamic_rotate %272 by %c448_i32_266 dim 1 : vector<16x512xf32>, i32 -> vector<16x512xf32>
    %423 = arith.truncf %422 : vector<16x512xf32> to vector<16x512xbf16>
    %c22_267 = arith.constant 22 : index
    %c0_268 = arith.constant 0 : index
    %c0_269 = arith.constant 0 : index
    %424 = vector.load %arg6[%c22_267, %c0_268, %c0_269] : memref<27x1x512xbf16, #tpu.memory_space<vmem>>, vector<1x1x512xbf16>
    %425 = vector.shape_cast %424 : vector<1x1x512xbf16> to vector<1x512xbf16>
    %426 = vector.broadcast %425 : vector<1x512xbf16> to vector<16x512xbf16>
    %427 = arith.mulf %423, %426 : vector<16x512xbf16>
    %c352_270 = arith.constant 352 : index
    %c0_271 = arith.constant 0 : index
    %428 = vector.load %arg17[%c352_270, %c0_271] : memref<432x512xbf16, #tpu.memory_space<vmem>>, vector<16x512xbf16>
    tpu.vector_store %arg17[%c352_270, %c0_271], %427 {strides = array<i32>} : memref<432x512xbf16, #tpu.memory_space<vmem>>, vector<16x512xbf16>,
    %c447_i32_272 = arith.constant 447 : i32
    %429 = tpu.dynamic_rotate %272 by %c447_i32_272 dim 1 : vector<16x512xf32>, i32 -> vector<16x512xf32>
    %430 = arith.truncf %429 : vector<16x512xf32> to vector<16x512xbf16>
    %c23_273 = arith.constant 23 : index
    %c0_274 = arith.constant 0 : index
    %c0_275 = arith.constant 0 : index
    %431 = vector.load %arg6[%c23_273, %c0_274, %c0_275] : memref<27x1x512xbf16, #tpu.memory_space<vmem>>, vector<1x1x512xbf16>
    %432 = vector.shape_cast %431 : vector<1x1x512xbf16> to vector<1x512xbf16>
    %433 = vector.broadcast %432 : vector<1x512xbf16> to vector<16x512xbf16>
    %434 = arith.mulf %430, %433 : vector<16x512xbf16>
    %c368_276 = arith.constant 368 : index
    %c0_277 = arith.constant 0 : index
    %435 = vector.load %arg17[%c368_276, %c0_277] : memref<432x512xbf16, #tpu.memory_space<vmem>>, vector<16x512xbf16>
    tpu.vector_store %arg17[%c368_276, %c0_277], %434 {strides = array<i32>} : memref<432x512xbf16, #tpu.memory_space<vmem>>, vector<16x512xbf16>,
    %c441_i32_278 = arith.constant 441 : i32
    %436 = tpu.dynamic_rotate %272 by %c441_i32_278 dim 1 : vector<16x512xf32>, i32 -> vector<16x512xf32>
    %437 = arith.truncf %436 : vector<16x512xf32> to vector<16x512xbf16>
    %c24_279 = arith.constant 24 : index
    %c0_280 = arith.constant 0 : index
    %c0_281 = arith.constant 0 : index
    %438 = vector.load %arg6[%c24_279, %c0_280, %c0_281] : memref<27x1x512xbf16, #tpu.memory_space<vmem>>, vector<1x1x512xbf16>
    %439 = vector.shape_cast %438 : vector<1x1x512xbf16> to vector<1x512xbf16>
    %440 = vector.broadcast %439 : vector<1x512xbf16> to vector<16x512xbf16>
    %441 = arith.mulf %437, %440 : vector<16x512xbf16>
    %c384_282 = arith.constant 384 : index
    %c0_283 = arith.constant 0 : index
    %442 = vector.load %arg17[%c384_282, %c0_283] : memref<432x512xbf16, #tpu.memory_space<vmem>>, vector<16x512xbf16>
    tpu.vector_store %arg17[%c384_282, %c0_283], %441 {strides = array<i32>} : memref<432x512xbf16, #tpu.memory_space<vmem>>, vector<16x512xbf16>,
    %c440_i32_284 = arith.constant 440 : i32
    %443 = tpu.dynamic_rotate %272 by %c440_i32_284 dim 1 : vector<16x512xf32>, i32 -> vector<16x512xf32>
    %444 = arith.truncf %443 : vector<16x512xf32> to vector<16x512xbf16>
    %c25_285 = arith.constant 25 : index
    %c0_286 = arith.constant 0 : index
    %c0_287 = arith.constant 0 : index
    %445 = vector.load %arg6[%c25_285, %c0_286, %c0_287] : memref<27x1x512xbf16, #tpu.memory_space<vmem>>, vector<1x1x512xbf16>
    %446 = vector.shape_cast %445 : vector<1x1x512xbf16> to vector<1x512xbf16>
    %447 = vector.broadcast %446 : vector<1x512xbf16> to vector<16x512xbf16>
    %448 = arith.mulf %444, %447 : vector<16x512xbf16>
    %c400_288 = arith.constant 400 : index
    %c0_289 = arith.constant 0 : index
    %449 = vector.load %arg17[%c400_288, %c0_289] : memref<432x512xbf16, #tpu.memory_space<vmem>>, vector<16x512xbf16>
    tpu.vector_store %arg17[%c400_288, %c0_289], %448 {strides = array<i32>} : memref<432x512xbf16, #tpu.memory_space<vmem>>, vector<16x512xbf16>,
    %c439_i32_290 = arith.constant 439 : i32
    %450 = tpu.dynamic_rotate %272 by %c439_i32_290 dim 1 : vector<16x512xf32>, i32 -> vector<16x512xf32>
    %451 = arith.truncf %450 : vector<16x512xf32> to vector<16x512xbf16>
    %c26_291 = arith.constant 26 : index
    %c0_292 = arith.constant 0 : index
    %c0_293 = arith.constant 0 : index
    %452 = vector.load %arg6[%c26_291, %c0_292, %c0_293] : memref<27x1x512xbf16, #tpu.memory_space<vmem>>, vector<1x1x512xbf16>
    %453 = vector.shape_cast %452 : vector<1x1x512xbf16> to vector<1x512xbf16>
    %454 = vector.broadcast %453 : vector<1x512xbf16> to vector<16x512xbf16>
    %455 = arith.mulf %451, %454 : vector<16x512xbf16>
    %c416_294 = arith.constant 416 : index
    %c0_295 = arith.constant 0 : index
    %456 = vector.load %arg17[%c416_294, %c0_295] : memref<432x512xbf16, #tpu.memory_space<vmem>>, vector<16x512xbf16>
    tpu.vector_store %arg17[%c416_294, %c0_295], %455 {strides = array<i32>} : memref<432x512xbf16, #tpu.memory_space<vmem>>, vector<16x512xbf16>,
    %c0_296 = arith.constant 0 : index
    %c0_297 = arith.constant 0 : index
    %457 = vector.load %arg11[%c0_296, %c0_297] : memref<16x432xbf16, #tpu.memory_space<vmem>>, vector<16x432xbf16>
    %c0_298 = arith.constant 0 : index
    %c0_299 = arith.constant 0 : index
    %458 = vector.load %arg17[%c0_298, %c0_299] : memref<432x512xbf16, #tpu.memory_space<vmem>>, vector<432x512xbf16>
    %cst_300 = arith.constant dense<0.000000e+00> : vector<16x512xf32>
    %459 = tpu.matmul %457, %458, %cst_300 {dimension_numbers = #tpu.dot_dimension_numbers<[1], [0], [0], [1], [0, 0, 1, 1], [], []>} : vector<16x432xbf16>, vector<432x512xbf16>, vector<16x512xf32> -> vector<16x512xf32>
    %c0_301 = arith.constant 0 : index
    %c0_302 = arith.constant 0 : index
    %460 = vector.load %arg12[%c0_301, %c0_302] : memref<16x1xf32, #tpu.memory_space<vmem>>, vector<16x1xf32>
    %461 = vector.broadcast %460 : vector<16x1xf32> to vector<16x512xf32>
    %462 = arith.addf %459, %461 : vector<16x512xf32>
    %cst_303 = arith.constant dense<0.000000e+00> : vector<16xf32>
    %463 = vector.multi_reduction <add>, %462, %cst_303 [1] : vector<16x512xf32> to vector<16xf32>
    %464 = vector.shape_cast %463 : vector<16xf32> to vector<16x1xf32>
    %c0_304 = arith.constant 0 : index
    %c0_305 = arith.constant 0 : index
    %465 = vector.load %arg15[%c0_304, %c0_305] : memref<16x16xf32, #tpu.memory_space<vmem>>, vector<16x16xf32>
    %cst_306 = arith.constant dense<0.000000e+00> : vector<16x1xf32>
    %466 = tpu.matmul %465, %464, %cst_306 {dimension_numbers = #tpu.dot_dimension_numbers<[1], [0], [0], [1], [0, 0, 1, 1], [], []>} : vector<16x16xf32>, vector<16x1xf32>, vector<16x1xf32> -> vector<16x1xf32>
    %cst_307 = arith.constant 9.765625E-4 : f32
    %467 = vector.broadcast %cst_307 : f32 to vector<16x1xf32>
    %468 = arith.mulf %466, %467 : vector<16x1xf32>
    %469 = vector.broadcast %468 : vector<16x1xf32> to vector<16x512xf32>
    %470 = arith.subf %462, %469 : vector<16x512xf32>
    %471 = arith.mulf %470, %470 : vector<16x512xf32>
    %cst_308 = arith.constant dense<0.000000e+00> : vector<16xf32>
    %472 = vector.multi_reduction <add>, %471, %cst_308 [1] : vector<16x512xf32> to vector<16xf32>
    %473 = vector.shape_cast %472 : vector<16xf32> to vector<16x1xf32>
    %c0_309 = arith.constant 0 : index
    %c0_310 = arith.constant 0 : index
    %474 = vector.load %arg15[%c0_309, %c0_310] : memref<16x16xf32, #tpu.memory_space<vmem>>, vector<16x16xf32>
    %cst_311 = arith.constant dense<0.000000e+00> : vector<16x1xf32>
    %475 = tpu.matmul %474, %473, %cst_311 {dimension_numbers = #tpu.dot_dimension_numbers<[1], [0], [0], [1], [0, 0, 1, 1], [], []>} : vector<16x16xf32>, vector<16x1xf32>, vector<16x1xf32> -> vector<16x1xf32>
    %cst_312 = arith.constant 9.765625E-4 : f32
    %476 = vector.broadcast %cst_312 : f32 to vector<16x1xf32>
    %477 = arith.mulf %475, %476 : vector<16x1xf32>
    %cst_313 = arith.constant 9.99999974E-6 : f32
    %478 = vector.broadcast %cst_313 : f32 to vector<16x1xf32>
    %479 = arith.addf %477, %478 : vector<16x1xf32>
    %480 = math.rsqrt %479 : vector<16x1xf32>
    %c0_314 = arith.constant 0 : index
    %c0_315 = arith.constant 0 : index
    %481 = vector.load %arg13[%c0_314, %c0_315] : memref<16x1xf32, #tpu.memory_space<vmem>>, vector<16x1xf32>
    %482 = arith.mulf %480, %481 : vector<16x1xf32>
    %483 = vector.broadcast %482 : vector<16x1xf32> to vector<16x512xf32>
    %484 = arith.mulf %470, %483 : vector<16x512xf32>
    %c0_316 = arith.constant 0 : index
    %c0_317 = arith.constant 0 : index
    %485 = vector.load %arg14[%c0_316, %c0_317] : memref<16x1xf32, #tpu.memory_space<vmem>>, vector<16x1xf32>
    %486 = vector.broadcast %485 : vector<16x1xf32> to vector<16x512xf32>
    %487 = arith.addf %484, %486 : vector<16x512xf32>
    %cst_318 = arith.constant 0.000000e+00 : f32
    %488 = vector.broadcast %cst_318 : f32 to vector<16x512xf32>
    %489 = arith.maximumf %487, %488 : vector<16x512xf32>
    %c0_319 = arith.constant 0 : index
    %c0_320 = arith.constant 0 : index
    %c0_321 = arith.constant 0 : index
    %490 = vector.load %arg16[%c0_319, %c0_320, %c0_321] : memref<1x16x512xf32, #tpu.memory_space<vmem>>, vector<1x16x512xf32>
    %491 = vector.shape_cast %490 : vector<1x16x512xf32> to vector<16x512xf32>
    %492 = vector.shape_cast %489 : vector<16x512xf32> to vector<1x16x512xf32>
    tpu.vector_store %arg16[%c0_319, %c0_320, %c0_321], %492 {strides = array<i32>} : memref<1x16x512xf32, #tpu.memory_space<vmem>>, vector<1x16x512xf32>,
    return
  }
  func.func @transform_0(%arg0: i32) -> (i32, i32, i32) {
    %c0_i32 = arith.constant 0 : i32
    %c0_i32_0 = arith.constant 0 : i32
    %c0_i32_1 = arith.constant 0 : i32
    return %arg0, %c0_i32, %c0_i32_0 : i32, i32, i32
  }
  func.func @transform_1(%arg0: i32) -> (i32, i32, i32) {
    %c0_i32 = arith.constant 0 : i32
    %c0_i32_0 = arith.constant 0 : i32
    %c0_i32_1 = arith.constant 0 : i32
    return %arg0, %c0_i32, %c0_i32_0 : i32, i32, i32
  }
  func.func @transform_2(%arg0: i32) -> (i32, i32) {
    %c0_i32 = arith.constant 0 : i32
    %c0_i32_0 = arith.constant 0 : i32
    %c0_i32_1 = arith.constant 0 : i32
    return %c0_i32, %c0_i32_0 : i32, i32
  }
  func.func @transform_3(%arg0: i32) -> (i32, i32, i32) {
    %c0_i32 = arith.constant 0 : i32
    %c0_i32_0 = arith.constant 0 : i32
    %c0_i32_1 = arith.constant 0 : i32
    %c0_i32_2 = arith.constant 0 : i32
    return %c0_i32, %c0_i32_0, %c0_i32_1 : i32, i32, i32
  }
  func.func @transform_4(%arg0: i32) -> (i32, i32) {
    %c0_i32 = arith.constant 0 : i32
    %c0_i32_0 = arith.constant 0 : i32
    %c0_i32_1 = arith.constant 0 : i32
    return %c0_i32, %c0_i32_0 : i32, i32
  }
  func.func @transform_5(%arg0: i32) -> (i32, i32, i32) {
    %c0_i32 = arith.constant 0 : i32
    %c0_i32_0 = arith.constant 0 : i32
    %c0_i32_1 = arith.constant 0 : i32
    %c0_i32_2 = arith.constant 0 : i32
    return %c0_i32, %c0_i32_0, %c0_i32_1 : i32, i32, i32
  }
  func.func @transform_6(%arg0: i32) -> (i32, i32) {
    %c0_i32 = arith.constant 0 : i32
    %c0_i32_0 = arith.constant 0 : i32
    %c0_i32_1 = arith.constant 0 : i32
    return %c0_i32, %c0_i32_0 : i32, i32
  }
  func.func @transform_7(%arg0: i32) -> (i32, i32) {
    %c0_i32 = arith.constant 0 : i32
    %c0_i32_0 = arith.constant 0 : i32
    %c0_i32_1 = arith.constant 0 : i32
    return %c0_i32, %c0_i32_0 : i32, i32
  }
  func.func @transform_8(%arg0: i32) -> (i32, i32) {
    %c0_i32 = arith.constant 0 : i32
    %c0_i32_0 = arith.constant 0 : i32
    %c0_i32_1 = arith.constant 0 : i32
    return %c0_i32, %c0_i32_0 : i32, i32
  }
  func.func @transform_9(%arg0: i32) -> (i32, i32) {
    %c0_i32 = arith.constant 0 : i32
    %c0_i32_0 = arith.constant 0 : i32
    %c0_i32_1 = arith.constant 0 : i32
    return %c0_i32, %c0_i32_0 : i32, i32
  }
  func.func @transform_10(%arg0: i32) -> (i32, i32) {
    %c0_i32 = arith.constant 0 : i32
    %c0_i32_0 = arith.constant 0 : i32
    %c0_i32_1 = arith.constant 0 : i32
    return %c0_i32, %c0_i32_0 : i32, i32
  }
  func.func @transform_11(%arg0: i32) -> (i32, i32) {
    %c0_i32 = arith.constant 0 : i32
    %c0_i32_0 = arith.constant 0 : i32
    %c0_i32_1 = arith.constant 0 : i32
    return %c0_i32, %c0_i32_0 : i32, i32
  }
  func.func @transform_12(%arg0: i32) -> (i32, i32) {
    %c0_i32 = arith.constant 0 : i32
    %c0_i32_0 = arith.constant 0 : i32
    %c0_i32_1 = arith.constant 0 : i32
    return %c0_i32, %c0_i32_0 : i32, i32
  }
  func.func @transform_13(%arg0: i32) -> (i32, i32) {
    %c0_i32 = arith.constant 0 : i32
    %c0_i32_0 = arith.constant 0 : i32
    %c0_i32_1 = arith.constant 0 : i32
    return %c0_i32, %c0_i32_0 : i32, i32
  }
  func.func @transform_14(%arg0: i32) -> (i32, i32) {
    %c0_i32 = arith.constant 0 : i32
    %c0_i32_0 = arith.constant 0 : i32
    %c0_i32_1 = arith.constant 0 : i32
    return %c0_i32, %c0_i32_0 : i32, i32
  }
  func.func @transform_15(%arg0: i32) -> (i32, i32, i32) {
    %c0_i32 = arith.constant 0 : i32
    %c0_i32_0 = arith.constant 0 : i32
    %c0_i32_1 = arith.constant 0 : i32
    return %arg0, %c0_i32, %c0_i32_0 : i32, i32, i32
  }
}

</mosaic_0001>

<bundles_post_ra>
// kernel: mul.5
= control target key start
LH: loop header
LB: loop body
LE: loop exit
PB: predicated region body
PF: predicated region fallthrough
CT: control target
= control target key end

     0   :  { %v5_v0 = vlaneseq  ;;  %s47_s0 = inlined_call_operand.vmem [shape: f32[8], index: 0, kind: input, shape index: {}]   ;;  %s48_s1 = inlined_call_operand.vmem [shape: f32[8,512], index: 1, kind: output, shape index: {}]  }
   0x1   :  { %v4_v2 = vld [vmem:[%s47_s0] ss:$0 sm:$0xff] }
   0x2   :  { %v6_v1 = vshrl.u32 %v5_v0, 7 }
   0x4   :  { %21 = vset.pattern.permute.xlu0 %v6_v1 }
   0xc   :  { %9 = vperm.xlu0 %21, %v4_v2  }
  0x7e   :  { %v10_v3 = vpop.permute.xlu0 %9 }
  0x7f   :  { %11 = vst [vmem:[%s48_s1] sm:$0xff] %v10_v3 }
  0x80   :  { %18 = vst [vmem:[%s48_s1 + $0x8] sm:$0xff] %v10_v3 }
  0x81   :  { %19 = vst [vmem:[%s48_s1 + $0x10] sm:$0xff] %v10_v3 }
  0x82   :  { %20 = vst [vmem:[%s48_s1 + $0x18] sm:$0xff] %v10_v3 }

// kernel: up_forward.1
= control target key start
LH: loop header
LB: loop body
LE: loop exit
PB: predicated region body
PF: predicated region fallthrough
CT: control target
= control target key end

     0   :  { %s8607_s18 = smov 0   ;;  %s12656_s0 = inlined_call_operand.vmem [shape: f32[2,8,64], index: 0, kind: input, shape index: {}]   ;;  %s12657_s1 = inlined_call_operand.vmem [shape: f32[2,8,512], index: 1, kind: input, shape index: {}]   ;;  %s12658_s2 = inlined_call_operand.vmem [shape: f32[64,512], index: 2, kind: input, shape index: {}]   ;;  %s12659_s3 = inlined_call_operand.vmem [shape: f32[8,8,512], index: 3, kind: input, shape index: {}]   ;;  %s12660_s4 = inlined_call_operand.vmem [shape: f32[8,512], index: 4, kind: input, shape index: {}]   ;;  %s12661_s5 = inlined_call_operand.vmem [shape: bf16[27,1,512], index: 5, kind: input, shape index: {}]   ;;  %s12662_s6 = inlined_call_operand.vmem [shape: bf16[16,432], index: 6, kind: input, shape index: {}]   ;;  %s12663_s7 = inlined_call_operand.vmem [shape: f32[16,1], index: 7, kind: input, shape index: {}]   ;;  %s12664_s8 = inlined_call_operand.vmem [shape: f32[16,1], index: 8, kind: input, shape index: {}]   ;;  %s12665_s9 = inlined_call_operand.vmem [shape: f32[16,1], index: 9, kind: input, shape index: {}]   ;;  %s12666_s10 = inlined_call_operand.vmem [shape: bf16[16,432], index: 10, kind: input, shape index: {}]   ;;  %s12667_s11 = inlined_call_operand.vmem [shape: f32[16,1], index: 11, kind: input, shape index: {}]   ;;  %s12668_s12 = inlined_call_operand.vmem [shape: f32[16,1], index: 12, kind: input, shape index: {}]   ;;  %s12669_s13 = inlined_call_operand.vmem [shape: f32[16,1], index: 13, kind: input, shape index: {}]   ;;  %s12670_s14 = inlined_call_operand.vmem [shape: f32[16,16], index: 14, kind: input, shape index: {}]   ;;  %s12671_s15 = inlined_call_operand.vmem [shape: f32[2,16,512], index: 15, kind: output, shape index: {}]  }
   0x1   :  { %12924 = sst [smem:[#allocation115_spill]] %s12656_s0 }
   0x2   :  { %12925 = sst [smem:[#allocation116_spill]] %s12657_s1 }
   0x3   :  { %12926 = sst [smem:[#allocation117_spill]] %s12658_s2 }
   0x4   :  { %12927 = sst [smem:[#allocation118_spill]] %s12659_s3 }
   0x5   :  { %12928 = sst [smem:[#allocation119_spill]] %s12660_s4 }
   0x6   :  { %12929 = sst [smem:[#allocation120_spill]] %s12666_s10 }
   0x7   :  { %12930 = sst [smem:[#allocation121_spill]] %s12667_s11 }
   0x8   :  { %12931 = sst [smem:[#allocation122_spill]] %s12668_s12 }
   0x9   :  { %12932 = sst [smem:[#allocation123_spill]] %s12669_s13 }
   0xa   :  { %12933 = sst [smem:[#allocation124_spill]] %s12671_s15 }
   0xb LB: > { %12934 = sst [smem:[#allocation3_spill]] %s8507_s18  ;;  %s6550_s19 = sadd.s32 4294967295, %s8507_s18   ;;  %s8507_s18 = sphi %s8607_s18, %s25_s18  }
   0xc   : > { %p6554_p0 = scmp.ge.s32.totalorder %s8507_s18, 1  ;;  %p446_p1 = scmp.lt.s32.totalorder %s8507_s18, 3 }
   0xe   : > { %p447_p2 = pnand %p6554_p0, %p446_p1 }
  0x10   : > { %450 = sbr.rel (%p447_p2) target bundleno = 3211 (0xc8b), region = 80 }
  0x15   : > { %s12935_s2 = sld [smem:[#allocation117_spill]]  ;;  %p498_p3 = scmp.lt.s32.totalorder %s6550_s19, 1  ;;  %vm546_vm0 = vcmask 523264   ;;  %v804_v33 = vld [vmem:[%s12661_s5] sm:$0xf] }
  0x16   : > { %s12937_s0 = sld [smem:[#allocation115_spill]]  ;;  %806 = vst [vmem:[#allocation1] ss:$9 sm:$0xff] %v804_v33  ;;  %v6592_v38 = vld [vmem:[%s12661_s5 + $0x4] sm:$0xf]  ;;  %s12686_s29 = smov 64  }
  0x17   : > { %s13735_s19 = smov (!%p498_p3, %s6550_s19), 1  ;;  %v6593_v39 = vld [vmem:[%s12661_s5 + $0x8] sm:$0xf]  ;;  %v6594_v44 = vld [vmem:[%s12661_s5 + $0xc] sm:$0xf]  ;;  %s12946_s3 = sld [smem:[#allocation118_spill]] }
  0x18   : > { %12936 = sst [smem:[#allocation4_spill]] %s13735_s19  ;;  %s6555_s16 = sshll.u32 %s13735_s19, 3  ;;  %v6595_v54 = vld [vmem:[%s12661_s5 + $0x10] sm:$0xf] }
  0x19   : > { %s12947_s1 = sld [smem:[#allocation116_spill]]  ;;  %s12672_s30 = smov 63  }
  0x1a   : > { %s12948_s4 = sld [smem:[#allocation119_spill]]  ;;  %s12696_s24 = smov 55  }
  0x1b   : > { %v542_v0 = vld [vmem:[%s12935_s2 + $0xe0] sm:$0xff]  ;;  %v543_v1 = vld [vmem:[%s12935_s2 + $0xe8] sm:$0xff]  ;;  %v544_v8 = vld [vmem:[%s12935_s2 + $0xf0] sm:$0xff]  ;;  %s12690_s17 = smov 65   ;;  %s12676_s26 = smov 1  }
  0x1c   : > { %v538_v2 = vld [vmem:[%s12935_s2 + $0xc0] sm:$0xff]  ;;  %558 = vmatpush.msra.mxu0 %v542_v0  ;;  %578 = vmatpush.msra.mxu1 %v543_v1  ;;  %v539_v3 = vld [vmem:[%s12935_s2 + $0xc8] sm:$0xff]  ;;  %v540_v9 = vld [vmem:[%s12935_s2 + $0xd0] sm:$0xff]  ;;  %s501_s23 = scalar_lea.vmem %s12937_s0, %s6555_s16  ;;  %s7556_s16 = sshll.u32 %s13735_s19, 5 }
  0x1d   : > { %v534_v4 = vld [vmem:[%s12935_s2 + $0xa0] sm:$0xff]  ;;  %v535_v5 = vld [vmem:[%s12935_s2 + $0xa8] sm:$0xff]  ;;  %598 = vmatpush.msra.mxu2 %v544_v8  ;;  %v536_v12 = vld [vmem:[%s12935_s2 + $0xb0] sm:$0xff]  ;;  %s12678_s20 = smov 56   ;;  %s12674_s27 = smov 73  }
  0x1e   : > { %559 = vmatpush.msra.mxu0 %v538_v2  ;;  %579 = vmatpush.msra.mxu1 %v539_v3  ;;  %v530_v6 = vld [vmem:[%s12935_s2 + $0x80] sm:$0xff]  ;;  %v531_v7 = vld [vmem:[%s12935_s2 + $0x88] sm:$0xff]  ;;  %v532_v15 = vld [vmem:[%s12935_s2 + $0x90] sm:$0xff]  ;;  %s12684_s21 = smov 127   ;;  %s12682_s22 = smov 71  }
  0x1f   : > { %v526_v10 = vld [vmem:[%s12935_s2 + $0x60] sm:$0xff]  ;;  %v527_v11 = vld [vmem:[%s12935_s2 + $0x68] sm:$0xff]  ;;  %599 = vmatpush.msra.mxu2 %v540_v9  ;;  %v545_v16 = vld [vmem:[%s12935_s2 + $0xf8] sm:$0xff]  ;;  %s8774_s28 = scalar_lea.vmem %s12947_s1, %s7556_s16  ;;  %s12688_s16 = smov 121  }
  0x20   : > { %560 = vmatpush.msra.mxu0 %v534_v4  ;;  %580 = vmatpush.msra.mxu1 %v535_v5  ;;  %v522_v13 = vld [vmem:[%s12935_s2 + $0x40] sm:$0xff]  ;;  %v523_v14 = vld [vmem:[%s12935_s2 + $0x48] sm:$0xff]  ;;  %v541_v19 = vld [vmem:[%s12935_s2 + $0xd8] sm:$0xff]  ;;  %s12984_s25 = smov 56   ;;  %s13013_s0 = smov 57  }
  0x21   : > { %v518_v17 = vld [vmem:[%s12935_s2 + $0x20] sm:$0xff]  ;;  %v519_v18 = vld [vmem:[%s12935_s2 + $0x28] sm:$0xff]  ;;  %600 = vmatpush.msra.mxu2 %v536_v12  ;;  %618 = vmatpush.msra.mxu3 %v545_v16  ;;  %v528_v20 = vld [vmem:[%s12935_s2 + $0x70] sm:$0xff]  ;;  %s13018_s1 = smov 8   ;;  %s13730_s15 = sld [smem:[#allocation122_spill]] }
  0x22   : > { %561 = vmatpush.msra.mxu0 %v530_v6  ;;  %581 = vmatpush.msra.mxu1 %v531_v7  ;;  %v537_v21 = vld [vmem:[%s12935_s2 + $0xb8] sm:$0xff]  ;;  %v514_v22 = vld [vmem:[%s12935_s2] sm:$0xff]  ;;  %v515_v23 = vld [vmem:[%s12935_s2 + $0x8] sm:$0xff]  ;;  %s13731_s18 = sld [smem:[#allocation4_spill]] }
  0x23   : > { %601 = vmatpush.msra.mxu2 %v532_v15  ;;  %619 = vmatpush.msra.mxu3 %v541_v19  ;;  %v513_v24 = vld [vmem:[%s501_s23] sm:$0xff]  ;;  %v524_v25 = vld [vmem:[%s12935_s2 + $0x50] sm:$0xff]  ;;  %v533_v26 = vld [vmem:[%s12935_s2 + $0x98] sm:$0xff]  ;;  %s12692_s23 = smov 8  }
  0x24   : > { %562 = vmatpush.msra.mxu0 %v526_v10  ;;  %582 = vmatpush.msra.mxu1 %v527_v11  ;;  %v520_v27 = vld [vmem:[%s12935_s2 + $0x30] sm:$0xff]  ;;  %v529_v28 = vld [vmem:[%s12935_s2 + $0x78] sm:$0xff]  ;;  %v8724_v34 = vld [vmem:[#allocation1] sm:$0xff] }
  0x25   : > { %602 = vmatpush.msra.mxu2 %v528_v20  ;;  %620 = vmatpush.msra.mxu3 %v537_v21  ;;  %v516_v29 = vld [vmem:[%s12935_s2 + $0x10] sm:$0xff]  ;;  %v525_v30 = vld [vmem:[%s12935_s2 + $0x58] sm:$0xff]  ;;  %12938 = vst [vmem:[#allocation5_spill] sm:$0xff] %v8724_v34  ;;  %v634_v50 = vld [vmem:[%s12946_s3] sm:$0xff] }
  0x26   : > { %563 = vmatpush.msra.mxu0 %v522_v13  ;;  %583 = vmatpush.msra.mxu1 %v523_v14  ;;  %v521_v31 = vld [vmem:[%s12935_s2 + $0x38] sm:$0xff]  ;;  %v8726_v35 = vld [vmem:[#allocation1 + $0x9] sm:$0xff]  ;;  %v6564_v52 = vld [vmem:[%s12946_s3 + $0x20] sm:$0xff] }
  0x27   : > { %603 = vmatpush.msra.mxu2 %v524_v25  ;;  %621 = vmatpush.msra.mxu3 %v533_v26  ;;  %v517_v32 = vld [vmem:[%s12935_s2 + $0x18] sm:$0xff]  ;;  %12939 = vst [vmem:[#allocation6_spill] sm:$0xff] %v8726_v35  ;;  %v630_v55 = vld [vmem:[%s12948_s4] sm:$0xff]  ;;  %v635_v2 = vld [vmem:[%s12946_s3 + $0x8] sm:$0xff]  ;;  %s13035_s2 = smov 120  }
  0x28   : > { %564 = vmatpush.msra.mxu0 %v518_v17  ;;  %584 = vmatpush.msra.mxu1 %v519_v18  ;;  %v8728_v36 = vld [vmem:[#allocation1 + $0x12] sm:$0xff]  ;;  %v8730_v37 = vld [vmem:[#allocation1 + $0x1b] sm:$0xff]  ;;  %v6565_v3 = vld [vmem:[%s12946_s3 + $0x28] sm:$0xff]  ;;  %s7557_s12 = sshll.u32 %s13731_s18, 6 }
  0x29   : > { %604 = vmatpush.msra.mxu2 %v520_v27  ;;  %622 = vmatpush.msra.mxu3 %v529_v28  ;;  %12940 = vst [vmem:[#allocation7_spill] sm:$0xff] %v8728_v36  ;;  %v6568_v61 = vld [vmem:[%s12946_s3 + $0x40] sm:$0xff]  ;;  %v8810_v10 = vld [vmem:[%s8774_s28 + $0x8] sm:$0xff] }
  0x2a   : > { %565 = vmatpush.msra.mxu0 %v514_v22  ;;  %585 = vmatpush.msra.mxu1 %v515_v23  ;;  %12941 = vst [vmem:[#allocation8_spill] sm:$0xff] %v8730_v37  ;;  %v8801_v4 = vld [vmem:[%s8774_s28] sm:$0xff]  ;;  %v631_v13 = vld [vmem:[%s12948_s4 + $0x8] sm:$0xff] }
  0x2b   : > { %6560 = vmatmul.msk.f32.vlgmr.msra.gmra.mxu0 %vm546_vm0, %v513_v24  ;;  %6561 = vmatmul.msk.f32.vlgmr.msra.gmra.mxu1 %vm546_vm0, %v513_v24  ;;  %883 = vst [vmem:[#allocation1] ss:$9 sm:$0xff] %v6592_v38  ;;  %v6572_v6 = vld [vmem:[%s12946_s3 + $0x60] sm:$0xff]  ;;  %v6569_v14 = vld [vmem:[%s12946_s3 + $0x48] sm:$0xff]  ;;  %v1775_v28 = vpack.c.bf16 %v8810_v10, %v8801_v4 }
  0x2c   : > { %605 = vmatpush.msra.mxu2 %v516_v29  ;;  %623 = vmatpush.msra.mxu3 %v525_v30  ;;  %v6576_v20 = vld [vmem:[%s12946_s3 + $0x80] sm:$0xff]  ;;  %v6573_v22 = vld [vmem:[%s12946_s3 + $0x68] sm:$0xff] }
  0x2d   : > { %6562 = vmatmul.msk.f32.vlgmr.msra.gmra.mxu2 %vm546_vm0, %v513_v24  ;;  %v6580_v25 = vld [vmem:[%s12946_s3 + $0xa0] sm:$0xff]  ;;  %v6577_v30 = vld [vmem:[%s12946_s3 + $0x88] sm:$0xff]  ;;  %1779 = vst [vmem:[#allocation2 + $0x1a0] sm:$0xff] %v1775_v28 }
  0x2e   : > { %624 = vmatpush.msra.mxu3 %v521_v31  ;;  %v6596_v31 = vld [vmem:[%s12661_s5 + $0x14] sm:$0xf] }
  0x30   : > { %625 = vmatpush.msra.mxu3 %v517_v32 }
  0x31   : > { %6563 = vmatmul.msk.f32.vlgmr.msra.gmra.mxu3 %vm546_vm0, %v513_v24 }
  0x32   : > { %v8738_v40 = vld [vmem:[#allocation1] sm:$0xff]  ;;  %v8740_v41 = vld [vmem:[#allocation1 + $0x9] sm:$0xff]  ;;  %v8742_v42 = vld [vmem:[#allocation1 + $0x12] sm:$0xff] }
  0x33   : > { %12942 = vst [vmem:[#allocation9_spill] sm:$0xff] %v8738_v40  ;;  %v8744_v43 = vld [vmem:[#allocation1 + $0x1b] sm:$0xff] }
  0x34   : > { %12943 = vst [vmem:[#allocation10_spill] sm:$0xff] %v8740_v41 }
  0x35   : > { %12944 = vst [vmem:[#allocation11_spill] sm:$0xff] %v8742_v42  ;;  %v6609_v42 = vld [vmem:[%s12661_s5 + $0x4c] sm:$0xf] }
  0x36   : > { %12945 = vst [vmem:[#allocation12_spill] sm:$0xff] %v8744_v43 }
  0x37   : > { %960 = vst [vmem:[#allocation1] ss:$9 sm:$0xff] %v6593_v39 }
  0x3e   : > { %v8749_v45 = vld [vmem:[#allocation1] sm:$0xff]  ;;  %v8751_v46 = vld [vmem:[#allocation1 + $0x9] sm:$0xff]  ;;  %v8753_v47 = vld [vmem:[#allocation1 + $0x12] sm:$0xff] }
  0x3f   : > { %v8755_v48 = vld [vmem:[#allocation1 + $0x1b] sm:$0xff] }
  0x40   : > { %1037 = vst [vmem:[#allocation1] ss:$9 sm:$0xff] %v6594_v44 }
  0x47   : > { %v8782_v58 = vld [vmem:[#allocation1] sm:$0xff]  ;;  %v8784_v59 = vld [vmem:[#allocation1 + $0x9] sm:$0xff]  ;;  %v8789_v62 = vld [vmem:[#allocation1 + $0x12] sm:$0xff] }
  0x48   : > { %12949 = vst [vmem:[#allocation13_spill] sm:$0xff] %v8782_v58  ;;  %v8791_v63 = vld [vmem:[#allocation1 + $0x1b] sm:$0xff] }
  0x49   : > { %12950 = vst [vmem:[#allocation14_spill] sm:$0xff] %v8784_v59 }
  0x4a   : > { %12951 = vst [vmem:[#allocation15_spill] sm:$0xff] %v8789_v62 }
  0x4b   : > { %12952 = vst [vmem:[#allocation16_spill] sm:$0xff] %v8791_v63 }
  0x4c   : > { %1114 = vst [vmem:[#allocation1] ss:$9 sm:$0xff] %v6595_v54 }
  0x53   : > { %v8840_v44 = vld [vmem:[#allocation1] sm:$0xff] }
  0x54   : > { %12953 = vst [vmem:[#allocation17_spill] sm:$0xff] %v8840_v44 }
  0xa8   : > { %v8758_v49 = vpop.f32.mrf.mxu0  ;;  %v8780_v57 = vpop.f32.mrf.mxu1 }
  0xa9   : > { %v638_v51 = vperm.slane %v8758_v49, 0  ;;  %v655_v53 = vperm.slane %v8758_v49, 1  ;;  %v672_v56 = vperm.slane %v8758_v49, 2  ;;  %v689_v1 = vperm.slane %v8758_v49, 3 }
  0xaa   : > { %v639_v7 = vperm.slane %v8780_v57, 0  ;;  %v656_v8 = vperm.slane %v8780_v57, 1  ;;  %v673_v9 = vperm.slane %v8780_v57, 2  ;;  %v706_v12 = vperm.slane %v8758_v49, 4 }
  0xab   : > { %v642_v60 = vmul.f32 %v638_v51, %v634_v50  ;;  %v659_v0 = vmul.f32 %v6564_v52, %v655_v53  ;;  %v676_v11 = vmul.f32 %v6568_v61, %v672_v56  ;;  %v690_v18 = vperm.slane %v8780_v57, 3  ;;  %v8842_v50 = vld [vmem:[#allocation1 + $0x9] sm:$0xff]  ;;  %v8844_v51 = vld [vmem:[#allocation1 + $0x12] sm:$0xff]  ;;  %v6584_v53 = vld [vmem:[%s12946_s3 + $0xc0] sm:$0xff] }
  0xac   : > { %v643_v16 = vmul.f32 %v639_v7, %v635_v2  ;;  %v660_v17 = vmul.f32 %v6565_v3, %v656_v8  ;;  %v693_v19 = vmul.f32 %v6572_v6, %v689_v1  ;;  %v723_v21 = vperm.slane %v8758_v49, 5  ;;  %12954 = vst [vmem:[#allocation18_spill] sm:$0xff] %v8842_v50  ;;  %v6581_v2 = vld [vmem:[%s12946_s3 + $0xa8] sm:$0xff] }
  0xad   : > { %v646_v5 = vadd.f32 %v642_v60, %v630_v55  ;;  %v707_v23 = vperm.slane %v8780_v57, 4  ;;  %v677_v27 = vmul.f32 %v6569_v14, %v673_v9  ;;  %v740_v29 = vperm.slane %v8758_v49, 6  ;;  %12955 = vst [vmem:[#allocation19_spill] sm:$0xff] %v8844_v51  ;;  %v8850_v55 = vld [vmem:[#allocation1 + $0x1b] sm:$0xff]  ;;  %v6585_v8 = vld [vmem:[%s12946_s3 + $0xc8] sm:$0xff] }
  0xae   : > { %v647_v26 = vadd.f32 %v643_v16, %v631_v13  ;;  %v710_v33 = vmul.f32 %v6576_v20, %v706_v12  ;;  %v694_v39 = vmul.f32 %v6573_v22, %v690_v18  ;;  %v727_v52 = vmul.f32 %v6580_v25, %v723_v21  ;;  %12956 = vst [vmem:[#allocation20_spill] sm:$0xff] %v8850_v55  ;;  %v6588_v60 = vld [vmem:[%s12946_s3 + $0xe0] sm:$0xff]  ;;  %v6589_v14 = vld [vmem:[%s12946_s3 + $0xe8] sm:$0xff]  ;;  %v6597_v21 = vld [vmem:[%s12661_s5 + $0x18] sm:$0xf] }
  0xaf   : > { %v663_v15 = vadd.f32 %v659_v0, %v646_v5  ;;  %v757_v54 = vperm.slane %v8758_v49, 7  ;;  %v711_v0 = vmul.f32 %v6577_v30, %v707_v23  ;;  %v724_v1 = vperm.slane %v8780_v57, 5  ;;  %1191 = vst [vmem:[#allocation1] ss:$9 sm:$0xff] %v6596_v31  ;;  %v636_v31 = vld [vmem:[%s12946_s3 + $0x10] sm:$0xff] }
  0xb0   : > { %v664_v38 = vadd.f32 %v660_v17, %v647_v26  ;;  %v744_v5 = vmul.f32 %v6584_v53, %v740_v29  ;;  %v741_v49 = vperm.slane %v8780_v57, 6  ;;  %v758_v13 = vperm.slane %v8780_v57, 7  ;;  %v8890_v26 = vpop.f32.mrf.mxu2  ;;  %v6566_v53 = vld [vmem:[%s12946_s3 + $0x30] sm:$0xff] }
  0xb1   : > { %v680_v24 = vadd.f32 %v676_v11, %v663_v15  ;;  %v761_v7 = vmul.f32 %v6588_v60, %v757_v54  ;;  %v728_v12 = vmul.f32 %v6581_v2, %v724_v1  ;;  %v640_v28 = vperm.slane %v8890_v26, 0  ;;  %v6570_v60 = vld [vmem:[%s12946_s3 + $0x50] sm:$0xff] }
  0xb2   : > { %v681_v61 = vadd.f32 %v677_v27, %v664_v38  ;;  %v745_v17 = vmul.f32 %v6585_v8, %v741_v49  ;;  %v6598_v27 = vld [vmem:[%s12661_s5 + $0x1c] sm:$0xf]  ;;  %v6574_v8 = vld [vmem:[%s12946_s3 + $0x70] sm:$0xff] }
  0xb3   : > { %v697_v32 = vadd.f32 %v693_v19, %v680_v24  ;;  %v762_v19 = vmul.f32 %v6589_v14, %v758_v13  ;;  %v644_v38 = vmul.f32 %v640_v28, %v636_v31  ;;  %v6578_v13 = vld [vmem:[%s12946_s3 + $0x90] sm:$0xff]  ;;  %v6600_v14 = vld [vmem:[%s12661_s5 + $0x24] sm:$0xf] }
  0xb4   : > { %v698_v6 = vadd.f32 %v694_v39, %v681_v61  ;;  %v657_v39 = vperm.slane %v8890_v26, 1  ;;  %v674_v61 = vperm.slane %v8890_v26, 2  ;;  %v8970_v28 = vpop.f32.mrf.mxu3 }
  0xb5   : > { %v714_v56 = vadd.f32 %v710_v33, %v697_v32 }
  0xb6   : > { %v715_v11 = vadd.f32 %v711_v0, %v698_v6  ;;  %v8873_v22 = vld [vmem:[#allocation1] sm:$0xff]  ;;  %v8875_v23 = vld [vmem:[#allocation1 + $0x9] sm:$0xff]  ;;  %v8881_v24 = vld [vmem:[#allocation1 + $0x12] sm:$0xff]  ;;  %v678_v49 = vmul.f32 %v6570_v60, %v674_v61 }
  0xb7   : > { %v731_v3 = vadd.f32 %v727_v52, %v714_v56  ;;  %12957 = vst [vmem:[#allocation21_spill] sm:$0xff] %v8873_v22  ;;  %v632_v52 = vld [vmem:[%s12948_s4 + $0x10] sm:$0xff]  ;;  %v661_v56 = vmul.f32 %v6566_v53, %v657_v39  ;;  %v6599_v0 = vld [vmem:[%s12661_s5 + $0x20] sm:$0xf]  ;;  %v641_v39 = vperm.slane %v8970_v28, 0  ;;  %v637_v53 = vld [vmem:[%s12946_s3 + $0x18] sm:$0xff] }
  0xb8   : > { %v732_v16 = vadd.f32 %v728_v12, %v715_v11  ;;  %12958 = vst [vmem:[#allocation22_spill] sm:$0xff] %v8875_v23  ;;  %v648_v54 = vadd.f32 %v644_v38, %v632_v52  ;;  %v708_v12 = vperm.slane %v8890_v26, 4  ;;  %v742_v38 = vperm.slane %v8890_v26, 6  ;;  %v6586_v52 = vld [vmem:[%s12946_s3 + $0xd0] sm:$0xff] }
  0xb9   : > { %v748_v9 = vadd.f32 %v744_v5, %v731_v3  ;;  %12959 = vst [vmem:[#allocation23_spill] sm:$0xff] %v8881_v24 }
  0xba   : > { %v749_v18 = vadd.f32 %v745_v17, %v732_v16  ;;  %v665_v6 = vadd.f32 %v661_v56, %v648_v54  ;;  %v6601_v54 = vld [vmem:[%s12661_s5 + $0x28] sm:$0xf]  ;;  %v759_v56 = vperm.slane %v8890_v26, 7 }
  0xbb   : > { %v765_v15 = vadd.f32 %v761_v7, %v748_v9  ;;  %v691_v7 = vperm.slane %v8890_v26, 3 }
  0xbc   : > { %v766_v57 = vadd.f32 %v762_v19, %v749_v18  ;;  %v682_v9 = vadd.f32 %v678_v49, %v665_v6  ;;  %v746_v49 = vmul.f32 %v6586_v52, %v742_v38  ;;  %v692_v52 = vperm.slane %v8970_v28, 3 }
  0xbd   : > { %v8868_v20 = vpack.i.bf16 %v765_v15, %v8801_v4  ;;  %v8883_v4 = vld [vmem:[#allocation1 + $0x1b] sm:$0xff]  ;;  %v695_v11 = vmul.f32 %v6574_v8, %v691_v7  ;;  %v6590_v7 = vld [vmem:[%s12946_s3 + $0xf0] sm:$0xff]  ;;  %v645_v8 = vmul.f32 %v641_v39, %v637_v53 }
  0xbe   : > { %12960 = vst [vmem:[#allocation24_spill] sm:$0xff] %v8883_v4  ;;  %v8886_v25 = vpack.i.bf16 %v766_v57, %v8810_v10  ;;  %v1777_v33 = vpack.c.bf16 %v766_v57, %v765_v15  ;;  %v725_v57 = vperm.slane %v8890_v26, 5 }
  0xbf   : > { %7819 = vrot.lane.b32.xlu1 %v8868_v20, %s12686_s29  ;;  %7809 = vrot.lane.b32.xlu0 %v8868_v20, %s12672_s30  ;;  %1268 = vst [vmem:[#allocation1] ss:$9 sm:$0xff] %v6597_v21  ;;  %v699_v19 = vadd.f32 %v695_v11, %v682_v9  ;;  %v712_v21 = vmul.f32 %v6578_v13, %v708_v12  ;;  %v658_v9 = vperm.slane %v8970_v28, 1  ;;  %v633_v11 = vld [vmem:[%s12948_s4 + $0x18] sm:$0xff]  ;;  %s13041_s4 = smov 121  }
  0xc0   : > { %7824 = vrot.lane.b32.xlu2 %v8886_v25, %s12686_s29  ;;  %1781 = vst [vmem:[#allocation2 + $0x1b0] sm:$0xff] %v1777_v33  ;;  %v6567_v12 = vld [vmem:[%s12946_s3 + $0x38] sm:$0xff]  ;;  %v763_v13 = vmul.f32 %v6590_v7, %v759_v56 }
  0xc1   : > { %v716_v31 = vadd.f32 %v712_v21, %v699_v19  ;;  %v649_v19 = vadd.f32 %v645_v8, %v633_v11  ;;  %v662_v21 = vmul.f32 %v6567_v12, %v658_v9  ;;  %v709_v12 = vperm.slane %v8970_v28, 4 }
  0xc3   : > { %v666_v38 = vadd.f32 %v662_v21, %v649_v19  ;;  %v6583_v21 = vld [vmem:[%s12946_s3 + $0xb8] sm:$0xff] }
  0xc6   : > { %v8900_v10 = vld [vmem:[#allocation1] sm:$0xff]  ;;  %v8902_v29 = vld [vmem:[#allocation1 + $0x9] sm:$0xff]  ;;  %v8904_v30 = vld [vmem:[#allocation1 + $0x12] sm:$0xff] }
  0xc7   : > { %7834 = vrot.lane.b32.xlu1 %v8886_v25, %s12688_s16  ;;  %7814 = vrot.lane.b32.xlu0 %v8886_v25, %s12672_s30  ;;  %12961 = vst [vmem:[#allocation25_spill] sm:$0xff] %v8904_v30  ;;  %v8909_v32 = vld [vmem:[#allocation1 + $0x1b] sm:$0xff]  ;;  %s12680_s30 = smov 119  }
  0xc8   : > { %12962 = vst [vmem:[#allocation26_spill] sm:$0xff] %v8909_v32  ;;  %7904 = vrot.lane.b32.xlu2 %v8886_v25, %s12696_s24 }
  0xc9   : > { %1345 = vst [vmem:[#allocation1] ss:$9 sm:$0xff] %v6598_v27  ;;  %v6582_v27 = vld [vmem:[%s12946_s3 + $0xb0] sm:$0xff] }
  0xca   : > { %v729_v33 = vmul.f32 %v6582_v27, %v725_v57  ;;  %v675_v57 = vperm.slane %v8970_v28, 2  ;;  %v6571_v27 = vld [vmem:[%s12946_s3 + $0x58] sm:$0xff] }
  0xcc   : > { %v733_v6 = vadd.f32 %v729_v33, %v716_v31  ;;  %v6602_v31 = vld [vmem:[%s12661_s5 + $0x2c] sm:$0xf]  ;;  %v679_v39 = vmul.f32 %v6571_v27, %v675_v57  ;;  %v726_v57 = vperm.slane %v8970_v28, 5  ;;  %v6603_v27 = vld [vmem:[%s12661_s5 + $0x30] sm:$0xf] }
  0xce   : > { %v683_v9 = vadd.f32 %v679_v39, %v666_v38 }
  0xcf   : > { %7844 = vrot.lane.b32.xlu1 %v8886_v25, %s12690_s17  ;;  %7829 = vrot.lane.b32.xlu0 %v8868_v20, %s12688_s16 }
  0xd0   : > { %v8931_v1 = vld [vmem:[#allocation1] sm:$0xff]  ;;  %v8933_v2 = vld [vmem:[#allocation1 + $0x9] sm:$0xff]  ;;  %v8935_v3 = vld [vmem:[#allocation1 + $0x12] sm:$0xff]  ;;  %7914 = vrot.lane.b32.xlu2 %v8886_v25, %s12676_s26  ;;  %s12989_s26 = smov 119  }
  0xd1   : > { %v8937_v5 = vld [vmem:[#allocation1 + $0x1b] sm:$0xff] }
  0xd2   : > { %1422 = vst [vmem:[#allocation1] ss:$9 sm:$0xff] %v6599_v0 }
  0xd7   : > { %7854 = vrot.lane.b32.xlu1 %v8886_v25, %s12678_s20  ;;  %7839 = vrot.lane.b32.xlu0 %v8868_v20, %s12690_s17 }
  0xd8   : > { %7924 = vrot.lane.b32.xlu2 %v8886_v25, %s12674_s27  ;;  %s12694_s27 = smov 7  }
  0xd9   : > { %v8956_v15 = vld [vmem:[#allocation1] sm:$0xff]  ;;  %v8958_v16 = vld [vmem:[#allocation1 + $0x9] sm:$0xff]  ;;  %v8960_v17 = vld [vmem:[#allocation1 + $0x12] sm:$0xff] }
  0xda   : > { %12963 = vst [vmem:[#allocation27_spill] sm:$0xff] %v8956_v15  ;;  %v8962_v18 = vld [vmem:[#allocation1 + $0x1b] sm:$0xff] }
  0xdb   : > { %12964 = vst [vmem:[#allocation28_spill] sm:$0xff] %v8958_v16 }
  0xdc   : > { %12965 = vst [vmem:[#allocation29_spill] sm:$0xff] %v8960_v17 }
  0xdd   : > { %12966 = vst [vmem:[#allocation30_spill] sm:$0xff] %v8962_v18 }
  0xde   : > { %1499 = vst [vmem:[#allocation1] ss:$9 sm:$0xff] %v6600_v14  ;;  %v750_v14 = vadd.f32 %v746_v49, %v733_v6  ;;  %v771_v6 = vld [vmem:[%s8774_s28 + $0x10] sm:$0xff]  ;;  %v6575_v49 = vld [vmem:[%s12946_s3 + $0x78] sm:$0xff] }
  0xdf   : > { %7864 = vrot.lane.b32.xlu1 %v8886_v25, %s12684_s21  ;;  %7849 = vrot.lane.b32.xlu0 %v8868_v20, %s12678_s20  ;;  %s12704_s20 = smov 57   ;;  %v696_v11 = vmul.f32 %v6575_v49, %v692_v52  ;;  %v730_v49 = vmul.f32 %v6583_v21, %v726_v57 }
  0xe0   : > { %7939 = vrot.lane.b32.xlu2 %v8868_v20, %s12692_s23  ;;  %v9019_v33 = vadd.f32 %v763_v13, %v750_v14  ;;  %v6579_v13 = vld [vmem:[%s12946_s3 + $0x98] sm:$0xff] }
  0xe1   : > { %v700_v14 = vadd.f32 %v696_v11, %v683_v9  ;;  %v713_v19 = vmul.f32 %v6579_v13, %v709_v12  ;;  %v743_v9 = vperm.slane %v8970_v28, 6  ;;  %v6587_v11 = vld [vmem:[%s12946_s3 + $0xd8] sm:$0xff] }
  0xe2   : > { %12969 = vst [vmem:[#allocation33_spill] sm:$0xff] %v9019_v33  ;;  %v9037_v8 = vpack.i.bf16 %v9019_v33, %v771_v6 }
  0xe3   : > { %v717_v6 = vadd.f32 %v713_v19, %v700_v14  ;;  %v747_v13 = vmul.f32 %v6587_v11, %v743_v9  ;;  %v6591_v14 = vld [vmem:[%s12946_s3 + $0xf8] sm:$0xff]  ;;  %s13039_s3 = smov 72  }
  0xe4   : > { %v6604_v19 = vld [vmem:[%s12661_s5 + $0x38] sm:$0xf] }
  0xe5   : > { %v8988_v60 = vld [vmem:[#allocation1] sm:$0xff]  ;;  %v8990_v61 = vld [vmem:[#allocation1 + $0x9] sm:$0xff]  ;;  %v8992_v0 = vld [vmem:[#allocation1 + $0x12] sm:$0xff]  ;;  %v734_v12 = vadd.f32 %v730_v49, %v717_v6 }
  0xe6   : > { %12967 = vst [vmem:[#allocation31_spill] sm:$0xff] %v8992_v0  ;;  %v9000_v26 = vld [vmem:[#allocation1 + $0x1b] sm:$0xff] }
  0xe7   : > { %12968 = vst [vmem:[#allocation32_spill] sm:$0xff] %v9000_v26  ;;  %7874 = vrot.lane.b32.xlu1 %v8886_v25, %s12682_s22  ;;  %7859 = vrot.lane.b32.xlu0 %v8868_v20, %s12684_s21  ;;  %s12985_s21 = smov 73   ;;  %v9244_v26 = vld [vmem:[#allocation2 + $0x1ac] sm:$0xf0] }
  0xe8   : > { %1576 = vst [vmem:[#allocation1] ss:$9 sm:$0xff] %v6601_v54  ;;  %7949 = vrot.lane.b32.xlu2 %v8868_v20, %s12680_s30  ;;  %s12700_s30 = smov 72  }
  0xef   : > { %v9024_v53 = vld [vmem:[#allocation1] sm:$0xff]  ;;  %v9026_v54 = vld [vmem:[#allocation1 + $0x9] sm:$0xff]  ;;  %v9028_v56 = vld [vmem:[#allocation1 + $0x12] sm:$0xff]  ;;  %7884 = vrot.lane.b32.xlu1 %v8886_v25, %s12704_s20  ;;  %7869 = vrot.lane.b32.xlu0 %v8868_v20, %s12682_s22  ;;  %s12982_s22 = smov 1  }
  0xf0   : > { %12970 = vst [vmem:[#allocation34_spill] sm:$0xff] %v9024_v53  ;;  %v9034_v7 = vld [vmem:[#allocation1 + $0x1b] sm:$0xff]  ;;  %7984 = vrot.lane.b32.xlu2 %v9037_v8, %s12686_s29  ;;  %s13032_s29 = smov 65  }
  0xf1   : > { %12971 = vst [vmem:[#allocation35_spill] sm:$0xff] %v9026_v54 }
  0xf2   : > { %12972 = vst [vmem:[#allocation36_spill] sm:$0xff] %v9028_v56  ;;  %v6607_v56 = vld [vmem:[%s12661_s5 + $0x44] sm:$0xf] }
  0xf3   : > { %12973 = vst [vmem:[#allocation37_spill] sm:$0xff] %v9034_v7 }
  0xf4   : > { %1653 = vst [vmem:[#allocation1] ss:$9 sm:$0xff] %v6602_v31 }
  0xf7   : > { %7894 = vrot.lane.b32.xlu1 %v8886_v25, %s12700_s30  ;;  %7879 = vrot.lane.b32.xlu0 %v8868_v20, %s12704_s20 }
  0xf8   : > { %7989 = vrot.lane.b32.xlu2 %v9037_v8, %s12688_s16  ;;  %s12988_s16 = smov 127  }
  0xfb   : > { %v9056_v31 = vld [vmem:[#allocation1] sm:$0xff]  ;;  %v9058_v38 = vld [vmem:[#allocation1 + $0x9] sm:$0xff]  ;;  %v9060_v39 = vld [vmem:[#allocation1 + $0x12] sm:$0xff] }
  0xfc   : > { %12974 = vst [vmem:[#allocation38_spill] sm:$0xff] %v9060_v39  ;;  %v9062_v52 = vld [vmem:[#allocation1 + $0x1b] sm:$0xff] }
  0xfd   : > { %12975 = vst [vmem:[#allocation39_spill] sm:$0xff] %v9062_v52  ;;  %v772_v52 = vld [vmem:[%s8774_s28 + $0x18] sm:$0xff] }
  0xfe   : > { %1730 = vst [vmem:[#allocation1] ss:$9 sm:$0xff] %v6603_v27  ;;  %v760_v27 = vperm.slane %v8970_v28, 7  ;;  %v751_v28 = vadd.f32 %v747_v13, %v734_v12  ;;  %v6605_v39 = vld [vmem:[%s12661_s5 + $0x3c] sm:$0xf] }
  0xff   : > { %7899 = vrot.lane.b32.xlu1 %v8868_v20, %s12696_s24  ;;  %7889 = vrot.lane.b32.xlu0 %v8868_v20, %s12700_s30  ;;  %s12702_s24 = smov 120  }
 0x100   : > { %v764_v9 = vmul.f32 %v6591_v14, %v760_v27  ;;  %7994 = vrot.lane.b32.xlu2 %v9037_v8, %s12690_s17  ;;  %s13012_s17 = smov 7  }
 0x102   : > { %v9093_v11 = vadd.f32 %v764_v9, %v751_v28 }
 0x104   : > { %12980 = vst [vmem:[#allocation44_spill] sm:$0xff] %v9093_v11  ;;  %v9108_v27 = vpack.i.bf16 %v9093_v11, %v772_v52 }
 0x105   : > { %v9081_v21 = vld [vmem:[#allocation1] sm:$0xff]  ;;  %v9083_v57 = vld [vmem:[#allocation1 + $0x9] sm:$0xff]  ;;  %v9085_v6 = vld [vmem:[#allocation1 + $0x12] sm:$0xff] }
 0x106   : > { %12976 = vst [vmem:[#allocation40_spill] sm:$0xff] %v9081_v21  ;;  %v9087_v49 = vld [vmem:[#allocation1 + $0x1b] sm:$0xff] }
 0x107   : > { %12977 = vst [vmem:[#allocation41_spill] sm:$0xff] %v9083_v57  ;;  %7909 = vrot.lane.b32.xlu1 %v8868_v20, %s12982_s22  ;;  %7929 = vrot.lane.b32.xlu0 %v8868_v20, %s12694_s27 }
 0x108   : > { %12978 = vst [vmem:[#allocation42_spill] sm:$0xff] %v9085_v6  ;;  %7999 = vrot.lane.b32.xlu2 %v9108_v27, %s12984_s25 }
 0x109   : > { %12979 = vst [vmem:[#allocation43_spill] sm:$0xff] %v9087_v49 }
 0x10a   : > { %1815 = vst [vmem:[#allocation1] ss:$9 sm:$0xff] %v6604_v19  ;;  %v6606_v19 = vld [vmem:[%s12661_s5 + $0x40] sm:$0xf] }
 0x10f   : > { %7919 = vrot.lane.b32.xlu1 %v8868_v20, %s12985_s21  ;;  %7944 = vrot.lane.b32.xlu0 %v8886_v25, %s12692_s23  ;;  %s12994_s23 = smov 71  }
 0x110   : > { %8004 = vrot.lane.b32.xlu2 %v9037_v8, %s12988_s16 }
 0x111   : > { %v9101_v7 = vld [vmem:[#allocation1] sm:$0xff]  ;;  %v9103_v12 = vld [vmem:[#allocation1 + $0x9] sm:$0xff]  ;;  %v9105_v13 = vld [vmem:[#allocation1 + $0x12] sm:$0xff] }
 0x112   : > { %12981 = vst [vmem:[#allocation45_spill] sm:$0xff] %v9105_v13  ;;  %v9114_v14 = vld [vmem:[#allocation1 + $0x1b] sm:$0xff] }
 0x113   : > { %12983 = vst [vmem:[#allocation46_spill] sm:$0xff] %v9114_v14  ;;  %v6608_v14 = vld [vmem:[%s12661_s5 + $0x48] sm:$0xf] }
 0x114   : > { %1892 = vst [vmem:[#allocation1] ss:$9 sm:$0xff] %v6605_v39 }
 0x117   : > { %7934 = vrot.lane.b32.xlu1 %v8886_v25, %s12694_s27  ;;  %7954 = vrot.lane.b32.xlu0 %v8886_v25, %s12989_s26  ;;  %s12698_s27 = smov 9  }
 0x118   : > { %8009 = vrot.lane.b32.xlu2 %v9037_v8, %s12994_s23 }
 0x11a   : > { %v9152_v34 = vpop.permute.xlu2 %7824 }
 0x11b   : > { %v9125_v52 = vld [vmem:[#allocation1] sm:$0xff]  ;;  %v9127_v28 = vld [vmem:[#allocation1 + $0x9] sm:$0xff]  ;;  %v9129_v9 = vld [vmem:[#allocation1 + $0x12] sm:$0xff]  ;;  %v7827_v33 = vunpack.i.h.bf16 %v9152_v34 }
 0x11c   : > { %12986 = vst [vmem:[#allocation47_spill] sm:$0xff] %v9129_v9  ;;  %v9131_v39 = vld [vmem:[#allocation1 + $0x1b] sm:$0xff] }
 0x11d   : > { %12987 = vst [vmem:[#allocation48_spill] sm:$0xff] %v9131_v39 }
 0x11e   : > { %1969 = vst [vmem:[#allocation1] ss:$9 sm:$0xff] %v6606_v19 }
 0x11f   : > { %7964 = vrot.lane.b32.xlu1 %v8886_v25, %s12698_s27  ;;  %7959 = vrot.lane.b32.xlu0 %v8868_v20, %s12698_s27  ;;  %s13004_s27 = smov 63  }
 0x120   : > { %8014 = vrot.lane.b32.xlu2 %v9108_v27, %s12704_s20  ;;  %s13020_s20 = smov 9  }
 0x122   : > { %v9171_v43 = vpop.permute.xlu2 %7904 }
 0x125   : > { %v9142_v37 = vld [vmem:[#allocation1] sm:$0xff]  ;;  %v9144_v36 = vld [vmem:[#allocation1 + $0x9] sm:$0xff]  ;;  %v9146_v35 = vld [vmem:[#allocation1 + $0x12] sm:$0xff] }
 0x126   : > { %12990 = vst [vmem:[#allocation49_spill] sm:$0xff] %v9142_v37  ;;  %v9148_v19 = vld [vmem:[#allocation1 + $0x1b] sm:$0xff] }
 0x127   : > { %12991 = vst [vmem:[#allocation50_spill] sm:$0xff] %v9144_v36  ;;  %7974 = vrot.lane.b32.xlu1 %v8886_v25, %s12702_s24  ;;  %7969 = vrot.lane.b32.xlu0 %v8868_v20, %s12702_s24  ;;  %s13010_s24 = smov 55  }
 0x128   : > { %12992 = vst [vmem:[#allocation51_spill] sm:$0xff] %v9146_v35  ;;  %8019 = vrot.lane.b32.xlu2 %v9037_v8, %s12700_s30  ;;  %s13009_s30 = smov 64  }
 0x129   : > { %12993 = vst [vmem:[#allocation52_spill] sm:$0xff] %v9148_v19 }
 0x12a   : > { %2046 = vst [vmem:[#allocation1] ss:$9 sm:$0xff] %v6607_v56  ;;  %v9190_v25 = vpop.permute.xlu2 %7914 }
 0x12b   : > { %13003 = vst [vmem:[#allocation61_spill] sm:$0xff] %v9190_v25 }
 0x12f   : > { %7979 = vrot.lane.b32.xlu1 %v9037_v8, %s13004_s27  ;;  %8024 = vrot.lane.b32.xlu0 %v9108_v27, %s13004_s27 }
 0x130   : > { %8049 = vrot.lane.b32.xlu2 %v9037_v8, %s12984_s25 }
 0x131   : > { %v9161_v35 = vld [vmem:[#allocation1] sm:$0xff]  ;;  %v9163_v19 = vld [vmem:[#allocation1 + $0x9] sm:$0xff]  ;;  %v9165_v56 = vld [vmem:[#allocation1 + $0x12] sm:$0xff]  ;;  %v9196_v20 = vpop.permute.xlu1 %7819  ;;  %v9198_v40 = vpop.permute.xlu0 %7809 }
 0x132   : > { %12995 = vst [vmem:[#allocation53_spill] sm:$0xff] %v9161_v35  ;;  %v9167_v13 = vld [vmem:[#allocation1 + $0x1b] sm:$0xff]  ;;  %v9213_v16 = vpop.permute.xlu2 %7924  ;;  %v9242_v35 = vld [vmem:[#allocation2 + $0x1a0] sm:$0xf]  ;;  %v13021_v39 = vunpack.i.h.bf16 %v9196_v20  ;;  %v13023_v57 = vunpack.i.l.bf16 %v9196_v20 }
 0x133   : > { %12996 = vst [vmem:[#allocation54_spill] sm:$0xff] %v9163_v19  ;;  %v789_v19 = vlaneseq }
 0x134   : > { %12997 = vst [vmem:[#allocation55_spill] sm:$0xff] %v9165_v56 }
 0x135   : > { %12998 = vst [vmem:[#allocation56_spill] sm:$0xff] %v9167_v13 }
 0x136   : > { %2098 = vst [vmem:[#allocation1] ss:$9 sm:$0xff] %v6608_v14 }
 0x137   : > { %13005 = vst [vmem:[#allocation62_spill] sm:$0xff] %v9196_v20  ;;  %8044 = vrot.lane.b32.xlu1 %v9108_v27, %s13009_s30  ;;  %8029 = vrot.lane.b32.xlu0 %v9037_v8, %s13010_s24  ;;  %v13029_v20 = vunpack.i.h.bf16 %v9198_v40 }
 0x138   : > { %13006 = vst [vmem:[#allocation63_spill] sm:$0xff] %v9198_v40  ;;  %8054 = vrot.lane.b32.xlu2 %v9108_v27, %s13012_s17 }
 0x139   : > { %v9219_v15 = vpop.permute.xlu1 %7834  ;;  %v9221_v63 = vpop.permute.xlu0 %7814 }
 0x13a   : > { %13011 = vst [vmem:[#allocation66_spill] sm:$0xff] %v9221_v63  ;;  %v9234_v59 = vpop.permute.xlu2 %7939  ;;  %v7837_v21 = vunpack.i.h.bf16 %v9219_v15 }
 0x13d   : > { %v9180_v56 = vld [vmem:[#allocation1] sm:$0xff]  ;;  %v9182_v13 = vld [vmem:[#allocation1 + $0x9] sm:$0xff]  ;;  %v9184_v41 = vld [vmem:[#allocation1 + $0x12] sm:$0xff] }
 0x13e   : > { %12999 = vst [vmem:[#allocation57_spill] sm:$0xff] %v9180_v56  ;;  %v9188_v14 = vld [vmem:[#allocation1 + $0x1b] sm:$0xff] }
 0x13f   : > { %13000 = vst [vmem:[#allocation58_spill] sm:$0xff] %v9182_v13  ;;  %8064 = vrot.lane.b32.xlu1 %v9037_v8, %s13013_s0  ;;  %8034 = vrot.lane.b32.xlu0 %v9108_v27, %s12982_s22  ;;  %v9252_v13 = vand.u32 127, %v789_v19  ;;  %v1897_v19 = vpack.i.b16 %v9125_v52, %v9125_v52  ;;  %v13025_v52 = vunpack.i.l.bf16 %v9221_v63 }
 0x140   : > { %13001 = vst [vmem:[#allocation59_spill] sm:$0xff] %v9184_v41  ;;  %v6610_v41 = vld [vmem:[%s12661_s5 + $0x50] sm:$0xf]  ;;  %8079 = vrot.lane.b32.xlu2 %v9108_v27, %s12994_s23 }
 0x141   : > { %13002 = vst [vmem:[#allocation60_spill] sm:$0xff] %v9188_v14  ;;  %v9246_v0 = vpop.permute.xlu1 %7844  ;;  %v9248_v11 = vpop.permute.xlu0 %7829  ;;  %vm1098_vm1 = vcmp.lt.s32.totalorder %v9252_v13, 64  ;;  %vm1175_vm2 = vcmp.lt.s32.totalorder %v9252_v13, 63  ;;  %vm1876_vm3 = vcmp.lt.s32.totalorder %v9252_v13, 121  ;;  %v9298_v32 = vperm.slane %v1897_v19, 0 }
 0x142   : > { %2150 = vst [vmem:[#allocation1] ss:$9 sm:$0xff] %v6609_v42  ;;  %v9259_v56 = vpop.permute.xlu2 %7949  ;;  %v7836_v19 = vunpack.i.l.bf16 %v9219_v15  ;;  %vm1021_vm4 = vcmp.lt.s32.totalorder %v9252_v13, 65  ;;  %vm1329_vm5 = vcmp.lt.s32.totalorder %v9252_v13, 56  ;;  %vm1799_vm6 = vcmp.lt.s32.totalorder %v9252_v13, 127 }
 0x143   : > { %13014 = vst [vmem:[#allocation67_spill] sm:$0xff] %v9248_v11  ;;  %vm944_vm7 = vcmp.lt.s32.totalorder %v9252_v13, 71  ;;  %vm12803_vm8 = vcmp.lt.s32.totalorder %v9252_v13, 57  ;;  %vm12806_vm9 = vcmp.lt.s32.totalorder %v9252_v13, 55  ;;  %vm867_vm10 = vcmp.lt.s32.totalorder %v9252_v13, 72 }
 0x144   : > { %13015 = vst [vmem:[#allocation68_spill] sm:$0xff] %v9259_v56  ;;  %v7826_v56 = vunpack.i.l.bf16 %v9152_v34  ;;  %v13026_v34 = vunpack.i.l.bf16 %v9198_v40  ;;  %vm1714_vm11 = vcmp.lt.s32.totalorder %v9252_v13, 1  ;;  %vm12817_vm12 = vcmp.lt.s32.totalorder %v9252_v13, 73 }
 0x145   : > { %vm12818_vm13 = vcmp.lt.s32.totalorder %v9252_v13, 8  ;;  %vm1637_vm14 = vcmp.lt.s32.totalorder %v9252_v13, 7  ;;  %vm12816_vm15 = vcmp.lt.s32.totalorder %v9252_v13, 9  ;;  %vm12813_vm0 = vcmp.lt.s32.totalorder %v9252_v13, 120 }
 0x146   : > { %v9322_v9 = vsel %vm1175_vm2, %v13026_v34, %v13025_v52 }
 0x147   : > { %8069 = vrot.lane.b32.xlu1 %v9108_v27, %s13018_s1  ;;  %8039 = vrot.lane.b32.xlu0 %v9037_v8, %s12985_s21  ;;  %13027 = vst [vmem:[#allocation74_spill] sm:$0xff] %v9322_v9 }
 0x148   : > { %8084 = vrot.lane.b32.xlu2 %v9108_v27, %s13020_s20 }
 0x149   : > { %v9205_v42 = vld [vmem:[#allocation1] sm:$0xff]  ;;  %v9207_v14 = vld [vmem:[#allocation1 + $0x9] sm:$0xff]  ;;  %v9209_v18 = vld [vmem:[#allocation1 + $0x12] sm:$0xff]  ;;  %v9286_v30 = vpop.permute.xlu0 %7839 }
 0x14a   : > { %13007 = vst [vmem:[#allocation64_spill] sm:$0xff] %v9209_v18  ;;  %v9211_v17 = vld [vmem:[#allocation1 + $0x1b] sm:$0xff]  ;;  %v9332_v55 = vpop.permute.xlu2 %7984 }
 0x14b   : > { %13008 = vst [vmem:[#allocation65_spill] sm:$0xff] %v9211_v17  ;;  %v6611_v17 = vld [vmem:[%s12661_s5 + $0x54] sm:$0xf]  ;;  %v12713_v44 = vunpack.i.h.bf16 %v9332_v55  ;;  %v12714_v36 = vunpack.i.l.bf16 %v9332_v55 }
 0x14c   : > { %2202 = vst [vmem:[#allocation1] ss:$9 sm:$0xff] %v6610_v41 }
 0x14d   : > { %13019 = vst [vmem:[#allocation71_spill] sm:$0xff] %v9286_v30 }
 0x14e   : > { %13031 = vst [vmem:[#allocation76_spill] sm:$0xff] %v9332_v55 }
 0x14f   : > { %8074 = vrot.lane.b32.xlu1 %v9037_v8, %s12989_s26  ;;  %8059 = vrot.lane.b32.xlu0 %v9108_v27, %s13032_s29 }
 0x150   : > { %8089 = vrot.lane.b32.xlu2 %v9037_v8, %s13035_s2 }
 0x152   : > { %v9382_v23 = vpop.permute.xlu2 %7989 }
 0x153   : > { %v9228_v18 = vld [vmem:[#allocation1] sm:$0xff]  ;;  %v9230_v41 = vld [vmem:[#allocation1 + $0x9] sm:$0xff]  ;;  %v9232_v62 = vld [vmem:[#allocation1 + $0x12] sm:$0xff]  ;;  %13037 = vst [vmem:[#allocation79_spill] sm:$0xff] %v9382_v23  ;;  %v12722_v22 = vunpack.i.h.bf16 %v9382_v23 }
 0x154   : > { %v9236_v58 = vld [vmem:[#allocation1 + $0x1b] sm:$0xff] }
 0x155   : > { %2254 = vst [vmem:[#allocation1] ss:$9 sm:$0xff] %v6611_v17  ;;  %v6612_v17 = vld [vmem:[%s12661_s5 + $0x58] sm:$0xf] }
 0x157   : > { %8099 = vrot.lane.b32.xlu1 %v9108_v27, %s13010_s24  ;;  %8094 = vrot.lane.b32.xlu0 %v9108_v27, %s13039_s3 }
 0x158   : > { %8104 = vrot.lane.b32.xlu2 %v9108_v27, %s13041_s4 }
 0x15c   : > { %v9261_v54 = vld [vmem:[#allocation1] sm:$0xff]  ;;  %v9263_v53 = vld [vmem:[#allocation1 + $0x9] sm:$0xff]  ;;  %v9265_v49 = vld [vmem:[#allocation1 + $0x12] sm:$0xff] }
 0x15d   : > { %13016 = vst [vmem:[#allocation69_spill] sm:$0xff] %v9265_v49  ;;  %v9267_v6 = vld [vmem:[#allocation1 + $0x1b] sm:$0xff]  ;;  %v9312_v49 = vsel %vm1098_vm1, %v13023_v57, %v7826_v56 }
 0x15e   : > { %13017 = vst [vmem:[#allocation70_spill] sm:$0xff] %v9267_v6  ;;  %v1900_v6 = vpack.i.b16 %v9127_v28, %v9127_v28  ;;  %v9306_v28 = vsel %vm1098_vm1, %v13021_v39, %v7827_v33  ;;  %v13028_v39 = vunpack.i.h.bf16 %v9221_v63 }
 0x15f   : > { %2306 = vst [vmem:[#allocation1] ss:$9 sm:$0xff] %v6612_v17  ;;  %v9284_v17 = vpop.permute.xlu1 %7854  ;;  %8114 = vrot.lane.b32.xlu1 %v9108_v27, %s12988_s16  ;;  %8109 = vrot.lane.b32.xlu0 %v9108_v27, %s12985_s21 }
 0x160   : > { %13022 = vst [vmem:[#allocation72_spill] sm:$0xff] %v9306_v28  ;;  %v9330_v57 = vsel %vm1175_vm2, %v13029_v20, %v13028_v39  ;;  %v9337_v52 = vperm.slane %v1900_v6, 0  ;;  %v9350_v6 = vsel %vm1098_vm1, %v7827_v33, %v12713_v44  ;;  %v9367_v44 = vpop.permute.xlu0 %7849  ;;  %8119 = vrot.lane.b32.xlu2 %v9037_v8, %s12982_s22 }
 0x161   : > { %13024 = vst [vmem:[#allocation73_spill] sm:$0xff] %v9312_v49  ;;  %v2301_v39 = vpack.c.bf16 %v9350_v6, %v9306_v28  ;;  %v13036_v28 = vunpack.i.h.bf16 %v9248_v11 }
 0x162   : > { %13030 = vst [vmem:[#allocation75_spill] sm:$0xff] %v9330_v57 }
 0x163   : > { %13033 = vst [vmem:[#allocation77_spill] sm:$0xff] %v9350_v6  ;;  %v1882_v6 = vsel %vm1876_vm3, %v13036_v28, %v7837_v21  ;;  %v2328_v4 = vunpack.c.h.bf16 %v2301_v39  ;;  %v12721_v28 = vunpack.i.l.bf16 %v9382_v23 }
 0x166   : > { %v2307_v51 = vld [vmem:[#allocation1] sm:$0xff]  ;;  %v2308_v50 = vld [vmem:[#allocation1 + $0x9] sm:$0xff] }
 0x167   : > { %v2311_v37 = vpack.i.b16 %v2307_v51, %v2307_v51  ;;  %v2314_v40 = vpack.i.b16 %v2308_v50, %v2308_v50  ;;  %v9356_v50 = vsel %vm1098_vm1, %v7826_v56, %v12714_v36  ;;  %v2259_v51 = vpack.i.b16 %v9261_v54, %v9261_v54  ;;  %v9365_v33 = vpop.permute.xlu1 %7864  ;;  %8129 = vrot.lane.b32.xlu1 %v9037_v8, %s13018_s1 }
 0x168   : > { %13034 = vst [vmem:[#allocation78_spill] sm:$0xff] %v9356_v50  ;;  %v2299_v20 = vpack.c.bf16 %v9356_v50, %v9312_v49  ;;  %v1918_v54 = vunpack.c.l.bf16 %v9337_v52  ;;  %v2327_v56 = vunpack.c.l.bf16 %v2301_v39  ;;  %v13038_v39 = vunpack.i.l.bf16 %v9248_v11  ;;  %8124 = vrot.lane.b32.xlu0 %v9037_v8, %s13012_s17  ;;  %8134 = vrot.lane.b32.xlu2 %v9037_v8, %s13020_s20  ;;  %v6614_v8 = vld [vmem:[%s12661_s5 + $0x60] sm:$0xf] }
 0x169   : > { %v2313_v34 = vperm.slane %v2311_v37, 0  ;;  %v2316_v15 = vperm.slane %v2314_v40, 0  ;;  %v2262_v37 = vpack.i.b16 %v9263_v53, %v9263_v53  ;;  %v9380_v36 = vperm.slane %v2259_v51, 0 }
 0x16a   : > { %v2323_v49 = vunpack.c.l.bf16 %v2299_v20  ;;  %v2324_v55 = vunpack.c.h.bf16 %v2299_v20  ;;  %v1350_v53 = vpack.i.b16 %v8931_v1, %v8931_v1 }
 0x16b   : > { %v2331_v40 = vunpack.c.l.bf16 %v2313_v34  ;;  %v2332_v50 = vunpack.c.l.bf16 %v2316_v15  ;;  %v1353_v15 = vpack.i.b16 %v8933_v2, %v8933_v2 }
 0x16d   : > { %v2335_v52 = vmul.f32 %v2331_v40, %v2323_v49  ;;  %v2336_v24 = vmul.f32 %v2332_v50, %v2324_v55  ;;  %v2339_v34 = vmul.f32 %v2331_v40, %v2327_v56  ;;  %v2340_v20 = vmul.f32 %v2332_v50, %v2328_v4 }
 0x16e   : > { %v1881_v49 = vsel %vm1876_vm3, %v13038_v39, %v7836_v19  ;;  %v9400_v4 = vperm.slane %v2262_v37, 0  ;;  %v1880_v50 = vsel %vm1876_vm3, %v7837_v21, %v12722_v22  ;;  %v7846_v56 = vunpack.i.l.bf16 %v9246_v0 }
 0x16f   : > { %v2343_v55 = vpack.c.bf16 %v2336_v24, %v2335_v52  ;;  %v2345_v1 = vpack.c.bf16 %v2340_v20, %v2339_v34  ;;  %v1879_v24 = vsel %vm1876_vm3, %v7836_v19, %v12721_v28  ;;  %v1887_v52 = vpack.c.bf16 %v1880_v50, %v1882_v6  ;;  %v9413_v34 = vpop.permute.xlu1 %7874  ;;  %v9415_v20 = vpop.permute.xlu0 %7859  ;;  %8144 = vrot.lane.b32.xlu1 %v9108_v27, %s13035_s2 }
 0x170   : > { %v1885_v37 = vpack.c.bf16 %v1879_v24, %v1881_v49  ;;  %13040 = vst [vmem:[#allocation80_spill] sm:$0xff] %v9415_v20  ;;  %v2279_v19 = vunpack.c.l.bf16 %v9380_v36  ;;  %v9419_v28 = vperm.slane %v1350_v53, 0  ;;  %v9421_v2 = vperm.slane %v1353_v15, 0  ;;  %8139 = vrot.lane.b32.xlu0 %v9108_v27, %s12989_s26 }
 0x171   : > { %2347 = vst [vmem:[#allocation2 + $0x2c0] sm:$0xff] %v2343_v55  ;;  %v1913_v55 = vunpack.c.l.bf16 %v1887_v52  ;;  %v1914_v51 = vunpack.c.h.bf16 %v1887_v52  ;;  %v13042_v6 = vunpack.i.h.bf16 %v9246_v0  ;;  %v13043_v49 = vunpack.i.h.bf16 %v9286_v30 }
 0x172   : > { %2349 = vst [vmem:[#allocation2 + $0x2d0] sm:$0xff] %v2345_v1  ;;  %v1909_v21 = vunpack.c.l.bf16 %v1885_v37  ;;  %v1910_v22 = vunpack.c.h.bf16 %v1885_v37  ;;  %v13045_v36 = vunpack.i.l.bf16 %v9286_v30  ;;  %v2280_v15 = vunpack.c.l.bf16 %v9400_v4 }
 0x173   : > { %v9431_v1 = vsel %vm1021_vm4, %v13043_v49, %v13042_v6  ;;  %v1820_v24 = vpack.i.b16 %v9101_v7, %v9101_v7  ;;  %v13047_v50 = vunpack.c.l.bf16 %v9298_v32  ;;  %v1926_v6 = vmul.f32 %v1918_v54, %v1914_v51  ;;  %v9446_v49 = vpop.permute.xlu2 %7994 }
 0x174   : > { %13044 = vst [vmem:[#allocation81_spill] sm:$0xff] %v9431_v1  ;;  %v9437_v53 = vsel %vm1021_vm4, %v13045_v36, %v7846_v56  ;;  %v1922_v52 = vmul.f32 %v1918_v54, %v1910_v22  ;;  %v7852_v30 = vunpack.i.h.bf16 %v9367_v44  ;;  %v12728_v36 = vunpack.i.h.bf16 %v9446_v49 }
 0x175   : > { %13046 = vst [vmem:[#allocation82_spill] sm:$0xff] %v9437_v53  ;;  %v1921_v37 = vmul.f32 %v13047_v50, %v1909_v21  ;;  %v13048_v39 = vmov %v13047_v50  ;;  %v12727_v11 = vunpack.i.l.bf16 %v9446_v49  ;;  %v1823_v7 = vpack.i.b16 %v9103_v12, %v9103_v12 }
 0x176   : > { %v1925_v40 = vmul.f32 %v13048_v39, %v1913_v55  ;;  %13049 = vst [vmem:[#allocation83_spill] sm:$0xff] %v9446_v49  ;;  %v7851_v54 = vunpack.i.l.bf16 %v9367_v44  ;;  %v13051_v12 = vunpack.i.h.bf16 %v9246_v0  ;;  %v9475_v39 = vperm.slane %v1820_v24, 0  ;;  %v9503_v44 = vld [vmem:[#allocation1 + $0x1b] sm:$0xff] }
 0x177   : > { %v1929_v4 = vpack.c.bf16 %v1922_v52, %v1921_v37  ;;  %v9465_v51 = vsel %vm1021_vm4, %v7846_v56, %v12727_v11  ;;  %v9483_v37 = vpop.permute.xlu1 %7884  ;;  %v9485_v0 = vpop.permute.xlu0 %7869  ;;  %v13054_v52 = vunpack.i.h.bf16 %v9284_v17  ;;  %13056 = vst [vmem:[#allocation88_spill] sm:$0xff] %v9503_v44  ;;  %v2158_v27 = vpack.i.b16 %v9207_v14, %v9207_v14 }
 0x178   : > { %v1931_v21 = vpack.c.bf16 %v1926_v6, %v1925_v40  ;;  %13050 = vst [vmem:[#allocation84_spill] sm:$0xff] %v9465_v51  ;;  %v9473_v40 = vsel %vm1021_vm4, %v13051_v12, %v12728_v36  ;;  %v2247_v50 = vpack.c.bf16 %v9465_v51, %v9437_v53  ;;  %v9493_v6 = vperm.slane %v1823_v7, 0  ;;  %v6613_v7 = vld [vmem:[%s12661_s5 + $0x5c] sm:$0xf] }
 0x179   : > { %13052 = vst [vmem:[#allocation85_spill] sm:$0xff] %v9473_v40  ;;  %v2249_v56 = vpack.c.bf16 %v9473_v40, %v9431_v1  ;;  %v9491_v24 = vsel %vm1329_vm5, %v7852_v30, %v13054_v52  ;;  %v2210_v12 = vpack.i.b16 %v9230_v41, %v9230_v41 }
 0x17a   : > { %1933 = vst [vmem:[#allocation2 + $0x1e0] sm:$0xff] %v1929_v4  ;;  %v2207_v4 = vpack.i.b16 %v9228_v18, %v9228_v18  ;;  %v2271_v11 = vunpack.c.l.bf16 %v2247_v50  ;;  %v2272_v36 = vunpack.c.h.bf16 %v2247_v50  ;;  %v13057_v18 = vunpack.i.l.bf16 %v9284_v17 }
 0x17b   : > { %13053 = vst [vmem:[#allocation86_spill] sm:$0xff] %v9483_v37  ;;  %v2275_v32 = vunpack.c.l.bf16 %v2249_v56  ;;  %v2276_v22 = vunpack.c.h.bf16 %v2249_v56  ;;  %v9517_v40 = vpop.permute.xlu2 %7999  ;;  %v9524_v50 = vperm.slane %v2210_v12, 0 }
 0x17c   : > { %1935 = vst [vmem:[#allocation2 + $0x1f0] sm:$0xff] %v1931_v21  ;;  %v9501_v21 = vld [vmem:[#allocation1 + $0x12] sm:$0xff]  ;;  %v9512_v41 = vsel %vm1329_vm5, %v7851_v54, %v13057_v18  ;;  %v2283_v55 = vmul.f32 %v2279_v19, %v2271_v11  ;;  %v2284_v1 = vmul.f32 %v2280_v15, %v2272_v36  ;;  %v12738_v49 = vunpack.i.h.bf16 %v9517_v40 }
 0x17d   : > { %13055 = vst [vmem:[#allocation87_spill] sm:$0xff] %v9501_v21  ;;  %v2287_v51 = vmul.f32 %v2279_v19, %v2275_v32  ;;  %v2288_v53 = vmul.f32 %v2280_v15, %v2276_v22  ;;  %v12739_v23 = vunpack.i.l.bf16 %v9517_v40  ;;  %v9522_v18 = vperm.slane %v2207_v4, 0 }
 0x17e   : > { %2358 = vst [vmem:[#allocation1] ss:$9 sm:$0xff] %v6613_v7  ;;  %v2291_v56 = vpack.c.bf16 %v2284_v1, %v2283_v55  ;;  %v9543_v1 = vsel %vm1329_vm5, %v12738_v49, %v7852_v30  ;;  %v1273_v36 = vpack.i.b16 %v8900_v10, %v8900_v10  ;;  %v13058_v22 = vunpack.i.h.bf16 %v9365_v33 }
 0x17f   : > { %v2293_v44 = vpack.c.bf16 %v2288_v53, %v2287_v51  ;;  %v9537_v15 = vsel %vm1329_vm5, %v12739_v23, %v7851_v54  ;;  %v13059_v32 = vunpack.i.h.bf16 %v9415_v20  ;;  %v13060_v54 = vunpack.i.l.bf16 %v9365_v33  ;;  %v9566_v49 = vpop.permute.xlu0 %7879 }
 0x180   : > { %2295 = vst [vmem:[#allocation2 + $0x2a0] sm:$0xff] %v2291_v56  ;;  %v13061_v55 = vunpack.i.l.bf16 %v9415_v20  ;;  %v1338_v4 = vpack.c.bf16 %v9512_v41, %v9537_v15  ;;  %v1340_v10 = vpack.c.bf16 %v9491_v24, %v9543_v1  ;;  %v9563_v56 = vpop.permute.xlu1 %7894  ;;  %v13065_v21 = vunpack.c.l.bf16 %v9421_v2 }
 0x181   : > { %v6875_v53 = vld [vmem:[#allocation2 + $0x1e0] sm:$0xf]  ;;  %v1805_v51 = vsel %vm1799_vm6, %v13059_v32, %v13058_v22  ;;  %2297 = vst [vmem:[#allocation2 + $0x2b0] sm:$0xff] %v2293_v44  ;;  %v13070_v2 = vunpack.i.h.bf16 %v9365_v33 }
 0x182   : > { %v1804_v30 = vsel %vm1799_vm6, %v13061_v55, %v13060_v54  ;;  %v1276_v54 = vpack.i.b16 %v8902_v29, %v8902_v29  ;;  %v1362_v55 = vunpack.c.l.bf16 %v1338_v4  ;;  %v1363_v11 = vunpack.c.h.bf16 %v1338_v4 }
 0x183   : > { %v7624_v12 = vld [vmem:[#allocation2 + $0x1ec] sm:$0xf0]  ;;  %v1366_v52 = vunpack.c.l.bf16 %v1340_v10  ;;  %v1367_v19 = vunpack.c.h.bf16 %v1340_v10  ;;  %v9583_v29 = vperm.slane %v1273_v36, 0  ;;  %v13064_v10 = vunpack.c.l.bf16 %v9419_v28  ;;  %v9598_v36 = vpop.permute.xlu2 %8004 }
 0x184   : > { %v6876_v22 = vor.u32 %v7624_v12, %v6875_v53  ;;  %v13067_v23 = vmov %v13065_v21  ;;  %13068 = vst [vmem:[#allocation91_spill] sm:$0xff] %v9598_v36  ;;  %v12744_v9 = vunpack.i.l.bf16 %v9598_v36  ;;  %v9602_v57 = vperm.slane %v1276_v54, 0 }
 0x185   : > { %v9574_v7 = vld [vmem:[#allocation1] sm:$0xff]  ;;  %v9576_v20 = vld [vmem:[#allocation1 + $0x9] sm:$0xff]  ;;  %v9578_v44 = vld [vmem:[#allocation1 + $0x12] sm:$0xff]  ;;  %v1374_v32 = vmul.f32 %v13064_v10, %v1362_v55  ;;  %v13066_v53 = vmov %v13064_v10  ;;  %v2155_v55 = vpack.i.b16 %v9205_v42, %v9205_v42  ;;  %v12747_v28 = vunpack.i.l.bf16 %v9483_v37 }
 0x186   : > { %13062 = vst [vmem:[#allocation89_spill] sm:$0xff] %v9578_v44  ;;  %3260 = vmatpush.bf16.msrb.mxu1 %v6876_v22  ;;  %v9585_v4 = vld [vmem:[#allocation1 + $0x1b] sm:$0xff]  ;;  %v1375_v44 = vmul.f32 %v13065_v21, %v1363_v11  ;;  %v1378_v12 = vmul.f32 %v13066_v53, %v1366_v52  ;;  %v1379_v22 = vmul.f32 %v13067_v23, %v1367_v19  ;;  %v12746_v52 = vunpack.i.h.bf16 %v9566_v49 }
 0x187   : > { %13063 = vst [vmem:[#allocation90_spill] sm:$0xff] %v9585_v4  ;;  %v12745_v4 = vunpack.i.h.bf16 %v9598_v36  ;;  %v13069_v23 = vunpack.i.l.bf16 %v9365_v33  ;;  %v12748_v19 = vunpack.i.l.bf16 %v9566_v49  ;;  %v13072_v54 = vunpack.i.h.bf16 %v9485_v0 }
 0x188   : > { %2410 = vst [vmem:[#allocation1] ss:$9 sm:$0xff] %v6614_v8  ;;  %v1382_v10 = vpack.c.bf16 %v1375_v44, %v1374_v32  ;;  %v1384_v21 = vpack.c.bf16 %v1379_v22, %v1378_v12  ;;  %v13071_v32 = vunpack.i.h.bf16 %v9413_v34  ;;  %v13073_v53 = vunpack.i.l.bf16 %v9413_v34  ;;  %v9644_v14 = vpop.permute.xlu1 %7899 }
 0x189   : > { %v1802_v42 = vsel %vm1799_vm6, %v13069_v23, %v12744_v9  ;;  %v1803_v11 = vsel %vm1799_vm6, %v13070_v2, %v12745_v4  ;;  %v13074_v33 = vunpack.i.l.bf16 %v9485_v0  ;;  %13075 = vst [vmem:[#allocation92_spill] sm:$0xff] %v9644_v14 }
 0x18a   : > { %1386 = vst [vmem:[#allocation2 + $0xe0] sm:$0xff] %v1382_v10  ;;  %v9634_v44 = vsel %vm944_vm7, %v13072_v54, %v13071_v32  ;;  %v1808_v8 = vpack.c.bf16 %v1802_v42, %v1804_v30  ;;  %v1810_v22 = vpack.c.bf16 %v1803_v11, %v1805_v51  ;;  %v9647_v10 = vpop.permute.xlu0 %7889  ;;  %v9652_v54 = vperm.slane %v2155_v55, 0  ;;  %v6615_v51 = vld [vmem:[%s12661_s5 + $0x64] sm:$0xf] }
 0x18b   : > { %v9642_v12 = vsel %vm944_vm7, %v13074_v33, %v13073_v53  ;;  %13076 = vst [vmem:[#allocation93_spill] sm:$0xff] %v9647_v10  ;;  %v9672_v55 = vsel %vm12803_vm8, %v12748_v19, %v12747_v28 }
 0x18c   : > { %1388 = vst [vmem:[#allocation2 + $0xf0] sm:$0xff] %v1384_v21  ;;  %v1832_v9 = vunpack.c.l.bf16 %v1808_v8  ;;  %v1833_v53 = vunpack.c.h.bf16 %v1808_v8  ;;  %v1836_v33 = vunpack.c.l.bf16 %v1810_v22  ;;  %v1837_v30 = vunpack.c.h.bf16 %v1810_v22 }
 0x18d   : > { %v13077_v21 = vunpack.i.h.bf16 %v9483_v37  ;;  %13079 = vst [vmem:[#allocation95_spill] sm:$0xff] %v9672_v55  ;;  %v9675_v8 = vperm.slane %v2158_v27, 0  ;;  %v9691_v27 = vpop.permute.xlu2 %8009 }
 0x18f   : > { %v9664_v11 = vsel %vm12803_vm8, %v12746_v52, %v13077_v21  ;;  %v9677_v22 = vld [vmem:[#allocation1] sm:$0xff]  ;;  %v9679_v4 = vld [vmem:[#allocation1 + $0x9] sm:$0xff]  ;;  %v9681_v32 = vld [vmem:[#allocation1 + $0x12] sm:$0xff]  ;;  %v13083_v21 = vunpack.c.l.bf16 %v9475_v39  ;;  %v13084_v52 = vunpack.c.l.bf16 %v9493_v6 }
 0x190   : > { %13078 = vst [vmem:[#allocation94_spill] sm:$0xff] %v9664_v11  ;;  %v9693_v37 = vld [vmem:[#allocation1 + $0x1b] sm:$0xff] }
 0x191   : > { %13080 = vst [vmem:[#allocation96_spill] sm:$0xff] %v9677_v22  ;;  %v1844_v2 = vmul.f32 %v13083_v21, %v1832_v9  ;;  %v1845_v42 = vmul.f32 %v13084_v52, %v1833_v53  ;;  %v13085_v23 = vmov %v13083_v21  ;;  %v13086_v19 = vmov %v13084_v52 }
 0x192   : > { %13081 = vst [vmem:[#allocation97_spill] sm:$0xff] %v9679_v4  ;;  %v1848_v28 = vmul.f32 %v13085_v23, %v1836_v33  ;;  %v1849_v36 = vmul.f32 %v13086_v19, %v1837_v30  ;;  %v12754_v4 = vunpack.i.h.bf16 %v9691_v27  ;;  %v12757_v22 = vunpack.i.h.bf16 %v9644_v14 }
 0x193   : > { %13082 = vst [vmem:[#allocation98_spill] sm:$0xff] %v9681_v32  ;;  %v12753_v32 = vunpack.i.l.bf16 %v9691_v27  ;;  %v1852_v52 = vpack.c.bf16 %v1845_v42, %v1844_v2  ;;  %v13088_v19 = vunpack.i.l.bf16 %v9413_v34  ;;  %v13089_v33 = vunpack.i.h.bf16 %v9413_v34  ;;  %v7592_v21 = vld [vmem:[#allocation2 + $0xec] sm:$0xf0] }
 0x194   : > { %13087 = vst [vmem:[#allocation99_spill] sm:$0xff] %v9693_v37  ;;  %v1854_v53 = vpack.c.bf16 %v1849_v36, %v1848_v28  ;;  %v6747_v36 = vld [vmem:[#allocation2 + $0xe0] sm:$0xf]  ;;  %v1356_v28 = vpack.i.b16 %v8935_v3, %v8935_v3  ;;  %v1359_v30 = vpack.i.b16 %v8937_v5, %v8937_v5  ;;  %v13091_v3 = vunpack.i.h.bf16 %v9171_v43 }
 0x195   : > { %2462 = vst [vmem:[#allocation1] ss:$9 sm:$0xff] %v6615_v51  ;;  %v9707_v23 = vsel %vm944_vm7, %v13088_v19, %v12753_v32  ;;  %v9715_v2 = vsel %vm944_vm7, %v13089_v33, %v12754_v4  ;;  %v9726_v19 = vpop.permute.xlu1 %7909  ;;  %v9728_v33 = vpop.permute.xlu0 %7929  ;;  %v13093_v32 = vunpack.i.l.bf16 %v9171_v43 }
 0x196   : > { %1856 = vst [vmem:[#allocation2 + $0x1c0] sm:$0xff] %v1852_v52  ;;  %v2195_v51 = vpack.c.bf16 %v9707_v23, %v9642_v12  ;;  %v2197_v42 = vpack.c.bf16 %v9715_v2, %v9634_v44  ;;  %v9737_v5 = vsel %vm12806_vm9, %v12757_v22, %v13091_v3  ;;  %v6748_v52 = vor.u32 %v7592_v21, %v6747_v36 }
 0x197   : > { %13090 = vst [vmem:[#allocation100_spill] sm:$0xff] %v9726_v19  ;;  %v13096_v3 = vunpack.i.h.bf16 %v9563_v56  ;;  %v13097_v36 = vunpack.i.h.bf16 %v9647_v10  ;;  %v13099_v22 = vunpack.c.l.bf16 %v9522_v18 }
 0x198   : > { %1858 = vst [vmem:[#allocation2 + $0x1d0] sm:$0xff] %v1854_v53  ;;  %v2219_v34 = vunpack.c.l.bf16 %v2195_v51  ;;  %v2220_v6 = vunpack.c.h.bf16 %v2195_v51  ;;  %v2223_v39 = vunpack.c.l.bf16 %v2197_v42  ;;  %v2224_v37 = vunpack.c.h.bf16 %v2197_v42  ;;  %3246 = vmatpush.bf16.msrb.mxu0 %v6748_v52 }
 0x199   : > { %13092 = vst [vmem:[#allocation101_spill] sm:$0xff] %v9737_v5  ;;  %v13094_v53 = vunpack.i.l.bf16 %v9644_v14  ;;  %v9755_v21 = vsel %vm867_vm10, %v13097_v36, %v13096_v3  ;;  %v9758_v51 = vperm.slane %v1356_v28, 0  ;;  %v9760_v42 = vperm.slane %v1359_v30, 0  ;;  %v9770_v36 = vpop.permute.xlu2 %8014 }
 0x19a   : > { %13098 = vst [vmem:[#allocation103_spill] sm:$0xff] %v9755_v21  ;;  %v2231_v9 = vmul.f32 %v13099_v22, %v2219_v34  ;;  %v13101_v4 = vmov %v13099_v22  ;;  %v13104_v28 = vunpack.i.l.bf16 %v9563_v56  ;;  %v13105_v30 = vunpack.i.l.bf16 %v9647_v10 }
 0x19b   : > { %v9747_v63 = vsel %vm12806_vm9, %v13094_v53, %v13093_v32  ;;  %v13100_v32 = vunpack.c.l.bf16 %v9524_v50  ;;  %v2235_v14 = vmul.f32 %v13101_v4, %v2223_v39  ;;  %13103 = vst [vmem:[#allocation104_spill] sm:$0xff] %v9770_v36  ;;  %v12767_v22 = vunpack.i.h.bf16 %v9770_v36 }
 0x19c   : > { %13095 = vst [vmem:[#allocation102_spill] sm:$0xff] %v9747_v63  ;;  %v2463_v52 = vld [vmem:[#allocation1] sm:$0xff]  ;;  %v9778_v5 = vsel %vm867_vm10, %v13105_v30, %v13104_v28  ;;  %v13107_v50 = vunpack.i.h.bf16 %v9190_v25  ;;  %v13108_v4 = vunpack.i.h.bf16 %v9726_v19  ;;  %v13110_v34 = vunpack.i.l.bf16 %v9190_v25  ;;  %v2464_v30 = vld [vmem:[#allocation1 + $0x9] sm:$0xff]  ;;  %v2465_v18 = vld [vmem:[#allocation1 + $0x12] sm:$0xff] }
 0x19d   : > { %v2232_v53 = vmul.f32 %v13100_v32, %v2220_v6  ;;  %v13102_v63 = vmov %v13100_v32  ;;  %13106 = vst [vmem:[#allocation105_spill] sm:$0xff] %v9778_v5  ;;  %v12762_v6 = vunpack.i.l.bf16 %v9770_v36  ;;  %v13111_v32 = vunpack.i.l.bf16 %v9726_v19  ;;  %v9821_v10 = vpop.permute.xlu1 %7919 }
 0x19e   : > { %v2236_v3 = vmul.f32 %v13102_v63, %v2224_v37  ;;  %v9790_v39 = vsel %vm1714_vm11, %v13108_v4, %v13107_v50  ;;  %v6859_v4 = vld [vmem:[#allocation2 + $0x1c0] sm:$0xf]  ;;  %13117 = vst [vmem:[#allocation110_spill] sm:$0xff] %v9821_v10 }
 0x19f   : > { %v2239_v63 = vpack.c.bf16 %v2232_v53, %v2231_v9  ;;  %13109 = vst [vmem:[#allocation106_spill] sm:$0xff] %v9790_v39  ;;  %v9798_v28 = vsel %vm1714_vm11, %v13111_v32, %v13110_v34  ;;  %v13115_v53 = vunpack.i.h.bf16 %v9566_v49  ;;  %v2467_v34 = vpack.i.b16 %v2463_v52, %v2463_v52 }
 0x1a0   : > { %v2241_v37 = vpack.c.bf16 %v2236_v3, %v2235_v14  ;;  %13112 = vst [vmem:[#allocation107_spill] sm:$0xff] %v9798_v28  ;;  %v13113_v14 = vunpack.i.l.bf16 %v9566_v49  ;;  %v9823_v49 = vpop.permute.xlu0 %7944  ;;  %v12776_v52 = vunpack.i.h.bf16 %v9821_v10  ;;  %v2473_v28 = vpack.i.b16 %v2465_v18, %v2465_v18 }
 0x1a1   : > { %v9814_v3 = vsel %vm12803_vm8, %v12767_v22, %v13115_v53  ;;  %2243 = vst [vmem:[#allocation2 + $0x280] sm:$0xff] %v2239_v63  ;;  %v2466_v22 = vld [vmem:[#allocation1 + $0x1b] sm:$0xff]  ;;  %v2470_v63 = vpack.i.b16 %v2464_v30, %v2464_v30  ;;  %v9830_v36 = vperm.slane %v2467_v34, 0  ;;  %v13119_v53 = vunpack.c.l.bf16 %v9583_v29 }
 0x1a2   : > { %v9806_v9 = vsel %vm12803_vm8, %v12762_v6, %v13113_v14  ;;  %13116 = vst [vmem:[#allocation109_spill] sm:$0xff] %v9814_v3  ;;  %v1263_v14 = vpack.c.bf16 %v9664_v11, %v9814_v3  ;;  %v7620_v6 = vld [vmem:[#allocation2 + $0x1cc] sm:$0xf0]  ;;  %v2476_v25 = vpack.i.b16 %v2466_v22, %v2466_v22  ;;  %v12778_v22 = vunpack.i.l.bf16 %v9823_v49 }
 0x1a3   : > { %13114 = vst [vmem:[#allocation108_spill] sm:$0xff] %v9806_v9  ;;  %v1261_v32 = vpack.c.bf16 %v9672_v55, %v9806_v9  ;;  %v6860_v50 = vor.u32 %v7620_v6, %v6859_v4  ;;  %v13120_v6 = vunpack.c.l.bf16 %v9602_v57  ;;  %v13121_v18 = vmov %v13119_v53 }
 0x1a4   : > { %13118 = vst [vmem:[#allocation111_spill] sm:$0xff] %v9823_v49  ;;  %v1289_v9 = vunpack.c.l.bf16 %v1263_v14  ;;  %v1290_v3 = vunpack.c.h.bf16 %v1263_v14  ;;  %v9845_v55 = vperm.slane %v2470_v63, 0  ;;  %v9855_v29 = vperm.slane %v2473_v28, 0 }
 0x1a5   : > { %2245 = vst [vmem:[#allocation2 + $0x290] sm:$0xff] %v2241_v37  ;;  %v1285_v39 = vunpack.c.l.bf16 %v1261_v32  ;;  %v1286_v19 = vunpack.c.h.bf16 %v1261_v32  ;;  %3261 = vmatpush.bf16.msrb.mxu1 %v6860_v50  ;;  %v13122_v32 = vmov %v13120_v6  ;;  %v9840_v50 = vpop.permute.xlu2 %8019  ;;  %v13126_v63 = vunpack.i.h.bf16 %v9563_v56 }
 0x1a6   : > { %v1301_v30 = vmul.f32 %v13121_v18, %v1289_v9  ;;  %v1302_v14 = vmul.f32 %v13122_v32, %v1290_v3  ;;  %v12779_v11 = vunpack.i.h.bf16 %v9840_v50  ;;  %v12777_v34 = vunpack.i.l.bf16 %v9840_v50 }
 0x1a7   : > { %v1297_v37 = vmul.f32 %v13119_v53, %v1285_v39  ;;  %v1298_v4 = vmul.f32 %v13120_v6, %v1286_v19  ;;  %v13123_v19 = vunpack.i.h.bf16 %v9213_v16  ;;  %v13124_v9 = vunpack.i.l.bf16 %v9563_v56 }
 0x1a8   : > { %v1307_v53 = vpack.c.bf16 %v1302_v14, %v1301_v30  ;;  %v13128_v6 = vunpack.i.l.bf16 %v9213_v16  ;;  %v13129_v28 = vunpack.i.l.bf16 %v9821_v10  ;;  %v13130_v18 = vor.u32 %v9244_v26, %v9242_v35  ;;  %v9899_v35 = vpop.permute.xlu1 %7934 }
 0x1a9   : > { %v1305_v39 = vpack.c.bf16 %v1298_v4, %v1297_v37  ;;  %v9853_v57 = vsel %vm12817_vm12, %v12776_v52, %v13123_v19  ;;  %v9863_v3 = vsel %vm867_vm10, %v13124_v9, %v12777_v34  ;;  %v9871_v37 = vsel %vm867_vm10, %v13126_v63, %v12779_v11  ;;  %13133 = vst [vmem:[#allocation114_spill] sm:$0xff] %v9899_v35 }
 0x1aa   : > { %13125 = vst [vmem:[#allocation112_spill] sm:$0xff] %v9863_v3  ;;  %v9879_v4 = vsel %vm12817_vm12, %v13129_v28, %v13128_v6  ;;  %3262 = vmatpush.bf16.msrb.mxu1 %v13130_v18  ;;  %v9884_v30 = vperm.slane %v2476_v25, 0  ;;  %v2143_v56 = vpack.c.bf16 %v9863_v3, %v9778_v5  ;;  %v2145_v32 = vpack.c.bf16 %v9871_v37, %v9755_v21 }
 0x1ab   : > { %13127 = vst [vmem:[#allocation113_spill] sm:$0xff] %v9871_v37  ;;  %v13131_v14 = vunpack.i.h.bf16 %v9823_v49  ;;  %v13132_v19 = vunpack.i.h.bf16 %v9234_v59  ;;  %v13134_v26 = vunpack.i.l.bf16 %v9234_v59  ;;  %v12786_v6 = vunpack.i.l.bf16 %v9899_v35 }
 0x1ac   : > { %1309 = vst [vmem:[#allocation2 + $0xc0] sm:$0xff] %v1305_v39  ;;  %v2167_v28 = vunpack.c.l.bf16 %v2143_v56  ;;  %v2168_v18 = vunpack.c.h.bf16 %v2143_v56  ;;  %v2489_v52 = vunpack.c.l.bf16 %v9855_v29  ;;  %v2490_v34 = vunpack.c.l.bf16 %v9884_v30 }
 0x1ad   : > { %v9896_v9 = vsel %vm12818_vm13, %v13132_v19, %v13131_v14  ;;  %1311 = vst [vmem:[#allocation2 + $0xd0] sm:$0xff] %v1307_v53  ;;  %v9907_v25 = vsel %vm12818_vm13, %v13134_v26, %v12778_v22  ;;  %v2171_v14 = vunpack.c.l.bf16 %v2145_v32  ;;  %v2172_v19 = vunpack.c.h.bf16 %v2145_v32  ;;  %v8050_v49 = vpop.permute.xlu2 %8049 }
 0x1ae   : > { %v2488_v53 = vunpack.c.l.bf16 %v9845_v55  ;;  %v13135_v26 = vunpack.i.l.bf16 %v9728_v33  ;;  %v13136_v11 = vunpack.c.l.bf16 %v9652_v54  ;;  %v13137_v56 = vunpack.c.l.bf16 %v9675_v8 }
 0x1af   : > { %v8052_v10 = vunpack.i.h.bf16 %v8050_v49  ;;  %v8051_v21 = vunpack.i.l.bf16 %v8050_v49  ;;  %v13140_v3 = vunpack.i.h.bf16 %v9899_v35  ;;  %v1661_v8 = vpack.i.b16 %v9058_v38, %v9058_v38 }
 0x1b0   : > { %v9921_v22 = vsel %vm1637_vm14, %v13135_v26, %v12786_v6  ;;  %v2179_v39 = vmul.f32 %v13136_v11, %v2167_v28  ;;  %v2180_v32 = vmul.f32 %v13137_v56, %v2168_v18  ;;  %v13138_v55 = vmov %v13136_v11  ;;  %v9941_v18 = vpop.permute.xlu0 %7954  ;;  %v9982_v37 = vpop.permute.xlu1 %7964 }
 0x1b1   : > { %v2183_v63 = vmul.f32 %v13138_v55, %v2171_v14  ;;  %v13139_v29 = vmov %v13137_v56  ;;  %v13141_v26 = vunpack.i.h.bf16 %v9728_v33  ;;  %v1658_v11 = vpack.i.b16 %v9056_v31, %v9056_v31 }
 0x1b2   : > { %v2184_v30 = vmul.f32 %v13139_v29, %v2172_v19  ;;  %v2187_v28 = vpack.c.bf16 %v2180_v32, %v2179_v39  ;;  %v13142_v14 = vunpack.i.l.bf16 %v9517_v40  ;;  %v13144_v39 = vunpack.i.l.bf16 %v9284_v17 }
 0x1b3   : > { %v9937_v6 = vsel %vm1637_vm14, %v13141_v26, %v13140_v3  ;;  %v13143_v3 = vunpack.i.h.bf16 %v9517_v40  ;;  %v13145_v38 = vunpack.i.h.bf16 %v9284_v17  ;;  %v6731_v32 = vld [vmem:[#allocation2 + $0xc0] sm:$0xf]  ;;  %v13150_v5 = vunpack.c.l.bf16 %v9830_v36 }
 0x1b4   : > { %v2189_v54 = vpack.c.bf16 %v2184_v30, %v2183_v63  ;;  %v1330_v19 = vsel %vm1329_vm5, %v8051_v21, %v13142_v14  ;;  %v1332_v63 = vsel %vm1329_vm5, %v13144_v39, %v8051_v21  ;;  %2191 = vst [vmem:[#allocation2 + $0x260] sm:$0xff] %v2187_v28  ;;  %v7588_v26 = vld [vmem:[#allocation2 + $0xcc] sm:$0xf0]  ;;  %v9967_v39 = vperm.slane %v1658_v11, 0 }
 0x1b5   : > { %v1331_v31 = vsel %vm1329_vm5, %v8052_v10, %v13143_v3  ;;  %v1333_v56 = vsel %vm1329_vm5, %v13145_v38, %v8052_v10  ;;  %v1339_v55 = vpack.c.bf16 %v1330_v19, %v1332_v63  ;;  %v2455_v30 = vpack.c.bf16 %v1332_v63, %v9512_v41 }
 0x1b6   : > { %v1341_v29 = vpack.c.bf16 %v1331_v31, %v1333_v56  ;;  %v2456_v40 = vpack.c.bf16 %v9537_v15, %v1330_v19  ;;  %2193 = vst [vmem:[#allocation2 + $0x270] sm:$0xff] %v2189_v54  ;;  %v2457_v14 = vpack.c.bf16 %v1333_v56, %v9491_v24  ;;  %v2458_v3 = vpack.c.bf16 %v9543_v1, %v1331_v31 }
 0x1b7   : > { %v6732_v21 = vor.u32 %v7588_v26, %v6731_v32  ;;  %v1364_v17 = vunpack.c.l.bf16 %v1339_v55  ;;  %v1365_v49 = vunpack.c.h.bf16 %v1339_v55  ;;  %v2479_v28 = vunpack.c.l.bf16 %v2455_v30 }
 0x1b8   : > { %v1368_v10 = vunpack.c.l.bf16 %v1341_v29  ;;  %v1369_v38 = vunpack.c.h.bf16 %v1341_v29  ;;  %v2480_v35 = vunpack.c.h.bf16 %v2455_v30  ;;  %v2481_v41 = vunpack.c.l.bf16 %v2456_v40  ;;  %v9978_v30 = vpop.permute.xlu2 %8054 }
 0x1b9   : > { %v2482_v63 = vunpack.c.h.bf16 %v2456_v40  ;;  %3247 = vmatpush.bf16.msrb.mxu0 %v6732_v21  ;;  %v13146_v15 = vunpack.c.l.bf16 %v9758_v51  ;;  %v13147_v24 = vunpack.c.l.bf16 %v9760_v42  ;;  %v2483_v32 = vunpack.c.l.bf16 %v2457_v14 }
 0x1ba   : > { %v2484_v55 = vunpack.c.h.bf16 %v2457_v14  ;;  %v2485_v29 = vunpack.c.l.bf16 %v2458_v3  ;;  %v2486_v26 = vunpack.c.h.bf16 %v2458_v3  ;;  %v12795_v36 = vunpack.i.l.bf16 %v9978_v30 }
 0x1bb   : > { %v1376_v54 = vmul.f32 %v13146_v15, %v1364_v17  ;;  %v1377_v1 = vmul.f32 %v13147_v24, %v1365_v49  ;;  %v13148_v11 = vmov %v13146_v15  ;;  %v13149_v31 = vmov %v13147_v24 }
 0x1bc   : > { %v1380_v19 = vmul.f32 %v13148_v11, %v1368_v10  ;;  %v1381_v56 = vmul.f32 %v13149_v31, %v1369_v38  ;;  %v2491_v17 = vmul.f32 %v13150_v5, %v2479_v28  ;;  %v2492_v15 = vmul.f32 %v2488_v53, %v2480_v35  ;;  %v9986_v31 = vpop.permute.xlu0 %7959 }
 0x1bd   : > { %v1383_v40 = vpack.c.bf16 %v1377_v1, %v1376_v54  ;;  %v2493_v49 = vmul.f32 %v2489_v52, %v2481_v41  ;;  %v2494_v51 = vmul.f32 %v2490_v34, %v2482_v63  ;;  %v13151_v10 = vmov %v13150_v5 }
 0x1be   : > { %v1385_v21 = vpack.c.bf16 %v1381_v56, %v1380_v19  ;;  %v2495_v42 = vmul.f32 %v13151_v10, %v2483_v32  ;;  %v2496_v38 = vmul.f32 %v2488_v53, %v2484_v55  ;;  %v2497_v14 = vmul.f32 %v2489_v52, %v2485_v29 }
 0x1bf   : > { %1387 = vst [vmem:[#allocation2 + $0xe8] sm:$0xff] %v1383_v40  ;;  %v2498_v24 = vmul.f32 %v2490_v34, %v2486_v26  ;;  %v2499_v3 = vpack.c.bf16 %v2492_v15, %v2491_v17  ;;  %v1663_v11 = vperm.slane %v1661_v8, 0  ;;  %v2500_v54 = vpack.c.bf16 %v2494_v51, %v2493_v49 }
 0x1c0   : > { %1389 = vst [vmem:[#allocation2 + $0xf8] sm:$0xff] %v1385_v21  ;;  %v2501_v1 = vpack.c.bf16 %v2496_v38, %v2495_v42  ;;  %v1678_v5 = vunpack.c.l.bf16 %v9967_v39  ;;  %v12796_v35 = vunpack.i.h.bf16 %v9978_v30  ;;  %v7967_v53 = vunpack.i.h.bf16 %v9982_v37  ;;  %v8080_v42 = vpop.permute.xlu2 %8079 }
 0x1c1   : > { %v2502_v28 = vpack.c.bf16 %v2498_v24, %v2497_v14  ;;  %2503 = vst [vmem:[#allocation2 + $0x320] sm:$0xff] %v2499_v3  ;;  %v1679_v41 = vunpack.c.l.bf16 %v1663_v11  ;;  %v13152_v52 = vunpack.i.h.bf16 %v9728_v33  ;;  %v7966_v8 = vunpack.i.l.bf16 %v9982_v37  ;;  %v10034_v11 = vpop.permute.xlu1 %7974 }
 0x1c2   : > { %2504 = vst [vmem:[#allocation2 + $0x328] sm:$0xff] %v2500_v54  ;;  %v7962_v39 = vunpack.i.h.bf16 %v9986_v31  ;;  %v7961_v63 = vunpack.i.l.bf16 %v9986_v31  ;;  %v13153_v19 = vunpack.i.l.bf16 %v9728_v33  ;;  %v13154_v55 = vpack.i.b16 %v8749_v45, %v8749_v45 }
 0x1c3   : > { %v1645_v34 = vsel %vm1637_vm14, %v12796_v35, %v13152_v52  ;;  %2505 = vst [vmem:[#allocation2 + $0x330] sm:$0xff] %v2501_v1  ;;  %v968_v26 = vpack.i.b16 %v8751_v46, %v8751_v46  ;;  %v971_v46 = vpack.i.b16 %v8753_v47, %v8753_v47  ;;  %v974_v17 = vpack.i.b16 %v8755_v48, %v8755_v48 }
 0x1c4   : > { %v1644_v56 = vsel %vm1637_vm14, %v12795_v36, %v13153_v19  ;;  %v1648_v32 = vpack.c.bf16 %v9937_v6, %v1645_v34  ;;  %v967_v29 = vperm.slane %v13154_v55, 0  ;;  %2506 = vst [vmem:[#allocation2 + $0x338] sm:$0xff] %v2502_v28  ;;  %v10020_v33 = vsel %vm12816_vm15, %v7962_v39, %v7967_v53 }
 0x1c5   : > { %v1646_v40 = vpack.c.bf16 %v9921_v22, %v1644_v56  ;;  %v10028_v45 = vsel %vm12816_vm15, %v7961_v63, %v7966_v8  ;;  %v970_v21 = vperm.slane %v968_v26, 0  ;;  %v973_v51 = vperm.slane %v971_v46, 0 }
 0x1c6   : > { %v1674_v22 = vunpack.c.l.bf16 %v1648_v32  ;;  %v1675_v6 = vunpack.c.h.bf16 %v1648_v32  ;;  %v985_v10 = vunpack.c.l.bf16 %v967_v29  ;;  %v976_v24 = vperm.slane %v974_v17, 0 }
 0x1c7   : > { %v1670_v15 = vunpack.c.l.bf16 %v1646_v40  ;;  %v1671_v49 = vunpack.c.h.bf16 %v1646_v40  ;;  %v986_v3 = vunpack.c.l.bf16 %v970_v21  ;;  %v987_v47 = vunpack.c.l.bf16 %v973_v51 }
 0x1c8   : > { %v1686_v38 = vmul.f32 %v1678_v5, %v1674_v22  ;;  %v1687_v14 = vmul.f32 %v1679_v41, %v1675_v6  ;;  %v2213_v28 = vpack.i.b16 %v9232_v62, %v9232_v62  ;;  %v988_v34 = vunpack.c.l.bf16 %v976_v24 }
 0x1c9   : > { %v1682_v54 = vmul.f32 %v1678_v5, %v1670_v15  ;;  %v1683_v1 = vmul.f32 %v1679_v41, %v1671_v49  ;;  %v2216_v48 = vpack.i.b16 %v9236_v58, %v9236_v58  ;;  %v8082_v19 = vunpack.i.h.bf16 %v8080_v42 }
 0x1ca   : > { %v1692_v52 = vpack.c.bf16 %v1687_v14, %v1686_v38  ;;  %v2215_v32 = vperm.slane %v2213_v28, 0  ;;  %v8081_v55 = vunpack.i.l.bf16 %v8080_v42  ;;  %v7977_v29 = vunpack.i.h.bf16 %v10034_v11 }
 0x1cb   : > { %v1690_v56 = vpack.c.bf16 %v1683_v1, %v1682_v54  ;;  %v2218_v26 = vperm.slane %v2216_v48, 0  ;;  %v13155_v5 = vunpack.i.h.bf16 %v9691_v27  ;;  %v13156_v62 = vunpack.i.h.bf16 %v9485_v0 }
 0x1cc   : > { %1696 = vst [vmem:[#allocation2 + $0x170] sm:$0xff] %v1692_v52  ;;  %v7976_v58 = vunpack.i.l.bf16 %v10034_v11  ;;  %v2229_v46 = vunpack.c.l.bf16 %v2215_v32  ;;  %v13157_v22 = vunpack.i.l.bf16 %v9691_v27  ;;  %v13158_v21 = vunpack.i.l.bf16 %v9485_v0 }
 0x1cd   : > { %v946_v41 = vsel %vm944_vm7, %v13155_v5, %v8082_v19  ;;  %v952_v40 = vsel %vm944_vm7, %v8082_v19, %v13156_v62  ;;  %1694 = vst [vmem:[#allocation2 + $0x160] sm:$0xff] %v1690_v56  ;;  %v2230_v49 = vunpack.c.l.bf16 %v2218_v26 }
 0x1ce   : > { %v945_v6 = vsel %vm944_vm7, %v13157_v22, %v8081_v55  ;;  %v951_v17 = vsel %vm944_vm7, %v8081_v55, %v13158_v21  ;;  %v955_v15 = vpack.c.bf16 %v9634_v44, %v952_v40  ;;  %v956_v38 = vpack.c.bf16 %v946_v41, %v9715_v2  ;;  %v10062_v22 = vpop.permute.xlu0 %7969 }
 0x1cf   : > { %v953_v51 = vpack.c.bf16 %v9642_v12, %v951_v17  ;;  %v954_v42 = vpack.c.bf16 %v945_v6, %v9707_v23  ;;  %v2196_v27 = vpack.c.bf16 %v951_v17, %v945_v6  ;;  %v2198_v54 = vpack.c.bf16 %v952_v40, %v946_v41  ;;  %v10064_v17 = vpop.permute.xlu2 %8084 }
 0x1d0   : > { %v981_v14 = vunpack.c.l.bf16 %v955_v15  ;;  %v982_v24 = vunpack.c.h.bf16 %v955_v15  ;;  %v983_v48 = vunpack.c.l.bf16 %v956_v38  ;;  %v984_v19 = vunpack.c.h.bf16 %v956_v38 }
 0x1d1   : > { %v977_v1 = vunpack.c.l.bf16 %v953_v51  ;;  %v978_v28 = vunpack.c.h.bf16 %v953_v51  ;;  %v979_v52 = vunpack.c.l.bf16 %v954_v42  ;;  %v980_v0 = vunpack.c.h.bf16 %v954_v42 }
 0x1d2   : > { %v993_v56 = vmul.f32 %v985_v10, %v981_v14  ;;  %v994_v32 = vmul.f32 %v986_v3, %v982_v24  ;;  %v995_v5 = vmul.f32 %v987_v47, %v983_v48  ;;  %v996_v23 = vmul.f32 %v988_v34, %v984_v19 }
 0x1d3   : > { %v989_v44 = vmul.f32 %v985_v10, %v977_v1  ;;  %v990_v55 = vmul.f32 %v986_v3, %v978_v28  ;;  %v991_v26 = vmul.f32 %v987_v47, %v979_v52  ;;  %v992_v12 = vmul.f32 %v988_v34, %v980_v0  ;;  %v6616_v1 = vld [vmem:[%s12661_s5 + $0x68] sm:$0xf] }
 0x1d4   : > { %v999_v62 = vpack.c.bf16 %v994_v32, %v993_v56  ;;  %v2221_v2 = vunpack.c.l.bf16 %v2196_v27  ;;  %v2222_v40 = vunpack.c.h.bf16 %v2196_v27  ;;  %v2225_v21 = vunpack.c.l.bf16 %v2198_v54  ;;  %2514 = vst [vmem:[#allocation1] ss:$9 sm:$0xff] %v6616_v1 }
 0x1d5   : > { %v997_v6 = vpack.c.bf16 %v990_v55, %v989_v44  ;;  %v998_v41 = vpack.c.bf16 %v992_v12, %v991_v26  ;;  %v1000_v15 = vpack.c.bf16 %v996_v23, %v995_v5  ;;  %v2226_v51 = vunpack.c.h.bf16 %v2198_v54 }
 0x1d6   : > { %1003 = vst [vmem:[#allocation2 + $0x50] sm:$0xff] %v999_v62  ;;  %v2233_v42 = vmul.f32 %v2229_v46, %v2221_v2  ;;  %v2234_v10 = vmul.f32 %v2230_v49, %v2222_v40  ;;  %v2237_v3 = vmul.f32 %v2229_v46, %v2225_v21  ;;  %v12793_v47 = vunpack.i.h.bf16 %v10062_v22 }
 0x1d7   : > { %1001 = vst [vmem:[#allocation2 + $0x40] sm:$0xff] %v997_v6  ;;  %v12791_v34 = vunpack.i.l.bf16 %v10062_v22  ;;  %v2238_v38 = vmul.f32 %v2230_v49, %v2226_v51  ;;  %v1504_v14 = vpack.i.b16 %v8988_v60, %v8988_v60  ;;  %v1507_v24 = vpack.i.b16 %v8990_v61, %v8990_v61  ;;  %v10091_v49 = vpop.permute.xlu1 %7979  ;;  %v13159_v6 = vld [vmem:[#allocation66_spill] sm:$0xff] }
 0x1d8   : > { %1002 = vst [vmem:[#allocation2 + $0x48] sm:$0xff] %v998_v41  ;;  %v8087_v27 = vunpack.i.h.bf16 %v10064_v17  ;;  %v2240_v54 = vpack.c.bf16 %v2234_v10, %v2233_v42  ;;  %v10080_v46 = vsel %vm12813_vm0, %v12793_v47, %v7977_v29  ;;  %v8086_v61 = vunpack.i.l.bf16 %v10064_v17 }
 0x1d9   : > { %1004 = vst [vmem:[#allocation2 + $0x58] sm:$0xff] %v1000_v15  ;;  %v10088_v60 = vsel %vm12813_vm0, %v12791_v34, %v7976_v58  ;;  %v2242_v28 = vpack.c.bf16 %v2238_v38, %v2237_v3  ;;  %v1506_v52 = vperm.slane %v1504_v14, 0  ;;  %v1509_v0 = vperm.slane %v1507_v24, 0  ;;  %v13162_v3 = vld [vmem:[#allocation75_spill] sm:$0xff]  ;;  %v13163_v24 = vld [vmem:[#allocation74_spill] sm:$0xff] }
 0x1da   : > { %v1491_v48 = vsel %vm12816_vm15, %v8087_v27, %v7962_v39  ;;  %2244 = vst [vmem:[#allocation2 + $0x288] sm:$0xff] %v2240_v54  ;;  %v1490_v19 = vsel %vm12816_vm15, %v8086_v61, %v7961_v63  ;;  %v2363_v32 = vpack.i.b16 %v9574_v7, %v9574_v7  ;;  %v2366_v44 = vpack.i.b16 %v9576_v20, %v9576_v20 }
 0x1db   : > { %v1494_v56 = vpack.c.bf16 %v10020_v33, %v1491_v48  ;;  %2246 = vst [vmem:[#allocation2 + $0x298] sm:$0xff] %v2242_v28  ;;  %v1524_v55 = vunpack.c.l.bf16 %v1506_v52  ;;  %v1525_v39 = vunpack.c.l.bf16 %v1509_v0  ;;  %v1492_v26 = vpack.c.bf16 %v10028_v45, %v1490_v19  ;;  %v13165_v28 = vld [vmem:[#allocation22_spill] sm:$0xff] }
 0x1dc   : > { %v7982_v31 = vunpack.i.h.bf16 %v10091_v49  ;;  %v2365_v23 = vperm.slane %v2363_v32, 0  ;;  %v2368_v62 = vperm.slane %v2366_v44, 0  ;;  %v7981_v33 = vunpack.i.l.bf16 %v10091_v49  ;;  %v13164_v49 = vld [vmem:[#allocation21_spill] sm:$0xff] }
 0x1dd   : > { %v1520_v12 = vunpack.c.l.bf16 %v1494_v56  ;;  %v1521_v5 = vunpack.c.h.bf16 %v1494_v56  ;;  %v1516_v63 = vunpack.c.l.bf16 %v1492_v26  ;;  %v1517_v2 = vunpack.c.h.bf16 %v1492_v26  ;;  %v13166_v56 = vld [vmem:[#allocation23_spill] sm:$0xff] }
 0x1de   : > { %v13160_v7 = vunpack.i.h.bf16 %v13159_v6  ;;  %v2383_v21 = vunpack.c.l.bf16 %v2365_v23  ;;  %v2384_v15 = vunpack.c.l.bf16 %v2368_v62  ;;  %v13161_v42 = vunpack.i.l.bf16 %v13159_v6  ;;  %v13167_v62 = vld [vmem:[#allocation24_spill] sm:$0xff] }
 0x1df   : > { %v1532_v41 = vmul.f32 %v1524_v55, %v1520_v12  ;;  %v1533_v40 = vmul.f32 %v1525_v39, %v1521_v5  ;;  %v1528_v45 = vmul.f32 %v1524_v55, %v1516_v63  ;;  %v1529_v51 = vmul.f32 %v1525_v39, %v1517_v2  ;;  %v8025_v2 = vpop.permute.xlu0 %8024 }
 0x1e0   : > { %v1179_v20 = vsel %vm1175_vm2, %v13160_v7, %v7982_v31  ;;  %v1178_v10 = vsel %vm1175_vm2, %v13161_v42, %v7981_v33  ;;  %v1196_v1 = vpack.i.b16 %v13164_v49, %v13164_v49  ;;  %v1199_v52 = vpack.i.b16 %v13165_v28, %v13165_v28  ;;  %v13169_v49 = vld [vmem:[#allocation90_spill] sm:$0xff] }
 0x1e1   : > { %v2353_v38 = vpack.c.bf16 %v1179_v20, %v13162_v3  ;;  %v1538_v14 = vpack.c.bf16 %v1533_v40, %v1532_v41  ;;  %v2351_v54 = vpack.c.bf16 %v1178_v10, %v13163_v24  ;;  %v1536_v0 = vpack.c.bf16 %v1529_v51, %v1528_v45 }
 0x1e2   : > { %v1202_v32 = vpack.i.b16 %v13166_v56, %v13166_v56  ;;  %v1198_v39 = vperm.slane %v1196_v1, 0  ;;  %v1201_v26 = vperm.slane %v1199_v52, 0  ;;  %v1205_v63 = vpack.i.b16 %v13167_v62, %v13167_v62 }
 0x1e3   : > { %v2379_v48 = vunpack.c.l.bf16 %v2353_v38  ;;  %v2380_v19 = vunpack.c.h.bf16 %v2353_v38  ;;  %1542 = vst [vmem:[#allocation2 + $0x130] sm:$0xff] %v1538_v14  ;;  %v2375_v44 = vunpack.c.l.bf16 %v2351_v54  ;;  %v2376_v55 = vunpack.c.h.bf16 %v2351_v54  ;;  %v13168_v38 = vld [vmem:[#allocation89_spill] sm:$0xff] }
 0x1e4   : > { %1540 = vst [vmem:[#allocation2 + $0x120] sm:$0xff] %v1536_v0  ;;  %v1204_v23 = vperm.slane %v1202_v32, 0  ;;  %v1216_v41 = vunpack.c.l.bf16 %v1198_v39  ;;  %v1217_v40 = vunpack.c.l.bf16 %v1201_v26  ;;  %v1207_v51 = vperm.slane %v1205_v63, 0  ;;  %v13172_v39 = vld [vmem:[#allocation63_spill] sm:$0xff] }
 0x1e5   : > { %v2391_v12 = vmul.f32 %v2383_v21, %v2379_v48  ;;  %v2392_v5 = vmul.f32 %v2384_v15, %v2380_v19  ;;  %v2387_v6 = vmul.f32 %v2383_v21, %v2375_v44  ;;  %v2388_v7 = vmul.f32 %v2384_v15, %v2376_v55  ;;  %v13170_v19 = vld [vmem:[#allocation49_spill] sm:$0xff]  ;;  %v13171_v15 = vld [vmem:[#allocation50_spill] sm:$0xff] }
 0x1e6   : > { %v1218_v42 = vunpack.c.l.bf16 %v1204_v23  ;;  %v2369_v14 = vpack.i.b16 %v13168_v38, %v13168_v38  ;;  %v2372_v1 = vpack.i.b16 %v13169_v49, %v13169_v49  ;;  %v8027_v28 = vunpack.i.h.bf16 %v8025_v2 }
 0x1e7   : > { %v2397_v45 = vpack.c.bf16 %v2392_v5, %v2391_v12  ;;  %v2395_v54 = vpack.c.bf16 %v2388_v7, %v2387_v6  ;;  %v8026_v52 = vunpack.i.l.bf16 %v8025_v2  ;;  %v1219_v0 = vunpack.c.l.bf16 %v1207_v51 }
 0x1e8   : > { %v2371_v48 = vperm.slane %v2369_v14, 0  ;;  %v1974_v21 = vpack.i.b16 %v13170_v19, %v13170_v19  ;;  %v1977_v56 = vpack.i.b16 %v13171_v15, %v13171_v15  ;;  %v2374_v32 = vperm.slane %v2372_v1, 0 }
 0x1e9   : > { %2401 = vst [vmem:[#allocation2 + $0x2f0] sm:$0xff] %v2397_v45  ;;  %v1177_v44 = vsel %vm1175_vm2, %v7982_v31, %v8027_v28  ;;  %v1176_v55 = vsel %vm1175_vm2, %v7981_v33, %v8026_v52  ;;  %v13173_v26 = vunpack.i.l.bf16 %v13172_v39  ;;  %v13174_v23 = vunpack.i.h.bf16 %v13172_v39 }
 0x1ea   : > { %2399 = vst [vmem:[#allocation2 + $0x2e0] sm:$0xff] %v2395_v54  ;;  %v2385_v5 = vunpack.c.l.bf16 %v2371_v48  ;;  %v1185_v2 = vpack.c.bf16 %v1176_v55, %v1178_v10  ;;  %v2386_v6 = vunpack.c.l.bf16 %v2374_v32  ;;  %v1187_v7 = vpack.c.bf16 %v1177_v44, %v1179_v20 }
 0x1eb   : > { %v1182_v12 = vsel %vm1175_vm2, %v8026_v52, %v13173_v26  ;;  %v1183_v62 = vsel %vm1175_vm2, %v8027_v28, %v13174_v23 }
 0x1ec   : > { %v1184_v63 = vpack.c.bf16 %v13163_v24, %v1182_v12  ;;  %v1186_v31 = vpack.c.bf16 %v13162_v3, %v1183_v62  ;;  %v2352_v45 = vpack.c.bf16 %v1182_v12, %v1176_v55  ;;  %v1210_v38 = vunpack.c.l.bf16 %v1185_v2  ;;  %v10156_v12 = vpop.permute.xlu2 %8089 }
 0x1ed   : > { %v1211_v14 = vunpack.c.h.bf16 %v1185_v2  ;;  %v1214_v1 = vunpack.c.l.bf16 %v1187_v7  ;;  %v1215_v52 = vunpack.c.h.bf16 %v1187_v7  ;;  %v2354_v20 = vpack.c.bf16 %v1183_v62, %v1177_v44 }
 0x1ee   : > { %v1208_v33 = vunpack.c.l.bf16 %v1184_v63  ;;  %v1209_v51 = vunpack.c.h.bf16 %v1184_v63  ;;  %v1212_v54 = vunpack.c.l.bf16 %v1186_v31  ;;  %v1213_v49 = vunpack.c.h.bf16 %v1186_v31 }
 0x1ef   : > { %v1222_v15 = vmul.f32 %v1218_v42, %v1210_v38  ;;  %v1223_v28 = vmul.f32 %v1219_v0, %v1211_v14  ;;  %v1226_v10 = vmul.f32 %v1218_v42, %v1214_v1  ;;  %v1227_v32 = vmul.f32 %v1219_v0, %v1215_v52 }
 0x1f0   : > { %v1220_v48 = vmul.f32 %v1216_v41, %v1208_v33  ;;  %v1221_v19 = vmul.f32 %v1217_v40, %v1209_v51  ;;  %v1224_v39 = vmul.f32 %v1216_v41, %v1212_v54  ;;  %v1225_v24 = vmul.f32 %v1217_v40, %v1213_v49  ;;  %v13175_v54 = vld [vmem:[#allocation17_spill] sm:$0xff] }
 0x1f1   : > { %v1229_v3 = vpack.c.bf16 %v1223_v28, %v1222_v15  ;;  %v2377_v55 = vunpack.c.l.bf16 %v2352_v45  ;;  %v1231_v63 = vpack.c.bf16 %v1227_v32, %v1226_v10  ;;  %v2378_v2 = vunpack.c.h.bf16 %v2352_v45 }
 0x1f2   : > { %v1228_v26 = vpack.c.bf16 %v1221_v19, %v1220_v48  ;;  %v1230_v23 = vpack.c.bf16 %v1225_v24, %v1224_v39  ;;  %v1976_v31 = vperm.slane %v1974_v21, 0  ;;  %v2381_v7 = vunpack.c.l.bf16 %v2354_v20  ;;  %v13178_v39 = vld [vmem:[#allocation20_spill] sm:$0xff]  ;;  %v13179_v24 = vld [vmem:[#allocation87_spill] sm:$0xff] }
 0x1f3   : > { %v2382_v33 = vunpack.c.h.bf16 %v2354_v20  ;;  %v2389_v51 = vmul.f32 %v2385_v5, %v2377_v55  ;;  %v1979_v38 = vperm.slane %v1977_v56, 0  ;;  %1233 = vst [vmem:[#allocation2 + $0xa8] sm:$0xff] %v1229_v3  ;;  %v2390_v41 = vmul.f32 %v2386_v6, %v2378_v2 }
 0x1f4   : > { %1232 = vst [vmem:[#allocation2 + $0xa0] sm:$0xff] %v1228_v26  ;;  %v1994_v40 = vunpack.c.l.bf16 %v1976_v31  ;;  %v12794_v42 = vunpack.i.h.bf16 %v10156_v12  ;;  %v12792_v0 = vunpack.i.l.bf16 %v10156_v12  ;;  %v2393_v44 = vmul.f32 %v2385_v5, %v2381_v7 }
 0x1f5   : > { %1234 = vst [vmem:[#allocation2 + $0xb0] sm:$0xff] %v1230_v23  ;;  %v2394_v62 = vmul.f32 %v2386_v6, %v2382_v33  ;;  %v1995_v14 = vunpack.c.l.bf16 %v1979_v38  ;;  %v1119_v45 = vpack.i.b16 %v13175_v54, %v13175_v54  ;;  %v2396_v21 = vpack.c.bf16 %v2390_v41, %v2389_v51  ;;  %v13176_v6 = vld [vmem:[#allocation18_spill] sm:$0xff]  ;;  %v8045_v23 = vpop.permute.xlu1 %8044  ;;  %v2515_v33 = vld [vmem:[#allocation1] sm:$0xff] }
 0x1f6   : > { %1235 = vst [vmem:[#allocation2 + $0xb8] sm:$0xff] %v1231_v63  ;;  %v1956_v56 = vsel %vm12813_vm0, %v7976_v58, %v12792_v0  ;;  %v1957_v5 = vsel %vm12813_vm0, %v7977_v29, %v12794_v42  ;;  %v1122_v49 = vpack.i.b16 %v13176_v6, %v13176_v6  ;;  %v13177_v58 = vld [vmem:[#allocation19_spill] sm:$0xff]  ;;  %v1128_v11 = vpack.i.b16 %v13178_v39, %v13178_v39  ;;  %v2516_v51 = vld [vmem:[#allocation1 + $0x9] sm:$0xff] }
 0x1f7   : > { %v2398_v1 = vpack.c.bf16 %v2394_v62, %v2393_v44  ;;  %v1962_v52 = vpack.c.bf16 %v1956_v56, %v10088_v60  ;;  %v1964_v48 = vpack.c.bf16 %v1957_v5, %v10080_v46  ;;  %v10178_v19 = vperm.slane %v1119_v45, 0  ;;  %2400 = vst [vmem:[#allocation2 + $0x2e8] sm:$0xff] %v2396_v21  ;;  %v13180_v62 = vld [vmem:[#allocation88_spill] sm:$0xff]  ;;  %v10308_v42 = vld [vmem:[#allocation1 + $0x12] sm:$0xff] }
 0x1f8   : > { %v1124_v15 = vperm.slane %v1122_v49, 0  ;;  %v1125_v28 = vpack.i.b16 %v13177_v58, %v13177_v58  ;;  %v2317_v29 = vpack.i.b16 %v13179_v24, %v13179_v24  ;;  %v1130_v46 = vperm.slane %v1128_v11, 0  ;;  %v13184_v58 = vld [vmem:[#allocation62_spill] sm:$0xff] }
 0x1f9   : > { %2402 = vst [vmem:[#allocation2 + $0x2f8] sm:$0xff] %v2398_v1  ;;  %v1986_v10 = vunpack.c.l.bf16 %v1962_v52  ;;  %v1987_v32 = vunpack.c.h.bf16 %v1962_v52  ;;  %v1990_v26 = vunpack.c.l.bf16 %v1964_v48  ;;  %v1991_v60 = vunpack.c.h.bf16 %v1964_v48  ;;  %v13181_v48 = vld [vmem:[#allocation76_spill] sm:$0xff] }
 0x1fa   : > { %v1127_v3 = vperm.slane %v1125_v28, 0  ;;  %v1139_v20 = vunpack.c.l.bf16 %v10178_v19  ;;  %v1140_v55 = vunpack.c.l.bf16 %v1124_v15  ;;  %v1142_v41 = vunpack.c.l.bf16 %v1130_v46 }
 0x1fb   : > { %v1998_v63 = vmul.f32 %v1994_v40, %v1986_v10  ;;  %v1999_v2 = vmul.f32 %v1995_v14, %v1987_v32  ;;  %v2002_v31 = vmul.f32 %v1994_v40, %v1990_v26  ;;  %v2003_v7 = vmul.f32 %v1995_v14, %v1991_v60  ;;  %v13187_v10 = vld [vmem:[#allocation77_spill] sm:$0xff] }
 0x1fc   : > { %v1141_v38 = vunpack.c.l.bf16 %v1127_v3  ;;  %v2319_v44 = vperm.slane %v2317_v29, 0  ;;  %v2320_v54 = vpack.i.b16 %v13180_v62, %v13180_v62  ;;  %v8047_v56 = vunpack.i.h.bf16 %v8045_v23  ;;  %v13188_v26 = vld [vmem:[#allocation73_spill] sm:$0xff]  ;;  %v13189_v3 = vld [vmem:[#allocation78_spill] sm:$0xff] }
 0x1fd   : > { %v2006_v45 = vpack.c.bf16 %v1999_v2, %v1998_v63  ;;  %v2008_v21 = vpack.c.bf16 %v2003_v7, %v2002_v31  ;;  %v8046_v5 = vunpack.i.l.bf16 %v8045_v23  ;;  %v2519_v1 = vpack.i.b16 %v2515_v33, %v2515_v33  ;;  %v13190_v23 = vld [vmem:[#allocation72_spill] sm:$0xff] }
 0x1fe   : > { %v2322_v6 = vperm.slane %v2320_v54, 0  ;;  %v2333_v49 = vunpack.c.l.bf16 %v2319_v44  ;;  %v2522_v52 = vpack.i.b16 %v2516_v51, %v2516_v51  ;;  %v13182_v40 = vunpack.i.h.bf16 %v13181_v48 }
 0x1ff   : > { %2010 = vst [vmem:[#allocation2 + $0x200] sm:$0xff] %v2006_v45  ;;  %v13183_v19 = vunpack.i.l.bf16 %v13181_v48  ;;  %v13185_v28 = vunpack.i.l.bf16 %v13184_v58  ;;  %v13186_v11 = vunpack.i.h.bf16 %v13184_v58  ;;  %v10209_v7 = vperm.slane %v2519_v1, 0 }
 0x200   : > { %v1100_v14 = vsel %vm1098_vm1, %v13182_v40, %v8047_v56  ;;  %2012 = vst [vmem:[#allocation2 + $0x210] sm:$0xff] %v2008_v21  ;;  %v2334_v29 = vunpack.c.l.bf16 %v2322_v6 }
 0x201   : > { %v1099_v15 = vsel %vm1098_vm1, %v13183_v19, %v8046_v5  ;;  %v1105_v39 = vsel %vm1098_vm1, %v8046_v5, %v13185_v28  ;;  %v1106_v24 = vsel %vm1098_vm1, %v8047_v56, %v13186_v11  ;;  %v1110_v32 = vpack.c.bf16 %v1100_v14, %v13187_v10 }
 0x202   : > { %v1107_v60 = vpack.c.bf16 %v13188_v26, %v1105_v39  ;;  %v1108_v46 = vpack.c.bf16 %v1099_v15, %v13189_v3  ;;  %v1109_v63 = vpack.c.bf16 %v13190_v23, %v1106_v24  ;;  %v2300_v2 = vpack.c.bf16 %v1105_v39, %v1099_v15 }
 0x203   : > { %v2302_v31 = vpack.c.bf16 %v1106_v24, %v1100_v14  ;;  %v1137_v33 = vunpack.c.l.bf16 %v1110_v32  ;;  %v1138_v51 = vunpack.c.h.bf16 %v1110_v32  ;;  %v10211_v24 = vpop.permute.xlu0 %8029  ;;  %v2524_v23 = vperm.slane %v2522_v52, 0 }
 0x204   : > { %v1131_v44 = vunpack.c.l.bf16 %v1107_v60  ;;  %v1132_v62 = vunpack.c.h.bf16 %v1107_v60  ;;  %v1133_v54 = vunpack.c.l.bf16 %v1108_v46  ;;  %v1134_v45 = vunpack.c.h.bf16 %v1108_v46 }
 0x205   : > { %v1135_v21 = vunpack.c.l.bf16 %v1109_v63  ;;  %v1136_v56 = vunpack.c.h.bf16 %v1109_v63  ;;  %v1149_v5 = vmul.f32 %v1141_v38, %v1137_v33  ;;  %v1150_v6 = vmul.f32 %v1142_v41, %v1138_v51 }
 0x206   : > { %v1143_v48 = vmul.f32 %v1139_v20, %v1131_v44  ;;  %v1144_v40 = vmul.f32 %v1140_v55, %v1132_v62  ;;  %v1145_v19 = vmul.f32 %v1141_v38, %v1133_v54  ;;  %v1146_v58 = vmul.f32 %v1142_v41, %v1134_v45  ;;  %v8105_v38 = vpop.permute.xlu2 %8104  ;;  %v13191_v44 = vld [vmem:[#allocation47_spill] sm:$0xff]  ;;  %v13192_v62 = vld [vmem:[#allocation48_spill] sm:$0xff] }
 0x207   : > { %v1147_v28 = vmul.f32 %v1139_v20, %v1135_v21  ;;  %v1148_v11 = vmul.f32 %v1140_v55, %v1136_v56  ;;  %v1154_v15 = vpack.c.bf16 %v1150_v6, %v1149_v5  ;;  %v2325_v1 = vunpack.c.l.bf16 %v2300_v2  ;;  %v13195_v56 = vld [vmem:[#allocation101_spill] sm:$0xff]  ;;  %v13196_v6 = vld [vmem:[#allocation102_spill] sm:$0xff] }
 0x208   : > { %v1151_v14 = vpack.c.bf16 %v1144_v40, %v1143_v48  ;;  %v2326_v39 = vunpack.c.h.bf16 %v2300_v2  ;;  %v1152_v10 = vpack.c.bf16 %v1146_v58, %v1145_v19  ;;  %v2329_v26 = vunpack.c.l.bf16 %v2302_v31 }
 0x209   : > { %v1153_v32 = vpack.c.bf16 %v1148_v11, %v1147_v28  ;;  %v2330_v60 = vunpack.c.h.bf16 %v2302_v31  ;;  %1158 = vst [vmem:[#allocation2 + $0x98] sm:$0xff] %v1154_v15  ;;  %v2337_v3 = vmul.f32 %v2333_v49, %v2325_v1  ;;  %v2539_v63 = vunpack.c.l.bf16 %v10209_v7  ;;  %v13197_v28 = vld [vmem:[#allocation79_spill] sm:$0xff] }
 0x20a   : > { %v2338_v46 = vmul.f32 %v2334_v29, %v2326_v39  ;;  %1155 = vst [vmem:[#allocation2 + $0x80] sm:$0xff] %v1151_v14  ;;  %v2341_v20 = vmul.f32 %v2333_v49, %v2329_v26  ;;  %v12802_v41 = vunpack.i.h.bf16 %v10211_v24  ;;  %v12801_v2 = vunpack.i.l.bf16 %v10211_v24  ;;  %v13199_v15 = vld [vmem:[#allocation67_spill] sm:$0xff]  ;;  %v13201_v39 = vld [vmem:[#allocation25_spill] sm:$0xff] }
 0x20b   : > { %v2342_v55 = vmul.f32 %v2334_v29, %v2330_v60  ;;  %1156 = vst [vmem:[#allocation2 + $0x88] sm:$0xff] %v1152_v10  ;;  %v2540_v51 = vunpack.c.l.bf16 %v2524_v23  ;;  %v1903_v31 = vpack.i.b16 %v13191_v44, %v13191_v44  ;;  %v1906_v54 = vpack.i.b16 %v13192_v62, %v13192_v62 }
 0x20c   : > { %v2344_v33 = vpack.c.bf16 %v2338_v46, %v2337_v3  ;;  %1157 = vst [vmem:[#allocation2 + $0x90] sm:$0xff] %v1153_v32  ;;  %v13193_v49 = vunpack.i.h.bf16 %v9171_v43  ;;  %v13194_v7 = vunpack.i.l.bf16 %v9171_v43  ;;  %v8107_v21 = vunpack.i.h.bf16 %v8105_v38 }
 0x20d   : > { %v2346_v52 = vpack.c.bf16 %v2342_v55, %v2341_v20  ;;  %v1905_v40 = vperm.slane %v1903_v31, 0  ;;  %v1908_v19 = vperm.slane %v1906_v54, 0  ;;  %v8106_v58 = vunpack.i.l.bf16 %v8105_v38 }
 0x20e   : > { %v10226_v29 = vsel %vm12806_vm9, %v13193_v49, %v12802_v41  ;;  %v10234_v45 = vsel %vm12806_vm9, %v13194_v7, %v12801_v2  ;;  %2348 = vst [vmem:[#allocation2 + $0x2c8] sm:$0xff] %v2344_v33  ;;  %v13198_v11 = vunpack.i.h.bf16 %v13197_v28  ;;  %v13200_v14 = vunpack.i.h.bf16 %v13199_v15 }
 0x20f   : > { %v2509_v5 = vpack.c.bf16 %v10226_v29, %v13195_v56  ;;  %v2507_v48 = vpack.c.bf16 %v10234_v45, %v13196_v6  ;;  %2350 = vst [vmem:[#allocation2 + $0x2d8] sm:$0xff] %v2346_v52  ;;  %v1279_v10 = vpack.i.b16 %v13201_v39, %v13201_v39  ;;  %v1919_v46 = vunpack.c.l.bf16 %v1905_v40 }
 0x210   : > { %v1878_v43 = vsel %vm1876_vm3, %v13198_v11, %v8107_v21  ;;  %v1884_v1 = vsel %vm1876_vm3, %v8107_v21, %v13200_v14  ;;  %v1920_v23 = vunpack.c.l.bf16 %v1908_v19  ;;  %v13202_v38 = vunpack.i.l.bf16 %v13197_v28  ;;  %v13204_v21 = vld [vmem:[#allocation26_spill] sm:$0xff]  ;;  %v13205_v19 = vld [vmem:[#allocation96_spill] sm:$0xff]  ;;  %v13206_v11 = vld [vmem:[#allocation97_spill] sm:$0xff] }
 0x211   : > { %v2535_v32 = vunpack.c.l.bf16 %v2509_v5  ;;  %v2536_v26 = vunpack.c.h.bf16 %v2509_v5  ;;  %v2531_v60 = vunpack.c.l.bf16 %v2507_v48  ;;  %v2532_v3 = vunpack.c.h.bf16 %v2507_v48 }
 0x212   : > { %v1877_v20 = vsel %vm1876_vm3, %v13202_v38, %v8106_v58  ;;  %v13203_v55 = vunpack.i.l.bf16 %v13199_v15  ;;  %v1888_v49 = vpack.c.bf16 %v1884_v1, %v1878_v43  ;;  %v10258_v7 = vperm.slane %v1279_v10, 0 }
 0x213   : > { %v2547_v44 = vmul.f32 %v2539_v63, %v2535_v32  ;;  %v2548_v31 = vmul.f32 %v2540_v51, %v2536_v26  ;;  %v2543_v62 = vmul.f32 %v2539_v63, %v2531_v60  ;;  %v2544_v54 = vmul.f32 %v2540_v51, %v2532_v3  ;;  %v8065_v32 = vpop.permute.xlu1 %8064 }
 0x214   : > { %v1883_v33 = vsel %vm1876_vm3, %v8106_v58, %v13203_v55  ;;  %v1282_v5 = vpack.i.b16 %v13204_v21, %v13204_v21  ;;  %v2415_v28 = vpack.i.b16 %v13205_v19, %v13205_v19  ;;  %v2418_v15 = vpack.i.b16 %v13206_v11, %v13206_v11  ;;  %v13207_v55 = vld [vmem:[#allocation98_spill] sm:$0xff]  ;;  %v13210_v19 = vld [vmem:[#allocation104_spill] sm:$0xff] }
 0x215   : > { %v1886_v52 = vpack.c.bf16 %v1883_v33, %v1877_v20  ;;  %v2553_v48 = vpack.c.bf16 %v2548_v31, %v2547_v44  ;;  %v2551_v40 = vpack.c.bf16 %v2544_v54, %v2543_v62  ;;  %v1915_v39 = vunpack.c.l.bf16 %v1888_v49  ;;  %v13208_v44 = vld [vmem:[#allocation99_spill] sm:$0xff]  ;;  %v10276_v54 = vpop.permute.xlu0 %8034 }
 0x216   : > { %v1916_v63 = vunpack.c.h.bf16 %v1888_v49  ;;  %v1284_v51 = vperm.slane %v1282_v5, 0  ;;  %v1295_v43 = vunpack.c.l.bf16 %v10258_v7  ;;  %v10267_v1 = vperm.slane %v2415_v28, 0 }
 0x217   : > { %v1911_v58 = vunpack.c.l.bf16 %v1886_v52  ;;  %v1912_v14 = vunpack.c.h.bf16 %v1886_v52  ;;  %2557 = vst [vmem:[#allocation2 + $0x350] sm:$0xff] %v2553_v48  ;;  %v10269_v10 = vperm.slane %v2418_v15, 0  ;;  %v1927_v3 = vmul.f32 %v1919_v46, %v1915_v39  ;;  %v13212_v15 = vld [vmem:[#allocation86_spill] sm:$0xff]  ;;  %v13214_v39 = vld [vmem:[#allocation41_spill] sm:$0xff] }
 0x218   : > { %2555 = vst [vmem:[#allocation2 + $0x340] sm:$0xff] %v2551_v40  ;;  %v1928_v38 = vmul.f32 %v1920_v23, %v1916_v63  ;;  %v1296_v20 = vunpack.c.l.bf16 %v1284_v51  ;;  %v2421_v33 = vpack.i.b16 %v13207_v55, %v13207_v55  ;;  %v2424_v31 = vpack.i.b16 %v13208_v44, %v13208_v44 }
 0x219   : > { %v1923_v26 = vmul.f32 %v1919_v46, %v1911_v58  ;;  %v1924_v60 = vmul.f32 %v1920_v23, %v1912_v14  ;;  %v2435_v62 = vunpack.c.l.bf16 %v10267_v1  ;;  %v2436_v7 = vunpack.c.l.bf16 %v10269_v10  ;;  %v13209_v23 = vld [vmem:[#allocation40_spill] sm:$0xff] }
 0x21a   : > { %v1932_v49 = vpack.c.bf16 %v1928_v38, %v1927_v3  ;;  %v8067_v21 = vunpack.i.h.bf16 %v8065_v32  ;;  %v2423_v5 = vperm.slane %v2421_v33, 0  ;;  %v2426_v48 = vperm.slane %v2424_v31, 0  ;;  %v13217_v33 = vld [vmem:[#allocation95_spill] sm:$0xff]  ;;  %v13218_v31 = vld [vmem:[#allocation108_spill] sm:$0xff] }
 0x21b   : > { %v1930_v52 = vpack.c.bf16 %v1924_v60, %v1923_v26  ;;  %v8066_v46 = vunpack.i.l.bf16 %v8065_v32  ;;  %v1735_v40 = vpack.i.b16 %v13209_v23, %v13209_v23  ;;  %v13211_v28 = vunpack.i.h.bf16 %v13210_v19 }
 0x21c   : > { %v13213_v58 = vunpack.i.h.bf16 %v13212_v15  ;;  %v1738_v63 = vpack.i.b16 %v13214_v39, %v13214_v39  ;;  %v8037_v51 = vunpack.i.h.bf16 %v10276_v54  ;;  %1936 = vst [vmem:[#allocation2 + $0x1f8] sm:$0xff] %v1932_v49  ;;  %v2437_v1 = vunpack.c.l.bf16 %v2423_v5  ;;  %v13220_v5 = vld [vmem:[#allocation109_spill] sm:$0xff] }
 0x21d   : > { %1934 = vst [vmem:[#allocation2 + $0x1e8] sm:$0xff] %v1930_v52  ;;  %v1254_v11 = vsel %vm12803_vm8, %v8067_v21, %v13211_v28  ;;  %v2438_v10 = vunpack.c.l.bf16 %v2426_v48  ;;  %v13215_v32 = vunpack.i.l.bf16 %v13210_v19  ;;  %v13216_v60 = vunpack.i.l.bf16 %v13212_v15 }
 0x21e   : > { %v1256_v14 = vsel %vm12803_vm8, %v13213_v58, %v8067_v21  ;;  %v13219_v21 = vld [vmem:[#allocation94_spill] sm:$0xff]  ;;  %v2406_v48 = vpack.c.bf16 %v13220_v5, %v1254_v11  ;;  %v10304_v23 = vperm.slane %v1735_v40, 0  ;;  %v10306_v19 = vperm.slane %v1738_v63, 0 }
 0x21f   : > { %v1253_v26 = vsel %vm12803_vm8, %v8066_v46, %v13215_v32  ;;  %v1255_v3 = vsel %vm12803_vm8, %v13216_v60, %v8066_v46  ;;  %v1264_v55 = vpack.c.bf16 %v1254_v11, %v1256_v14  ;;  %v2405_v49 = vpack.c.bf16 %v1256_v14, %v13219_v21  ;;  %v7051_v36 = vld [vmem:[#allocation2 + $0x340] sm:$0xf] }
 0x220   : > { %v1262_v38 = vpack.c.bf16 %v1253_v26, %v1255_v3  ;;  %v2403_v44 = vpack.c.bf16 %v1255_v3, %v13217_v33  ;;  %v2404_v52 = vpack.c.bf16 %v13218_v31, %v1253_v26  ;;  %v2433_v21 = vunpack.c.l.bf16 %v2406_v48 }
 0x221   : > { %v1291_v15 = vunpack.c.l.bf16 %v1264_v55  ;;  %v1292_v39 = vunpack.c.h.bf16 %v1264_v55  ;;  %v2431_v31 = vunpack.c.l.bf16 %v2405_v49  ;;  %v2432_v14 = vunpack.c.h.bf16 %v2405_v49  ;;  %v3675_v55 = vld [vmem:[%s12661_s5] sm:$0xf]  ;;  %v7584_v49 = vld [vmem:[#allocation2 + $0xac] sm:$0xf0] }
 0x222   : > { %v1287_v28 = vunpack.c.l.bf16 %v1262_v38  ;;  %v1288_v58 = vunpack.c.h.bf16 %v1262_v38  ;;  %v2427_v32 = vunpack.c.l.bf16 %v2403_v44  ;;  %v2428_v46 = vunpack.c.h.bf16 %v2403_v44  ;;  %v10310_v38 = vld [vmem:[#allocation1 + $0x1b] sm:$0xff] }
 0x223   : > { %v2429_v60 = vunpack.c.l.bf16 %v2404_v52  ;;  %v2430_v34 = vunpack.c.h.bf16 %v2404_v52  ;;  %v1303_v33 = vmul.f32 %v1295_v43, %v1291_v15  ;;  %v1304_v26 = vmul.f32 %v1296_v20, %v1292_v39  ;;  %3677 = vst [vmem:[#allocation1] ss:$9 sm:$0xff] %v3675_v55  ;;  %v7003_v39 = vld [vmem:[#allocation2 + $0x2e0] sm:$0xf] }
 0x224   : > { %v1299_v0 = vmul.f32 %v1295_v43, %v1287_v28  ;;  %v1300_v3 = vmul.f32 %v1296_v20, %v1288_v58  ;;  %v2434_v11 = vunpack.c.h.bf16 %v2406_v48  ;;  %v2439_v63 = vmul.f32 %v2435_v62, %v2427_v32  ;;  %v6715_v28 = vld [vmem:[#allocation2 + $0xa0] sm:$0xf]  ;;  %v7656_v32 = vld [vmem:[#allocation2 + $0x2ec] sm:$0xf0] }
 0x225   : > { %v1308_v5 = vpack.c.bf16 %v1304_v26, %v1303_v33  ;;  %v2440_v47 = vmul.f32 %v2436_v7, %v2428_v46  ;;  %v2441_v44 = vmul.f32 %v2437_v1, %v2429_v60  ;;  %v2442_v52 = vmul.f32 %v2438_v10, %v2430_v34  ;;  %v8120_v46 = vpop.permute.xlu2 %8119  ;;  %v13221_v34 = vld [vmem:[#allocation100_spill] sm:$0xff] }
 0x226   : > { %v1306_v40 = vpack.c.bf16 %v1300_v3, %v1299_v0  ;;  %v2443_v43 = vmul.f32 %v2435_v62, %v2431_v31  ;;  %v2444_v20 = vmul.f32 %v2436_v7, %v2432_v14  ;;  %v2445_v0 = vmul.f32 %v2437_v1, %v2433_v21  ;;  %v13224_v14 = vld [vmem:[#allocation42_spill] sm:$0xff] }
 0x227   : > { %v2446_v48 = vmul.f32 %v2438_v10, %v2434_v11  ;;  %v2447_v58 = vpack.c.bf16 %v2440_v47, %v2439_v63  ;;  %v1755_v15 = vunpack.c.l.bf16 %v10304_v23  ;;  %1312 = vst [vmem:[#allocation2 + $0xd8] sm:$0xff] %v1308_v5  ;;  %v2448_v3 = vpack.c.bf16 %v2442_v52, %v2441_v44  ;;  %v13223_v47 = vld [vmem:[#allocation106_spill] sm:$0xff] }
 0x228   : > { %1310 = vst [vmem:[#allocation2 + $0xc8] sm:$0xff] %v1306_v40  ;;  %v2449_v33 = vpack.c.bf16 %v2444_v20, %v2443_v43  ;;  %v1756_v60 = vunpack.c.l.bf16 %v10306_v19  ;;  %v13222_v62 = vunpack.i.h.bf16 %v13221_v34  ;;  %v8036_v23 = vunpack.i.l.bf16 %v10276_v54  ;;  %v13225_v19 = vld [vmem:[#allocation43_spill] sm:$0xff] }
 0x229   : > { %v2450_v1 = vpack.c.bf16 %v2446_v48, %v2445_v0  ;;  %2451 = vst [vmem:[#allocation2 + $0x300] sm:$0xff] %v2447_v58  ;;  %v6716_v26 = vor.u32 %v7584_v49, %v6715_v28  ;;  %v7004_v31 = vor.u32 %v7656_v32, %v7003_v39  ;;  %v1741_v21 = vpack.i.b16 %v13224_v14, %v13224_v14  ;;  %v13227_v43 = vld [vmem:[#allocation107_spill] sm:$0xff]  ;;  %v13228_v0 = vld [vmem:[#allocation61_spill] sm:$0xff]  ;;  %v7073_v39 = vld [vmem:[%s12661_s5 + $0x4] sm:$0xf] }
 0x22a   : > { %v1722_v7 = vsel %vm1714_vm11, %v8037_v51, %v13222_v62  ;;  %2452 = vst [vmem:[#allocation2 + $0x308] sm:$0xff] %v2448_v3  ;;  %v1744_v11 = vpack.i.b16 %v13225_v19, %v13225_v19  ;;  %v8122_v40 = vunpack.i.h.bf16 %v8120_v46  ;;  %v13226_v55 = vunpack.i.l.bf16 %v13221_v34  ;;  %v10347_v34 = vld [vmem:[#allocation1] sm:$0xff]  ;;  %v10349_v62 = vld [vmem:[#allocation1 + $0x9] sm:$0xff] }
 0x22b   : > { %v1725_v10 = vpack.c.bf16 %v13223_v47, %v1722_v7  ;;  %2453 = vst [vmem:[#allocation2 + $0x310] sm:$0xff] %v2449_v33  ;;  %3248 = vmatpush.bf16.msrb.mxu0 %v6716_v26  ;;  %v8121_v52 = vunpack.i.l.bf16 %v8120_v46  ;;  %3274 = vmatpush.bf16.msrb.mxu2 %v7004_v31  ;;  %v1743_v28 = vperm.slane %v1741_v21, 0  ;;  %v13229_v48 = vunpack.i.h.bf16 %v13228_v0  ;;  %v10351_v7 = vld [vmem:[#allocation1 + $0x12] sm:$0xff]  ;;  %v10353_v31 = vpop.permute.xlu1 %8069  ;;  %v10355_v14 = vld [vmem:[#allocation1 + $0x1b] sm:$0xff] }
 0x22c   : > { %v1721_v44 = vsel %vm1714_vm11, %v8036_v23, %v13226_v55  ;;  %2454 = vst [vmem:[#allocation2 + $0x318] sm:$0xff] %v2450_v1  ;;  %v1746_v49 = vperm.slane %v1744_v11, 0  ;;  %v1716_v33 = vsel %vm1714_vm11, %v8122_v40, %v8037_v51  ;;  %v13234_v54 = vunpack.i.l.bf16 %v13228_v0  ;;  %v13235_v19 = vld [vmem:[#allocation34_spill] sm:$0xff]  ;;  %v13236_v55 = vld [vmem:[#allocation35_spill] sm:$0xff] }
 0x22d   : > { %v1751_v5 = vunpack.c.l.bf16 %v1725_v10  ;;  %v1752_v63 = vunpack.c.h.bf16 %v1725_v10  ;;  %v1723_v20 = vpack.c.bf16 %v13227_v43, %v1721_v44  ;;  %v1718_v58 = vsel %vm1714_vm11, %v13229_v48, %v8122_v40  ;;  %13230 = vst [vmem:[#allocation66_spill] sm:$0xff] %v10347_v34 }
 0x22e   : > { %v1715_v46 = vsel %vm1714_vm11, %v8121_v52, %v8036_v23  ;;  %13231 = vst [vmem:[#allocation75_spill] sm:$0xff] %v10349_v62  ;;  %v1757_v10 = vunpack.c.l.bf16 %v1743_v28  ;;  %v1758_v26 = vunpack.c.l.bf16 %v1746_v49  ;;  %v1717_v51 = vsel %vm1714_vm11, %v13234_v54, %v8121_v52 }
 0x22f   : > { %v1763_v32 = vmul.f32 %v1755_v15, %v1751_v5  ;;  %v1764_v3 = vmul.f32 %v1756_v60, %v1752_v63  ;;  %13232 = vst [vmem:[#allocation74_spill] sm:$0xff] %v10351_v7  ;;  %v1747_v1 = vunpack.c.l.bf16 %v1723_v20  ;;  %v1748_v47 = vunpack.c.h.bf16 %v1723_v20 }
 0x230   : > { %13233 = vst [vmem:[#allocation21_spill] sm:$0xff] %v10355_v14  ;;  %v1726_v21 = vpack.c.bf16 %v1716_v33, %v1718_v58  ;;  %v1581_v11 = vpack.i.b16 %v13235_v19, %v13235_v19  ;;  %v1724_v63 = vpack.c.bf16 %v1715_v46, %v1717_v51  ;;  %v1584_v44 = vpack.i.b16 %v13236_v55, %v13236_v55  ;;  %v7074_v55 = vld [vmem:[%s12661_s5 + $0x8] sm:$0xf] }
 0x231   : > { %v1769_v23 = vpack.c.bf16 %v1764_v3, %v1763_v32  ;;  %3752 = vst [vmem:[#allocation1] ss:$9 sm:$0xff] %v7073_v39  ;;  %v1759_v40 = vmul.f32 %v1755_v15, %v1747_v1  ;;  %v1760_v5 = vmul.f32 %v1756_v60, %v1748_v47  ;;  %v12798_v49 = vunpack.i.h.bf16 %v10353_v31  ;;  %v10372_v39 = vpop.permute.xlu0 %8039 }
 0x232   : > { %v1753_v43 = vunpack.c.l.bf16 %v1726_v21  ;;  %v1754_v20 = vunpack.c.h.bf16 %v1726_v21  ;;  %v1583_v28 = vperm.slane %v1581_v11, 0  ;;  %v1749_v48 = vunpack.c.l.bf16 %v1724_v63  ;;  %v13238_v21 = vld [vmem:[#allocation57_spill] sm:$0xff]  ;;  %v13239_v11 = vld [vmem:[#allocation58_spill] sm:$0xff] }
 0x233   : > { %1773 = vst [vmem:[#allocation2 + $0x190] sm:$0xff] %v1769_v23  ;;  %v1767_v0 = vpack.c.bf16 %v1760_v5, %v1759_v40  ;;  %v1750_v52 = vunpack.c.h.bf16 %v1724_v63  ;;  %v1586_v58 = vperm.slane %v1584_v44, 0  ;;  %v13237_v15 = vunpack.i.h.bf16 %v9234_v59  ;;  %v6987_v5 = vld [vmem:[#allocation2 + $0x2c0] sm:$0xf]  ;;  %v7652_v63 = vld [vmem:[#allocation2 + $0x2cc] sm:$0xf0] }
 0x234   : > { %v1765_v32 = vmul.f32 %v1757_v10, %v1753_v43  ;;  %v1766_v3 = vmul.f32 %v1758_v26, %v1754_v20  ;;  %v1601_v33 = vunpack.c.l.bf16 %v1583_v28  ;;  %v1761_v46 = vmul.f32 %v1757_v10, %v1749_v48 }
 0x235   : > { %v1568_v60 = vsel %vm12818_vm13, %v12798_v49, %v13237_v15  ;;  %1771 = vst [vmem:[#allocation2 + $0x180] sm:$0xff] %v1767_v0  ;;  %v1762_v1 = vmul.f32 %v1758_v26, %v1750_v52  ;;  %v1602_v47 = vunpack.c.l.bf16 %v1586_v58  ;;  %v12797_v23 = vunpack.i.l.bf16 %v10353_v31 }
 0x236   : > { %v1770_v54 = vpack.c.bf16 %v1766_v3, %v1765_v32  ;;  %v1571_v51 = vpack.c.bf16 %v9896_v9, %v1568_v60  ;;  %v2103_v19 = vpack.i.b16 %v13238_v21, %v13238_v21  ;;  %v2106_v40 = vpack.i.b16 %v13239_v11, %v13239_v11 }
 0x237   : > { %v1768_v10 = vpack.c.bf16 %v1762_v1, %v1761_v46  ;;  %v13240_v26 = vunpack.i.l.bf16 %v9234_v59  ;;  %v12800_v44 = vunpack.i.h.bf16 %v10372_v39  ;;  %v12799_v43 = vunpack.i.l.bf16 %v10372_v39 }
 0x238   : > { %v10391_v20 = vld [vmem:[#allocation1] sm:$0xff]  ;;  %v10393_v28 = vld [vmem:[#allocation1 + $0x9] sm:$0xff]  ;;  %v10395_v0 = vld [vmem:[#allocation1 + $0x12] sm:$0xff]  ;;  %1774 = vst [vmem:[#allocation2 + $0x198] sm:$0xff] %v1770_v54  ;;  %v1597_v52 = vunpack.c.l.bf16 %v1571_v51  ;;  %v1598_v59 = vunpack.c.h.bf16 %v1571_v51  ;;  %v2105_v58 = vperm.slane %v2103_v19, 0  ;;  %v2108_v3 = vperm.slane %v2106_v40, 0 }
 0x239   : > { %v1567_v9 = vsel %vm12818_vm13, %v12797_v23, %v13240_v26  ;;  %13241 = vst [vmem:[#allocation22_spill] sm:$0xff] %v10391_v20  ;;  %v10398_v32 = vld [vmem:[#allocation1 + $0x1b] sm:$0xff]  ;;  %v13245_v15 = vunpack.i.h.bf16 %v9213_v16  ;;  %v13246_v46 = vunpack.i.l.bf16 %v9213_v16  ;;  %v6988_v1 = vor.u32 %v7652_v63, %v6987_v5  ;;  %v6699_v54 = vld [vmem:[#allocation2 + $0x80] sm:$0xf] }
 0x23a   : > { %13242 = vst [vmem:[#allocation23_spill] sm:$0xff] %v10393_v28  ;;  %v1569_v48 = vpack.c.bf16 %v9907_v25, %v1567_v9  ;;  %v7580_v51 = vld [vmem:[#allocation2 + $0x8c] sm:$0xf0]  ;;  %v1609_v11 = vmul.f32 %v1601_v33, %v1597_v52  ;;  %v1610_v40 = vmul.f32 %v1602_v47, %v1598_v59  ;;  %v2123_v26 = vunpack.c.l.bf16 %v2105_v58 }
 0x23b   : > { %13243 = vst [vmem:[#allocation24_spill] sm:$0xff] %v10395_v0  ;;  %v10406_v60 = vsel %vm12817_vm12, %v13245_v15, %v12800_v44  ;;  %v10414_v25 = vsel %vm12817_vm12, %v13246_v46, %v12799_v43  ;;  %v2124_v9 = vunpack.c.l.bf16 %v2108_v3  ;;  %3275 = vmatpush.bf16.msrb.mxu2 %v6988_v1  ;;  %v7648_v46 = vld [vmem:[#allocation2 + $0x2ac] sm:$0xf0]  ;;  %vm12815_vm8 = vcmp.lt.s32.totalorder %v9252_v13, 119 }
 0x23c   : > { %13244 = vst [vmem:[#allocation89_spill] sm:$0xff] %v10398_v32  ;;  %v1593_v21 = vunpack.c.l.bf16 %v1569_v48  ;;  %v1594_v19 = vunpack.c.h.bf16 %v1569_v48  ;;  %v2093_v15 = vpack.c.bf16 %v10406_v60, %v9853_v57  ;;  %v2091_v16 = vpack.c.bf16 %v10414_v25, %v9879_v4  ;;  %v7668_v5 = vld [vmem:[#allocation2 + $0x34c] sm:$0xf0] }
 0x23d   : > { %1772 = vst [vmem:[#allocation2 + $0x188] sm:$0xff] %v1768_v10  ;;  %v6971_v10 = vld [vmem:[#allocation2 + $0x2a0] sm:$0xf]  ;;  %v1615_v23 = vpack.c.bf16 %v1610_v40, %v1609_v11  ;;  %v6700_v48 = vor.u32 %v7580_v51, %v6699_v54  ;;  %v7052_v43 = vor.u32 %v7668_v5, %v7051_v36  ;;  %v8499_v54 = vld [vmem:[%s8774_s28 + $0x10] sm:$0xff]  ;;  %v8500_v51 = vld [vmem:[%s8774_s28 + $0x18] sm:$0xff] }
 0x23e   : > { %3827 = vst [vmem:[#allocation1] ss:$9 sm:$0xff] %v7074_v55  ;;  %v1605_v63 = vmul.f32 %v1601_v33, %v1593_v21  ;;  %v1606_v35 = vmul.f32 %v1602_v47, %v1594_v19  ;;  %v2119_v52 = vunpack.c.l.bf16 %v2093_v15  ;;  %v2120_v59 = vunpack.c.h.bf16 %v2093_v15  ;;  %v6955_v33 = vld [vmem:[#allocation2 + $0x280] sm:$0xf]  ;;  %v7644_v47 = vld [vmem:[#allocation2 + $0x28c] sm:$0xf0] }
 0x23f   : > { %v2115_v49 = vunpack.c.l.bf16 %v2091_v16  ;;  %v2116_v55 = vunpack.c.h.bf16 %v2091_v16  ;;  %1619 = vst [vmem:[#allocation2 + $0x150] sm:$0xff] %v1615_v23  ;;  %3249 = vmatpush.bf16.msrb.mxu0 %v6700_v48  ;;  %v6972_v3 = vor.u32 %v7648_v46, %v6971_v10  ;;  %3293 = vmatpush.bf16.msrb.mxu3 %v7052_v43  ;;  %v1776_v21 = vpack.c.bf16 %v8500_v51, %v8499_v54  ;;  %v13251_v10 = vld [vmem:[#allocation33_spill] sm:$0xff]  ;;  %v10440_v15 = vld [vmem:[#allocation2 + $0xf0] sm:$0xf0]  ;;  %v13253_v16 = vld [vmem:[#allocation68_spill] sm:$0xff] }
 0x240   : > { %v1613_v58 = vpack.c.bf16 %v1606_v35, %v1605_v63  ;;  %v2131_v44 = vmul.f32 %v2123_v26, %v2119_v52  ;;  %v2132_v1 = vmul.f32 %v2124_v9, %v2120_v59  ;;  %v7075_v35 = vld [vmem:[%s12661_s5 + $0xc] sm:$0xf]  ;;  %v6956_v43 = vor.u32 %v7644_v47, %v6955_v33  ;;  %v10446_v48 = vld [vmem:[#allocation2 + $0x2d0] sm:$0xf0]  ;;  %v8135_v47 = vpop.permute.xlu2 %8134 }
 0x241   : > { %v2127_v2 = vmul.f32 %v2123_v26, %v2115_v49  ;;  %v2128_v41 = vmul.f32 %v2124_v9, %v2116_v55  ;;  %3276 = vmatpush.bf16.msrb.mxu2 %v6972_v3  ;;  %v13252_v26 = vld [vmem:[#allocation44_spill] sm:$0xff]  ;;  %1780 = vst [vmem:[#allocation2 + $0x1a8] sm:$0xff] %v1776_v21  ;;  %v12805_v46 = vunpack.i.h.bf16 %v13253_v16  ;;  %v12804_v5 = vunpack.i.l.bf16 %v13253_v16  ;;  %v10444_v63 = vld [vmem:[#allocation2 + $0x2c4] sm:$0xf]  ;;  %v13257_v21 = vld [vmem:[#allocation54_spill] sm:$0xff] }
 0x242   : > { %1617 = vst [vmem:[#allocation2 + $0x140] sm:$0xff] %v1613_v58  ;;  %v2137_v19 = vpack.c.bf16 %v2132_v1, %v2131_v44  ;;  %v1778_v9 = vpack.c.bf16 %v13252_v26, %v13251_v10  ;;  %v10438_v44 = vld [vmem:[#allocation2 + $0xe4] sm:$0xf]  ;;  %v13254_v58 = vld [vmem:[#allocation31_spill] sm:$0xff]  ;;  %v13255_v1 = vld [vmem:[#allocation32_spill] sm:$0xff] }
 0x243   : > { %v2135_v11 = vpack.c.bf16 %v2128_v41, %v2127_v2  ;;  %v7957_v41 = vunpack.i.h.bf16 %v9941_v18  ;;  %v7956_v2 = vunpack.i.l.bf16 %v9941_v18  ;;  %v1510_v3 = vpack.i.b16 %v13254_v58, %v13254_v58  ;;  %v13256_v54 = vld [vmem:[#allocation53_spill] sm:$0xff] }
 0x244   : > { %2141 = vst [vmem:[#allocation2 + $0x250] sm:$0xff] %v2137_v19  ;;  %v1513_v33 = vpack.i.b16 %v13255_v1, %v13255_v1  ;;  %v2051_v51 = vpack.i.b16 %v13256_v54, %v13256_v54  ;;  %v2054_v19 = vpack.i.b16 %v13257_v21, %v13257_v21 }
 0x245   : > { %v10422_v40 = vld [vmem:[#allocation1] sm:$0xff]  ;;  %v10427_v36 = vld [vmem:[#allocation1 + $0x9] sm:$0xff]  ;;  %v10429_v49 = vld [vmem:[#allocation1 + $0x12] sm:$0xff]  ;;  %2139 = vst [vmem:[#allocation2 + $0x240] sm:$0xff] %v2135_v11  ;;  %3277 = vmatpush.bf16.msrb.mxu2 %v6956_v43  ;;  %v2036_v18 = vsel %vm12815_vm8, %v12805_v46, %v7957_v41  ;;  %v2035_v52 = vsel %vm12815_vm8, %v12804_v5, %v7956_v2  ;;  %v10468_v11 = vpop.permute.xlu1 %8074  ;;  %v8136_v43 = vunpack.i.l.bf16 %v8135_v47  ;;  %v1512_v58 = vperm.slane %v1510_v3, 0 }
 0x246   : > { %13247 = vst [vmem:[#allocation90_spill] sm:$0xff] %v10422_v40  ;;  %v10431_v23 = vld [vmem:[#allocation1 + $0x1b] sm:$0xff]  ;;  %v1515_v1 = vperm.slane %v1513_v33, 0  ;;  %v2053_v5 = vperm.slane %v2051_v51, 0  ;;  %v2056_v46 = vperm.slane %v2054_v19, 0 }
 0x247   : > { %13248 = vst [vmem:[#allocation49_spill] sm:$0xff] %v10427_v36  ;;  %v1486_v3 = vsel %vm12816_vm15, %v7966_v8, %v8136_v43  ;;  %v1526_v19 = vunpack.c.l.bf16 %v1512_v58  ;;  %v13263_v8 = vunpack.i.h.bf16 %v10468_v11  ;;  %v7019_v36 = vld [vmem:[#allocation2 + $0x300] sm:$0xf]  ;;  %v7660_v40 = vld [vmem:[#allocation2 + $0x30c] sm:$0xf0] }
 0x248   : > { %13249 = vst [vmem:[#allocation50_spill] sm:$0xff] %v10429_v49  ;;  %v1527_v10 = vunpack.c.l.bf16 %v1515_v1  ;;  %v2071_v17 = vunpack.c.l.bf16 %v2053_v5  ;;  %v2072_v14 = vunpack.c.l.bf16 %v2056_v46  ;;  %v13265_v46 = vld [vmem:[#allocation14_spill] sm:$0xff] }
 0x249   : > { %13250 = vst [vmem:[#allocation63_spill] sm:$0xff] %v10431_v23  ;;  %v2034_v37 = vsel %vm12815_vm8, %v7957_v41, %v13263_v8  ;;  %v7035_v8 = vld [vmem:[#allocation2 + $0x320] sm:$0xf] }
 0x24a   : > { %3902 = vst [vmem:[#allocation1] ss:$9 sm:$0xff] %v7075_v35  ;;  %v8137_v35 = vunpack.i.h.bf16 %v8135_v47  ;;  %v1484_v47 = vsel %vm12816_vm15, %v8136_v43, %v8086_v61 }
 0x24b   : > { %1782 = vst [vmem:[#allocation2 + $0x1b8] sm:$0xff] %v1778_v9  ;;  %v7076_v9 = vld [vmem:[%s12661_s5 + $0x10] sm:$0xf]  ;;  %v1493_v61 = vpack.c.bf16 %v1484_v47, %v1486_v3  ;;  %v2041_v47 = vpack.c.bf16 %v2034_v37, %v2036_v18 }
 0x24c   : > { %v1485_v59 = vsel %vm12816_vm15, %v8137_v35, %v8087_v27  ;;  %v1487_v33 = vsel %vm12816_vm15, %v7967_v53, %v8137_v35  ;;  %v13262_v27 = vunpack.i.l.bf16 %v10468_v11 }
 0x24d   : > { %v1495_v26 = vpack.c.bf16 %v1485_v59, %v1487_v33  ;;  %v1518_v53 = vunpack.c.l.bf16 %v1493_v61  ;;  %v1519_v35 = vunpack.c.h.bf16 %v1493_v61  ;;  %v13264_v59 = vld [vmem:[#allocation13_spill] sm:$0xff]  ;;  %v2067_v32 = vunpack.c.l.bf16 %v2041_v47 }
 0x24e   : > { %v2033_v7 = vsel %vm12815_vm8, %v7956_v2, %v13262_v27  ;;  %v1042_v5 = vpack.i.b16 %v13264_v59, %v13264_v59  ;;  %v2068_v41 = vunpack.c.h.bf16 %v2041_v47 }
 0x24f   : > { %v1522_v43 = vunpack.c.l.bf16 %v1495_v26  ;;  %v1523_v58 = vunpack.c.h.bf16 %v1495_v26  ;;  %v2039_v1 = vpack.c.bf16 %v2033_v7, %v2035_v52  ;;  %v1530_v3 = vmul.f32 %v1526_v19, %v1518_v53  ;;  %v7077_v26 = vld [vmem:[%s12661_s5 + $0x14] sm:$0xf] }
 0x250   : > { %v1531_v33 = vmul.f32 %v1527_v10, %v1519_v35  ;;  %v10514_v52 = vperm.slane %v1042_v5, 0  ;;  %v2079_v35 = vmul.f32 %v2071_v17, %v2067_v32  ;;  %v13266_v5 = vld [vmem:[#allocation15_spill] sm:$0xff] }
 0x251   : > { %v10475_v54 = vld [vmem:[#allocation1] sm:$0xff]  ;;  %v10477_v55 = vld [vmem:[#allocation1 + $0x9] sm:$0xff]  ;;  %v10479_v21 = vld [vmem:[#allocation1 + $0x12] sm:$0xff]  ;;  %v1534_v2 = vmul.f32 %v1526_v19, %v1522_v43  ;;  %v1535_v27 = vmul.f32 %v1527_v10, %v1523_v58  ;;  %v2063_v62 = vunpack.c.l.bf16 %v2039_v1  ;;  %v2064_v34 = vunpack.c.h.bf16 %v2039_v1  ;;  %v8060_v10 = vpop.permute.xlu0 %8059 }
 0x252   : > { %13258 = vst [vmem:[#allocation17_spill] sm:$0xff] %v10475_v54  ;;  %v10497_v51 = vld [vmem:[#allocation1 + $0x1b] sm:$0xff]  ;;  %v1537_v7 = vpack.c.bf16 %v1531_v33, %v1530_v3  ;;  %v2080_v19 = vmul.f32 %v2072_v14, %v2068_v41  ;;  %v6827_v58 = vld [vmem:[#allocation2 + $0x180] sm:$0xf]  ;;  %v13269_v41 = vld [vmem:[#allocation70_spill] sm:$0xff]  ;;  %v8062_v28 = vunpack.i.h.bf16 %v8060_v10 }
 0x253   : > { %13259 = vst [vmem:[#allocation18_spill] sm:$0xff] %v10477_v55  ;;  %v1539_v18 = vpack.c.bf16 %v1535_v27, %v1534_v2  ;;  %v2075_v37 = vmul.f32 %v2071_v17, %v2063_v62  ;;  %v2076_v53 = vmul.f32 %v2072_v14, %v2064_v34  ;;  %v7664_v43 = vld [vmem:[#allocation2 + $0x32c] sm:$0xf0]  ;;  %v13267_v3 = vld [vmem:[#allocation16_spill] sm:$0xff]  ;;  %v1062_v34 = vunpack.c.l.bf16 %v10514_v52  ;;  %v13268_v2 = vld [vmem:[#allocation69_spill] sm:$0xff] }
 0x254   : > { %13260 = vst [vmem:[#allocation19_spill] sm:$0xff] %v10479_v21  ;;  %v7612_v1 = vld [vmem:[#allocation2 + $0x18c] sm:$0xf0]  ;;  %v1051_v62 = vpack.i.b16 %v13267_v3, %v13267_v3  ;;  %v2085_v33 = vpack.c.bf16 %v2080_v19, %v2079_v35  ;;  %v2265_v27 = vpack.i.b16 %v13268_v2, %v13268_v2  ;;  %v8061_v3 = vunpack.i.l.bf16 %v8060_v10  ;;  %v6939_v55 = vld [vmem:[#allocation2 + $0x260] sm:$0xf] }
 0x255   : > { %13261 = vst [vmem:[#allocation20_spill] sm:$0xff] %v10497_v51  ;;  %v2083_v17 = vpack.c.bf16 %v2076_v53, %v2075_v37  ;;  %v6828_v51 = vor.u32 %v7612_v1, %v6827_v58  ;;  %v13270_v53 = vld [vmem:[#allocation83_spill] sm:$0xff] }
 0x256   : > { %3977 = vst [vmem:[#allocation1] ss:$9 sm:$0xff] %v7076_v9  ;;  %v1045_v9 = vpack.i.b16 %v13265_v46, %v13265_v46  ;;  %v1053_v0 = vperm.slane %v1051_v62, 0  ;;  %v2267_v52 = vperm.slane %v2265_v27, 0  ;;  %v13271_v35 = vunpack.i.h.bf16 %v13270_v53 }
 0x257   : > { %1541 = vst [vmem:[#allocation2 + $0x128] sm:$0xff] %v1537_v7  ;;  %v2268_v7 = vpack.i.b16 %v13269_v41, %v13269_v41  ;;  %3263 = vmatpush.bf16.msrb.mxu1 %v6828_v51  ;;  %v13278_v41 = vld [vmem:[#allocation84_spill] sm:$0xff] }
 0x258   : > { %v10516_v61 = vperm.slane %v1045_v9, 0  ;;  %v1048_v9 = vpack.i.b16 %v13266_v5, %v13266_v5  ;;  %1543 = vst [vmem:[#allocation2 + $0x138] sm:$0xff] %v1539_v18  ;;  %v1065_v37 = vunpack.c.l.bf16 %v1053_v0  ;;  %v1023_v19 = vsel %vm1021_vm4, %v13271_v35, %v8062_v28 }
 0x259   : > { %2087 = vst [vmem:[#allocation2 + $0x220] sm:$0xff] %v2083_v17  ;;  %v10536_v20 = vperm.slane %v2268_v7, 0  ;;  %v2281_v10 = vunpack.c.l.bf16 %v2267_v52  ;;  %v13273_v17 = vld [vmem:[#allocation85_spill] sm:$0xff] }
 0x25a   : > { %v1063_v14 = vunpack.c.l.bf16 %v10516_v61  ;;  %v1050_v5 = vperm.slane %v1048_v9, 0  ;;  %v7036_v61 = vor.u32 %v7664_v43, %v7035_v8  ;;  %2089 = vst [vmem:[#allocation2 + $0x230] sm:$0xff] %v2085_v33  ;;  %v1033_v2 = vpack.c.bf16 %v1023_v19, %v13273_v17  ;;  %v13274_v8 = vld [vmem:[#allocation71_spill] sm:$0xff]  ;;  %v13277_v33 = vld [vmem:[#allocation82_spill] sm:$0xff] }
 0x25b   : > { %v2282_v62 = vunpack.c.l.bf16 %v10536_v20  ;;  %v13275_v43 = vunpack.i.l.bf16 %v13274_v8  ;;  %v13276_v58 = vunpack.i.h.bf16 %v13274_v8 }
 0x25c   : > { %v1064_v18 = vunpack.c.l.bf16 %v1050_v5  ;;  %3294 = vmatpush.bf16.msrb.mxu3 %v7036_v61  ;;  %v1060_v20 = vunpack.c.l.bf16 %v1033_v2  ;;  %v1061_v52 = vunpack.c.h.bf16 %v1033_v2 }
 0x25d   : > { %v10518_v47 = vld [vmem:[#allocation1] sm:$0xff]  ;;  %v10520_v59 = vld [vmem:[#allocation1 + $0x9] sm:$0xff]  ;;  %v10522_v46 = vld [vmem:[#allocation1 + $0x12] sm:$0xff]  ;;  %v1028_v0 = vsel %vm1021_vm4, %v8061_v3, %v13275_v43  ;;  %v1029_v1 = vsel %vm1021_vm4, %v8062_v28, %v13276_v58 }
 0x25e   : > { %v10530_v32 = vld [vmem:[#allocation1 + $0x1b] sm:$0xff]  ;;  %v1030_v27 = vpack.c.bf16 %v13277_v33, %v1028_v0 }
 0x25f   : > { %4052 = vst [vmem:[#allocation1] ss:$9 sm:$0xff] %v7077_v26  ;;  %v13272_v26 = vunpack.i.l.bf16 %v13270_v53  ;;  %v13279_v53 = vld [vmem:[#allocation81_spill] sm:$0xff] }
 0x260   : > { %v1032_v35 = vpack.c.bf16 %v13279_v53, %v1029_v1  ;;  %v1054_v51 = vunpack.c.l.bf16 %v1030_v27  ;;  %v1055_v61 = vunpack.c.h.bf16 %v1030_v27  ;;  %v7640_v27 = vld [vmem:[#allocation2 + $0x26c] sm:$0xf0] }
 0x261   : > { %v1022_v9 = vsel %vm1021_vm4, %v13272_v26, %v8061_v3  ;;  %v2250_v26 = vpack.c.bf16 %v1029_v1, %v1023_v19  ;;  %v7078_v3 = vld [vmem:[%s12661_s5 + $0x18] sm:$0xf] }
 0x262   : > { %v1031_v7 = vpack.c.bf16 %v1022_v9, %v13278_v41  ;;  %v2248_v5 = vpack.c.bf16 %v1028_v0, %v1022_v9  ;;  %v1072_v9 = vmul.f32 %v1064_v18, %v1060_v20  ;;  %v1073_v0 = vmul.f32 %v1065_v37, %v1061_v52 }
 0x263   : > { %v1058_v2 = vunpack.c.l.bf16 %v1032_v35  ;;  %v1059_v33 = vunpack.c.h.bf16 %v1032_v35  ;;  %v1066_v19 = vmul.f32 %v1062_v34, %v1054_v51  ;;  %v1067_v1 = vmul.f32 %v1063_v14, %v1055_v61  ;;  %v8100_v35 = vpop.permute.xlu1 %8099 }
 0x264   : > { %v1056_v17 = vunpack.c.l.bf16 %v1031_v7  ;;  %v1057_v8 = vunpack.c.h.bf16 %v1031_v7  ;;  %v1077_v7 = vpack.c.bf16 %v1073_v0, %v1072_v9  ;;  %v2273_v49 = vunpack.c.l.bf16 %v2248_v5  ;;  %v13284_v9 = vld [vmem:[#allocation28_spill] sm:$0xff] }
 0x265   : > { %v1070_v54 = vmul.f32 %v1062_v34, %v1058_v2  ;;  %v1071_v23 = vmul.f32 %v1063_v14, %v1059_v33  ;;  %v2274_v52 = vunpack.c.h.bf16 %v2248_v5  ;;  %v2278_v51 = vunpack.c.h.bf16 %v2250_v26  ;;  %v13285_v5 = vld [vmem:[#allocation29_spill] sm:$0xff] }
 0x266   : > { %v10562_v43 = vld [vmem:[#allocation1] sm:$0xff]  ;;  %v10564_v28 = vld [vmem:[#allocation1 + $0x9] sm:$0xff]  ;;  %v10566_v58 = vld [vmem:[#allocation1 + $0x12] sm:$0xff]  ;;  %v1068_v53 = vmul.f32 %v1064_v18, %v1056_v17  ;;  %v1069_v21 = vmul.f32 %v1065_v37, %v1057_v8  ;;  %1081 = vst [vmem:[#allocation2 + $0x78] sm:$0xff] %v1077_v7  ;;  %v2285_v61 = vmul.f32 %v2281_v10, %v2273_v49  ;;  %v6940_v18 = vor.u32 %v7640_v27, %v6939_v55 }
 0x267   : > { %13280 = vst [vmem:[#allocation87_spill] sm:$0xff] %v10564_v28  ;;  %v10568_v41 = vld [vmem:[#allocation1 + $0x1b] sm:$0xff]  ;;  %v2277_v28 = vunpack.c.l.bf16 %v2250_v26  ;;  %v2286_v37 = vmul.f32 %v2282_v62, %v2274_v52  ;;  %v2290_v14 = vmul.f32 %v2282_v62, %v2278_v51  ;;  %v1433_v0 = vpack.i.b16 %v13285_v5, %v13285_v5 }
 0x268   : > { %13281 = vst [vmem:[#allocation88_spill] sm:$0xff] %v10566_v58  ;;  %v1074_v58 = vpack.c.bf16 %v1067_v1, %v1066_v19  ;;  %v1075_v20 = vpack.c.bf16 %v1069_v21, %v1068_v53  ;;  %v13283_v8 = vld [vmem:[#allocation27_spill] sm:$0xff]  ;;  %3278 = vmatpush.bf16.msrb.mxu2 %v6940_v18  ;;  %v1430_v21 = vpack.i.b16 %v13284_v9, %v13284_v9  ;;  %v8101_v27 = vunpack.i.l.bf16 %v8100_v35 }
 0x269   : > { %13282 = vst [vmem:[#allocation76_spill] sm:$0xff] %v10568_v41  ;;  %v1076_v41 = vpack.c.bf16 %v1071_v23, %v1070_v54  ;;  %v2289_v17 = vmul.f32 %v2281_v10, %v2277_v28  ;;  %v1427_v34 = vpack.i.b16 %v13283_v8, %v13283_v8  ;;  %v8102_v23 = vunpack.i.h.bf16 %v8100_v35  ;;  %v13286_v54 = vld [vmem:[#allocation30_spill] sm:$0xff]  ;;  %v7079_v10 = vld [vmem:[%s12661_s5 + $0x1c] sm:$0xf]  ;;  %v13292_v35 = vld [vmem:[#allocation92_spill] sm:$0xff] }
 0x26a   : > { %4127 = vst [vmem:[#allocation1] ss:$9 sm:$0xff] %v7078_v3  ;;  %v7020_v3 = vor.u32 %v7660_v40, %v7019_v36  ;;  %v2292_v49 = vpack.c.bf16 %v2286_v37, %v2285_v61  ;;  %v1436_v40 = vpack.i.b16 %v13286_v54, %v13286_v54  ;;  %v2525_v36 = vpack.i.b16 %v10308_v42, %v10308_v42 }
 0x26b   : > { %1078 = vst [vmem:[#allocation2 + $0x60] sm:$0xff] %v1074_v58  ;;  %v1429_v55 = vperm.slane %v1427_v34, 0  ;;  %v2294_v62 = vpack.c.bf16 %v2290_v14, %v2289_v17  ;;  %v13287_v26 = vor.u32 %v10438_v44, %v10440_v15  ;;  %v1432_v28 = vperm.slane %v1430_v21, 0 }
 0x26c   : > { %1079 = vst [vmem:[#allocation2 + $0x68] sm:$0xff] %v1075_v20  ;;  %3295 = vmatpush.bf16.msrb.mxu3 %v7020_v3  ;;  %v1435_v58 = vperm.slane %v1433_v0, 0  ;;  %v2528_v2 = vpack.i.b16 %v10310_v38, %v10310_v38  ;;  %v1438_v42 = vperm.slane %v1436_v40, 0  ;;  %v2527_v53 = vperm.slane %v2525_v36, 0 }
 0x26d   : > { %1080 = vst [vmem:[#allocation2 + $0x70] sm:$0xff] %v1076_v41  ;;  %v1447_v1 = vunpack.c.l.bf16 %v1429_v55  ;;  %v1448_v44 = vunpack.c.l.bf16 %v1432_v28  ;;  %v13290_v52 = vunpack.i.h.bf16 %v10211_v24  ;;  %v13291_v18 = vunpack.i.l.bf16 %v10211_v24 }
 0x26e   : > { %2296 = vst [vmem:[#allocation2 + $0x2a8] sm:$0xff] %v2292_v49  ;;  %v1449_v15 = vunpack.c.l.bf16 %v1435_v58  ;;  %v2530_v20 = vperm.slane %v2528_v2, 0  ;;  %v1450_v51 = vunpack.c.l.bf16 %v1438_v42  ;;  %v2541_v61 = vunpack.c.l.bf16 %v2527_v53 }
 0x26f   : > { %2298 = vst [vmem:[#allocation2 + $0x2b8] sm:$0xff] %v2294_v62  ;;  %v1408_v38 = vsel %vm12806_vm9, %v13290_v52, %v8102_v23  ;;  %v1407_v37 = vsel %vm12806_vm9, %v13291_v18, %v8101_v27  ;;  %v13293_v17 = vunpack.i.l.bf16 %v13292_v35  ;;  %v13294_v34 = vunpack.i.h.bf16 %v13292_v35 }
 0x270   : > { %3302 = vmatpush.bf16.msra.mxu3 %v13287_v26  ;;  %v2542_v8 = vunpack.c.l.bf16 %v2530_v20  ;;  %v1416_v21 = vpack.c.bf16 %v1407_v37, %v10234_v45  ;;  %v1418_v5 = vpack.c.bf16 %v1408_v38, %v10226_v29 }
 0x271   : > { %v10588_v33 = vld [vmem:[#allocation1] sm:$0xff]  ;;  %v10590_v41 = vld [vmem:[#allocation1 + $0x9] sm:$0xff]  ;;  %v10592_v19 = vld [vmem:[#allocation1 + $0x12] sm:$0xff]  ;;  %v1413_v3 = vsel %vm12806_vm9, %v8101_v27, %v13293_v17  ;;  %v1414_v14 = vsel %vm12806_vm9, %v8102_v23, %v13294_v34  ;;  %vm12812_vm9 = vcmask 392192  }
 0x272   : > { %13288 = vst [vmem:[#allocation62_spill] sm:$0xff] %v10592_v19  ;;  %v10594_v7 = vld [vmem:[#allocation1 + $0x1b] sm:$0xff]  ;;  %v1415_v9 = vpack.c.bf16 %v13196_v6, %v1413_v3  ;;  %v1417_v24 = vpack.c.bf16 %v13195_v56, %v1414_v14  ;;  %v2508_v0 = vpack.c.bf16 %v1413_v3, %v1407_v37  ;;  %v2510_v49 = vpack.c.bf16 %v1414_v14, %v1408_v38  ;;  %v13295_v34 = vld [vmem:[#allocation9_spill] sm:$0xff] }
 0x273   : > { %13289 = vst [vmem:[#allocation77_spill] sm:$0xff] %v10594_v7  ;;  %v1441_v40 = vunpack.c.l.bf16 %v1416_v21  ;;  %v1442_v36 = vunpack.c.h.bf16 %v1416_v21  ;;  %v1445_v26 = vunpack.c.l.bf16 %v1418_v5  ;;  %v1446_v28 = vunpack.c.h.bf16 %v1418_v5 }
 0x274   : > { %4202 = vst [vmem:[#allocation1] ss:$9 sm:$0xff] %v7079_v10  ;;  %v1439_v55 = vunpack.c.l.bf16 %v1415_v9  ;;  %v1440_v54 = vunpack.c.h.bf16 %v1415_v9  ;;  %v1443_v10 = vunpack.c.l.bf16 %v1417_v24  ;;  %v1444_v62 = vunpack.c.h.bf16 %v1417_v24  ;;  %v13296_v9 = vld [vmem:[#allocation10_spill] sm:$0xff]  ;;  %v13298_v24 = vld [vmem:[#allocation12_spill] sm:$0xff] }
 0x275   : > { %v1453_v2 = vmul.f32 %v1449_v15, %v1441_v40  ;;  %v1454_v6 = vmul.f32 %v1450_v51, %v1442_v36  ;;  %v1457_v53 = vmul.f32 %v1449_v15, %v1445_v26  ;;  %v1458_v56 = vmul.f32 %v1450_v51, %v1446_v28  ;;  %v13297_v51 = vld [vmem:[#allocation11_spill] sm:$0xff]  ;;  %v13299_v40 = vld [vmem:[#allocation64_spill] sm:$0xff] }
 0x276   : > { %v1451_v58 = vmul.f32 %v1447_v1, %v1439_v55  ;;  %v1452_v23 = vmul.f32 %v1448_v44, %v1440_v54  ;;  %v1455_v42 = vmul.f32 %v1447_v1, %v1443_v10  ;;  %v1456_v45 = vmul.f32 %v1448_v44, %v1444_v62  ;;  %v6811_v10 = vld [vmem:[#allocation2 + $0x160] sm:$0xf] }
 0x277   : > { %v1460_v29 = vpack.c.bf16 %v1454_v6, %v1453_v2  ;;  %v2533_v20 = vunpack.c.l.bf16 %v2508_v0  ;;  %v2534_v52 = vunpack.c.h.bf16 %v2508_v0  ;;  %v1462_v18 = vpack.c.bf16 %v1458_v56, %v1457_v53  ;;  %v8095_v0 = vpop.permute.xlu0 %8094 }
 0x278   : > { %v1459_v27 = vpack.c.bf16 %v1452_v23, %v1451_v58  ;;  %v1461_v38 = vpack.c.bf16 %v1456_v45, %v1455_v42  ;;  %v2537_v37 = vunpack.c.l.bf16 %v2510_v49  ;;  %v2538_v35 = vunpack.c.h.bf16 %v2510_v49  ;;  %v7608_v58 = vld [vmem:[#allocation2 + $0x16c] sm:$0xf0] }
 0x279   : > { %v2545_v17 = vmul.f32 %v2541_v61, %v2533_v20  ;;  %v2546_v3 = vmul.f32 %v2542_v8, %v2534_v52  ;;  %v888_v14 = vpack.i.b16 %v13295_v34, %v13295_v34  ;;  %v891_v1 = vpack.i.b16 %v13296_v9, %v13296_v9  ;;  %1464 = vst [vmem:[#allocation2 + $0x108] sm:$0xff] %v1460_v29 }
 0x27a   : > { %1463 = vst [vmem:[#allocation2 + $0x100] sm:$0xff] %v1459_v27  ;;  %v2549_v44 = vmul.f32 %v2541_v61, %v2537_v37  ;;  %v2550_v15 = vmul.f32 %v2542_v8, %v2538_v35  ;;  %v894_v21 = vpack.i.b16 %v13297_v51, %v13297_v51  ;;  %v897_v5 = vpack.i.b16 %v13298_v24, %v13298_v24  ;;  %v13300_v8 = vld [vmem:[#allocation65_spill] sm:$0xff] }
 0x27b   : > { %1465 = vst [vmem:[#allocation2 + $0x110] sm:$0xff] %v1461_v38  ;;  %v2552_v49 = vpack.c.bf16 %v2546_v3, %v2545_v17  ;;  %v890_v55 = vperm.slane %v888_v14, 0  ;;  %v893_v54 = vperm.slane %v891_v1, 0  ;;  %v2161_v36 = vpack.i.b16 %v13299_v40, %v13299_v40  ;;  %v13302_v38 = vld [vmem:[#allocation93_spill] sm:$0xff]  ;;  %v6733_v3 = vld [vmem:[#allocation2 + $0xd0] sm:$0xf0] }
 0x27c   : > { %1466 = vst [vmem:[#allocation2 + $0x118] sm:$0xff] %v1462_v18  ;;  %v2554_v62 = vpack.c.bf16 %v2550_v15, %v2549_v44  ;;  %v896_v26 = vperm.slane %v894_v21, 0  ;;  %v899_v61 = vperm.slane %v897_v5, 0  ;;  %v2164_v28 = vpack.i.b16 %v13300_v8, %v13300_v8  ;;  %v7586_v17 = vld [vmem:[#allocation2 + $0xc4] sm:$0xf]  ;;  %v13308_v5 = vld [vmem:[#allocation112_spill] sm:$0xff] }
 0x27d   : > { %2556 = vst [vmem:[#allocation2 + $0x348] sm:$0xff] %v2552_v49  ;;  %v908_v23 = vunpack.c.l.bf16 %v890_v55  ;;  %v909_v2 = vunpack.c.l.bf16 %v893_v54  ;;  %v10628_v6 = vperm.slane %v2161_v36, 0  ;;  %v8097_v42 = vunpack.i.h.bf16 %v8095_v0  ;;  %v13304_v14 = vld [vmem:[#allocation113_spill] sm:$0xff]  ;;  %v13309_v49 = vld [vmem:[#allocation103_spill] sm:$0xff] }
 0x27e   : > { %2558 = vst [vmem:[#allocation2 + $0x358] sm:$0xff] %v2554_v62  ;;  %v910_v45 = vunpack.c.l.bf16 %v896_v26  ;;  %v911_v53 = vunpack.c.l.bf16 %v899_v61  ;;  %v2166_v56 = vperm.slane %v2164_v28, 0  ;;  %v8096_v27 = vunpack.i.l.bf16 %v8095_v0  ;;  %v13307_v21 = vld [vmem:[#allocation105_spill] sm:$0xff] }
 0x27f   : > { %v2177_v29 = vunpack.c.l.bf16 %v10628_v6  ;;  %v13301_v20 = vunpack.i.h.bf16 %v9840_v50  ;;  %v13303_v18 = vunpack.i.h.bf16 %v13302_v38  ;;  %v6812_v35 = vor.u32 %v7608_v58, %v6811_v10 }
 0x280   : > { %v2178_v34 = vunpack.c.l.bf16 %v2166_v56  ;;  %v13305_v1 = vunpack.i.l.bf16 %v9840_v50  ;;  %v13306_v15 = vunpack.i.l.bf16 %v13302_v38  ;;  %v6736_v50 = vor.u32 %v7586_v17, %v6733_v3  ;;  %v7636_v17 = vld [vmem:[#allocation2 + $0x24c] sm:$0xf0]  ;;  %v7582_v3 = vld [vmem:[#allocation2 + $0xa4] sm:$0xf] }
 0x281   : > { %v869_v52 = vsel %vm867_vm10, %v13301_v20, %v8097_v42  ;;  %v875_v37 = vsel %vm867_vm10, %v8097_v42, %v13303_v18  ;;  %3264 = vmatpush.bf16.msrb.mxu1 %v6812_v35  ;;  %v6795_v18 = vld [vmem:[#allocation2 + $0x140] sm:$0xf] }
 0x282   : > { %v879_v9 = vpack.c.bf16 %v869_v52, %v13304_v14  ;;  %v868_v44 = vsel %vm867_vm10, %v13305_v1, %v8096_v27  ;;  %v874_v51 = vsel %vm867_vm10, %v8096_v27, %v13306_v15  ;;  %v878_v55 = vpack.c.bf16 %v13309_v49, %v875_v37  ;;  %3303 = vmatpush.bf16.msra.mxu3 %v6736_v50  ;;  %v7604_v14 = vld [vmem:[#allocation2 + $0x14c] sm:$0xf0]  ;;  %v6923_v35 = vld [vmem:[#allocation2 + $0x240] sm:$0xf] }
 0x283   : > { %v876_v24 = vpack.c.bf16 %v13307_v21, %v874_v51  ;;  %v877_v0 = vpack.c.bf16 %v868_v44, %v13308_v5  ;;  %v2144_v54 = vpack.c.bf16 %v874_v51, %v868_v44  ;;  %v2146_v10 = vpack.c.bf16 %v875_v37, %v869_v52  ;;  %v6717_v44 = vld [vmem:[#allocation2 + $0xb0] sm:$0xf0]  ;;  %v8115_v5 = vpop.permute.xlu1 %8114 }
 0x284   : > { %v906_v40 = vunpack.c.l.bf16 %v879_v9  ;;  %v907_v36 = vunpack.c.h.bf16 %v879_v9  ;;  %v904_v6 = vunpack.c.l.bf16 %v878_v55  ;;  %v905_v42 = vunpack.c.h.bf16 %v878_v55  ;;  %v10651_v55 = vpop.permute.xlu0 %8109 }
 0x285   : > { %v900_v62 = vunpack.c.l.bf16 %v876_v24  ;;  %v901_v26 = vunpack.c.h.bf16 %v876_v24  ;;  %v902_v61 = vunpack.c.l.bf16 %v877_v0  ;;  %v903_v8 = vunpack.c.h.bf16 %v877_v0 }
 0x286   : > { %v918_v28 = vmul.f32 %v910_v45, %v906_v40  ;;  %v919_v58 = vmul.f32 %v911_v53, %v907_v36  ;;  %v916_v9 = vmul.f32 %v908_v23, %v904_v6  ;;  %v917_v52 = vmul.f32 %v909_v2, %v905_v42 }
 0x287   : > { %v912_v56 = vmul.f32 %v908_v23, %v900_v62  ;;  %v913_v27 = vmul.f32 %v909_v2, %v901_v26  ;;  %v914_v20 = vmul.f32 %v910_v45, %v902_v61  ;;  %v915_v38 = vmul.f32 %v911_v53, %v903_v8  ;;  %v13310_v62 = vld [vmem:[#allocation45_spill] sm:$0xff]  ;;  %v13311_v26 = vld [vmem:[#allocation46_spill] sm:$0xff] }
 0x288   : > { %v923_v1 = vpack.c.bf16 %v919_v58, %v918_v28  ;;  %v2169_v37 = vunpack.c.l.bf16 %v2144_v54  ;;  %v2170_v21 = vunpack.c.h.bf16 %v2144_v54  ;;  %v2173_v24 = vunpack.c.l.bf16 %v2146_v10  ;;  %v13312_v58 = vld [vmem:[#allocation5_spill] sm:$0xff] }
 0x289   : > { %v920_v15 = vpack.c.bf16 %v913_v27, %v912_v56  ;;  %v921_v51 = vpack.c.bf16 %v915_v38, %v914_v20  ;;  %v922_v0 = vpack.c.bf16 %v917_v52, %v916_v9  ;;  %v2174_v49 = vunpack.c.h.bf16 %v2146_v10  ;;  %v13313_v27 = vld [vmem:[#allocation91_spill] sm:$0xff] }
 0x28a   : > { %927 = vst [vmem:[#allocation2 + $0x38] sm:$0xff] %v923_v1  ;;  %v2181_v45 = vmul.f32 %v2177_v29, %v2169_v37  ;;  %v6796_v53 = vor.u32 %v7604_v14, %v6795_v18  ;;  %v2182_v40 = vmul.f32 %v2178_v34, %v2170_v21  ;;  %v2185_v23 = vmul.f32 %v2177_v29, %v2173_v24  ;;  %v13319_v21 = vld [vmem:[#allocation6_spill] sm:$0xff] }
 0x28b   : > { %924 = vst [vmem:[#allocation2 + $0x20] sm:$0xff] %v920_v15  ;;  %v6924_v2 = vor.u32 %v7636_v17, %v6923_v35  ;;  %v6720_v36 = vor.u32 %v7582_v3, %v6717_v44  ;;  %v2186_v50 = vmul.f32 %v2178_v34, %v2174_v49  ;;  %v1826_v54 = vpack.i.b16 %v13310_v62, %v13310_v62  ;;  %v13316_v35 = vld [vmem:[#allocation80_spill] sm:$0xff] }
 0x28c   : > { %925 = vst [vmem:[#allocation2 + $0x28] sm:$0xff] %v921_v51  ;;  %3265 = vmatpush.bf16.msrb.mxu1 %v6796_v53  ;;  %v1829_v61 = vpack.i.b16 %v13311_v26, %v13311_v26  ;;  %v8117_v8 = vunpack.i.h.bf16 %v8115_v5  ;;  %v2188_v10 = vpack.c.bf16 %v2182_v40, %v2181_v45  ;;  %v8116_v28 = vunpack.i.l.bf16 %v8115_v5  ;;  %v13320_v5 = vld [vmem:[#allocation7_spill] sm:$0xff]  ;;  %v13321_v49 = vld [vmem:[#allocation8_spill] sm:$0xff] }
 0x28d   : > { %926 = vst [vmem:[#allocation2 + $0x30] sm:$0xff] %v922_v0  ;;  %3279 = vmatpush.bf16.msrb.mxu2 %v6924_v2  ;;  %3304 = vmatpush.bf16.msra.mxu3 %v6720_v36  ;;  %v811_v29 = vpack.i.b16 %v13312_v58, %v13312_v58  ;;  %v8112_v6 = vunpack.i.h.bf16 %v10651_v55  ;;  %v2190_v42 = vpack.c.bf16 %v2186_v50, %v2185_v23  ;;  %v1828_v34 = vperm.slane %v1826_v54, 0  ;;  %v13322_v26 = vld [vmem:[#allocation59_spill] sm:$0xff] }
 0x28e   : > { %v1831_v56 = vperm.slane %v1829_v61, 0  ;;  %v13314_v20 = vunpack.i.h.bf16 %v13313_v27  ;;  %2192 = vst [vmem:[#allocation2 + $0x268] sm:$0xff] %v2188_v10  ;;  %v13315_v18 = vunpack.i.l.bf16 %v13313_v27  ;;  %v13317_v1 = vunpack.i.l.bf16 %v13316_v35  ;;  %v6779_v27 = vld [vmem:[#allocation2 + $0x120] sm:$0xf] }
 0x28f   : > { %v13318_v52 = vunpack.i.h.bf16 %v13316_v35  ;;  %v10676_v17 = vperm.slane %v811_v29, 0  ;;  %2194 = vst [vmem:[#allocation2 + $0x278] sm:$0xff] %v2190_v42  ;;  %v1842_v3 = vunpack.c.l.bf16 %v1828_v34  ;;  %v814_v24 = vpack.i.b16 %v13319_v21, %v13319_v21 }
 0x290   : > { %v1801_v38 = vsel %vm1799_vm6, %v13314_v20, %v8117_v8  ;;  %v1800_v14 = vsel %vm1799_vm6, %v13315_v18, %v8116_v28  ;;  %v1806_v9 = vsel %vm1799_vm6, %v8116_v28, %v13317_v1  ;;  %v1843_v44 = vunpack.c.l.bf16 %v1831_v56  ;;  %v7600_v20 = vld [vmem:[#allocation2 + $0x12c] sm:$0xf0]  ;;  %v13324_v1 = vld [vmem:[#allocation110_spill] sm:$0xff] }
 0x291   : > { %v1807_v37 = vsel %vm1799_vm6, %v8117_v8, %v13318_v52  ;;  %v1809_v15 = vpack.c.bf16 %v1806_v9, %v1800_v14  ;;  %v817_v0 = vpack.i.b16 %v13320_v5, %v13320_v5  ;;  %v820_v45 = vpack.i.b16 %v13321_v49, %v13321_v49  ;;  %v13323_v14 = vld [vmem:[#allocation60_spill] sm:$0xff] }
 0x292   : > { %v1811_v51 = vpack.c.bf16 %v1807_v37, %v1801_v38  ;;  %v831_v53 = vunpack.c.l.bf16 %v10676_v17  ;;  %v816_v50 = vperm.slane %v814_v24, 0  ;;  %v2109_v61 = vpack.i.b16 %v13322_v26, %v13322_v26 }
 0x293   : > { %v1834_v40 = vunpack.c.l.bf16 %v1809_v15  ;;  %v1835_v23 = vunpack.c.h.bf16 %v1809_v15  ;;  %v819_v62 = vperm.slane %v817_v0, 0  ;;  %v822_v54 = vperm.slane %v820_v45, 0 }
 0x294   : > { %v1838_v2 = vunpack.c.l.bf16 %v1811_v51  ;;  %v1839_v36 = vunpack.c.h.bf16 %v1811_v51  ;;  %v832_v29 = vunpack.c.l.bf16 %v816_v50  ;;  %v10687_v56 = vperm.slane %v2109_v61, 0 }
 0x295   : > { %v1846_v8 = vmul.f32 %v1842_v3, %v1834_v40  ;;  %v1847_v10 = vmul.f32 %v1843_v44, %v1835_v23  ;;  %v833_v42 = vunpack.c.l.bf16 %v819_v62  ;;  %v834_v34 = vunpack.c.l.bf16 %v822_v54 }
 0x296   : > { %v1850_v28 = vmul.f32 %v1842_v3, %v1838_v2  ;;  %v1851_v58 = vmul.f32 %v1843_v44, %v1839_v36  ;;  %v2112_v35 = vpack.i.b16 %v13323_v14, %v13323_v14  ;;  %v13325_v9 = vunpack.i.h.bf16 %v13324_v1 }
 0x297   : > { %v1853_v38 = vpack.c.bf16 %v1847_v10, %v1846_v8  ;;  %v2125_v37 = vunpack.c.l.bf16 %v10687_v56  ;;  %v8111_v3 = vunpack.i.l.bf16 %v10651_v55  ;;  %v13326_v44 = vunpack.i.h.bf16 %v10372_v39 }
 0x298   : > { %v1855_v18 = vpack.c.bf16 %v1851_v58, %v1850_v28  ;;  %v799_v52 = vsel %vm12817_vm12, %v8112_v6, %v13325_v9  ;;  %v2114_v51 = vperm.slane %v2112_v35, 0  ;;  %v6780_v5 = vor.u32 %v7600_v20, %v6779_v27  ;;  %v7578_v27 = vld [vmem:[#allocation2 + $0x84] sm:$0xf]  ;;  %v6701_v20 = vld [vmem:[#allocation2 + $0x90] sm:$0xf0] }
 0x299   : > { %v802_v17 = vpack.c.bf16 %v9853_v57, %v799_v52  ;;  %v793_v15 = vsel %vm12817_vm12, %v13326_v44, %v8112_v6  ;;  %1857 = vst [vmem:[#allocation2 + $0x1c8] sm:$0xff] %v1853_v38  ;;  %v13327_v45 = vunpack.i.l.bf16 %v10372_v39  ;;  %v13328_v55 = vunpack.i.l.bf16 %v13324_v1  ;;  %v6683_v38 = vld [vmem:[#allocation2 + $0x60] sm:$0xf]  ;;  %v7576_v35 = vld [vmem:[#allocation2 + $0x6c] sm:$0xf0] }
 0x29a   : > { %v803_v21 = vpack.c.bf16 %v793_v15, %v10406_v60  ;;  %v2094_v24 = vpack.c.bf16 %v799_v52, %v793_v15  ;;  %1859 = vst [vmem:[#allocation2 + $0x1d8] sm:$0xff] %v1855_v18  ;;  %v2126_v6 = vunpack.c.l.bf16 %v2114_v51  ;;  %3266 = vmatpush.bf16.msrb.mxu1 %v6780_v5  ;;  %v6907_v1 = vld [vmem:[#allocation2 + $0x220] sm:$0xf]  ;;  %v7632_v9 = vld [vmem:[#allocation2 + $0x22c] sm:$0xf0] }
 0x29b   : > { %v827_v0 = vunpack.c.l.bf16 %v802_v17  ;;  %v828_v49 = vunpack.c.h.bf16 %v802_v17  ;;  %v792_v57 = vsel %vm12817_vm12, %v13327_v45, %v8111_v3  ;;  %v798_v40 = vsel %vm12817_vm12, %v8111_v3, %v13328_v55  ;;  %v7574_v15 = vld [vmem:[#allocation2 + $0x64] sm:$0xf]  ;;  %v6685_v51 = vld [vmem:[#allocation2 + $0x70] sm:$0xf0] }
 0x29c   : > { %v800_v23 = vpack.c.bf16 %v9879_v4, %v798_v40  ;;  %v801_v60 = vpack.c.bf16 %v792_v57, %v10414_v25  ;;  %v829_v2 = vunpack.c.l.bf16 %v803_v21  ;;  %v830_v62 = vunpack.c.h.bf16 %v803_v21  ;;  %v8130_v21 = vpop.permute.xlu1 %8129 }
 0x29d   : > { %v839_v36 = vmul.f32 %v831_v53, %v827_v0  ;;  %v840_v50 = vmul.f32 %v832_v29, %v828_v49  ;;  %v2092_v54 = vpack.c.bf16 %v798_v40, %v792_v57  ;;  %v2121_v3 = vunpack.c.l.bf16 %v2094_v24  ;;  %v13329_v40 = vld [vmem:[#allocation36_spill] sm:$0xff] }
 0x29e   : > { %v823_v39 = vunpack.c.l.bf16 %v800_v23  ;;  %v824_v26 = vunpack.c.h.bf16 %v800_v23  ;;  %v825_v61 = vunpack.c.l.bf16 %v801_v60  ;;  %v826_v8 = vunpack.c.h.bf16 %v801_v60 }
 0x29f   : > { %v845_v10 = vpack.c.bf16 %v840_v50, %v839_v36  ;;  %v841_v28 = vmul.f32 %v833_v42, %v829_v2  ;;  %v842_v58 = vmul.f32 %v834_v34, %v830_v62  ;;  %v2117_v56 = vunpack.c.l.bf16 %v2092_v54  ;;  %v13330_v36 = vld [vmem:[#allocation37_spill] sm:$0xff] }
 0x2a0   : > { %v835_v4 = vmul.f32 %v831_v53, %v823_v39  ;;  %v836_v18 = vmul.f32 %v832_v29, %v824_v26  ;;  %v837_v25 = vmul.f32 %v833_v42, %v825_v61  ;;  %v838_v14 = vmul.f32 %v834_v34, %v826_v8  ;;  %v13332_v39 = vld [vmem:[#allocation111_spill] sm:$0xff]  ;;  %v13334_v8 = vld [vmem:[#allocation38_spill] sm:$0xff] }
 0x2a1   : > { %849 = vst [vmem:[#allocation2 + $0x10] sm:$0xff] %v845_v10  ;;  %v846_v52 = vpack.c.bf16 %v842_v58, %v841_v28  ;;  %v2118_v17 = vunpack.c.h.bf16 %v2092_v54  ;;  %v2122_v44 = vunpack.c.h.bf16 %v2094_v24  ;;  %v2129_v49 = vmul.f32 %v2125_v37, %v2117_v56  ;;  %v8125_v28 = vpop.permute.xlu0 %8124 }
 0x2a2   : > { %v843_v5 = vpack.c.bf16 %v836_v18, %v835_v4  ;;  %v844_v0 = vpack.c.bf16 %v838_v14, %v837_v25  ;;  %v6704_v45 = vor.u32 %v7578_v27, %v6701_v20  ;;  %v2133_v29 = vmul.f32 %v2125_v37, %v2121_v3  ;;  %v6667_v3 = vld [vmem:[#allocation2 + $0x40] sm:$0xf] }
 0x2a3   : > { %850 = vst [vmem:[#allocation2 + $0x18] sm:$0xff] %v846_v52  ;;  %v2130_v53 = vmul.f32 %v2126_v6, %v2118_v17  ;;  %v2134_v42 = vmul.f32 %v2126_v6, %v2122_v44  ;;  %v6684_v34 = vor.u32 %v7576_v35, %v6683_v38  ;;  %v6908_v57 = vor.u32 %v7632_v9, %v6907_v1  ;;  %v13337_v35 = vld [vmem:[#allocation39_spill] sm:$0xff] }
 0x2a4   : > { %847 = vst [vmem:[#allocation2] sm:$0xff] %v843_v5  ;;  %3305 = vmatpush.bf16.msra.mxu3 %v6704_v45  ;;  %v6688_v55 = vor.u32 %v7574_v15, %v6685_v51  ;;  %v1587_v23 = vpack.i.b16 %v13329_v40, %v13329_v40  ;;  %v8132_v24 = vunpack.i.h.bf16 %v8130_v21  ;;  %v1590_v50 = vpack.i.b16 %v13330_v36, %v13330_v36  ;;  %v7572_v44 = vld [vmem:[#allocation2 + $0x4c] sm:$0xf0]  ;;  %v7570_v40 = vld [vmem:[#allocation2 + $0x44] sm:$0xf] }
 0x2a5   : > { %848 = vst [vmem:[#allocation2 + $0x8] sm:$0xff] %v844_v0  ;;  %v2136_v60 = vpack.c.bf16 %v2130_v53, %v2129_v49  ;;  %v2138_v2 = vpack.c.bf16 %v2134_v42, %v2133_v29  ;;  %3250 = vmatpush.bf16.msrb.mxu0 %v6684_v34  ;;  %v8131_v62 = vunpack.i.l.bf16 %v8130_v21  ;;  %3280 = vmatpush.bf16.msrb.mxu2 %v6908_v57  ;;  %v13331_v6 = vunpack.i.h.bf16 %v10353_v31  ;;  %v6891_v0 = vld [vmem:[#allocation2 + $0x200] sm:$0xf]  ;;  %v7628_v49 = vld [vmem:[#allocation2 + $0x20c] sm:$0xf0]  ;;  %v13339_v34 = vld [vmem:[#allocation114_spill] sm:$0xff] }
 0x2a6   : > { %v1589_v37 = vperm.slane %v1587_v23, 0  ;;  %v13333_v26 = vunpack.i.h.bf16 %v13332_v39  ;;  %v1664_v10 = vpack.i.b16 %v13334_v8, %v13334_v8  ;;  %v1592_v58 = vperm.slane %v1590_v50, 0  ;;  %v6669_v23 = vld [vmem:[#allocation2 + $0x50] sm:$0xf0]  ;;  %v7666_v50 = vld [vmem:[#allocation2 + $0x344] sm:$0xf] }
 0x2a7   : > { %v1562_v54 = vsel %vm12818_vm13, %v8132_v24, %v13331_v6  ;;  %2140 = vst [vmem:[#allocation2 + $0x248] sm:$0xff] %v2136_v60  ;;  %v13335_v56 = vunpack.i.l.bf16 %v10353_v31  ;;  %v13336_v20 = vunpack.i.l.bf16 %v13332_v39  ;;  %v1667_v1 = vpack.i.b16 %v13337_v35, %v13337_v35  ;;  %v7005_v6 = vld [vmem:[#allocation2 + $0x2f0] sm:$0xf0]  ;;  %v6651_v8 = vld [vmem:[#allocation2 + $0x20] sm:$0xf] }
 0x2a8   : > { %v1564_v61 = vsel %vm12818_vm13, %v13333_v26, %v8132_v24  ;;  %2142 = vst [vmem:[#allocation2 + $0x258] sm:$0xff] %v2138_v2  ;;  %3306 = vmatpush.bf16.msra.mxu3 %v6688_v55  ;;  %v1603_v18 = vunpack.c.l.bf16 %v1589_v37  ;;  %v10735_v14 = vperm.slane %v1664_v10, 0  ;;  %v1604_v9 = vunpack.c.l.bf16 %v1592_v58  ;;  %v7654_v37 = vld [vmem:[#allocation2 + $0x2e4] sm:$0xf]  ;;  %v7568_v10 = vld [vmem:[#allocation2 + $0x2c] sm:$0xf0] }
 0x2a9   : > { %v1561_v27 = vsel %vm12818_vm13, %v8131_v62, %v13335_v56  ;;  %v1563_v38 = vsel %vm12818_vm13, %v13336_v20, %v8131_v62  ;;  %v1572_v4 = vpack.c.bf16 %v1562_v54, %v1564_v61  ;;  %v8127_v17 = vunpack.i.h.bf16 %v8125_v28  ;;  %v7053_v62 = vld [vmem:[#allocation2 + $0x350] sm:$0xf0]  ;;  %v6763_v58 = vld [vmem:[#allocation2 + $0x100] sm:$0xf]  ;;  %v8145_v56 = vpop.permute.xlu1 %8144 }
 0x2aa   : > { %v1570_v25 = vpack.c.bf16 %v1561_v27, %v1563_v38  ;;  %v10739_v21 = vperm.slane %v1667_v1, 0  ;;  %v1680_v5 = vunpack.c.l.bf16 %v10735_v14  ;;  %v13338_v29 = vunpack.i.h.bf16 %v9978_v30  ;;  %v6653_v35 = vld [vmem:[#allocation2 + $0x30] sm:$0xf0] }
 0x2ab   : > { %v1599_v31 = vunpack.c.l.bf16 %v1572_v4  ;;  %v1600_v52 = vunpack.c.h.bf16 %v1572_v4  ;;  %v13340_v57 = vunpack.i.h.bf16 %v13339_v34  ;;  %v8126_v39 = vunpack.i.l.bf16 %v8125_v28 }
 0x2ac   : > { %v1595_v15 = vunpack.c.l.bf16 %v1570_v25  ;;  %v1596_v51 = vunpack.c.h.bf16 %v1570_v25  ;;  %v1639_v42 = vsel %vm1637_vm14, %v8127_v17, %v13338_v29  ;;  %v1681_v2 = vunpack.c.l.bf16 %v10739_v21  ;;  %v7566_v25 = vld [vmem:[#allocation2 + $0x24] sm:$0xf] }
 0x2ad   : > { %v1611_v45 = vmul.f32 %v1603_v18, %v1599_v31  ;;  %v1612_v53 = vmul.f32 %v1604_v9, %v1600_v52  ;;  %v1641_v55 = vsel %vm1637_vm14, %v13340_v57, %v8127_v17  ;;  %v6668_v26 = vor.u32 %v7572_v44, %v6667_v3  ;;  %v7662_v17 = vld [vmem:[#allocation2 + $0x324] sm:$0xf]  ;;  %v7037_v3 = vld [vmem:[#allocation2 + $0x330] sm:$0xf0] }
 0x2ae   : > { %v1607_v24 = vmul.f32 %v1603_v18, %v1595_v15  ;;  %v1608_v60 = vmul.f32 %v1604_v9, %v1596_v51  ;;  %v1649_v36 = vpack.c.bf16 %v1639_v42, %v1641_v55  ;;  %v6892_v61 = vor.u32 %v7628_v49, %v6891_v0  ;;  %v7596_v18 = vld [vmem:[#allocation2 + $0x10c] sm:$0xf0] }
 0x2af   : > { %v1616_v54 = vpack.c.bf16 %v1612_v53, %v1611_v45  ;;  %v6672_v4 = vor.u32 %v7570_v40, %v6669_v23  ;;  %v13341_v1 = vunpack.i.l.bf16 %v9978_v30  ;;  %v13342_v28 = vunpack.i.l.bf16 %v13339_v34  ;;  %3251 = vmatpush.bf16.msrb.mxu0 %v6668_v26  ;;  %v13343_v57 = vld [vmem:[#allocation51_spill] sm:$0xff]  ;;  %v13344_v40 = vld [vmem:[#allocation52_spill] sm:$0xff] }
 0x2b0   : > { %v1614_v27 = vpack.c.bf16 %v1608_v60, %v1607_v24  ;;  %v1676_v20 = vunpack.c.l.bf16 %v1649_v36  ;;  %v1677_v38 = vunpack.c.h.bf16 %v1649_v36  ;;  %3281 = vmatpush.bf16.msrb.mxu2 %v6892_v61  ;;  %v7056_v52 = vor.u32 %v7666_v50, %v7053_v62 }
 0x2b1   : > { %1620 = vst [vmem:[#allocation2 + $0x158] sm:$0xff] %v1616_v54  ;;  %v1638_v9 = vsel %vm1637_vm14, %v8126_v39, %v13341_v1  ;;  %v1640_v31 = vsel %vm1637_vm14, %v13342_v28, %v8126_v39  ;;  %3307 = vmatpush.bf16.msra.mxu3 %v6672_v4  ;;  %v8147_v30 = vunpack.i.h.bf16 %v8145_v56  ;;  %v6652_v21 = vor.u32 %v7568_v10, %v6651_v8  ;;  %v8140_v54 = vpop.permute.xlu0 %8139 }
 0x2b2   : > { %1618 = vst [vmem:[#allocation2 + $0x148] sm:$0xff] %v1614_v27  ;;  %v1688_v44 = vmul.f32 %v1680_v5, %v1676_v20  ;;  %v1689_v15 = vmul.f32 %v1681_v2, %v1677_v38  ;;  %v1647_v51 = vpack.c.bf16 %v1638_v9, %v1640_v31  ;;  %v6764_v0 = vor.u32 %v7596_v18, %v6763_v58  ;;  %v13349_v27 = vld [vmem:[#allocation55_spill] sm:$0xff]  ;;  %v13350_v18 = vld [vmem:[#allocation56_spill] sm:$0xff]  ;;  %v7559_v31 = vld [vmem:[%s12662_s6 + $0xc] sm:$0xf] }
 0x2b3   : > { %v6656_v49 = vor.u32 %v7566_v25, %v6653_v35  ;;  %v7008_v45 = vor.u32 %v7654_v37, %v7005_v6  ;;  %v7040_v34 = vor.u32 %v7662_v17, %v7037_v3  ;;  %3252 = vmatpush.bf16.msrb.mxu0 %v6652_v21  ;;  %v1980_v55 = vpack.i.b16 %v13343_v57, %v13343_v57 }
 0x2b4   : > { %3349 = vmatpush.bf16.msra.mxu2 %v7056_v52  ;;  %v1693_v53 = vpack.c.bf16 %v1689_v15, %v1688_v44  ;;  %v1672_v29 = vunpack.c.l.bf16 %v1647_v51  ;;  %v1673_v42 = vunpack.c.h.bf16 %v1647_v51  ;;  %3267 = vmatpush.bf16.msrb.mxu1 %v6764_v0  ;;  %v1983_v23 = vpack.i.b16 %v13344_v40, %v13344_v40  ;;  %v6629_v52 = vld [vmem:[%s12662_s6 + $0x18] sm:$0xf0]  ;;  %v7658_v0 = vld [vmem:[#allocation2 + $0x304] sm:$0xf] }
 0x2b5   : > { %v13345_v24 = vunpack.i.h.bf16 %v10156_v12  ;;  %v8146_v36 = vunpack.i.l.bf16 %v8145_v56  ;;  %3308 = vmatpush.bf16.msra.mxu3 %v6656_v49  ;;  %v13346_v37 = vunpack.i.h.bf16 %v10062_v22  ;;  %v1982_v39 = vperm.slane %v1980_v55, 0  ;;  %v7021_v49 = vld [vmem:[#allocation2 + $0x310] sm:$0xf0] }
 0x2b6   : > { %1697 = vst [vmem:[#allocation2 + $0x178] sm:$0xff] %v1693_v53  ;;  %v1684_v50 = vmul.f32 %v1680_v5, %v1672_v29  ;;  %v1685_v62 = vmul.f32 %v1681_v2, %v1673_v42  ;;  %v1985_v26 = vperm.slane %v1983_v23, 0  ;;  %v13347_v61 = vunpack.i.l.bf16 %v10156_v12  ;;  %v2671_v12 = vld [vmem:[%s12663_s7] sm:$0xff]  ;;  %v6627_v29 = vld [vmem:[%s12662_s6 + $0x8] sm:$0xf] }
 0x2b7   : > { %v1955_v60 = vsel %vm12813_vm0, %v13345_v24, %v8147_v30  ;;  %v1961_v6 = vsel %vm12813_vm0, %v8147_v30, %v13346_v37  ;;  %v13348_v14 = vunpack.i.l.bf16 %v10062_v22  ;;  %v8526_v2 = vmov 0   ;;  %v7561_v42 = vld [vmem:[%s12662_s6 + $0x14] sm:$0xf0]  ;;  %v6883_v23 = vld [vmem:[#allocation2 + $0x1e8] sm:$0xf] }
 0x2b8   : > { %3330 = vmatpush.bf16.msra.mxu1 %v7008_v45  ;;  %3350 = vmatpush.bf16.msra.mxu2 %v7040_v34  ;;  %v1954_v8 = vsel %vm12813_vm0, %v13347_v61, %v8146_v36  ;;  %v1691_v10 = vpack.c.bf16 %v1685_v62, %v1684_v50  ;;  %v1965_v56 = vpack.c.bf16 %v1961_v6, %v1955_v60  ;;  %v1996_v38 = vunpack.c.l.bf16 %v1982_v39  ;;  %v7625_v24 = vld [vmem:[#allocation2 + $0x1f4] sm:$0xf0]  ;;  %v7564_v60 = vld [vmem:[#allocation2 + $0xc] sm:$0xf0]  ;;  %v6877_v50 = vld [vmem:[#allocation2 + $0x1f0] sm:$0xf0] }
 0x2b9   : > { %v1960_v5 = vsel %vm12813_vm0, %v8146_v36, %v13348_v14  ;;  %8149 = vset.pattern.permute.xlu0 %v8526_v2  ;;  %v2057_v20 = vpack.i.b16 %v13349_v27, %v13349_v27  ;;  %8148 = vset.pattern.permute.xlu2 %v8526_v2  ;;  %v1997_v4 = vunpack.c.l.bf16 %v1985_v26  ;;  %v2060_v22 = vpack.i.b16 %v13350_v18, %v13350_v18  ;;  %v7622_v36 = vld [vmem:[#allocation2 + $0x1e4] sm:$0xf]  ;;  %v6635_v26 = vld [vmem:[#allocation2] sm:$0xf]  ;;  %v6973_v27 = vld [vmem:[#allocation2 + $0x2b0] sm:$0xf0] }
 0x2ba   : > { %v1963_v58 = vpack.c.bf16 %v1960_v5, %v1954_v8  ;;  %v8142_v25 = vunpack.i.h.bf16 %v8140_v54  ;;  %2675 = vperm.xlu0 %8149, %v2671_v12   ;;  %8150 = vset.pattern.permute.xlu1 %v8526_v2  ;;  %1695 = vst [vmem:[#allocation2 + $0x168] sm:$0xff] %v1691_v10  ;;  %v1992_v9 = vunpack.c.l.bf16 %v1965_v56  ;;  %v1993_v28 = vunpack.c.h.bf16 %v1965_v56  ;;  %v7562_v61 = vld [vmem:[#allocation2 + $0x4] sm:$0xf]  ;;  %v6637_v8 = vld [vmem:[#allocation2 + $0x10] sm:$0xf0] }
 0x2bb   : > { %v13351_v17 = vor.u32 %v10444_v63, %v10446_v48  ;;  %v10799_v3 = vperm.slane %v2057_v20, 0  ;;  %v10801_v44 = vperm.slane %v2060_v22, 0  ;;  %v13352_v15 = vunpack.i.h.bf16 %v10468_v11  ;;  %v7646_v56 = vld [vmem:[#allocation2 + $0x2a4] sm:$0xf]  ;;  %v6755_v20 = vld [vmem:[#allocation2 + $0xe8] sm:$0xf] }
 0x2bc   : > { %v1988_v35 = vunpack.c.l.bf16 %v1963_v58  ;;  %v1989_v1 = vunpack.c.h.bf16 %v1963_v58  ;;  %v13353_v30 = vunpack.i.h.bf16 %v13253_v16  ;;  %v2004_v63 = vmul.f32 %v1996_v38, %v1992_v9  ;;  %v6867_v18 = vld [vmem:[#allocation2 + $0x1c8] sm:$0xf] }
 0x2bd   : > { %3331 = vmatpush.bf16.msra.mxu1 %v13351_v17  ;;  %v2032_v51 = vsel %vm12815_vm8, %v13352_v15, %v8142_v25  ;;  %v2005_v48 = vmul.f32 %v1997_v4, %v1993_v28  ;;  %v2073_v34 = vunpack.c.l.bf16 %v10799_v3  ;;  %v2074_v57 = vunpack.c.l.bf16 %v10801_v44  ;;  %v7560_v9 = vld [vmem:[%s12662_s6 + $0xc] sm:$0xf0]  ;;  %v7621_v17 = vld [vmem:[#allocation2 + $0x1d4] sm:$0xf0]  ;;  %v7558_v3 = vld [vmem:[%s12662_s6 + $0x4] sm:$0xf] }
 0x2be   : > { %v2038_v21 = vsel %vm12815_vm8, %v8142_v25, %v13353_v30  ;;  %v2000_v45 = vmul.f32 %v1996_v38, %v1988_v35  ;;  %v2001_v53 = vmul.f32 %v1997_v4, %v1989_v1  ;;  %v8141_v40 = vunpack.i.l.bf16 %v8140_v54  ;;  %v7593_v4 = vld [vmem:[#allocation2 + $0xf4] sm:$0xf0]  ;;  %v6621_v44 = vld [vmem:[%s12662_s6 + $0x10] sm:$0xf0] }
 0x2bf   : > { %v2042_v55 = vpack.c.bf16 %v2038_v21, %v2032_v51  ;;  %v2009_v37 = vpack.c.bf16 %v2005_v48, %v2004_v63  ;;  %v10819_v6 = vor.u32 %v7559_v31, %v6629_v52  ;;  %v7024_v39 = vor.u32 %v7658_v0, %v7021_v49  ;;  %v6619_v1 = vld [vmem:[%s12662_s6] sm:$0xf]  ;;  %v7618_v21 = vld [vmem:[#allocation2 + $0x1c4] sm:$0xf]  ;;  %v6861_v0 = vld [vmem:[#allocation2 + $0x1d0] sm:$0xf0] }
 0x2c0   : > { %v2007_v62 = vpack.c.bf16 %v2001_v53, %v2000_v45  ;;  %v13354_v2 = vunpack.i.l.bf16 %v10468_v11  ;;  %v13355_v10 = vunpack.i.l.bf16 %v13253_v16  ;;  %v10831_v38 = vor.u32 %v7561_v42, %v6627_v29  ;;  %v7642_v49 = vld [vmem:[#allocation2 + $0x284] sm:$0xf]  ;;  %v6957_v48 = vld [vmem:[#allocation2 + $0x290] sm:$0xf0]  ;;  %v6739_v29 = vld [vmem:[#allocation2 + $0xc8] sm:$0xf] }
 0x2c1   : > { %v2069_v14 = vunpack.c.l.bf16 %v2042_v55  ;;  %v2070_v5 = vunpack.c.h.bf16 %v2042_v55  ;;  %7065 = vmatmul.msk.bf16.vlgmr.msrb.gmra.mxu3 %vm12812_vm9, %v10819_v6  ;;  %3351 = vmatpush.bf16.msra.mxu2 %v7024_v39  ;;  %v6884_v11 = vor.u32 %v7625_v24, %v6883_v23  ;;  %2013 = vst [vmem:[#allocation2 + $0x218] sm:$0xff] %v2009_v37  ;;  %v6636_v25 = vor.u32 %v7564_v60, %v6635_v26  ;;  %v7589_v42 = vld [vmem:[#allocation2 + $0xd4] sm:$0xf0]  ;;  %v6851_v60 = vld [vmem:[#allocation2 + $0x1a8] sm:$0xf] }
 0x2c2   : > { %v2031_v54 = vsel %vm12815_vm8, %v13354_v2, %v8141_v40  ;;  %v2037_v58 = vsel %vm12815_vm8, %v8141_v40, %v13355_v10  ;;  %2011 = vst [vmem:[#allocation2 + $0x208] sm:$0xff] %v2007_v62  ;;  %v6640_v35 = vor.u32 %v7562_v61, %v6637_v8  ;;  %3282 = vmatmul.bf16.vlgmr.msrb.gmra.mxu2 %v10831_v38  ;;  %v6845_v62 = vld [vmem:[#allocation2 + $0x1b0] sm:$0xf0]  ;;  %v7638_v37 = vld [vmem:[#allocation2 + $0x264] sm:$0xf] }
 0x2c3   : > { %v2040_v12 = vpack.c.bf16 %v2037_v58, %v2031_v54  ;;  %v2081_v22 = vmul.f32 %v2073_v34, %v2069_v14  ;;  %v2082_v16 = vmul.f32 %v2074_v57, %v2070_v5  ;;  %v6880_v52 = vor.u32 %v7622_v36, %v6877_v50  ;;  %3253 = vmatpush.bf16.msrb.mxu0 %v6636_v25  ;;  %v6941_v39 = vld [vmem:[#allocation2 + $0x270] sm:$0xf0]  ;;  %v6723_v26 = vld [vmem:[#allocation2 + $0xa8] sm:$0xf]  ;;  %v7585_v61 = vld [vmem:[#allocation2 + $0xb4] sm:$0xf0] }
 0x2c4   : > { %v6976_v51 = vor.u32 %v7646_v56, %v6973_v27  ;;  %v6756_v30 = vor.u32 %v7593_v4, %v6755_v20  ;;  %3309 = vmatpush.bf16.msra.mxu3 %v6640_v35  ;;  %v10846_v63 = vor.u32 %v7560_v9, %v6619_v1  ;;  %v6868_v55 = vor.u32 %v7621_v17, %v6867_v18  ;;  %v6835_v5 = vld [vmem:[#allocation2 + $0x188] sm:$0xf]  ;;  %v7613_v2 = vld [vmem:[#allocation2 + $0x194] sm:$0xf0]  ;;  %v7610_v58 = vld [vmem:[#allocation2 + $0x184] sm:$0xf] }
 0x2c5   : > { %v2065_v28 = vunpack.c.l.bf16 %v2040_v12  ;;  %v2066_v31 = vunpack.c.h.bf16 %v2040_v12  ;;  %v2086_v15 = vpack.c.bf16 %v2082_v16, %v2081_v22  ;;  %3372 = vmatpush.bf16.msrb.mxu2 %v6884_v11  ;;  %v10848_v40 = vor.u32 %v7558_v3, %v6621_v44  ;;  %v6829_v56 = vld [vmem:[#allocation2 + $0x190] sm:$0xf0]  ;;  %v7634_v27 = vld [vmem:[#allocation2 + $0x244] sm:$0xf]  ;;  %v6707_v12 = vld [vmem:[#allocation2 + $0x88] sm:$0xf] }
 0x2c6   : > { %3332 = vmatpush.bf16.msra.mxu1 %v6976_v51  ;;  %3254 = vmatmul.bf16.vlgmr.msrb.gmra.mxu0 %v10846_v63  ;;  %v6864_v24 = vor.u32 %v7618_v21, %v6861_v0  ;;  %v6960_v36 = vor.u32 %v7642_v49, %v6957_v48  ;;  %v6740_v50 = vor.u32 %v7589_v42, %v6739_v29  ;;  %v6925_v20 = vld [vmem:[#allocation2 + $0x250] sm:$0xf0]  ;;  %v7581_v11 = vld [vmem:[#allocation2 + $0x94] sm:$0xf0]  ;;  %v6819_v22 = vld [vmem:[#allocation2 + $0x168] sm:$0xf] }
 0x2c7   : > { %v2077_v45 = vmul.f32 %v2073_v34, %v2065_v28  ;;  %v2078_v53 = vmul.f32 %v2074_v57, %v2066_v31  ;;  %3316 = vmatpush.bf16.msra.mxu0 %v6880_v52  ;;  %2090 = vst [vmem:[#allocation2 + $0x238] sm:$0xff] %v2086_v15  ;;  %v7617_v34 = vld [vmem:[#allocation2 + $0x1b4] sm:$0xf0]  ;;  %v7614_v57 = vld [vmem:[#allocation2 + $0x1a4] sm:$0xf]  ;;  %3268 = vmatmul.bf16.vlgmr.msrb.gmra.mxu1 %v10848_v40 }
 0x2c8   : > { %3358 = vmatpush.bf16.msrb.mxu3 %v6756_v30  ;;  %v6852_v8 = vor.u32 %v7617_v34, %v6851_v60  ;;  %v6848_v14 = vor.u32 %v7614_v57, %v6845_v62  ;;  %v6944_v54 = vor.u32 %v7638_v37, %v6941_v39  ;;  %v6724_v10 = vor.u32 %v7585_v61, %v6723_v26  ;;  %v7609_v16 = vld [vmem:[#allocation2 + $0x174] sm:$0xf0]  ;;  %v7606_v1 = vld [vmem:[#allocation2 + $0x164] sm:$0xf]  ;;  %v6813_v9 = vld [vmem:[#allocation2 + $0x170] sm:$0xf0] }
 0x2c9   : > { %v2084_v23 = vpack.c.bf16 %v2078_v53, %v2077_v45  ;;  %3373 = vmatpush.bf16.msrb.mxu2 %v6868_v55  ;;  %v6836_v4 = vor.u32 %v7613_v2, %v6835_v5  ;;  %v6832_v18 = vor.u32 %v7610_v58, %v6829_v56  ;;  %v6928_v25 = vor.u32 %v7634_v27, %v6925_v20  ;;  %v7630_v28 = vld [vmem:[#allocation2 + $0x224] sm:$0xf]  ;;  %v6909_v31 = vld [vmem:[#allocation2 + $0x230] sm:$0xf0]  ;;  %v6691_v52 = vld [vmem:[#allocation2 + $0x68] sm:$0xf] }
 0x2ca   : > { %3333 = vmatpush.bf16.msra.mxu1 %v6960_v36  ;;  %v6708_v35 = vor.u32 %v7581_v11, %v6707_v12  ;;  %v7577_v17 = vld [vmem:[#allocation2 + $0x74] sm:$0xf0]  ;;  %v6820_v3 = vor.u32 %v7609_v16, %v6819_v22  ;;  %v2672_v44 = vld [vmem:[%s12663_s7 + $0x8] sm:$0xff]  ;;  %v6816_v15 = vor.u32 %v7606_v1, %v6813_v9  ;;  %v6803_v51 = vld [vmem:[#allocation2 + $0x148] sm:$0xf]  ;;  %v6912_v21 = vor.u32 %v7630_v28, %v6909_v31 }
 0x2cb   : > { %2088 = vst [vmem:[#allocation2 + $0x228] sm:$0xff] %v2084_v23  ;;  %3317 = vmatpush.bf16.msra.mxu0 %v6864_v24  ;;  %v7605_v30 = vld [vmem:[#allocation2 + $0x154] sm:$0xf0]  ;;  %2680 = vperm.xlu2 %8148, %v2672_v44   ;;  %v6692_v0 = vor.u32 %v7577_v17, %v6691_v52  ;;  %v7602_v49 = vld [vmem:[#allocation2 + $0x144] sm:$0xf] }
 0x2cc   : > { %3359 = vmatpush.bf16.msrb.mxu3 %v6740_v50  ;;  %v6797_v45 = vld [vmem:[#allocation2 + $0x150] sm:$0xf0]  ;;  %v7626_v53 = vld [vmem:[#allocation2 + $0x204] sm:$0xf]  ;;  %v6675_v29 = vld [vmem:[#allocation2 + $0x48] sm:$0xf]  ;;  %v6804_v55 = vor.u32 %v7605_v30, %v6803_v51 }
 0x2cd   : > { %3374 = vmatpush.bf16.msrb.mxu2 %v6852_v8  ;;  %v6893_v48 = vld [vmem:[#allocation2 + $0x210] sm:$0xf0]  ;;  %v7573_v42 = vld [vmem:[#allocation2 + $0x54] sm:$0xf0]  ;;  %v7059_v23 = vld [vmem:[#allocation2 + $0x348] sm:$0xf]  ;;  %v6800_v60 = vor.u32 %v7602_v49, %v6797_v45 }
 0x2ce   : > { %3334 = vmatpush.bf16.msra.mxu1 %v6944_v54  ;;  %v7669_v24 = vld [vmem:[#allocation2 + $0x354] sm:$0xf0]  ;;  %v6787_v34 = vld [vmem:[#allocation2 + $0x128] sm:$0xf]  ;;  %v6896_v36 = vor.u32 %v7626_v53, %v6893_v48  ;;  %v6676_v50 = vor.u32 %v7573_v42, %v6675_v29  ;;  %v7598_v62 = vld [vmem:[#allocation2 + $0x124] sm:$0xf] }
 0x2cf   : > { %3318 = vmatpush.bf16.msra.mxu0 %v6848_v14  ;;  %v7601_v57 = vld [vmem:[#allocation2 + $0x134] sm:$0xf0]  ;;  %v6781_v37 = vld [vmem:[#allocation2 + $0x130] sm:$0xf0]  ;;  %v7060_v39 = vor.u32 %v7669_v24, %v7059_v23  ;;  %v6659_v26 = vld [vmem:[#allocation2 + $0x28] sm:$0xf] }
 0x2d0   : > { %3360 = vmatpush.bf16.msrb.mxu3 %v6724_v10  ;;  %v7569_v61 = vld [vmem:[#allocation2 + $0x34] sm:$0xf0]  ;;  %v6771_v8 = vld [vmem:[#allocation2 + $0x108] sm:$0xf]  ;;  %v6788_v14 = vor.u32 %v7601_v57, %v6787_v34  ;;  %v6784_v10 = vor.u32 %v7598_v62, %v6781_v37  ;;  %v7655_v58 = vld [vmem:[#allocation2 + $0x2ec] sm:$0xf] }
 0x2d1   : > { %3375 = vmatpush.bf16.msrb.mxu2 %v6836_v4  ;;  %3310 = vmatmul.bf16.vlgmr.msra.gmra.mxu3 %v10846_v63  ;;  %v7597_v5 = vld [vmem:[#allocation2 + $0x114] sm:$0xf0]  ;;  %v7043_v2 = vld [vmem:[#allocation2 + $0x328] sm:$0xf]  ;;  %v7013_v56 = vld [vmem:[#allocation2 + $0x2f8] sm:$0xf0]  ;;  %v6660_v20 = vor.u32 %v7569_v61, %v6659_v26 }
 0x2d2   : > { %3335 = vmatpush.bf16.msra.mxu1 %v6928_v25  ;;  %7066 = vmatmul.msk.bf16.vlgmr.msra.gmra.mxu2 %vm12812_vm9, %v10819_v6  ;;  %v7665_v54 = vld [vmem:[#allocation2 + $0x334] sm:$0xf0]  ;;  %v7594_v27 = vld [vmem:[#allocation2 + $0x104] sm:$0xf]  ;;  %v6765_v12 = vld [vmem:[#allocation2 + $0x110] sm:$0xf0]  ;;  %v7016_v31 = vor.u32 %v7655_v58, %v7013_v56 }
 0x2d3   : > { %3319 = vmatpush.bf16.msra.mxu0 %v6832_v18  ;;  %v6643_v11 = vld [vmem:[#allocation2 + $0x8] sm:$0xf]  ;;  %v7565_v4 = vld [vmem:[#allocation2 + $0x14] sm:$0xf0]  ;;  %v7044_v18 = vor.u32 %v7665_v54, %v7043_v2  ;;  %v7591_v9 = vld [vmem:[#allocation2 + $0xec] sm:$0xf]  ;;  %v6768_v52 = vor.u32 %v7594_v27, %v6765_v12 }
 0x2d4   : > { %3361 = vmatpush.bf16.msrb.mxu3 %v6708_v35  ;;  %v7011_v22 = vld [vmem:[#allocation2 + $0x2e8] sm:$0xf]  ;;  %v7657_v16 = vld [vmem:[#allocation2 + $0x2f4] sm:$0xf0]  ;;  %v6772_v35 = vor.u32 %v7597_v5, %v6771_v8  ;;  %v6757_v28 = vld [vmem:[#allocation2 + $0xf8] sm:$0xf0]  ;;  %v6644_v44 = vor.u32 %v7565_v4, %v6643_v11 }
 0x2d5   : > { %3376 = vmatpush.bf16.msrb.mxu2 %v6820_v3  ;;  %v7027_v25 = vld [vmem:[#allocation2 + $0x308] sm:$0xf]  ;;  %v7661_v1 = vld [vmem:[#allocation2 + $0x314] sm:$0xf0]  ;;  %v7623_v17 = vld [vmem:[#allocation2 + $0x1ec] sm:$0xf] }
 0x2d6   : > { %3336 = vmatpush.bf16.msra.mxu1 %v6912_v21  ;;  %v6885_v3 = vld [vmem:[#allocation2 + $0x1f8] sm:$0xf0]  ;;  %v7651_v51 = vld [vmem:[#allocation2 + $0x2cc] sm:$0xf]  ;;  %v7028_v21 = vor.u32 %v7661_v1, %v7027_v25  ;;  %v6995_v49 = vld [vmem:[#allocation2 + $0x2c8] sm:$0xf] }
 0x2d7   : > { %3320 = vmatpush.bf16.msra.mxu0 %v6816_v15  ;;  %v7012_v15 = vor.u32 %v7657_v16, %v7011_v22  ;;  %v6997_v30 = vld [vmem:[#allocation2 + $0x2d8] sm:$0xf0]  ;;  %v7653_v45 = vld [vmem:[#allocation2 + $0x2d4] sm:$0xf0]  ;;  %v6888_v53 = vor.u32 %v7623_v17, %v6885_v3  ;;  %v7587_v48 = vld [vmem:[#allocation2 + $0xcc] sm:$0xf] }
 0x2d8   : > { %3362 = vmatpush.bf16.msrb.mxu3 %v6692_v0  ;;  %v6760_v0 = vor.u32 %v7591_v9, %v6757_v28  ;;  %v6741_v29 = vld [vmem:[#allocation2 + $0xd8] sm:$0xf0]  ;;  %v7000_v42 = vor.u32 %v7651_v51, %v6997_v30  ;;  %v6996_v24 = vor.u32 %v7653_v45, %v6995_v49  ;;  %v7583_v37 = vld [vmem:[#allocation2 + $0xac] sm:$0xf]  ;;  %v7645_v58 = vld [vmem:[#allocation2 + $0x294] sm:$0xf0] }
 0x2d9   : > { %3377 = vmatpush.bf16.msrb.mxu2 %v6804_v55  ;;  %v7619_v55 = vld [vmem:[#allocation2 + $0x1cc] sm:$0xf]  ;;  %v6869_v23 = vld [vmem:[#allocation2 + $0x1d8] sm:$0xf0]  ;;  %v6744_v57 = vor.u32 %v7587_v48, %v6741_v29  ;;  %v7641_v1 = vld [vmem:[#allocation2 + $0x274] sm:$0xf0] }
 0x2da   : > { %3337 = vmatpush.bf16.msra.mxu1 %v6896_v36  ;;  %v6981_v34 = vld [vmem:[#allocation2 + $0x2b8] sm:$0xf0]  ;;  %v6979_v36 = vld [vmem:[#allocation2 + $0x2a8] sm:$0xf]  ;;  %v6872_v62 = vor.u32 %v7619_v55, %v6869_v23  ;;  %v7615_v61 = vld [vmem:[#allocation2 + $0x1ac] sm:$0xf] }
 0x2db   : > { %3321 = vmatpush.bf16.msra.mxu0 %v6800_v60  ;;  %v7647_v60 = vld [vmem:[#allocation2 + $0x2ac] sm:$0xf]  ;;  %v6853_v8 = vld [vmem:[#allocation2 + $0x1b8] sm:$0xf0] }
 0x2dc   : > { %3363 = vmatpush.bf16.msrb.mxu3 %v6676_v50  ;;  %v7649_v50 = vld [vmem:[#allocation2 + $0x2b4] sm:$0xf0]  ;;  %v6984_v26 = vor.u32 %v7647_v60, %v6981_v34  ;;  %v7643_v5 = vld [vmem:[#allocation2 + $0x28c] sm:$0xf]  ;;  %v6965_v2 = vld [vmem:[#allocation2 + $0x298] sm:$0xf0]  ;;  %v6856_v56 = vor.u32 %v7615_v61, %v6853_v8 }
 0x2dd   : > { %3378 = vmatpush.bf16.msrb.mxu2 %v6788_v14  ;;  %3338 = vmatmul.bf16.vlgmr.msra.gmra.mxu1 %v10831_v38  ;;  %v6980_v14 = vor.u32 %v7649_v50, %v6979_v36  ;;  %v7579_v27 = vld [vmem:[#allocation2 + $0x8c] sm:$0xf]  ;;  %v6968_v12 = vor.u32 %v7643_v5, %v6965_v2  ;;  %v6837_v4 = vld [vmem:[#allocation2 + $0x198] sm:$0xf0]  ;;  %v6915_v34 = vld [vmem:[#allocation2 + $0x228] sm:$0xf] }
 0x2de   : > { %3405 = vmatpush.bf16.msrb.mxu1 %v7060_v39  ;;  %v6725_v39 = vld [vmem:[#allocation2 + $0xb8] sm:$0xf0]  ;;  %v7611_v11 = vld [vmem:[#allocation2 + $0x18c] sm:$0xf]  ;;  %v6899_v2 = vld [vmem:[#allocation2 + $0x208] sm:$0xf] }
 0x2df   : > { %3322 = vmatpush.bf16.msra.mxu0 %v6784_v10  ;;  %v6728_v54 = vor.u32 %v7583_v37, %v6725_v39  ;;  %v6963_v10 = vld [vmem:[#allocation2 + $0x288] sm:$0xf]  ;;  %v7639_v22 = vld [vmem:[#allocation2 + $0x26c] sm:$0xf]  ;;  %v6949_v16 = vld [vmem:[#allocation2 + $0x278] sm:$0xf0]  ;;  %v6840_v9 = vor.u32 %v7611_v11, %v6837_v4 }
 0x2e0   : > { %3364 = vmatpush.bf16.msrb.mxu3 %v6660_v20  ;;  %v6709_v20 = vld [vmem:[#allocation2 + $0x98] sm:$0xf0]  ;;  %v7575_v28 = vld [vmem:[#allocation2 + $0x6c] sm:$0xf] }
 0x2e1   : > { %3379 = vmatpush.bf16.msrb.mxu2 %v6772_v35  ;;  %v6712_v25 = vor.u32 %v7579_v27, %v6709_v20  ;;  %v6947_v35 = vld [vmem:[#allocation2 + $0x268] sm:$0xf]  ;;  %v7607_v17 = vld [vmem:[#allocation2 + $0x16c] sm:$0xf]  ;;  %v6821_v3 = vld [vmem:[#allocation2 + $0x178] sm:$0xf0] }
 0x2e2   : > { %3406 = vmatpush.bf16.msrb.mxu1 %v7044_v18  ;;  %v6964_v18 = vor.u32 %v7645_v58, %v6963_v10  ;;  %v6933_v51 = vld [vmem:[#allocation2 + $0x258] sm:$0xf0]  ;;  %v6824_v49 = vor.u32 %v7607_v17, %v6821_v3  ;;  %v7571_v45 = vld [vmem:[#allocation2 + $0x4c] sm:$0xf] }
 0x2e3   : > { %3323 = vmatpush.bf16.msra.mxu0 %v6768_v52  ;;  %v6952_v52 = vor.u32 %v7639_v22, %v6949_v16  ;;  %v7603_v29 = vld [vmem:[#allocation2 + $0x14c] sm:$0xf]  ;;  %v7061_v20 = vld [vmem:[#allocation2 + $0x358] sm:$0xf0] }
 0x2e4   : > { %3365 = vmatpush.bf16.msrb.mxu3 %v6644_v44  ;;  %3380 = vmatmul.bf16.vlgmr.msrb.gmra.mxu2 %v10848_v40  ;;  %v6948_v44 = vor.u32 %v7641_v1, %v6947_v35  ;;  %v7631_v23 = vld [vmem:[#allocation2 + $0x22c] sm:$0xf]  ;;  %v6773_v4 = vld [vmem:[#allocation2 + $0x118] sm:$0xf0] }
 0x2e5   : > { %3442 = vmatpush.bf16.msra.mxu2 %v7016_v31  ;;  %v6693_v31 = vld [vmem:[#allocation2 + $0x78] sm:$0xf0]  ;;  %v7567_v50 = vld [vmem:[#allocation2 + $0x2c] sm:$0xf] }
 0x2e6   : > { %3407 = vmatpush.bf16.msrb.mxu1 %v7028_v21  ;;  %3324 = vmatmul.bf16.vlgmr.msra.gmra.mxu0 %v10848_v40  ;;  %v6696_v30 = vor.u32 %v7575_v28, %v6693_v31  ;;  %v6931_v21 = vld [vmem:[#allocation2 + $0x248] sm:$0xf]  ;;  %v7599_v39 = vld [vmem:[#allocation2 + $0x12c] sm:$0xf]  ;;  %v7045_v1 = vld [vmem:[#allocation2 + $0x338] sm:$0xf0] }
 0x2e7   : > { %3386 = vmatpush.bf16.msrb.mxu0 %v7012_v15  ;;  %3366 = vmatmul.bf16.vlgmr.msrb.gmra.mxu3 %v10846_v63  ;;  %v7635_v15 = vld [vmem:[#allocation2 + $0x24c] sm:$0xf]  ;;  %v7029_v31 = vld [vmem:[#allocation2 + $0x318] sm:$0xf0] }
 0x2e8   : > { %3414 = vmatpush.bf16.msra.mxu3 %v6760_v0  ;;  %v7637_v0 = vld [vmem:[#allocation2 + $0x254] sm:$0xf0]  ;;  %v6936_v48 = vor.u32 %v7635_v15, %v6933_v51  ;;  %v7627_v8 = vld [vmem:[#allocation2 + $0x20c] sm:$0xf] }
 0x2e9   : > { %3443 = vmatpush.bf16.msra.mxu2 %v7000_v42  ;;  %v6805_v42 = vld [vmem:[#allocation2 + $0x158] sm:$0xf0]  ;;  %v6932_v55 = vor.u32 %v7637_v0, %v6931_v21  ;;  %v7563_v10 = vld [vmem:[#allocation2 + $0xc] sm:$0xf] }
 0x2ea   : > { %3428 = vmatpush.bf16.msra.mxu1 %v6888_v53  ;;  %v6677_v53 = vld [vmem:[#allocation2 + $0x58] sm:$0xf0]  ;;  %v6808_v36 = vor.u32 %v7603_v29, %v6805_v42  ;;  %v7667_v27 = vld [vmem:[#allocation2 + $0x34c] sm:$0xf] }
 0x2eb   : > { %3387 = vmatpush.bf16.msrb.mxu0 %v6996_v24  ;;  %v6917_v24 = vld [vmem:[#allocation2 + $0x238] sm:$0xf0]  ;;  %v6680_v60 = vor.u32 %v7571_v45, %v6677_v53  ;;  %v7595_v11 = vld [vmem:[#allocation2 + $0x10c] sm:$0xf]  ;;  %v7064_v16 = vor.u32 %v7667_v27, %v7061_v20 }
 0x2ec   : > { %3415 = vmatpush.bf16.msra.mxu3 %v6744_v57  ;;  %v7633_v57 = vld [vmem:[#allocation2 + $0x234] sm:$0xf0]  ;;  %v6920_v37 = vor.u32 %v7631_v23, %v6917_v24  ;;  %v7663_v35 = vld [vmem:[#allocation2 + $0x32c] sm:$0xf] }
 0x2ed   : > { %3444 = vmatpush.bf16.msra.mxu2 %v6984_v26  ;;  %7067 = vmatmul.msk.bf16.vlgmr.msrb.gmra.mxu1 %vm12812_vm9, %v10819_v6  ;;  %v6789_v26 = vld [vmem:[#allocation2 + $0x138] sm:$0xf0]  ;;  %v6916_v61 = vor.u32 %v7633_v57, %v6915_v34  ;;  %v7659_v28 = vld [vmem:[#allocation2 + $0x30c] sm:$0xf] }
 0x2ee   : > { %3429 = vmatpush.bf16.msra.mxu1 %v6872_v62  ;;  %v6661_v62 = vld [vmem:[#allocation2 + $0x38] sm:$0xf0]  ;;  %v6792_v58 = vor.u32 %v7599_v39, %v6789_v26 }
 0x2ef   : > { %3388 = vmatpush.bf16.msrb.mxu0 %v6980_v14  ;;  %v6901_v14 = vld [vmem:[#allocation2 + $0x218] sm:$0xf0]  ;;  %v6664_v5 = vor.u32 %v7567_v50, %v6661_v62 }
 0x2f0   : > { %3416 = vmatpush.bf16.msra.mxu3 %v6728_v54  ;;  %v7629_v54 = vld [vmem:[#allocation2 + $0x214] sm:$0xf0] }
 0x2f1   : > { %3445 = vmatpush.bf16.msra.mxu2 %v6968_v12  ;;  %v6904_v12 = vor.u32 %v7627_v8, %v6901_v14 }
 0x2f2   : > { %3430 = vmatpush.bf16.msra.mxu1 %v6856_v56  ;;  %v6645_v56 = vld [vmem:[#allocation2 + $0x18] sm:$0xf0] }
 0x2f3   : > { %3389 = vmatpush.bf16.msrb.mxu0 %v6964_v18  ;;  %v6900_v18 = vor.u32 %v7629_v54, %v6899_v2  ;;  %v6648_v22 = vor.u32 %v7563_v10, %v6645_v56 }
 0x2f4   : > { %3417 = vmatpush.bf16.msra.mxu3 %v6712_v25  ;;  %v6776_v25 = vor.u32 %v7595_v11, %v6773_v4 }
 0x2f5   : > { %3446 = vmatpush.bf16.msra.mxu2 %v6952_v52  ;;  %v7032_v52 = vor.u32 %v7659_v28, %v7029_v31 }
 0x2f6   : > { %3431 = vmatpush.bf16.msra.mxu1 %v6840_v9  ;;  %v7048_v9 = vor.u32 %v7663_v35, %v7045_v1 }
 0x2f7   : > { %3390 = vmatpush.bf16.msrb.mxu0 %v6948_v44 }
 0x2f8   : > { %3418 = vmatpush.bf16.msra.mxu3 %v6696_v30 }
 0x2f9   : > { %3447 = vmatpush.bf16.msra.mxu2 %v6936_v48 }
 0x2fa   : > { %3432 = vmatpush.bf16.msra.mxu1 %v6824_v49 }
 0x2fb   : > { %3391 = vmatpush.bf16.msrb.mxu0 %v6932_v55 }
 0x2fc   : > { %3419 = vmatpush.bf16.msra.mxu3 %v6680_v60 }
 0x2fd   : > { %3448 = vmatpush.bf16.msra.mxu2 %v6920_v37 }
 0x2fe   : > { %3433 = vmatpush.bf16.msra.mxu1 %v6808_v36 }
 0x2ff   : > { %3392 = vmatpush.bf16.msrb.mxu0 %v6916_v61 }
 0x300   : > { %3420 = vmatpush.bf16.msra.mxu3 %v6664_v5 }
 0x301   : > { %3449 = vmatpush.bf16.msra.mxu2 %v6904_v12 }
 0x302   : > { %3434 = vmatpush.bf16.msra.mxu1 %v6792_v58 }
 0x303   : > { %3393 = vmatpush.bf16.msrb.mxu0 %v6900_v18 }
 0x304   : > { %3421 = vmatpush.bf16.msra.mxu3 %v6648_v22  ;;  %3450 = vmatmul.bf16.vlgmr.msra.gmra.mxu2 %v10831_v38 }
 0x306   : > { %3435 = vmatpush.bf16.msra.mxu1 %v6776_v25  ;;  %3394 = vmatmul.bf16.vlgmr.msrb.gmra.mxu0 %v10831_v38 }
 0x307   : > { %3461 = vmatpush.bf16.msra.mxu0 %v7064_v16  ;;  %3422 = vmatmul.bf16.vlgmr.msra.gmra.mxu3 %v10846_v63 }
 0x309   : > { %3436 = vmatmul.bf16.vlgmr.msra.gmra.mxu1 %v10848_v40 }
 0x30b   : > { %3462 = vmatpush.bf16.msra.mxu0 %v7048_v9 }
 0x30f   : > { %3463 = vmatpush.bf16.msra.mxu0 %v7032_v52 }
 0x316   : > { %7068 = vmatmul.msk.bf16.vlgmr.msra.gmra.mxu0 %vm12812_vm9, %v10819_v6  ;;  %vm12814_vm9 = vcmask 130048  }
 0x325   : > { %v2681_v26 = vpop.permute.xlu2 %2680 }
 0x32c   : > { %v2676_v6 = vpop.permute.xlu0 %2675 }
 0x343   : > { %v3255_v30 = vpop.f32.mrf.mxu0 }
 0x344   : > { %v3269_v17 = vpop.f32.mrf.mxu1  ;;  %v3297_v3 = vpop.f32.mrf.mxu3  ;;  %v3256_v36 = vadd.f32 %v3255_v30, %v2676_v6 }
 0x345   : > { %v3283_v44 = vpop.f32.mrf.mxu2 }
 0x346   : > { %v3270_v39 = vadd.f32 %v3269_v17, %v3256_v36 }
 0x348   : > { %v3284_v58 = vadd.f32 %v3283_v44, %v3270_v39 }
 0x34a   : > { %v3298_v22 = vadd.f32 %v3297_v3, %v3284_v58 }
 0x34b   : > { %v3257_v63 = vpop.f32.mrf.mxu0 }
 0x34c   : > { %v3271_v15 = vpop.f32.mrf.mxu1  ;;  %v3299_v51 = vpop.f32.mrf.mxu3  ;;  %v3258_v56 = vadd.f32 %v3257_v63, %v2681_v26 }
 0x34d   : > { %v3285_v38 = vpop.f32.mrf.mxu2 }
 0x34e   : > { %v3272_v16 = vadd.f32 %v3271_v15, %v3258_v56 }
 0x350   : > { %v3286_v30 = vadd.f32 %v3285_v38, %v3272_v16  ;;  %v3480_v38 = vld [vmem:[%s12670_s14] sm:$0xff] }
 0x354   : > { %v3311_v0 = vpop.f32.mrf.mxu3 }
 0x355   : > { %v3353_v49 = vpop.f32.mrf.mxu2  ;;  %v3312_v60 = vadd.f32 %v3311_v0, %v2676_v6 }
 0x35a   : > { %v3339_v21 = vpop.f32.mrf.mxu1 }
 0x35c   : > { %v3313_v53 = vpop.f32.mrf.mxu3 }
 0x35d   : > { %v3355_v40 = vpop.f32.mrf.mxu2  ;;  %v3314_v8 = vadd.f32 %v3313_v53, %v2681_v26 }
 0x362   : > { %v3341_v45 = vpop.f32.mrf.mxu1 }
 0x363   : > { %v3325_v48 = vpop.f32.mrf.mxu0 }
 0x364   : > { %v3326_v50 = vadd.f32 %v3325_v48, %v3312_v60 }
 0x366   : > { %v3340_v61 = vadd.f32 %v3339_v21, %v3326_v50 }
 0x367   : > { %v3381_v23 = vpop.f32.mrf.mxu2 }
 0x368   : > { %v3354_v12 = vadd.f32 %v3353_v49, %v3340_v61 }
 0x36a   : > { %v3409_v29 = vpop.f32.mrf.mxu1  ;;  %v3367_v42 = vpop.f32.mrf.mxu3  ;;  %v3470_v1 = vadd.f32 %v3354_v12, %v3298_v22 }
 0x36b   : > { %v3327_v55 = vpop.f32.mrf.mxu0  ;;  %v3368_v62 = vadd.f32 %v3367_v42, %v2676_v6  ;;  %v3300_v42 = vadd.f32 %v3299_v51, %v3286_v30  ;;  %v3481_v51 = vld [vmem:[%s12670_s14 + $0x8] sm:$0xff] }
 0x36c   : > { %v3328_v11 = vadd.f32 %v3327_v55, %v3314_v8 }
 0x36d   : > { %v3382_v14 = vadd.f32 %v3381_v23, %v3368_v62 }
 0x36e   : > { %v3342_v9 = vadd.f32 %v3341_v45, %v3328_v11 }
 0x36f   : > { %v3383_v37 = vpop.f32.mrf.mxu2 }
 0x370   : > { %v3356_v53 = vadd.f32 %v3355_v40, %v3342_v9  ;;  %v3620_v9 = vld [vmem:[%s12665_s9 + $0x8] sm:$0xff] }
 0x372   : > { %v3411_v24 = vpop.f32.mrf.mxu1  ;;  %v3369_v34 = vpop.f32.mrf.mxu3  ;;  %v3475_v15 = vadd.f32 %v3356_v53, %v3300_v42 }
 0x373   : > { %v3370_v4 = vadd.f32 %v3369_v34, %v2681_v26 }
 0x375   : > { %v3384_v28 = vadd.f32 %v3383_v37, %v3370_v4 }
 0x383   : > { %v3395_v57 = vpop.f32.mrf.mxu0 }
 0x384   : > { %v3396_v27 = vadd.f32 %v3395_v57, %v3382_v14 }
 0x386   : > { %v3437_v2 = vpop.f32.mrf.mxu1  ;;  %v3410_v25 = vadd.f32 %v3409_v29, %v3396_v27 }
 0x387   : > { %v3451_v18 = vpop.f32.mrf.mxu2 }
 0x388   : > { %v3471_v0 = vadd.f32 %v3470_v1, %v3410_v25 }
 0x38a   : > { %v3423_v5 = vpop.f32.mrf.mxu3 }
 0x38b   : > { %v3424_v54 = vadd.f32 %v3423_v5, %v2676_v6  ;;  %v3397_v10 = vpop.f32.mrf.mxu0 }
 0x38c   : > { %v3398_v21 = vadd.f32 %v3397_v10, %v3384_v28 }
 0x38d   : > { %v3438_v20 = vadd.f32 %v3437_v2, %v3424_v54 }
 0x38e   : > { %v3439_v63 = vpop.f32.mrf.mxu1  ;;  %v3412_v55 = vadd.f32 %v3411_v24, %v3398_v21 }
 0x38f   : > { %v3452_v35 = vadd.f32 %v3451_v18, %v3438_v20  ;;  %v3453_v3 = vpop.f32.mrf.mxu2 }
 0x390   : > { %v3476_v6 = vadd.f32 %v3475_v15, %v3412_v55 }
 0x392   : > { %v3425_v31 = vpop.f32.mrf.mxu3 }
 0x393   : > { %v3426_v52 = vadd.f32 %v3425_v31, %v2681_v26  ;;  %v3465_v17 = vpop.f32.mrf.mxu0 }
 0x394   : > { %v3466_v44 = vadd.f32 %v3465_v17, %v3452_v35 }
 0x395   : > { %v3440_v49 = vadd.f32 %v3439_v63, %v3426_v52  ;;  %v3619_v52 = vld [vmem:[%s12665_s9] sm:$0xff] }
 0x396   : > { %v3472_v48 = vadd.f32 %v3471_v0, %v3466_v44 }
 0x397   : > { %v3454_v29 = vadd.f32 %v3453_v3, %v3440_v49 }
 0x398   : > { %3473 = vadd.xlane.f32.xlu2 %v3472_v48 }
 0x39b   : > { %v3467_v23 = vpop.f32.mrf.mxu0 }
 0x39c   : > { %v3468_v45 = vadd.f32 %v3467_v23, %v3454_v29  ;;  %v3597_v23 = vld [vmem:[%s12664_s8] sm:$0xff] }
 0x39e   : > { %v3477_v60 = vadd.f32 %v3476_v6, %v3468_v45 }
 0x3a0   : > { %3478 = vadd.xlane.f32.xlu1 %v3477_v60 }
 0x3b9   : > { %3623 = vperm.xlu1 %8150, %v3619_v52  }
 0x40b   : > { %v3474_v40 = vpop.xlane.xlu2 %3473 }
 0x413   : > { %v3479_v34 = vpop.xlane.xlu1 %3478 }
 0x414   : > { %3503 = vmatpush.msrb.mxu3 %v3479_v34 }
 0x416   : > { %3504 = vmatpush.msrb.mxu3 %v3474_v40 }
 0x417   : > { %7069 = vmatmul.msk.f32.vlgmr.msrb.gmra.mxu3 %vm12814_vm9, %v3480_v38 }
 0x41f   : > { %7070 = vmatmul.msk.f32.gmra.mxu3 %vm12814_vm9, %v3481_v51 }
 0x49a   : > { %v3506_v24 = vpop.f32.mrf.mxu3 }
 0x49b   : > { %v3512_v50 = vmul.f32 0.0009765625, %v3506_v24 }
 0x4a2   : > { %v3509_v57 = vpop.f32.mrf.mxu3 }
 0x4a3   : > { %v3513_v36 = vmul.f32 0.0009765625, %v3509_v57 }
 0x4a5   : > { %3521 = vperm.xlu0 %8149, %v3513_v36  }
 0x4ad   : > { %3516 = vperm.xlu0 %8149, %v3512_v50   ;;  %v3624_v50 = vpop.permute.xlu1 %3623 }
 0x517   : > { %v3522_v62 = vpop.permute.xlu0 %3521 }
 0x518   : > { %v10878_v37 = vsub.f32 %v3300_v42, %v3522_v62  ;;  %v10880_v39 = vsub.f32 %v3356_v53, %v3522_v62  ;;  %v10882_v26 = vsub.f32 %v3412_v55, %v3522_v62  ;;  %v10884_v61 = vsub.f32 %v3468_v45, %v3522_v62 }
 0x51a   : > { %v3536_v8 = vmul.f32 %v10878_v37, %v10878_v37  ;;  %v3537_v14 = vmul.f32 %v10880_v39, %v10880_v39  ;;  %v3538_v5 = vmul.f32 %v10882_v26, %v10882_v26  ;;  %v3539_v54 = vmul.f32 %v10884_v61, %v10884_v61 }
 0x51c   : > { %v3545_v2 = vadd.f32 %v3537_v14, %v3536_v8 }
 0x51e   : > { %v3546_v10 = vadd.f32 %v3545_v2, %v3538_v5 }
 0x51f   : > { %v3517_v58 = vpop.permute.xlu0 %3516 }
 0x520   : > { %v10894_v56 = vsub.f32 %v3298_v22, %v3517_v58  ;;  %v10896_v27 = vsub.f32 %v3354_v12, %v3517_v58  ;;  %v10898_v20 = vsub.f32 %v3410_v25, %v3517_v58  ;;  %v3547_v11 = vadd.f32 %v3546_v10, %v3539_v54 }
 0x521   : > { %v10900_v4 = vsub.f32 %v3466_v44, %v3517_v58 }
 0x522   : > { %3548 = vadd.xlane.f32.xlu0 %v3547_v11  ;;  %v3532_v18 = vmul.f32 %v10894_v56, %v10894_v56  ;;  %v3533_v16 = vmul.f32 %v10896_v27, %v10896_v27  ;;  %v3534_v35 = vmul.f32 %v10898_v20, %v10898_v20 }
 0x523   : > { %v3535_v12 = vmul.f32 %v10900_v4, %v10900_v4 }
 0x524   : > { %v3540_v1 = vadd.f32 %v3533_v16, %v3532_v18 }
 0x526   : > { %v3541_v22 = vadd.f32 %v3540_v1, %v3534_v35 }
 0x528   : > { %v3542_v25 = vadd.f32 %v3541_v22, %v3535_v12 }
 0x52a   : > { %3543 = vadd.xlane.f32.xlu2 %v3542_v25 }
 0x542   : > { %3628 = vperm.xlu2 %8148, %v3620_v9  }
 0x595   : > { %v3549_v28 = vpop.xlane.xlu0 %3548 }
 0x596   : > { %3564 = vmatpush.msrb.mxu0 %v3549_v28 }
 0x59d   : > { %v3544_v31 = vpop.xlane.xlu2 %3543 }
 0x59e   : > { %3565 = vmatpush.msrb.mxu0 %v3544_v31 }
 0x59f   : > { %7071 = vmatmul.msk.f32.vlgmr.msrb.gmra.mxu0 %vm12814_vm9, %v3480_v38 }
 0x5a5   : > { %v3629_v36 = vpop.permute.xlu2 %3628 }
 0x5a7   : > { %7072 = vmatmul.msk.f32.gmra.mxu0 %vm12814_vm9, %v3481_v51  ;;  %v3598_v51 = vld [vmem:[%s12664_s8 + $0x8] sm:$0xff] }
 0x61c   : > { %v3567_v17 = vpop.f32.mrf.mxu0 }
 0x61d   : > { %v3573_v30 = vmul.f32 0.0009765625, %v3567_v17 }
 0x61f   : > { %v3575_v21 = vadd.f32 1e-05, %v3573_v30 }
 0x621   : > { %8491 = vrsqrt.f32 %v3575_v21  ;;  %vm3583_vm9 = vweird.f32 %v3575_v21 }
 0x624   : > { %v3570_v44 = vpop.f32.mrf.mxu0 }
 0x625   : > { %v3574_v0 = vmul.f32 0.0009765625, %v3570_v44  ;;  %v11048_v44 = vld [vmem:[#allocation1 + $0x9] sm:$0xff] }
 0x627   : > { %v8492_v63 = vpop.eup %8491  ;;  %v3576_v53 = vadd.f32 1e-05, %v3574_v0  ;;  %v11050_v0 = vld [vmem:[#allocation1 + $0x12] sm:$0xff] }
 0x628   : > { %v3578_v49 = vmul.f32 %v8492_v63, %v3575_v21  ;;  %vm3584_vm0 = vweird.f32 %v8492_v63  ;;  %13360 = vst [vmem:[#allocation48_spill] sm:$0xff] %v11050_v0 }
 0x629   : > { %8493 = vrsqrt.f32 %v3576_v53  ;;  %vm3585_vm8 = vmor %vm3583_vm9, %vm3584_vm0  ;;  %vm3593_vm15 = vweird.f32 %v3576_v53 }
 0x62a   : > { %v3579_v48 = vmul.f32 %v8492_v63, %v3578_v49  ;;  %v7081_v49 = vld [vmem:[%s12661_s5 + $0x24] sm:$0xf] }
 0x62c   : > { %v3580_v42 = vmul.f32 0.5, %v3579_v48 }
 0x62e   : > { %v3581_v55 = vsub.f32 1.5, %v3580_v42 }
 0x62f   : > { %v8494_v3 = vpop.eup %8493 }
 0x630   : > { %v3588_v15 = vmul.f32 %v8494_v3, %v3576_v53  ;;  %v3582_v29 = vmul.f32 %v8492_v63, %v3581_v55  ;;  %vm3594_vm12 = vweird.f32 %v8494_v3  ;;  %v7080_v53 = vld [vmem:[%s12661_s5 + $0x20] sm:$0xf] }
 0x631   : > { %vm3595_vm13 = vmor %vm3593_vm15, %vm3594_vm12 }
 0x632   : > { %v3589_v45 = vmul.f32 %v8494_v3, %v3588_v15  ;;  %v3586_v6 = vsel %vm3585_vm8, %v8492_v63, %v3582_v29  ;;  %v11052_v63 = vld [vmem:[#allocation1 + $0x1b] sm:$0xff]  ;;  %v7082_v15 = vld [vmem:[%s12661_s5 + $0x28] sm:$0xf]  ;;  %vm13459_vm8 = vcmp.lt.s32.totalorder %v9252_v13, 57 }
 0x633   : > { %v3599_v60 = vmul.f32 %v3597_v23, %v3586_v6  ;;  %13361 = vst [vmem:[#allocation101_spill] sm:$0xff] %v11052_v63  ;;  %vm13462_vm9 = vmmov %vm13459_vm8 }
 0x634   : > { %v3590_v34 = vmul.f32 0.5, %v3589_v45  ;;  %vm13469_vm12 = vmmov %vm13459_vm8 }
 0x635   : > { %3603 = vperm.xlu1 %8150, %v3599_v60   ;;  %v7083_v60 = vld [vmem:[%s12661_s5 + $0x2c] sm:$0xf] }
 0x636   : > { %v3591_v38 = vsub.f32 1.5, %v3590_v34 }
 0x638   : > { %v3592_v40 = vmul.f32 %v8494_v3, %v3591_v38 }
 0x63a   : > { %v3596_v24 = vsel %vm3595_vm13, %v8494_v3, %v3592_v40  ;;  %vm13471_vm13 = vmmov %vm13459_vm8 }
 0x63b   : > { %v3600_v57 = vmul.f32 %v3598_v51, %v3596_v24  ;;  %v7084_v24 = vld [vmem:[%s12661_s5 + $0x30] sm:$0xf] }
 0x63d   : > { %3608 = vperm.xlu2 %8148, %v3600_v57  }
 0x697   : > { %v3609_v62 = vpop.permute.xlu2 %3608 }
 0x698   : > { %v3615_v8 = vmul.f32 %v3609_v62, %v10878_v37  ;;  %v3616_v14 = vmul.f32 %v3609_v62, %v10880_v39  ;;  %v3617_v5 = vmul.f32 %v3609_v62, %v10882_v26  ;;  %v3618_v31 = vmul.f32 %v3609_v62, %v10884_v61 }
 0x69a   : > { %v10927_v2 = vadd.f32 %v3629_v36, %v3615_v8  ;;  %v10929_v54 = vadd.f32 %v3629_v36, %v3616_v14  ;;  %v10931_v58 = vadd.f32 %v3629_v36, %v3617_v5  ;;  %v11000_v17 = vadd.f32 %v3629_v36, %v3618_v31  ;;  %v7085_v8 = vld [vmem:[%s12661_s5 + $0x38] sm:$0xf] }
 0x69c   : > { %13356 = vst [vmem:[#allocation73_spill] sm:$0xff] %v10931_v58  ;;  %v12824_v26 = vmax.f32 %v10927_v2, 0.0  ;;  %v12823_v1 = vmax.f32 %v10929_v54, 0.0  ;;  %v12820_v12 = vmax.f32 %v10931_v58, 0.0  ;;  %v12819_v21 = vmax.f32 %v11000_v17, 0.0 }
 0x69d   : > { %13359 = vst [vmem:[#allocation47_spill] sm:$0xff] %v11000_v17 }
 0x6a7   : > { %v3604_v10 = vpop.permute.xlu1 %3603 }
 0x6a8   : > { %v3611_v11 = vmul.f32 %v3604_v10, %v10894_v56  ;;  %v3612_v18 = vmul.f32 %v3604_v10, %v10896_v27  ;;  %v3613_v16 = vmul.f32 %v3604_v10, %v10898_v20  ;;  %v3614_v28 = vmul.f32 %v3604_v10, %v10900_v4  ;;  %v11046_v4 = vld [vmem:[#allocation1] sm:$0xff] }
 0x6a9   : > { %4277 = vst [vmem:[#allocation1] ss:$9 sm:$0xff] %v7080_v53 }
 0x6aa   : > { %v10936_v35 = vadd.f32 %v3624_v50, %v3611_v11  ;;  %v10938_v37 = vadd.f32 %v3624_v50, %v3612_v18  ;;  %v10940_v39 = vadd.f32 %v3624_v50, %v3613_v16  ;;  %v10998_v52 = vadd.f32 %v3624_v50, %v3614_v28  ;;  %v7086_v18 = vld [vmem:[%s12661_s5 + $0x3c] sm:$0xf] }
 0x6ac   : > { %13357 = vst [vmem:[#allocation78_spill] sm:$0xff] %v10940_v39  ;;  %v12826_v22 = vmax.f32 %v10936_v35, 0.0  ;;  %v12825_v56 = vmax.f32 %v10938_v37, 0.0  ;;  %v12822_v27 = vmax.f32 %v10940_v39, 0.0  ;;  %v12821_v30 = vmax.f32 %v10998_v52, 0.0 }
 0x6ad   : > { %13358 = vst [vmem:[#allocation72_spill] sm:$0xff] %v10998_v52 }
 0x6ae   : > { %v10952_v20 = vpack.i.bf16 %v12820_v12, %v12822_v27  ;;  %v10958_v25 = vpack.i.bf16 %v12823_v1, %v12825_v56  ;;  %v10964_v9 = vpack.i.bf16 %v12824_v26, %v12826_v22  ;;  %v11014_v61 = vpack.i.bf16 %v12819_v21, %v12821_v30  ;;  %v7088_v30 = vld [vmem:[%s12661_s5 + $0x44] sm:$0xf]  ;;  %v7089_v22 = vld [vmem:[%s12661_s5 + $0x48] sm:$0xf] }
 0x6b0   : > { %8162 = vrot.lane.b32.xlu2 %v10952_v20, %s13041_s4  ;;  %8157 = vrot.lane.b32.xlu1 %v10958_v25, %s13041_s4  ;;  %v11066_v48 = vld [vmem:[#allocation1] sm:$0xff]  ;;  %v11068_v42 = vld [vmem:[#allocation1 + $0x9] sm:$0xff]  ;;  %v11070_v55 = vld [vmem:[#allocation1 + $0x12] sm:$0xff] }
 0x6b1   : > { %8152 = vrot.lane.b32.xlu0 %v10964_v9, %s13041_s4  ;;  %13362 = vst [vmem:[#allocation102_spill] sm:$0xff] %v11066_v48  ;;  %v11072_v3 = vld [vmem:[#allocation1 + $0x1b] sm:$0xff] }
 0x6b2   : > { %13363 = vst [vmem:[#allocation79_spill] sm:$0xff] %v11068_v42 }
 0x6b3   : > { %13364 = vst [vmem:[#allocation67_spill] sm:$0xff] %v11070_v55 }
 0x6b4   : > { %13365 = vst [vmem:[#allocation25_spill] sm:$0xff] %v11072_v3 }
 0x6b5   : > { %4352 = vst [vmem:[#allocation1] ss:$9 sm:$0xff] %v7081_v49 }
 0x6b8   : > { %8172 = vrot.lane.b32.xlu2 %v10958_v25, %s13004_s27  ;;  %8167 = vrot.lane.b32.xlu1 %v10964_v9, %s13004_s27 }
 0x6b9   : > { %8182 = vrot.lane.b32.xlu0 %v10964_v9, %s12988_s16 }
 0x6bc   : > { %v11083_v29 = vld [vmem:[#allocation1] sm:$0xff]  ;;  %v11085_v23 = vld [vmem:[#allocation1 + $0x9] sm:$0xff]  ;;  %v11087_v45 = vld [vmem:[#allocation1 + $0x12] sm:$0xff] }
 0x6bd   : > { %13366 = vst [vmem:[#allocation26_spill] sm:$0xff] %v11083_v29  ;;  %v11093_v6 = vld [vmem:[#allocation1 + $0x1b] sm:$0xff] }
 0x6be   : > { %13367 = vst [vmem:[#allocation96_spill] sm:$0xff] %v11085_v23 }
 0x6bf   : > { %13368 = vst [vmem:[#allocation97_spill] sm:$0xff] %v11087_v45 }
 0x6c0   : > { %8187 = vrot.lane.b32.xlu2 %v10958_v25, %s12988_s16  ;;  %8177 = vrot.lane.b32.xlu1 %v10952_v20, %s13004_s27  ;;  %13369 = vst [vmem:[#allocation98_spill] sm:$0xff] %v11093_v6 }
 0x6c1   : > { %8197 = vrot.lane.b32.xlu0 %v10964_v9, %s13009_s30  ;;  %4427 = vst [vmem:[#allocation1] ss:$9 sm:$0xff] %v7082_v15  ;;  %v7087_v15 = vld [vmem:[%s12661_s5 + $0x40] sm:$0xf] }
 0x6c8   : > { %8202 = vrot.lane.b32.xlu2 %v10958_v25, %s13009_s30  ;;  %8192 = vrot.lane.b32.xlu1 %v10952_v20, %s12988_s16  ;;  %v11104_v34 = vld [vmem:[#allocation1] sm:$0xff]  ;;  %v11106_v38 = vld [vmem:[#allocation1 + $0x9] sm:$0xff]  ;;  %v11108_v40 = vld [vmem:[#allocation1 + $0x12] sm:$0xff] }
 0x6c9   : > { %8212 = vrot.lane.b32.xlu0 %v10964_v9, %s13032_s29  ;;  %13370 = vst [vmem:[#allocation99_spill] sm:$0xff] %v11104_v34  ;;  %v11112_v51 = vld [vmem:[#allocation1 + $0x1b] sm:$0xff] }
 0x6ca   : > { %13371 = vst [vmem:[#allocation40_spill] sm:$0xff] %v11106_v38 }
 0x6cb   : > { %13372 = vst [vmem:[#allocation104_spill] sm:$0xff] %v11108_v40 }
 0x6cc   : > { %13373 = vst [vmem:[#allocation86_spill] sm:$0xff] %v11112_v51 }
 0x6cd   : > { %4502 = vst [vmem:[#allocation1] ss:$9 sm:$0xff] %v7083_v60 }
 0x6d0   : > { %8217 = vrot.lane.b32.xlu2 %v10958_v25, %s13032_s29  ;;  %8207 = vrot.lane.b32.xlu1 %v10952_v20, %s13009_s30 }
 0x6d1   : > { %8227 = vrot.lane.b32.xlu0 %v10964_v9, %s12984_s25 }
 0x6d4   : > { %v11117_v57 = vld [vmem:[#allocation1] sm:$0xff]  ;;  %v11119_v36 = vld [vmem:[#allocation1 + $0x9] sm:$0xff]  ;;  %v11121_v50 = vld [vmem:[#allocation1 + $0x12] sm:$0xff] }
 0x6d5   : > { %13374 = vst [vmem:[#allocation41_spill] sm:$0xff] %v11121_v50  ;;  %v11123_v62 = vld [vmem:[#allocation1 + $0x1b] sm:$0xff] }
 0x6d6   : > { %13375 = vst [vmem:[#allocation95_spill] sm:$0xff] %v11123_v62 }
 0x6d7   : > { %4577 = vst [vmem:[#allocation1] ss:$9 sm:$0xff] %v7084_v24 }
 0x6d8   : > { %8232 = vrot.lane.b32.xlu2 %v10958_v25, %s12984_s25  ;;  %8222 = vrot.lane.b32.xlu1 %v10952_v20, %s13032_s29 }
 0x6d9   : > { %8242 = vrot.lane.b32.xlu0 %v10964_v9, %s12982_s22 }
 0x6de   : > { %v11128_v14 = vld [vmem:[#allocation1] sm:$0xff]  ;;  %v11130_v5 = vld [vmem:[#allocation1 + $0x9] sm:$0xff]  ;;  %v11132_v10 = vld [vmem:[#allocation1 + $0x12] sm:$0xff] }
 0x6df   : > { %13376 = vst [vmem:[#allocation108_spill] sm:$0xff] %v11132_v10  ;;  %v11134_v11 = vld [vmem:[#allocation1 + $0x1b] sm:$0xff] }
 0x6e0   : > { %8247 = vrot.lane.b32.xlu2 %v10958_v25, %s12982_s22  ;;  %8237 = vrot.lane.b32.xlu1 %v11014_v61, %s12984_s25  ;;  %13377 = vst [vmem:[#allocation94_spill] sm:$0xff] %v11134_v11 }
 0x6e1   : > { %8257 = vrot.lane.b32.xlu0 %v10964_v9, %s12994_s23  ;;  %4660 = vst [vmem:[#allocation1] ss:$9 sm:$0xff] %v7085_v8 }
 0x6e8   : > { %8262 = vrot.lane.b32.xlu2 %v10958_v25, %s12994_s23  ;;  %8252 = vrot.lane.b32.xlu1 %v11014_v61, %s12982_s22  ;;  %v11139_v16 = vld [vmem:[#allocation1] sm:$0xff]  ;;  %v11141_v28 = vld [vmem:[#allocation1 + $0x9] sm:$0xff]  ;;  %v11143_v31 = vld [vmem:[#allocation1 + $0x12] sm:$0xff] }
 0x6e9   : > { %8272 = vrot.lane.b32.xlu0 %v10964_v9, %s13013_s0  ;;  %13378 = vst [vmem:[#allocation109_spill] sm:$0xff] %v11143_v31  ;;  %v11147_v49 = vld [vmem:[#allocation1 + $0x1b] sm:$0xff] }
 0x6ea   : > { %13380 = vst [vmem:[#allocation106_spill] sm:$0xff] %v11147_v49 }
 0x6eb   : > { %4735 = vst [vmem:[#allocation1] ss:$9 sm:$0xff] %v7086_v18 }
 0x6f0   : > { %8277 = vrot.lane.b32.xlu2 %v10958_v25, %s13013_s0  ;;  %8267 = vrot.lane.b32.xlu1 %v10952_v20, %s12994_s23 }
 0x6f1   : > { %8287 = vrot.lane.b32.xlu0 %v10964_v9, %s13012_s17 }
 0x6f2   : > { %v4736_v60 = vld [vmem:[#allocation1] sm:$0xff]  ;;  %v4737_v24 = vld [vmem:[#allocation1 + $0x9] sm:$0xff]  ;;  %v11152_v8 = vld [vmem:[#allocation1 + $0x12] sm:$0xff] }
 0x6f3   : > { %13381 = vst [vmem:[#allocation42_spill] sm:$0xff] %v11152_v8  ;;  %v11154_v21 = vld [vmem:[#allocation1 + $0x1b] sm:$0xff]  ;;  %v4740_v50 = vpack.i.b16 %v4736_v60, %v4736_v60 }
 0x6f4   : > { %13382 = vst [vmem:[#allocation43_spill] sm:$0xff] %v11154_v21  ;;  %v4743_v21 = vpack.i.b16 %v4737_v24, %v4737_v24 }
 0x6f5   : > { %4810 = vst [vmem:[#allocation1] ss:$9 sm:$0xff] %v7087_v15  ;;  %v4742_v0 = vperm.slane %v4740_v50, 0 }
 0x6f8   : > { %8292 = vrot.lane.b32.xlu2 %v10958_v25, %s13012_s17  ;;  %8282 = vrot.lane.b32.xlu1 %v11014_v61, %s13013_s0 }
 0x6f9   : > { %8302 = vrot.lane.b32.xlu0 %v10964_v9, %s13039_s3 }
 0x6fc   : > { %v11161_v27 = vld [vmem:[#allocation1] sm:$0xff]  ;;  %v11163_v18 = vld [vmem:[#allocation1 + $0x9] sm:$0xff]  ;;  %v11165_v1 = vld [vmem:[#allocation1 + $0x12] sm:$0xff] }
 0x6fd   : > { %13383 = vst [vmem:[#allocation107_spill] sm:$0xff] %v11161_v27  ;;  %v11167_v26 = vld [vmem:[#allocation1 + $0x1b] sm:$0xff] }
 0x6fe   : > { %13384 = vst [vmem:[#allocation61_spill] sm:$0xff] %v11163_v18 }
 0x6ff   : > { %13385 = vst [vmem:[#allocation34_spill] sm:$0xff] %v11165_v1 }
 0x700   : > { %8307 = vrot.lane.b32.xlu2 %v10958_v25, %s13039_s3  ;;  %8297 = vrot.lane.b32.xlu1 %v11014_v61, %s13012_s17  ;;  %13386 = vst [vmem:[#allocation35_spill] sm:$0xff] %v11167_v26  ;;  %v4745_v26 = vperm.slane %v4743_v21, 0  ;;  %v7091_v21 = vld [vmem:[%s12661_s5 + $0x50] sm:$0xf] }
 0x701   : > { %8317 = vrot.lane.b32.xlu0 %v11014_v61, %s13004_s27  ;;  %4885 = vst [vmem:[#allocation1] ss:$9 sm:$0xff] %v7088_v30  ;;  %v7090_v30 = vld [vmem:[%s12661_s5 + $0x4c] sm:$0xf] }
 0x708   : > { %8322 = vrot.lane.b32.xlu2 %v10964_v9, %s13018_s1  ;;  %8312 = vrot.lane.b32.xlu1 %v10952_v20, %s13039_s3  ;;  %v11174_v15 = vld [vmem:[#allocation1] sm:$0xff]  ;;  %v11176_v17 = vld [vmem:[#allocation1 + $0x9] sm:$0xff]  ;;  %v11178_v58 = vld [vmem:[#allocation1 + $0x12] sm:$0xff] }
 0x709   : > { %8332 = vrot.lane.b32.xlu0 %v11014_v61, %s13018_s1  ;;  %13387 = vst [vmem:[#allocation57_spill] sm:$0xff] %v11174_v15  ;;  %v11180_v52 = vld [vmem:[#allocation1 + $0x1b] sm:$0xff] }
 0x70a   : > { %v11145_v53 = vpop.permute.xlu2 %8162  ;;  %13388 = vst [vmem:[#allocation58_spill] sm:$0xff] %v11176_v17 }
 0x70b   : > { %13379 = vst [vmem:[#allocation100_spill] sm:$0xff] %v11145_v53  ;;  %v12831_v8 = vunpack.i.l.bf16 %v11145_v53 }
 0x70c   : > { %13389 = vst [vmem:[#allocation33_spill] sm:$0xff] %v11178_v58 }
 0x70d   : > { %13390 = vst [vmem:[#allocation44_spill] sm:$0xff] %v11180_v52 }
 0x70e   : > { %4936 = vst [vmem:[#allocation1] ss:$9 sm:$0xff] %v7089_v22  ;;  %v12832_v22 = vunpack.i.h.bf16 %v11145_v53 }
 0x710   : > { %8337 = vrot.lane.b32.xlu2 %v10964_v9, %s12985_s21  ;;  %8327 = vrot.lane.b32.xlu1 %v10958_v25, %s13018_s1 }
 0x711   : > { %8347 = vrot.lane.b32.xlu0 %v10952_v20, %s12985_s21 }
 0x712   : > { %v11156_v12 = vpop.permute.xlu2 %8172 }
 0x715   : > { %v11187_v11 = vld [vmem:[#allocation1] sm:$0xff]  ;;  %v11189_v10 = vld [vmem:[#allocation1 + $0x9] sm:$0xff]  ;;  %v11191_v62 = vld [vmem:[#allocation1 + $0x12] sm:$0xff] }
 0x716   : > { %13391 = vst [vmem:[#allocation68_spill] sm:$0xff] %v11187_v11  ;;  %v11193_v58 = vld [vmem:[#allocation1 + $0x1b] sm:$0xff] }
 0x717   : > { %13392 = vst [vmem:[#allocation31_spill] sm:$0xff] %v11189_v10 }
 0x718   : > { %8352 = vrot.lane.b32.xlu2 %v11014_v61, %s13009_s30  ;;  %8342 = vrot.lane.b32.xlu1 %v10958_v25, %s12985_s21  ;;  %13393 = vst [vmem:[#allocation32_spill] sm:$0xff] %v11191_v62  ;;  %s13702_s30 = sld [smem:[#allocation120_spill]] }
 0x719   : > { %8362 = vrot.lane.b32.xlu0 %v10958_v25, %s13020_s20  ;;  %13394 = vst [vmem:[#allocation53_spill] sm:$0xff] %v11193_v58  ;;  %v4761_v58 = vunpack.c.l.bf16 %v4745_v26 }
 0x71a   : > { %v11169_v56 = vpop.permute.xlu2 %8187  ;;  %4987 = vst [vmem:[#allocation1] ss:$9 sm:$0xff] %v7090_v30 }
 0x720   : > { %8367 = vrot.lane.b32.xlu2 %v11014_v61, %s13020_s20  ;;  %8357 = vrot.lane.b32.xlu1 %v10964_v9, %s13020_s20 }
 0x721   : > { %8377 = vrot.lane.b32.xlu0 %v10958_v25, %s12989_s26  ;;  %v11230_v53 = vld [vmem:[#allocation1] sm:$0xff]  ;;  %v11232_v18 = vld [vmem:[#allocation1 + $0x9] sm:$0xff]  ;;  %v11234_v27 = vld [vmem:[#allocation1 + $0x12] sm:$0xff] }
 0x722   : > { %v11182_v39 = vpop.permute.xlu2 %8202  ;;  %v8158_v6 = vpop.permute.xlu1 %8157  ;;  %13397 = vst [vmem:[#allocation14_spill] sm:$0xff] %v11230_v53 }
 0x723   : > { %v8160_v45 = vunpack.i.h.bf16 %v8158_v6  ;;  %v8159_v52 = vunpack.i.l.bf16 %v8158_v6  ;;  %v11201_v1 = vpop.permute.xlu0 %8152  ;;  %13398 = vst [vmem:[#allocation15_spill] sm:$0xff] %v11232_v18 }
 0x724   : > { %13395 = vst [vmem:[#allocation54_spill] sm:$0xff] %v11201_v1  ;;  %v12835_v6 = vunpack.i.h.bf16 %v11201_v1  ;;  %v12838_v24 = vunpack.i.l.bf16 %v11201_v1 }
 0x725   : > { %v4724_v63 = vsel %vm1876_vm3, %v8160_v45, %v12832_v22  ;;  %v4723_v60 = vsel %vm1876_vm3, %v8159_v52, %v12831_v8  ;;  %v4760_v22 = vunpack.c.l.bf16 %v4742_v0  ;;  %13399 = vst [vmem:[#allocation16_spill] sm:$0xff] %v11234_v27 }
 0x726   : > { %v4726_v50 = vsel %vm1876_vm3, %v12835_v6, %v8160_v45  ;;  %v4725_v30 = vsel %vm1876_vm3, %v12838_v24, %v8159_v52  ;;  %v11236_v6 = vld [vmem:[#allocation1 + $0x1b] sm:$0xff] }
 0x727   : > { %v4731_v51 = vpack.c.bf16 %v4724_v63, %v4726_v50  ;;  %v4729_v45 = vpack.c.bf16 %v4723_v60, %v4725_v30  ;;  %13400 = vst [vmem:[#allocation69_spill] sm:$0xff] %v11236_v6  ;;  %v7093_v6 = vld [vmem:[%s12661_s5 + $0x58] sm:$0xf] }
 0x728   : > { %8382 = vrot.lane.b32.xlu2 %v10952_v20, %s12989_s26  ;;  %8372 = vrot.lane.b32.xlu1 %v10964_v9, %s12989_s26  ;;  %5038 = vst [vmem:[#allocation1] ss:$9 sm:$0xff] %v7091_v21 }
 0x729   : > { %8392 = vrot.lane.b32.xlu0 %v10964_v9, %s13010_s24  ;;  %v4756_v1 = vunpack.c.l.bf16 %v4731_v51  ;;  %v4757_v52 = vunpack.c.h.bf16 %v4731_v51  ;;  %v4752_v24 = vunpack.c.l.bf16 %v4729_v45  ;;  %v4753_v40 = vunpack.c.h.bf16 %v4729_v45 }
 0x72a   : > { %v11203_v62 = vpop.permute.xlu2 %8217  ;;  %v11228_v8 = vpop.permute.xlu1 %8167 }
 0x72b   : > { %13396 = vst [vmem:[#allocation13_spill] sm:$0xff] %v11228_v8  ;;  %v4768_v3 = vmul.f32 %v4760_v22, %v4756_v1  ;;  %v4769_v55 = vmul.f32 %v4761_v58, %v4757_v52  ;;  %v4764_v42 = vmul.f32 %v4760_v22, %v4752_v24  ;;  %v4765_v0 = vmul.f32 %v4761_v58, %v4753_v40  ;;  %v11238_v49 = vpop.permute.xlu0 %8182  ;;  %v7092_v1 = vld [vmem:[%s12661_s5 + $0x54] sm:$0xf] }
 0x72c   : > { %13401 = vst [vmem:[#allocation70_spill] sm:$0xff] %v11238_v49  ;;  %v12839_v58 = vunpack.i.l.bf16 %v11228_v8  ;;  %v8174_v22 = vunpack.i.l.bf16 %v11156_v12  ;;  %v12842_v24 = vunpack.i.h.bf16 %v11228_v8  ;;  %v13411_v30 = vunpack.i.l.bf16 %v11238_v49 }
 0x72d   : > { %v4774_v26 = vpack.c.bf16 %v4769_v55, %v4768_v3  ;;  %v4772_v48 = vpack.c.bf16 %v4765_v0, %v4764_v42  ;;  %v8175_v42 = vunpack.i.h.bf16 %v11156_v12  ;;  %v8190_v0 = vunpack.i.h.bf16 %v11169_v56 }
 0x72f   : > { %4778 = vst [vmem:[#allocation2 + $0x1f0] sm:$0xff] %v4774_v26  ;;  %v11253_v55 = vld [vmem:[#allocation1] sm:$0xff]  ;;  %v11255_v3 = vld [vmem:[#allocation1 + $0x9] sm:$0xff]  ;;  %v11257_v40 = vld [vmem:[#allocation1 + $0x12] sm:$0xff]  ;;  %v8189_v26 = vunpack.i.l.bf16 %v11169_v56  ;;  %v13410_v56 = vunpack.i.h.bf16 %v11238_v49 }
 0x730   : > { %8397 = vrot.lane.b32.xlu2 %v10958_v25, %s13010_s24  ;;  %8387 = vrot.lane.b32.xlu1 %v11014_v61, %s13032_s29  ;;  %13403 = vst [vmem:[#allocation85_spill] sm:$0xff] %v11257_v40  ;;  %v11262_v60 = vld [vmem:[#allocation1 + $0x1b] sm:$0xff] }
 0x731   : > { %8407 = vrot.lane.b32.xlu0 %v10952_v20, %s13010_s24  ;;  %4776 = vst [vmem:[#allocation2 + $0x1e0] sm:$0xff] %v4772_v48  ;;  %v11272_v48 = vsel %vm1175_vm2, %v12839_v58, %v8174_v22  ;;  %v4650_v45 = vsel %vm1799_vm6, %v13411_v30, %v8189_v26 }
 0x732   : > { %v11244_v63 = vpop.permute.xlu2 %8232  ;;  %v11259_v51 = vpop.permute.xlu1 %8177  ;;  %13405 = vst [vmem:[#allocation82_spill] sm:$0xff] %v11262_v60 }
 0x733   : > { %13402 = vst [vmem:[#allocation83_spill] sm:$0xff] %v11244_v63  ;;  %v12840_v21 = vunpack.i.h.bf16 %v11259_v51  ;;  %v12841_v50 = vunpack.i.l.bf16 %v11259_v51 }
 0x734   : > { %13404 = vst [vmem:[#allocation71_spill] sm:$0xff] %v11259_v51 }
 0x735   : > { %5089 = vst [vmem:[#allocation1] ss:$9 sm:$0xff] %v7092_v1  ;;  %v11279_v12 = vsel %vm1175_vm2, %v8175_v42, %v12840_v21  ;;  %v11285_v52 = vsel %vm1175_vm2, %v8174_v22, %v12841_v50  ;;  %v11301_v22 = vsel %vm1175_vm2, %v12842_v24, %v8175_v42  ;;  %v4651_v50 = vsel %vm1799_vm6, %v13410_v56, %v8190_v0  ;;  %v11317_v42 = vpop.permute.xlu0 %8197 }
 0x736   : > { %13406 = vst [vmem:[#allocation84_spill] sm:$0xff] %v11272_v48  ;;  %v11292_v58 = vpack.c.bf16 %v11285_v52, %v11272_v48  ;;  %v11311_v21 = vpack.c.bf16 %v11279_v12, %v11301_v22  ;;  %v7736_v27 = vld [vmem:[#allocation2 + $0x1ec] sm:$0xf0]  ;;  %v4665_v56 = vpack.i.b16 %v11139_v16, %v11139_v16  ;;  %v13418_v60 = vunpack.i.h.bf16 %v11317_v42 }
 0x737   : > { %13407 = vst [vmem:[#allocation81_spill] sm:$0xff] %v11279_v12  ;;  %v13421_v40 = vunpack.i.l.bf16 %v11317_v42 }
 0x738   : > { %13408 = vst [vmem:[#allocation27_spill] sm:$0xff] %v11285_v52  ;;  %v7356_v24 = vld [vmem:[#allocation2 + $0x1e0] sm:$0xf]  ;;  %8412 = vrot.lane.b32.xlu2 %v10964_v9, %s13035_s2  ;;  %8402 = vrot.lane.b32.xlu1 %v11014_v61, %s13010_s24  ;;  %v4667_v16 = vperm.slane %v4665_v56, 0  ;;  %v13420_v56 = vunpack.i.l.bf16 %v11182_v39  ;;  %s13732_s24 = sld [smem:[#allocation124_spill]] }
 0x739   : > { %13409 = vst [vmem:[#allocation28_spill] sm:$0xff] %v11301_v22  ;;  %v7357_v7 = vor.u32 %v7736_v27, %v7356_v24  ;;  %v4668_v27 = vpack.i.b16 %v11141_v28, %v11141_v28  ;;  %8422 = vrot.lane.b32.xlu0 %v10952_v20, %s13035_s2 }
 0x73a   : > { %v11319_v31 = vpop.permute.xlu2 %8247  ;;  %v11328_v19 = vpop.permute.xlu1 %8192  ;;  %v4685_v9 = vunpack.c.l.bf16 %v4667_v16 }
 0x73b   : > { %13412 = vst [vmem:[#allocation29_spill] sm:$0xff] %v11319_v31  ;;  %6089 = vmatpush.bf16.msrb.mxu2 %v7357_v7  ;;  %v4670_v24 = vperm.slane %v4668_v27, 0 }
 0x73c   : > { %13413 = vst [vmem:[#allocation30_spill] sm:$0xff] %v11328_v19  ;;  %v11330_v30 = vld [vmem:[#allocation1] sm:$0xff]  ;;  %v11332_v17 = vld [vmem:[#allocation1 + $0x9] sm:$0xff]  ;;  %v11334_v15 = vld [vmem:[#allocation1 + $0x12] sm:$0xff] }
 0x73d   : > { %13414 = vst [vmem:[#allocation92_spill] sm:$0xff] %v11334_v15  ;;  %v11344_v1 = vld [vmem:[#allocation1 + $0x1b] sm:$0xff]  ;;  %v13417_v15 = vunpack.i.h.bf16 %v11182_v39  ;;  %v11378_v10 = vpop.permute.xlu0 %8212 }
 0x73e   : > { %13415 = vst [vmem:[#allocation9_spill] sm:$0xff] %v11344_v1  ;;  %v13416_v1 = vunpack.i.h.bf16 %v11328_v19  ;;  %s511_s19 = scalar_lea.vmem %s13732_s24, %s7557_s12 }
 0x73f   : > { %5140 = vst [vmem:[#allocation1] ss:$9 sm:$0xff] %v7093_v6  ;;  %v11364_v7 = vsel %vm1098_vm1, %v13418_v60, %v13417_v15  ;;  %v13419_v6 = vunpack.i.l.bf16 %v11328_v19 }
 0x740   : > { %v4649_v49 = vsel %vm1799_vm6, %v8190_v0, %v13416_v1  ;;  %v11376_v0 = vsel %vm1098_vm1, %v13421_v40, %v13420_v56  ;;  %v4686_v1 = vunpack.c.l.bf16 %v4670_v24  ;;  %13422 = vst [vmem:[#allocation10_spill] sm:$0xff] %v11378_v10  ;;  %v7094_v40 = vld [vmem:[%s12661_s5 + $0x5c] sm:$0xf]  ;;  %8427 = vrot.lane.b32.xlu2 %v11014_v61, %s12994_s23  ;;  %8417 = vrot.lane.b32.xlu1 %v10958_v25, %s13035_s2  ;;  %v13426_v25 = vunpack.i.l.bf16 %v11378_v10 }
 0x741   : > { %v4648_v28 = vsel %vm1799_vm6, %v8189_v26, %v13419_v6  ;;  %v4656_v27 = vpack.c.bf16 %v4649_v49, %v4651_v50  ;;  %v12847_v50 = vunpack.i.h.bf16 %v11378_v10  ;;  %v13423_v6 = vunpack.i.h.bf16 %v11203_v62  ;;  %8437 = vrot.lane.b32.xlu0 %v11014_v61, %s13039_s3  ;;  %s13460_s3 = sld [smem:[#allocation121_spill]] }
 0x742   : > { %v4654_v23 = vpack.c.bf16 %v4648_v28, %v4650_v45  ;;  %v11380_v19 = vpop.permute.xlu2 %8262  ;;  %v11384_v11 = vpop.permute.xlu1 %8207  ;;  %v5097_v10 = vpack.i.b16 %v11332_v17, %v11332_v17 }
 0x743   : > { %v4681_v29 = vunpack.c.l.bf16 %v4656_v27  ;;  %v4682_v15 = vunpack.c.h.bf16 %v4656_v27 }
 0x744   : > { %v4677_v60 = vunpack.c.l.bf16 %v4654_v23  ;;  %v4678_v16 = vunpack.c.h.bf16 %v4654_v23  ;;  %v11445_v17 = vperm.slane %v5097_v10, 0 }
 0x745   : > { %v4693_v26 = vmul.f32 %v4685_v9, %v4681_v29  ;;  %v4694_v49 = vmul.f32 %v4686_v1, %v4682_v15 }
 0x746   : > { %v4689_v45 = vmul.f32 %v4685_v9, %v4677_v60  ;;  %v4690_v24 = vmul.f32 %v4686_v1, %v4678_v16  ;;  %v5141_v56 = vld [vmem:[#allocation1] sm:$0xff]  ;;  %v5142_v28 = vld [vmem:[#allocation1 + $0x9] sm:$0xff]  ;;  %v11395_v27 = vld [vmem:[#allocation1 + $0x12] sm:$0xff]  ;;  %v11403_v9 = vsel %vm1021_vm4, %v12847_v50, %v13423_v6  ;;  %v13425_v1 = vunpack.i.l.bf16 %v11203_v62 }
 0x747   : > { %v4699_v15 = vpack.c.bf16 %v4694_v49, %v4693_v26  ;;  %13424 = vst [vmem:[#allocation11_spill] sm:$0xff] %v11403_v9  ;;  %v12850_v16 = vunpack.i.h.bf16 %v11384_v11  ;;  %v11416_v26 = vld [vmem:[#allocation1 + $0x1b] sm:$0xff]  ;;  %v5145_v23 = vpack.i.b16 %v5141_v56, %v5141_v56  ;;  %v5148_v29 = vpack.i.b16 %v5142_v28, %v5142_v28 }
 0x748   : > { %v11411_v60 = vsel %vm1021_vm4, %v13426_v25, %v13425_v1  ;;  %v4697_v49 = vpack.c.bf16 %v4690_v24, %v4689_v45  ;;  %v12851_v6 = vunpack.i.l.bf16 %v11384_v11  ;;  %5191 = vst [vmem:[#allocation1] ss:$9 sm:$0xff] %v7094_v40  ;;  %v13428_v50 = vunpack.i.h.bf16 %v11182_v39  ;;  %8442 = vrot.lane.b32.xlu2 %v10952_v20, %s13013_s0  ;;  %8432 = vrot.lane.b32.xlu1 %v10952_v20, %s12984_s25 }
 0x749   : > { %13427 = vst [vmem:[#allocation12_spill] sm:$0xff] %v11411_v60  ;;  %v5094_v25 = vpack.i.b16 %v11330_v30, %v11330_v30  ;;  %v5147_v45 = vperm.slane %v5145_v23, 0  ;;  %v5150_v24 = vperm.slane %v5148_v29, 0  ;;  %v13429_v40 = vunpack.i.l.bf16 %v11182_v39  ;;  %v11447_v39 = vpop.permute.xlu0 %8227  ;;  %8452 = vrot.lane.b32.xlu0 %v11014_v61, %s13041_s4 }
 0x74a   : > { %v11425_v1 = vsel %vm1098_vm1, %v13428_v50, %v12850_v16  ;;  %4701 = vst [vmem:[#allocation2 + $0x1c0] sm:$0xff] %v4697_v49  ;;  %v11449_v38 = vpop.permute.xlu2 %8277  ;;  %v12854_v34 = vunpack.i.h.bf16 %v11447_v39  ;;  %v11453_v18 = vpop.permute.xlu1 %8222 }
 0x74b   : > { %v11437_v56 = vsel %vm1098_vm1, %v13429_v40, %v12851_v6  ;;  %v5136_v50 = vpack.c.bf16 %v11425_v1, %v11364_v7  ;;  %4703 = vst [vmem:[#allocation2 + $0x1d0] sm:$0xff] %v4699_v15  ;;  %v11443_v28 = vperm.slane %v5094_v25, 0  ;;  %v5165_v29 = vunpack.c.l.bf16 %v5147_v45 }
 0x74c   : > { %v5134_v30 = vpack.c.bf16 %v11437_v56, %v11376_v0  ;;  %v5166_v23 = vunpack.c.l.bf16 %v5150_v24  ;;  %v12861_v15 = vunpack.i.l.bf16 %v11447_v39  ;;  %13430 = vst [vmem:[#allocation64_spill] sm:$0xff] %v11453_v18  ;;  %v5115_v45 = vunpack.c.l.bf16 %v11445_v17 }
 0x74d   : > { %v5161_v49 = vunpack.c.l.bf16 %v5136_v50  ;;  %v5162_v16 = vunpack.c.h.bf16 %v5136_v50  ;;  %v12860_v12 = vunpack.i.l.bf16 %v11453_v18  ;;  %v4207_v17 = vpack.i.b16 %v11046_v4, %v11046_v4 }
 0x74e   : > { %v5157_v40 = vunpack.c.l.bf16 %v5134_v30  ;;  %v5158_v6 = vunpack.c.h.bf16 %v5134_v30  ;;  %v13431_v30 = vunpack.i.h.bf16 %v11244_v63 }
 0x74f   : > { %v5173_v25 = vmul.f32 %v5165_v29, %v5161_v49  ;;  %v5174_v52 = vmul.f32 %v5166_v23, %v5162_v16  ;;  %v13432_v16 = vunpack.i.l.bf16 %v11244_v63 }
 0x750   : > { %v5169_v24 = vmul.f32 %v5165_v29, %v5157_v40  ;;  %v5170_v50 = vmul.f32 %v5166_v23, %v5158_v6  ;;  %v11467_v49 = vsel %vm1329_vm5, %v12854_v34, %v13431_v30  ;;  %v5192_v6 = vld [vmem:[#allocation1] sm:$0xff]  ;;  %v5193_v29 = vld [vmem:[#allocation1 + $0x9] sm:$0xff]  ;;  %v5114_v40 = vunpack.c.l.bf16 %v11443_v28  ;;  %8457 = vrot.lane.b32.xlu2 %v11014_v61, %s12988_s16  ;;  %8447 = vrot.lane.b32.xlu1 %v11014_v61, %s12985_s21 }
 0x751   : > { %v11475_v48 = vsel %vm1329_vm5, %v12861_v15, %v13432_v16  ;;  %v5179_v23 = vpack.c.bf16 %v5174_v52, %v5173_v25  ;;  %v12859_v30 = vunpack.i.h.bf16 %v11453_v18  ;;  %v5196_v10 = vpack.i.b16 %v5192_v6, %v5192_v6  ;;  %v7340_v22 = vld [vmem:[#allocation2 + $0x1c0] sm:$0xf]  ;;  %8467 = vrot.lane.b32.xlu0 %v10952_v20, %s13012_s17 }
 0x752   : > { %v5199_v34 = vpack.i.b16 %v5193_v29, %v5193_v29  ;;  %v5177_v63 = vpack.c.bf16 %v5170_v50, %v5169_v24  ;;  %v13433_v16 = vunpack.i.h.bf16 %v11203_v62  ;;  %v7732_v28 = vld [vmem:[#allocation2 + $0x1cc] sm:$0xf0]  ;;  %v13435_v24 = vunpack.i.l.bf16 %v11203_v62  ;;  %v11513_v15 = vpop.permute.xlu1 %8237 }
 0x753   : > { %5183 = vst [vmem:[#allocation2 + $0x2d0] sm:$0xff] %v5179_v23  ;;  %v5198_v25 = vperm.slane %v5196_v10, 0  ;;  %v7341_v4 = vor.u32 %v7732_v28, %v7340_v22  ;;  %v11507_v10 = vpop.permute.xlu2 %8292  ;;  %v4210_v62 = vpack.i.b16 %v11048_v44, %v11048_v44  ;;  %v13438_v44 = vunpack.c.l.bf16 %v11292_v58 }
 0x754   : > { %v11489_v52 = vsel %vm1021_vm4, %v13433_v16, %v12859_v30  ;;  %v5201_v6 = vperm.slane %v5199_v34, 0  ;;  %5181 = vst [vmem:[#allocation2 + $0x2c0] sm:$0xff] %v5177_v63  ;;  %v11499_v50 = vsel %vm1021_vm4, %v13435_v24, %v12860_v12  ;;  %v11505_v16 = vpop.permute.xlu0 %8242  ;;  %v11509_v34 = vperm.slane %v4207_v17, 0 }
 0x755   : > { %13434 = vst [vmem:[#allocation65_spill] sm:$0xff] %v11489_v52  ;;  %v5085_v29 = vpack.c.bf16 %v11489_v52, %v11403_v9  ;;  %v5083_v23 = vpack.c.bf16 %v11499_v50, %v11411_v60  ;;  %v5216_v63 = vunpack.c.l.bf16 %v5198_v25  ;;  %v13439_v28 = vunpack.c.h.bf16 %v11292_v58  ;;  %6090 = vmatpush.bf16.msrb.mxu2 %v7341_v4 }
 0x756   : > { %13436 = vst [vmem:[#allocation93_spill] sm:$0xff] %v11499_v50  ;;  %v5217_v30 = vunpack.c.l.bf16 %v5201_v6  ;;  %v13440_v25 = vunpack.c.l.bf16 %v11311_v21  ;;  %v13443_v58 = vunpack.i.h.bf16 %v11505_v16  ;;  %v4212_v4 = vperm.slane %v4210_v62, 0 }
 0x757   : > { %13437 = vst [vmem:[#allocation113_spill] sm:$0xff] %v11507_v10  ;;  %v5110_v24 = vunpack.c.l.bf16 %v5085_v29  ;;  %v5111_v12 = vunpack.c.h.bf16 %v5085_v29  ;;  %v5106_v52 = vunpack.c.l.bf16 %v5083_v23  ;;  %v5107_v9 = vunpack.c.h.bf16 %v5083_v23 }
 0x758   : > { %v5220_v22 = vmul.f32 %v5216_v63, %v13438_v44  ;;  %v5221_v17 = vmul.f32 %v5217_v30, %v13439_v28  ;;  %v5224_v6 = vmul.f32 %v5216_v63, %v13440_v25  ;;  %v13441_v29 = vunpack.c.h.bf16 %v11311_v21  ;;  %8472 = vrot.lane.b32.xlu2 %v10952_v20, %s13018_s1  ;;  %8462 = vrot.lane.b32.xlu1 %v10952_v20, %s12982_s22 }
 0x759   : > { %v5118_v60 = vmul.f32 %v5114_v40, %v5106_v52  ;;  %v5119_v50 = vmul.f32 %v5115_v45, %v5107_v9  ;;  %v5122_v18 = vmul.f32 %v5114_v40, %v5110_v24  ;;  %v5123_v8 = vmul.f32 %v5115_v45, %v5111_v12  ;;  %8482 = vrot.lane.b32.xlu0 %v11014_v61, %s12989_s26  ;;  %s13727_s26 = sld [smem:[#allocation123_spill]] }
 0x75a   : > { %v5225_v23 = vmul.f32 %v5217_v30, %v13441_v29  ;;  %v5228_v51 = vpack.c.bf16 %v5221_v17, %v5220_v22  ;;  %v13442_v44 = vunpack.i.h.bf16 %v11319_v31  ;;  %v13444_v21 = vunpack.i.l.bf16 %v11319_v31 }
 0x75b   : > { %v13445_v30 = vunpack.i.l.bf16 %v11505_v16  ;;  %v5126_v9 = vpack.c.bf16 %v5119_v50, %v5118_v60  ;;  %v5128_v12 = vpack.c.bf16 %v5123_v8, %v5122_v18  ;;  %v4227_v24 = vunpack.c.l.bf16 %v11509_v34  ;;  %v11560_v62 = vld [vmem:[#allocation2 + $0x2c0] sm:$0xf]  ;;  %v11562_v34 = vld [vmem:[#allocation2 + $0x2cc] sm:$0xf0] }
 0x75c   : > { %v5230_v53 = vpack.c.bf16 %v5225_v23, %v5224_v6  ;;  %v4568_v63 = vsel %vm1714_vm11, %v13443_v58, %v13442_v44  ;;  %5232 = vst [vmem:[#allocation2 + $0x2e0] sm:$0xff] %v5228_v51  ;;  %v12873_v22 = vunpack.i.h.bf16 %v11513_v15  ;;  %v12872_v28 = vunpack.i.l.bf16 %v11513_v15  ;;  %v11550_v17 = vpop.permute.xlu0 %8257  ;;  %v11564_v6 = vpop.permute.xlu2 %8307 }
 0x75d   : > { %v11543_v52 = vsel %vm1714_vm11, %v13445_v30, %v13444_v21  ;;  %v13446_v25 = vmax.f32 %v10936_v35, 0.0  ;;  %v13447_v60 = vmax.f32 %v10938_v37, 0.0  ;;  %v13448_v18 = vmax.f32 %v10927_v2, 0.0  ;;  %5130 = vst [vmem:[#allocation2 + $0x2a0] sm:$0xff] %v5126_v9  ;;  %v11583_v23 = vpop.permute.xlu1 %8252 }
 0x75e   : > { %5234 = vst [vmem:[#allocation2 + $0x2f0] sm:$0xff] %v5230_v53  ;;  %v13449_v50 = vmax.f32 %v10929_v54, 0.0  ;;  %v4228_v53 = vunpack.c.l.bf16 %v4212_v4  ;;  %v13450_v29 = vunpack.i.l.bf16 %v11447_v39  ;;  %v13451_v2 = vunpack.i.h.bf16 %v11447_v39 }
 0x75f   : > { %v4622_v8 = vpack.c.bf16 %v13447_v60, %v13446_v25  ;;  %v12874_v37 = vunpack.i.h.bf16 %v11550_v17  ;;  %13453 = vst [vmem:[#allocation112_spill] sm:$0xff] %v11583_v23  ;;  %v12875_v21 = vunpack.i.l.bf16 %v11550_v17  ;;  %v13454_v30 = vunpack.i.h.bf16 %v11380_v19 }
 0x760   : > { %v4624_v51 = vpack.c.bf16 %v13449_v50, %v13448_v18  ;;  %v11572_v35 = vsel %vm1329_vm5, %v12872_v28, %v13450_v29  ;;  %v11580_v54 = vsel %vm1329_vm5, %v12873_v22, %v13451_v2  ;;  %5132 = vst [vmem:[#allocation2 + $0x2b0] sm:$0xff] %v5128_v12  ;;  %v7469_v12 = vor.u32 %v11562_v34, %v11560_v62 }
 0x761   : > { %13452 = vst [vmem:[#allocation105_spill] sm:$0xff] %v11580_v54  ;;  %v4196_v44 = vpack.c.bf16 %v11475_v48, %v11572_v35  ;;  %v4198_v58 = vpack.c.bf16 %v11467_v49, %v11580_v54  ;;  %v11601_v9 = vsel %vm944_vm7, %v12874_v37, %v13454_v30  ;;  %v13455_v29 = vunpack.i.l.bf16 %v11380_v19  ;;  %8487 = vrot.lane.b32.xlu2 %v11014_v61, %s13035_s2 }
 0x762   : > { %4626 = vst [vmem:[#allocation2 + $0x1a0] sm:$0xff] %v4622_v8  ;;  %v4582_v8 = vpack.i.b16 %v11128_v14, %v11128_v14  ;;  %v4585_v62 = vpack.i.b16 %v11130_v5, %v11130_v5  ;;  %v12876_v34 = vunpack.i.h.bf16 %v11583_v23  ;;  %v13456_v4 = vunpack.i.h.bf16 %v11505_v16  ;;  %8477 = vrot.lane.b32.xlu1 %v10952_v20, %s13020_s20 }
 0x763   : > { %v4219_v25 = vunpack.c.l.bf16 %v4196_v44  ;;  %v4220_v60 = vunpack.c.h.bf16 %v4196_v44  ;;  %v4223_v18 = vunpack.c.l.bf16 %v4198_v58  ;;  %v4224_v50 = vunpack.c.h.bf16 %v4198_v58  ;;  %4628 = vst [vmem:[#allocation2 + $0x1b0] sm:$0xff] %v4624_v51  ;;  %v7484_v51 = vld [vmem:[#allocation2 + $0x2e0] sm:$0xf] }
 0x764   : > { %v11612_v2 = vsel %vm944_vm7, %v12875_v21, %v13455_v29  ;;  %v4584_v37 = vperm.slane %v4582_v8, 0  ;;  %v4587_v29 = vperm.slane %v4585_v62, 0  ;;  %v12877_v21 = vunpack.i.l.bf16 %v11583_v23 }
 0x765   : > { %v4231_v44 = vmul.f32 %v4227_v24, %v4219_v25  ;;  %v4232_v58 = vmul.f32 %v4228_v53, %v4220_v60  ;;  %v4235_v30 = vmul.f32 %v4227_v24, %v4223_v18  ;;  %v4236_v28 = vmul.f32 %v4228_v53, %v4224_v50  ;;  %v7768_v22 = vld [vmem:[#allocation2 + $0x2ec] sm:$0xf0]  ;;  %v11628_v25 = vpop.permute.xlu0 %8272  ;;  %v7452_v24 = vld [vmem:[#allocation2 + $0x2a0] sm:$0xf]  ;;  %v11630_v53 = vpop.permute.xlu2 %8322 }
 0x766   : > { %v4570_v14 = vsel %vm1714_vm11, %v12876_v34, %v13456_v4  ;;  %v7485_v5 = vor.u32 %v7768_v22, %v7484_v51  ;;  %v4602_v60 = vunpack.c.l.bf16 %v4584_v37  ;;  %v4603_v18 = vunpack.c.l.bf16 %v4587_v29  ;;  %v11639_v62 = vpop.permute.xlu1 %8267 }
 0x767   : > { %v4239_v39 = vpack.c.bf16 %v4232_v58, %v4231_v44  ;;  %v4241_v40 = vpack.c.bf16 %v4236_v28, %v4235_v30  ;;  %v4573_v45 = vpack.c.bf16 %v4568_v63, %v4570_v14  ;;  %v13457_v50 = vunpack.i.l.bf16 %v11505_v16  ;;  %v7760_v22 = vld [vmem:[#allocation2 + $0x2ac] sm:$0xf0] }
 0x768   : > { %v12882_v4 = vunpack.i.h.bf16 %v11628_v25  ;;  %6103 = vmatpush.bf16.msra.mxu3 %v7485_v5  ;;  %v12881_v44 = vunpack.i.l.bf16 %v11628_v25  ;;  %v13458_v58 = vunpack.i.h.bf16 %v11449_v38  ;;  %v7453_v29 = vor.u32 %v7760_v22, %v7452_v24 }
 0x769   : > { %v4569_v8 = vsel %vm1714_vm11, %v12877_v21, %v13457_v50  ;;  %4243 = vst [vmem:[#allocation2 + $0xe0] sm:$0xff] %v4239_v39  ;;  %v7324_v63 = vld [vmem:[#allocation2 + $0x1a0] sm:$0xf]  ;;  %v4598_v51 = vunpack.c.l.bf16 %v4573_v45  ;;  %v4599_v37 = vunpack.c.h.bf16 %v4573_v45  ;;  %v5046_v61 = vpack.i.b16 %v11255_v3, %v11255_v3 }
 0x76a   : > { %v4571_v28 = vpack.c.bf16 %v11543_v52, %v4569_v8  ;;  %4245 = vst [vmem:[#allocation2 + $0xf0] sm:$0xff] %v4241_v40  ;;  %v7728_v16 = vld [vmem:[#allocation2 + $0x1ac] sm:$0xf0]  ;;  %v11649_v30 = vsel %vm13459_vm8, %v12882_v4, %v13458_v58  ;;  %v5501_v52 = vld [vmem:[%s13460_s3] sm:$0xff]  ;;  %v13461_v40 = vunpack.i.l.bf16 %v11449_v38  ;;  %v12879_v20 = vunpack.i.l.bf16 %v11639_v62 }
 0x76b   : > { %v7325_v14 = vor.u32 %v7728_v16, %v7324_v63  ;;  %v4610_v50 = vmul.f32 %v4602_v60, %v4598_v51  ;;  %v4611_v45 = vmul.f32 %v4603_v18, %v4599_v37  ;;  %v5043_v51 = vpack.i.b16 %v11253_v55, %v11253_v55  ;;  %5505 = vperm.xlu0 %8149, %v5501_v52  }
 0x76c   : > { %v4594_v39 = vunpack.c.l.bf16 %v4571_v28  ;;  %v4595_v5 = vunpack.c.h.bf16 %v4571_v28  ;;  %v11660_v8 = vsel %vm13462_vm9, %v12881_v44, %v13461_v40  ;;  %6104 = vmatpush.bf16.msra.mxu3 %v7469_v12  ;;  %v12878_v37 = vunpack.i.h.bf16 %v11639_v62 }
 0x76d   : > { %6091 = vmatpush.bf16.msrb.mxu2 %v7325_v14  ;;  %v4616_v16 = vpack.c.bf16 %v4611_v45, %v4610_v50  ;;  %v4132_v58 = vpack.i.b16 %v10588_v33, %v10588_v33  ;;  %v5045_v14 = vperm.slane %v5043_v51, 0  ;;  %v13463_v12 = vunpack.i.h.bf16 %v11380_v19 }
 0x76e   : > { %v4606_v63 = vmul.f32 %v4602_v60, %v4594_v39  ;;  %v4607_v28 = vmul.f32 %v4603_v18, %v4595_v5  ;;  %v11684_v60 = vpop.permute.xlu0 %8287  ;;  %v11686_v18 = vpop.permute.xlu2 %8337  ;;  %v4135_v3 = vpack.i.b16 %v10590_v41, %v10590_v41  ;;  %v5048_v39 = vperm.slane %v5046_v61, 0 }
 0x76f   : > { %v11682_v55 = vsel %vm944_vm7, %v13463_v12, %v12878_v37  ;;  %13464 = vst [vmem:[#allocation103_spill] sm:$0xff] %v11686_v18  ;;  %v13465_v33 = vunpack.i.l.bf16 %v11380_v19  ;;  %v12880_v52 = vunpack.i.h.bf16 %v11684_v60  ;;  %v5502_v19 = vld [vmem:[%s13460_s3 + $0x8] sm:$0xff]  ;;  %v13466_v34 = vunpack.i.h.bf16 %v11507_v10 }
 0x770   : > { %v4614_v40 = vpack.c.bf16 %v4607_v28, %v4606_v63  ;;  %4620 = vst [vmem:[#allocation2 + $0x190] sm:$0xff] %v4616_v16  ;;  %v5034_v50 = vpack.c.bf16 %v11682_v55, %v11601_v9  ;;  %v7228_v45 = vld [vmem:[#allocation2 + $0xe0] sm:$0xf]  ;;  %6105 = vmatpush.bf16.msra.mxu3 %v7453_v29  ;;  %v5063_v63 = vunpack.c.l.bf16 %v5045_v14  ;;  %v12890_v28 = vunpack.i.l.bf16 %v11684_v60  ;;  %5510 = vperm.xlu1 %8150, %v5502_v19  }
 0x771   : > { %v11696_v5 = vsel %vm944_vm7, %v13465_v33, %v12879_v20  ;;  %v7704_v51 = vld [vmem:[#allocation2 + $0xec] sm:$0xf0]  ;;  %v5064_v61 = vunpack.c.l.bf16 %v5048_v39  ;;  %v11714_v29 = vsel %vm1637_vm14, %v12880_v52, %v13466_v34  ;;  %v13467_v37 = vunpack.i.l.bf16 %v11507_v10 }
 0x772   : > { %4618 = vst [vmem:[#allocation2 + $0x180] sm:$0xff] %v4614_v40  ;;  %v5032_v41 = vpack.c.bf16 %v11696_v5, %v11612_v2  ;;  %v5059_v12 = vunpack.c.l.bf16 %v5034_v50  ;;  %v5060_v33 = vunpack.c.h.bf16 %v5034_v50  ;;  %v11716_v40 = vpop.permute.xlu1 %8282  ;;  %v7229_v50 = vor.u32 %v7704_v51, %v7228_v45 }
 0x773   : > { %v11724_v39 = vsel %vm1637_vm14, %v12890_v28, %v13467_v37  ;;  %v4134_v34 = vperm.slane %v4132_v58, 0  ;;  %v4137_v44 = vperm.slane %v4135_v3, 0  ;;  %v12889_v31 = vunpack.i.l.bf16 %v11716_v40 }
 0x774   : > { %v5055_v14 = vunpack.c.l.bf16 %v5032_v41  ;;  %v5056_v21 = vunpack.c.h.bf16 %v5032_v41  ;;  %v5071_v20 = vmul.f32 %v5063_v63, %v5059_v12  ;;  %v5072_v16 = vmul.f32 %v5064_v61, %v5060_v33  ;;  %6075 = vmatpush.bf16.msrb.mxu1 %v7229_v50 }
 0x775   : > { %v12888_v41 = vunpack.i.h.bf16 %v11716_v40  ;;  %v4152_v23 = vunpack.c.l.bf16 %v4134_v34  ;;  %v3982_v37 = vpack.i.b16 %v10518_v47, %v10518_v47  ;;  %v4153_v51 = vunpack.c.l.bf16 %v4137_v44 }
 0x776   : > { %v5067_v24 = vmul.f32 %v5063_v63, %v5055_v14  ;;  %v5068_v52 = vmul.f32 %v5064_v61, %v5056_v21  ;;  %v5077_v4 = vpack.c.bf16 %v5072_v16, %v5071_v20  ;;  %v13468_v19 = vunpack.i.h.bf16 %v11628_v25  ;;  %v11739_v58 = vpop.permute.xlu0 %8302 }
 0x777   : > { %v7724_v3 = vld [vmem:[#allocation2 + $0x18c] sm:$0xf0]  ;;  %v3985_v20 = vpack.i.b16 %v10520_v59, %v10520_v59  ;;  %v13470_v63 = vunpack.i.l.bf16 %v11628_v25  ;;  %v3984_v25 = vperm.slane %v3982_v37, 0  ;;  %v13472_v14 = vunpack.i.h.bf16 %v11564_v6 }
 0x778   : > { %v5075_v45 = vpack.c.bf16 %v5068_v52, %v5067_v24  ;;  %v11737_v21 = vsel %vm13469_vm12, %v12888_v41, %v13468_v19  ;;  %5081 = vst [vmem:[#allocation2 + $0x290] sm:$0xff] %v5077_v4  ;;  %v12887_v24 = vunpack.i.h.bf16 %v11739_v58  ;;  %v12891_v52 = vunpack.i.l.bf16 %v11739_v58 }
 0x779   : > { %v11749_v47 = vsel %vm13471_vm13, %v12889_v31, %v13470_v63  ;;  %v4123_v44 = vpack.c.bf16 %v11649_v30, %v11737_v21  ;;  %v7308_v16 = vld [vmem:[#allocation2 + $0x180] sm:$0xf]  ;;  %v3987_v61 = vperm.slane %v3985_v20, 0  ;;  %v13473_v34 = vunpack.i.l.bf16 %v11564_v6  ;;  %v8353_v63 = vpop.permute.xlu2 %8352 }
 0x77a   : > { %5079 = vst [vmem:[#allocation2 + $0x280] sm:$0xff] %v5075_v45  ;;  %v4121_v59 = vpack.c.bf16 %v11660_v8, %v11749_v47  ;;  %v7309_v4 = vor.u32 %v7724_v3, %v7308_v16  ;;  %v11763_v50 = vsel %vm867_vm10, %v12887_v24, %v13472_v14  ;;  %v3988_v3 = vpack.i.b16 %v10522_v46, %v10522_v46 }
 0x77b   : > { %v4148_v12 = vunpack.c.l.bf16 %v4123_v44  ;;  %v4149_v33 = vunpack.c.h.bf16 %v4123_v44  ;;  %v11771_v45 = vsel %vm867_vm10, %v12891_v52, %v13473_v34  ;;  %v3991_v20 = vpack.i.b16 %v10530_v32, %v10530_v32 }
 0x77c   : > { %v4144_v37 = vunpack.c.l.bf16 %v4121_v59  ;;  %v4145_v19 = vunpack.c.h.bf16 %v4121_v59  ;;  %6092 = vmatpush.bf16.msrb.mxu2 %v7309_v4  ;;  %v4002_v14 = vunpack.c.l.bf16 %v3984_v25  ;;  %v4003_v24 = vunpack.c.l.bf16 %v3987_v61 }
 0x77d   : > { %v4160_v44 = vmul.f32 %v4152_v23, %v4148_v12  ;;  %v4161_v16 = vmul.f32 %v4153_v51, %v4149_v33  ;;  %v3990_v22 = vperm.slane %v3988_v3, 0  ;;  %v3993_v28 = vperm.slane %v3991_v20, 0 }
 0x77e   : > { %v4156_v41 = vmul.f32 %v4152_v23, %v4144_v37  ;;  %v4157_v31 = vmul.f32 %v4153_v51, %v4145_v19  ;;  %v5151_v59 = vpack.i.b16 %v11395_v27, %v11395_v27  ;;  %v5154_v4 = vpack.i.b16 %v11416_v26, %v11416_v26 }
 0x77f   : > { %v4166_v34 = vpack.c.bf16 %v4161_v16, %v4160_v44  ;;  %v8355_v46 = vunpack.i.h.bf16 %v8353_v63  ;;  %v4004_v10 = vunpack.c.l.bf16 %v3990_v22  ;;  %v4005_v32 = vunpack.c.l.bf16 %v3993_v28 }
 0x780   : > { %v4164_v52 = vpack.c.bf16 %v4157_v31, %v4156_v41  ;;  %v8354_v54 = vunpack.i.l.bf16 %v8353_v63  ;;  %v5153_v12 = vperm.slane %v5151_v59, 0  ;;  %v5156_v25 = vperm.slane %v5154_v4, 0 }
 0x781   : > { %4170 = vst [vmem:[#allocation2 + $0xd0] sm:$0xff] %v4166_v34  ;;  %v13474_v23 = vunpack.i.h.bf16 %v11384_v11  ;;  %v13475_v61 = vunpack.i.h.bf16 %v11317_v42  ;;  %v13476_v26 = vunpack.i.l.bf16 %v11384_v11  ;;  %v13477_v22 = vunpack.i.l.bf16 %v11317_v42 }
 0x782   : > { %4168 = vst [vmem:[#allocation2 + $0xc0] sm:$0xff] %v4164_v52  ;;  %v5167_v37 = vunpack.c.l.bf16 %v5153_v12  ;;  %v5168_v19 = vunpack.c.l.bf16 %v5156_v25  ;;  %vm13515_vm8 = vcmp.lt.s32.totalorder %v9252_v13, 73 }
 0x783   : > { %v3964_v51 = vsel %vm1098_vm1, %v13474_v23, %v8355_v46  ;;  %v3970_v27 = vsel %vm1098_vm1, %v8355_v46, %v13475_v61  ;;  %v3963_v31 = vsel %vm1098_vm1, %v13476_v26, %v8354_v54  ;;  %v3969_v28 = vsel %vm1098_vm1, %v8354_v54, %v13477_v22  ;;  %v11801_v22 = vpop.permute.xlu1 %8297  ;;  %vm13517_vm9 = vmmov %vm13515_vm8 }
 0x784   : > { %v3973_v41 = vpack.c.bf16 %v11364_v7, %v3970_v27  ;;  %v3974_v33 = vpack.c.bf16 %v3964_v51, %v11425_v1  ;;  %v3971_v3 = vpack.c.bf16 %v11376_v0, %v3969_v28  ;;  %v3972_v52 = vpack.c.bf16 %v3963_v31, %v11437_v56  ;;  %13478 = vst [vmem:[#allocation45_spill] sm:$0xff] %v11801_v22  ;;  %vm13519_vm12 = vmmov %vm13515_vm8 }
 0x785   : > { %v5135_v26 = vpack.c.bf16 %v3969_v28, %v3963_v31  ;;  %v5137_v56 = vpack.c.bf16 %v3970_v27, %v3964_v51  ;;  %v12896_v51 = vunpack.i.h.bf16 %v11801_v22  ;;  %v12895_v27 = vunpack.i.l.bf16 %v11801_v22  ;;  %vm13522_vm13 = vmmov %vm13515_vm8 }
 0x786   : > { %v3998_v20 = vunpack.c.l.bf16 %v3973_v41  ;;  %v3999_v11 = vunpack.c.h.bf16 %v3973_v41  ;;  %v4000_v63 = vunpack.c.l.bf16 %v3974_v33  ;;  %v4001_v44 = vunpack.c.h.bf16 %v3974_v33 }
 0x787   : > { %v3994_v16 = vunpack.c.l.bf16 %v3971_v3  ;;  %v3995_v34 = vunpack.c.h.bf16 %v3971_v3  ;;  %v3996_v42 = vunpack.c.l.bf16 %v3972_v52  ;;  %v3997_v59 = vunpack.c.h.bf16 %v3972_v52 }
 0x788   : > { %v4010_v4 = vmul.f32 %v4002_v14, %v3998_v20  ;;  %v4011_v54 = vmul.f32 %v4003_v24, %v3999_v11  ;;  %v4012_v46 = vmul.f32 %v4004_v10, %v4000_v63  ;;  %v4013_v7 = vmul.f32 %v4005_v32, %v4001_v44 }
 0x789   : > { %v4006_v23 = vmul.f32 %v4002_v14, %v3994_v16  ;;  %v4007_v1 = vmul.f32 %v4003_v24, %v3995_v34  ;;  %v4008_v12 = vmul.f32 %v4004_v10, %v3996_v42  ;;  %v4009_v25 = vmul.f32 %v4005_v32, %v3997_v59 }
 0x78a   : > { %v4016_v61 = vpack.c.bf16 %v4011_v54, %v4010_v4  ;;  %v4017_v0 = vpack.c.bf16 %v4013_v7, %v4012_v46  ;;  %v4507_v3 = vpack.i.b16 %v11117_v57, %v11117_v57  ;;  %v4510_v52 = vpack.i.b16 %v11119_v36, %v11119_v36  ;;  %v8318_v46 = vpop.permute.xlu0 %8317 }
 0x78b   : > { %v4014_v41 = vpack.c.bf16 %v4007_v1, %v4006_v23  ;;  %v4015_v33 = vpack.c.bf16 %v4009_v25, %v4008_v12  ;;  %v5159_v20 = vunpack.c.l.bf16 %v5135_v26  ;;  %v5160_v14 = vunpack.c.h.bf16 %v5135_v26  ;;  %v13481_v23 = vld [vmem:[#allocation87_spill] sm:$0xff]  ;;  %v13482_v12 = vld [vmem:[#allocation88_spill] sm:$0xff] }
 0x78c   : > { %4020 = vst [vmem:[#allocation2 + $0x90] sm:$0xff] %v4016_v61  ;;  %v5163_v24 = vunpack.c.l.bf16 %v5137_v56  ;;  %v5164_v10 = vunpack.c.h.bf16 %v5137_v56  ;;  %v4509_v32 = vperm.slane %v4507_v3, 0  ;;  %v4512_v11 = vperm.slane %v4510_v52, 0  ;;  %v13483_v25 = vld [vmem:[#allocation76_spill] sm:$0xff] }
 0x78d   : > { %4018 = vst [vmem:[#allocation2 + $0x80] sm:$0xff] %v4014_v41  ;;  %v5171_v31 = vmul.f32 %v5167_v37, %v5159_v20  ;;  %v5172_v28 = vmul.f32 %v5168_v19, %v5160_v14  ;;  %v13479_v16 = vunpack.i.l.bf16 %v11684_v60  ;;  %v13480_v42 = vunpack.i.h.bf16 %v11684_v60  ;;  %v5194_v41 = vld [vmem:[#allocation1 + $0x12] sm:$0xff]  ;;  %v5195_v52 = vld [vmem:[#allocation1 + $0x1b] sm:$0xff]  ;;  %v11839_v20 = vpop.permute.xlu2 %8367 }
 0x78e   : > { %4019 = vst [vmem:[#allocation2 + $0x88] sm:$0xff] %v4015_v33  ;;  %v5175_v63 = vmul.f32 %v5167_v37, %v5163_v24  ;;  %v5176_v57 = vmul.f32 %v5168_v19, %v5164_v10  ;;  %v4527_v44 = vunpack.c.l.bf16 %v4509_v32  ;;  %v4528_v36 = vunpack.c.l.bf16 %v4512_v11  ;;  %v7436_v11 = vld [vmem:[#allocation2 + $0x280] sm:$0xf] }
 0x78f   : > { %4021 = vst [vmem:[#allocation2 + $0x98] sm:$0xff] %v4017_v0  ;;  %v4494_v34 = vsel %vm1637_vm14, %v12895_v27, %v13479_v16  ;;  %v4495_v59 = vsel %vm1637_vm14, %v12896_v51, %v13480_v42  ;;  %v5178_v4 = vpack.c.bf16 %v5172_v28, %v5171_v31  ;;  %v4057_v7 = vpack.i.b16 %v10562_v43, %v10562_v43  ;;  %v7756_v31 = vld [vmem:[#allocation2 + $0x28c] sm:$0xf0] }
 0x790   : > { %v5180_v37 = vpack.c.bf16 %v5176_v57, %v5175_v63  ;;  %v4496_v19 = vpack.c.bf16 %v11724_v39, %v4494_v34  ;;  %v4498_v54 = vpack.c.bf16 %v11714_v29, %v4495_v59  ;;  %v4060_v1 = vpack.i.b16 %v13481_v23, %v13481_v23  ;;  %13484 = vst [vmem:[#allocation46_spill] sm:$0xff] %v11839_v20  ;;  %v11845_v34 = vpop.permute.xlu1 %8312 }
 0x791   : > { %v4063_v60 = vpack.i.b16 %v13482_v12, %v13482_v12  ;;  %v4066_v61 = vpack.i.b16 %v13483_v25, %v13483_v25  ;;  %5182 = vst [vmem:[#allocation2 + $0x2c8] sm:$0xff] %v5178_v4  ;;  %v11831_v29 = vperm.slane %v4057_v7, 0  ;;  %v5202_v4 = vpack.i.b16 %v5194_v41, %v5194_v41  ;;  %v13485_v12 = vld [vmem:[#allocation14_spill] sm:$0xff]  ;;  %v13486_v25 = vld [vmem:[#allocation71_spill] sm:$0xff] }
 0x792   : > { %v4519_v0 = vunpack.c.l.bf16 %v4496_v19  ;;  %v4520_v26 = vunpack.c.h.bf16 %v4496_v19  ;;  %v4523_v56 = vunpack.c.l.bf16 %v4498_v54  ;;  %v4524_v39 = vunpack.c.h.bf16 %v4498_v54  ;;  %5184 = vst [vmem:[#allocation2 + $0x2d8] sm:$0xff] %v5180_v37 }
 0x793   : > { %v11833_v33 = vperm.slane %v4060_v1, 0  ;;  %v11835_v43 = vperm.slane %v4063_v60, 0  ;;  %v11837_v3 = vperm.slane %v4066_v61, 0  ;;  %v4077_v28 = vunpack.c.l.bf16 %v11831_v29 }
 0x794   : > { %v4531_v14 = vmul.f32 %v4527_v44, %v4519_v0  ;;  %v4532_v24 = vmul.f32 %v4528_v36, %v4520_v26  ;;  %v4535_v10 = vmul.f32 %v4527_v44, %v4523_v56  ;;  %v4536_v32 = vmul.f32 %v4528_v36, %v4524_v39  ;;  %v13488_v26 = vld [vmem:[#allocation13_spill] sm:$0xff] }
 0x795   : > { %v4078_v63 = vunpack.c.l.bf16 %v11833_v33  ;;  %v4079_v57 = vunpack.c.l.bf16 %v11835_v43  ;;  %v4080_v16 = vunpack.c.l.bf16 %v11837_v3  ;;  %v5205_v37 = vpack.i.b16 %v5195_v52, %v5195_v52  ;;  %v13492_v52 = vld [vmem:[#allocation28_spill] sm:$0xff] }
 0x796   : > { %v4539_v42 = vpack.c.bf16 %v4532_v24, %v4531_v14  ;;  %v4541_v59 = vpack.c.bf16 %v4536_v32, %v4535_v10  ;;  %v8320_v19 = vunpack.i.h.bf16 %v8318_v46  ;;  %v8319_v54 = vunpack.i.l.bf16 %v8318_v46  ;;  %v13493_v24 = vld [vmem:[#allocation81_spill] sm:$0xff]  ;;  %v11869_v32 = vpop.permute.xlu0 %8332 }
 0x797   : > { %v7437_v44 = vor.u32 %v7756_v31, %v7436_v11  ;;  %v5204_v7 = vperm.slane %v5202_v4, 0  ;;  %v5207_v23 = vperm.slane %v5205_v37, 0  ;;  %v4992_v60 = vpack.i.b16 %v13485_v12, %v13485_v12  ;;  %v13494_v31 = vld [vmem:[#allocation84_spill] sm:$0xff] }
 0x798   : > { %4543 = vst [vmem:[#allocation2 + $0x160] sm:$0xff] %v4539_v42  ;;  %v13487_v61 = vunpack.i.h.bf16 %v13486_v25  ;;  %v13489_v56 = vunpack.i.h.bf16 %v13488_v26  ;;  %v13490_v39 = vunpack.i.l.bf16 %v13486_v25  ;;  %v13491_v29 = vunpack.i.l.bf16 %v13488_v26 }
 0x799   : > { %4545 = vst [vmem:[#allocation2 + $0x170] sm:$0xff] %v4541_v59  ;;  %v5218_v43 = vunpack.c.l.bf16 %v5204_v7  ;;  %v5219_v3 = vunpack.c.l.bf16 %v5207_v23  ;;  %6106 = vmatpush.bf16.msra.mxu3 %v7437_v44  ;;  %v13495_v59 = vld [vmem:[#allocation27_spill] sm:$0xff]  ;;  %vm13502_vm1 = vcmp.lt.s32.totalorder %v9252_v13, 8 }
 0x79a   : > { %v4039_v0 = vsel %vm1175_vm2, %v13487_v61, %v8320_v19  ;;  %v4045_v46 = vsel %vm1175_vm2, %v8320_v19, %v13489_v56  ;;  %v4038_v41 = vsel %vm1175_vm2, %v13490_v39, %v8319_v54  ;;  %v4044_v33 = vsel %vm1175_vm2, %v8319_v54, %v13491_v29  ;;  %v11873_v56 = vpop.permute.xlu2 %8382  ;;  %vm13504_vm2 = vmmov %vm13502_vm1 }
 0x79b   : > { %v4048_v14 = vpack.c.bf16 %v13492_v52, %v4045_v46  ;;  %v4049_v10 = vpack.c.bf16 %v4039_v0, %v13493_v24  ;;  %v5188_v11 = vpack.c.bf16 %v4045_v46, %v4039_v0  ;;  %v4046_v42 = vpack.c.bf16 %v13494_v31, %v4044_v33  ;;  %13496 = vst [vmem:[#allocation5_spill] sm:$0xff] %v11873_v56  ;;  %vm13508_vm15 = vmmov %vm13502_vm1 }
 0x79c   : > { %v4047_v4 = vpack.c.bf16 %v4038_v41, %v13495_v59  ;;  %v5186_v37 = vpack.c.bf16 %v4044_v33, %v4038_v41  ;;  %v11875_v59 = vpop.permute.xlu1 %8327  ;;  %vm13510_vm0 = vmmov %vm13502_vm1 }
 0x79d   : > { %v4073_v19 = vunpack.c.l.bf16 %v4048_v14  ;;  %v4074_v12 = vunpack.c.h.bf16 %v4048_v14  ;;  %v4075_v25 = vunpack.c.l.bf16 %v4049_v10  ;;  %v4076_v61 = vunpack.c.h.bf16 %v4049_v10 }
 0x79e   : > { %v5214_v54 = vunpack.c.l.bf16 %v5188_v11  ;;  %v5215_v7 = vunpack.c.h.bf16 %v5188_v11  ;;  %v4069_v23 = vunpack.c.l.bf16 %v4046_v42  ;;  %v4070_v26 = vunpack.c.h.bf16 %v4046_v42 }
 0x79f   : > { %v4085_v39 = vmul.f32 %v4077_v28, %v4073_v19  ;;  %v4086_v44 = vmul.f32 %v4078_v63, %v4074_v12  ;;  %v4087_v29 = vmul.f32 %v4079_v57, %v4075_v25  ;;  %v4088_v52 = vmul.f32 %v4080_v16, %v4076_v61  ;;  %v13497_v25 = vld [vmem:[#allocation15_spill] sm:$0xff] }
 0x7a0   : > { %v5226_v0 = vmul.f32 %v5218_v43, %v5214_v54  ;;  %v5227_v46 = vmul.f32 %v5219_v3, %v5215_v7  ;;  %v4071_v24 = vunpack.c.l.bf16 %v4047_v4  ;;  %v4072_v31 = vunpack.c.h.bf16 %v4047_v4  ;;  %v7212_v54 = vld [vmem:[#allocation2 + $0xc0] sm:$0xf]  ;;  %v7700_v7 = vld [vmem:[#allocation2 + $0xcc] sm:$0xf0] }
 0x7a1   : > { %v4091_v41 = vpack.c.bf16 %v4086_v44, %v4085_v39  ;;  %v4092_v33 = vpack.c.bf16 %v4088_v52, %v4087_v29  ;;  %v4081_v14 = vmul.f32 %v4077_v28, %v4069_v23  ;;  %v4082_v10 = vmul.f32 %v4078_v63, %v4070_v26 }
 0x7a2   : > { %v5231_v27 = vpack.c.bf16 %v5227_v46, %v5226_v0  ;;  %v4083_v11 = vmul.f32 %v4079_v57, %v4071_v24  ;;  %v4084_v51 = vmul.f32 %v4080_v16, %v4072_v31  ;;  %v5210_v42 = vunpack.c.l.bf16 %v5186_v37 }
 0x7a3   : > { %4095 = vst [vmem:[#allocation2 + $0xb0] sm:$0xff] %v4091_v41  ;;  %v4089_v1 = vpack.c.bf16 %v4082_v10, %v4081_v14  ;;  %v5211_v19 = vunpack.c.h.bf16 %v5186_v37  ;;  %v4994_v12 = vperm.slane %v4992_v60, 0  ;;  %v4995_v61 = vpack.i.b16 %v13497_v25, %v13497_v25  ;;  %v11882_v37 = vpop.permute.xlu0 %8347  ;;  %v11919_v41 = vpop.permute.xlu2 %8397 }
 0x7a4   : > { %4096 = vst [vmem:[#allocation2 + $0xb8] sm:$0xff] %v4092_v33  ;;  %v4090_v4 = vpack.c.bf16 %v4084_v51, %v4083_v11  ;;  %v5222_v36 = vmul.f32 %v5218_v43, %v5210_v42  ;;  %v12898_v39 = vunpack.i.h.bf16 %v11845_v34  ;;  %v12897_v28 = vunpack.i.l.bf16 %v11845_v34  ;;  %v13505_v42 = vld [vmem:[#allocation99_spill] sm:$0xff] }
 0x7a5   : > { %5235 = vst [vmem:[#allocation2 + $0x2f8] sm:$0xff] %v5231_v27  ;;  %v5223_v63 = vmul.f32 %v5219_v3, %v5211_v19  ;;  %v4997_v57 = vperm.slane %v4995_v61, 0  ;;  %v5012_v16 = vunpack.c.l.bf16 %v4994_v12  ;;  %v12903_v23 = vunpack.i.h.bf16 %v11869_v32  ;;  %v13506_v12 = vld [vmem:[#allocation40_spill] sm:$0xff] }
 0x7a6   : > { %13498 = vst [vmem:[#allocation91_spill] sm:$0xff] %v11882_v37  ;;  %v13499_v60 = vunpack.i.h.bf16 %v11564_v6  ;;  %v13500_v27 = vunpack.i.l.bf16 %v11564_v6  ;;  %v12904_v3 = vunpack.i.l.bf16 %v11869_v32  ;;  %v7213_v26 = vor.u32 %v7700_v7, %v7212_v54  ;;  %v8343_v7 = vpop.permute.xlu1 %8342 }
 0x7a7   : > { %4093 = vst [vmem:[#allocation2 + $0xa0] sm:$0xff] %v4089_v1  ;;  %v5229_v1 = vpack.c.bf16 %v5223_v63, %v5222_v36  ;;  %v5013_v44 = vunpack.c.l.bf16 %v4997_v57  ;;  %v13501_v0 = vunpack.i.h.bf16 %v11630_v53  ;;  %v13503_v46 = vunpack.i.l.bf16 %v11630_v53 }
 0x7a8   : > { %v11890_v51 = vsel %vm867_vm10, %v13499_v60, %v12898_v39  ;;  %v11898_v43 = vsel %vm867_vm10, %v13500_v27, %v12897_v28  ;;  %4094 = vst [vmem:[#allocation2 + $0xa8] sm:$0xff] %v4090_v4  ;;  %6076 = vmatpush.bf16.msrb.mxu1 %v7213_v26  ;;  %v4432_v19 = vpack.i.b16 %v13505_v42, %v13505_v42  ;;  %v12899_v61 = vunpack.i.h.bf16 %v11875_v59  ;;  %v7720_v42 = vld [vmem:[#allocation2 + $0x16c] sm:$0xf0] }
 0x7a9   : > { %v4981_v29 = vpack.c.bf16 %v11898_v43, %v11771_v45  ;;  %v4983_v52 = vpack.c.bf16 %v11890_v51, %v11763_v50  ;;  %v4420_v6 = vsel %vm13502_vm1, %v12903_v23, %v13501_v0  ;;  %v4419_v36 = vsel %vm13504_vm2, %v12904_v3, %v13503_v46  ;;  %5233 = vst [vmem:[#allocation2 + $0x2e8] sm:$0xff] %v5229_v1 }
 0x7aa   : > { %v4435_v25 = vpack.i.b16 %v13506_v12, %v13506_v12  ;;  %v12900_v54 = vunpack.i.l.bf16 %v11875_v59  ;;  %v4434_v27 = vperm.slane %v4432_v19, 0  ;;  %v13507_v1 = vmov %v13501_v0 }
 0x7ab   : > { %v5004_v33 = vunpack.c.l.bf16 %v4981_v29  ;;  %v5005_v14 = vunpack.c.h.bf16 %v4981_v29  ;;  %v5008_v10 = vunpack.c.l.bf16 %v4983_v52  ;;  %v5009_v11 = vunpack.c.h.bf16 %v4983_v52 }
 0x7ac   : > { %v4437_v26 = vperm.slane %v4435_v25, 0  ;;  %v4418_v29 = vsel %vm13508_vm15, %v13507_v1, %v12899_v61  ;;  %v13509_v52 = vmov %v13503_v46  ;;  %v7292_v46 = vld [vmem:[#allocation2 + $0x160] sm:$0xf]  ;;  %v4452_v19 = vunpack.c.l.bf16 %v4434_v27 }
 0x7ad   : > { %v5016_v4 = vmul.f32 %v5012_v16, %v5004_v33  ;;  %v5017_v63 = vmul.f32 %v5013_v44, %v5005_v14  ;;  %v5020_v57 = vmul.f32 %v5012_v16, %v5008_v10  ;;  %v5021_v60 = vmul.f32 %v5013_v44, %v5009_v11  ;;  %v7696_v11 = vld [vmem:[#allocation2 + $0xac] sm:$0xf0] }
 0x7ae   : > { %v4417_v0 = vsel %vm13510_vm0, %v13509_v52, %v12900_v54  ;;  %v4423_v14 = vpack.c.bf16 %v4418_v29, %v4420_v6  ;;  %v7196_v10 = vld [vmem:[#allocation2 + $0xa0] sm:$0xf]  ;;  %v4453_v12 = vunpack.c.l.bf16 %v4437_v26  ;;  %v12901_v25 = vunpack.i.h.bf16 %v11882_v37  ;;  %v11941_v52 = vpop.permute.xlu0 %8362  ;;  %v13512_v29 = vld [vmem:[#allocation68_spill] sm:$0xff] }
 0x7af   : > { %v5024_v33 = vpack.c.bf16 %v5017_v63, %v5016_v4  ;;  %v5026_v16 = vpack.c.bf16 %v5021_v60, %v5020_v57  ;;  %v4421_v44 = vpack.c.bf16 %v4417_v0, %v4419_v36  ;;  %v12902_v1 = vunpack.i.l.bf16 %v11882_v37  ;;  %13511 = vst [vmem:[#allocation80_spill] sm:$0xff] %v11941_v52 }
 0x7b0   : > { %v4448_v39 = vunpack.c.l.bf16 %v4423_v14  ;;  %v4449_v61 = vunpack.c.h.bf16 %v4423_v14  ;;  %v7197_v4 = vor.u32 %v7696_v11, %v7196_v10  ;;  %v7293_v36 = vor.u32 %v7720_v42, %v7292_v46  ;;  %v7180_v10 = vld [vmem:[#allocation2 + $0x80] sm:$0xf]  ;;  %v7692_v46 = vld [vmem:[#allocation2 + $0x8c] sm:$0xf0]  ;;  %v11949_v11 = vpop.permute.xlu2 %8412 }
 0x7b1   : > { %5028 = vst [vmem:[#allocation2 + $0x260] sm:$0xff] %v5024_v33  ;;  %v4444_v28 = vunpack.c.l.bf16 %v4421_v44  ;;  %v4445_v53 = vunpack.c.h.bf16 %v4421_v44  ;;  %v4941_v0 = vpack.i.b16 %v13512_v29, %v13512_v29  ;;  %v13513_v33 = vld [vmem:[#allocation31_spill] sm:$0xff]  ;;  %v8345_v14 = vunpack.i.h.bf16 %v8343_v7 }
 0x7b2   : > { %5030 = vst [vmem:[#allocation2 + $0x270] sm:$0xff] %v5026_v16  ;;  %v4460_v27 = vmul.f32 %v4452_v19, %v4448_v39  ;;  %v4461_v26 = vmul.f32 %v4453_v12, %v4449_v61  ;;  %6077 = vmatpush.bf16.msrb.mxu1 %v7197_v4  ;;  %6093 = vmatpush.bf16.msrb.mxu2 %v7293_v36  ;;  %v8344_v16 = vunpack.i.l.bf16 %v8343_v7  ;;  %v8358_v4 = vpop.permute.xlu1 %8357  ;;  %v13526_v63 = vunpack.i.h.bf16 %v11839_v20 }
 0x7b3   : > { %v4456_v57 = vmul.f32 %v4452_v19, %v4444_v28  ;;  %v4457_v60 = vmul.f32 %v4453_v12, %v4445_v53  ;;  %v4944_v44 = vpack.i.b16 %v13513_v33, %v13513_v33  ;;  %v12905_v28 = vunpack.i.h.bf16 %v11941_v52 }
 0x7b4   : > { %v4466_v54 = vpack.c.bf16 %v4461_v26, %v4460_v27  ;;  %v4943_v61 = vperm.slane %v4941_v0, 0  ;;  %v13514_v12 = vunpack.i.h.bf16 %v11686_v18  ;;  %v11963_v7 = vsel %vm13517_vm9, %v8344_v16, %v12902_v1 }
 0x7b5   : > { %v4464_v42 = vpack.c.bf16 %v4457_v60, %v4456_v57  ;;  %v4946_v19 = vperm.slane %v4944_v44, 0  ;;  %13518 = vst [vmem:[#allocation7_spill] sm:$0xff] %v11963_v7  ;;  %v11969_v36 = vsel %vm13519_vm12, %v8345_v14, %v12901_v25  ;;  %v13521_v57 = vunpack.i.l.bf16 %v11686_v18  ;;  %v13524_v25 = vld [vmem:[#allocation26_spill] sm:$0xff] }
 0x7b6   : > { %v11957_v53 = vsel %vm13515_vm8, %v13514_v12, %v8345_v14  ;;  %13520 = vst [vmem:[#allocation8_spill] sm:$0xff] %v11969_v36  ;;  %v7181_v27 = vor.u32 %v7692_v46, %v7180_v10  ;;  %v4961_v29 = vunpack.c.l.bf16 %v4943_v61  ;;  %v13525_v10 = vld [vmem:[#allocation96_spill] sm:$0xff]  ;;  %vm13527_vm1 = vcmp.lt.s32.totalorder %v9252_v13, 9  ;;  %v11991_v12 = vpop.permute.xlu0 %8377 }
 0x7b7   : > { %13516 = vst [vmem:[#allocation6_spill] sm:$0xff] %v11957_v53  ;;  %v11975_v60 = vsel %vm13522_vm13, %v13521_v57, %v8344_v16  ;;  %v4962_v0 = vunpack.c.l.bf16 %v4946_v19  ;;  %v4932_v44 = vpack.c.bf16 %v11969_v36, %v11957_v53  ;;  %v4357_v16 = vpack.i.b16 %v13524_v25, %v13524_v25  ;;  %vm13528_vm2 = vmmov %vm13527_vm1 }
 0x7b8   : > { %4468 = vst [vmem:[#allocation2 + $0x140] sm:$0xff] %v4464_v42  ;;  %v4930_v33 = vpack.c.bf16 %v11963_v7, %v11975_v60  ;;  %v7420_v14 = vld [vmem:[#allocation2 + $0x260] sm:$0xf]  ;;  %6078 = vmatpush.bf16.msrb.mxu1 %v7181_v27  ;;  %v4360_v46 = vpack.i.b16 %v13525_v10, %v13525_v10  ;;  %vm13530_vm15 = vmmov %vm13527_vm1  ;;  %vm13535_vm8 = vcmp.lt.s32.totalorder %v9252_v13, 119  ;;  %vm13554_vm13 = vcmp.lt.s32.totalorder %v9252_v13, 55 }
 0x7b9   : > { %13523 = vst [vmem:[#allocation59_spill] sm:$0xff] %v11975_v60  ;;  %v7752_v42 = vld [vmem:[#allocation2 + $0x26c] sm:$0xf0]  ;;  %v4957_v57 = vunpack.c.l.bf16 %v4932_v44  ;;  %v4958_v1 = vunpack.c.h.bf16 %v4932_v44  ;;  %v4359_v23 = vperm.slane %v4357_v16, 0  ;;  %vm13532_vm0 = vmmov %vm13527_vm1 }
 0x7ba   : > { %4470 = vst [vmem:[#allocation2 + $0x150] sm:$0xff] %v4466_v54  ;;  %v8360_v54 = vunpack.i.h.bf16 %v8358_v4  ;;  %v4953_v61 = vunpack.c.l.bf16 %v4930_v33  ;;  %v4954_v19 = vunpack.c.h.bf16 %v4930_v33  ;;  %v7421_v26 = vor.u32 %v7752_v42, %v7420_v14  ;;  %vm13537_vm9 = vmmov %vm13535_vm8 }
 0x7bb   : > { %v4362_v3 = vperm.slane %v4360_v46, 0  ;;  %v4969_v31 = vmul.f32 %v4961_v29, %v4957_v57  ;;  %v4970_v24 = vmul.f32 %v4962_v0, %v4958_v1  ;;  %v4377_v10 = vunpack.c.l.bf16 %v4359_v23 }
 0x7bc   : > { %v4345_v27 = vsel %vm13527_vm1, %v13526_v63, %v8360_v54  ;;  %v4965_v6 = vmul.f32 %v4961_v29, %v4953_v61  ;;  %v4966_v25 = vmul.f32 %v4962_v0, %v4954_v19  ;;  %6107 = vmatpush.bf16.msra.mxu3 %v7421_v26  ;;  %v8359_v33 = vunpack.i.l.bf16 %v8358_v4  ;;  %v7095_v29 = vld [vmem:[%s12661_s5 + $0x60] sm:$0xf]  ;;  %vm13556_vm1 = vmmov %vm13554_vm13 }
 0x7bd   : > { %v4378_v39 = vunpack.c.l.bf16 %v4362_v3  ;;  %v4343_v44 = vsel %vm13528_vm2, %v8360_v54, %v12905_v28  ;;  %v4975_v42 = vpack.c.bf16 %v4970_v24, %v4969_v31  ;;  %v12906_v63 = vunpack.i.h.bf16 %v11991_v12  ;;  %5242 = vst [vmem:[#allocation1] ss:$9 sm:$0xff] %v7095_v29 }
 0x7be   : > { %v4973_v14 = vpack.c.bf16 %v4966_v25, %v4965_v6  ;;  %v4348_v16 = vpack.c.bf16 %v4343_v44, %v4345_v27  ;;  %v13529_v1 = vunpack.i.l.bf16 %v11941_v52  ;;  %v13531_v3 = vunpack.i.l.bf16 %v11839_v20  ;;  %v13533_v6 = vld [vmem:[#allocation90_spill] sm:$0xff]  ;;  %v12073_v18 = vpop.permute.xlu0 %8392 }
 0x7bf   : > { %v7276_v46 = vld [vmem:[#allocation2 + $0x140] sm:$0xf]  ;;  %v12907_v24 = vunpack.i.l.bf16 %v11991_v12  ;;  %v3832_v26 = vpack.i.b16 %v13533_v6, %v13533_v6  ;;  %v13534_v19 = vunpack.i.h.bf16 %v11873_v56  ;;  %4979 = vst [vmem:[#allocation2 + $0x250] sm:$0xff] %v4975_v42  ;;  %v13536_v27 = vunpack.i.l.bf16 %v11873_v56  ;;  %v13539_v42 = vld [vmem:[#allocation50_spill] sm:$0xff] }
 0x7c0   : > { %v4342_v23 = vsel %vm13530_vm15, %v8359_v33, %v13529_v1  ;;  %v4344_v4 = vsel %vm13532_vm0, %v13531_v3, %v8359_v33  ;;  %4977 = vst [vmem:[#allocation2 + $0x240] sm:$0xff] %v4973_v14  ;;  %v4373_v54 = vunpack.c.l.bf16 %v4348_v16  ;;  %v4374_v61 = vunpack.c.h.bf16 %v4348_v16  ;;  %v13538_v14 = vld [vmem:[#allocation49_spill] sm:$0xff] }
 0x7c1   : > { %v7716_v31 = vld [vmem:[#allocation2 + $0x14c] sm:$0xf0]  ;;  %v4346_v0 = vpack.c.bf16 %v4342_v23, %v4344_v4  ;;  %v12018_v57 = vsel %vm13535_vm8, %v12906_v63, %v13534_v19  ;;  %v12026_v25 = vsel %vm13537_vm9, %v12907_v24, %v13536_v27  ;;  %v3834_v44 = vperm.slane %v3832_v26, 0  ;;  %v8428_v27 = vpop.permute.xlu2 %8427  ;;  %v13541_v26 = vld [vmem:[#allocation85_spill] sm:$0xff]  ;;  %vm13587_vm9 = vmmov %vm13556_vm1 }
 0x7c2   : > { %v7277_v33 = vor.u32 %v7716_v31, %v7276_v46  ;;  %v3835_v16 = vpack.i.b16 %v13538_v14, %v13538_v14  ;;  %v4385_v23 = vmul.f32 %v4377_v10, %v4373_v54  ;;  %v4386_v3 = vmul.f32 %v4378_v39, %v4374_v61  ;;  %v13540_v19 = vld [vmem:[#allocation63_spill] sm:$0xff]  ;;  %v13542_v61 = vld [vmem:[#allocation82_spill] sm:$0xff] }
 0x7c3   : > { %v4369_v29 = vunpack.c.l.bf16 %v4346_v0  ;;  %v4370_v1 = vunpack.c.h.bf16 %v4346_v0  ;;  %v3838_v6 = vpack.i.b16 %v13539_v42, %v13539_v42  ;;  %v3841_v28 = vpack.i.b16 %v13540_v19, %v13540_v19 }
 0x7c4   : > { %6094 = vmatpush.bf16.msrb.mxu2 %v7277_v33  ;;  %v3837_v4 = vperm.slane %v3835_v16, 0  ;;  %v3852_v63 = vunpack.c.l.bf16 %v3834_v44  ;;  %v4391_v31 = vpack.c.bf16 %v4386_v3, %v4385_v23  ;;  %v5049_v14 = vpack.i.b16 %v13541_v26, %v13541_v26  ;;  %v7096_v16 = vld [vmem:[%s12661_s5 + $0x64] sm:$0xf]  ;;  %v12049_v26 = vld [vmem:[#allocation1 + $0x1b] sm:$0xff] }
 0x7c5   : > { %v4381_v24 = vmul.f32 %v4377_v10, %v4369_v29  ;;  %v4382_v46 = vmul.f32 %v4378_v39, %v4370_v1  ;;  %v3840_v52 = vperm.slane %v3838_v6, 0  ;;  %v3843_v0 = vperm.slane %v3841_v28, 0  ;;  %v12041_v39 = vld [vmem:[#allocation1] sm:$0xff]  ;;  %v12043_v29 = vld [vmem:[#allocation1 + $0x9] sm:$0xff]  ;;  %v12045_v1 = vld [vmem:[#allocation1 + $0x12] sm:$0xff] }
 0x7c6   : > { %v3853_v54 = vunpack.c.l.bf16 %v3837_v4  ;;  %v5052_v33 = vpack.i.b16 %v13542_v61, %v13542_v61  ;;  %4395 = vst [vmem:[#allocation2 + $0x130] sm:$0xff] %v4391_v31  ;;  %v5051_v44 = vperm.slane %v5049_v14, 0  ;;  %v8430_v19 = vunpack.i.h.bf16 %v8428_v27  ;;  %v13543_v4 = vld [vmem:[#allocation57_spill] sm:$0xff] }
 0x7c7   : > { %v4389_v42 = vpack.c.bf16 %v4382_v46, %v4381_v24  ;;  %v8429_v10 = vunpack.i.l.bf16 %v8428_v27  ;;  %v3854_v28 = vunpack.c.l.bf16 %v3840_v52  ;;  %v3855_v23 = vunpack.c.l.bf16 %v3843_v0  ;;  %5293 = vst [vmem:[#allocation1] ss:$9 sm:$0xff] %v7096_v16 }
 0x7c8   : > { %v5054_v3 = vperm.slane %v5052_v33, 0  ;;  %v4890_v6 = vpack.i.b16 %v13543_v4, %v13543_v4  ;;  %v5065_v24 = vunpack.c.l.bf16 %v5051_v44  ;;  %v13544_v46 = vunpack.i.l.bf16 %v11639_v62 }
 0x7c9   : > { %4393 = vst [vmem:[#allocation2 + $0x120] sm:$0xff] %v4389_v42  ;;  %v13545_v31 = vunpack.i.h.bf16 %v11639_v62  ;;  %v13546_v52 = vunpack.i.l.bf16 %v11550_v17  ;;  %v13547_v33 = vunpack.i.h.bf16 %v11550_v17  ;;  %vm13562_vm2 = vcmp.lt.s32.totalorder %v9252_v13, 57 }
 0x7ca   : > { %v3813_v27 = vsel %vm944_vm7, %v13544_v46, %v8429_v10  ;;  %v5066_v61 = vunpack.c.l.bf16 %v5054_v3  ;;  %vm13564_vm15 = vmmov %vm13562_vm2 }
 0x7cb   : > { %v3814_v14 = vsel %vm944_vm7, %v13545_v31, %v8430_v19  ;;  %v3819_v0 = vsel %vm944_vm7, %v8429_v10, %v13546_v52  ;;  %v3820_v42 = vsel %vm944_vm7, %v8430_v19, %v13547_v33  ;;  %v3822_v4 = vpack.c.bf16 %v3813_v27, %v11696_v5  ;;  %vm13550_vm7 = vmmov %vm13535_vm8 }
 0x7cc   : > { %v3821_v44 = vpack.c.bf16 %v11612_v2, %v3819_v0  ;;  %v3823_v62 = vpack.c.bf16 %v11601_v9, %v3820_v42  ;;  %v3824_v46 = vpack.c.bf16 %v3814_v14, %v11682_v55  ;;  %v5033_v31 = vpack.c.bf16 %v3819_v0, %v3813_v27  ;;  %v12071_v0 = vpop.permute.xlu1 %8372  ;;  %vm13552_vm12 = vmmov %vm13550_vm7 }
 0x7cd   : > { %v5035_v20 = vpack.c.bf16 %v3820_v42, %v3814_v14  ;;  %v3846_v10 = vunpack.c.l.bf16 %v3822_v4  ;;  %v3847_v3 = vunpack.c.h.bf16 %v3822_v4  ;;  %vm13566_vm0 = vmmov %vm13562_vm2 }
 0x7ce   : > { %v3844_v56 = vunpack.c.l.bf16 %v3821_v44  ;;  %v3845_v22 = vunpack.c.h.bf16 %v3821_v44  ;;  %v3848_v52 = vunpack.c.l.bf16 %v3823_v62  ;;  %v3849_v17 = vunpack.c.h.bf16 %v3823_v62  ;;  %vm13568_vm8 = vmmov %vm13566_vm0 }
 0x7cf   : > { %v3850_v36 = vunpack.c.l.bf16 %v3824_v46  ;;  %v3851_v60 = vunpack.c.h.bf16 %v3824_v46  ;;  %v3858_v2 = vmul.f32 %v3854_v28, %v3846_v10  ;;  %v3859_v53 = vmul.f32 %v3855_v23, %v3847_v3  ;;  %v7748_v10 = vld [vmem:[#allocation2 + $0x24c] sm:$0xf0] }
 0x7d0   : > { %v3856_v19 = vmul.f32 %v3852_v63, %v3844_v56  ;;  %v3857_v33 = vmul.f32 %v3853_v54, %v3845_v22  ;;  %v3860_v5 = vmul.f32 %v3852_v63, %v3848_v52  ;;  %v3861_v16 = vmul.f32 %v3853_v54, %v3849_v17  ;;  %v13548_v63 = vld [vmem:[#allocation58_spill] sm:$0xff] }
 0x7d1   : > { %v3862_v7 = vmul.f32 %v3854_v28, %v3850_v36  ;;  %v3863_v9 = vmul.f32 %v3855_v23, %v3851_v60  ;;  %v3865_v55 = vpack.c.bf16 %v3859_v53, %v3858_v2  ;;  %v5057_v27 = vunpack.c.l.bf16 %v5033_v31 }
 0x7d2   : > { %v3864_v37 = vpack.c.bf16 %v3857_v33, %v3856_v19  ;;  %v5058_v14 = vunpack.c.h.bf16 %v5033_v31  ;;  %v3866_v42 = vpack.c.bf16 %v3861_v16, %v3860_v5  ;;  %v5061_v4 = vunpack.c.l.bf16 %v5035_v20 }
 0x7d3   : > { %v3867_v44 = vpack.c.bf16 %v3863_v9, %v3862_v7  ;;  %v5062_v62 = vunpack.c.h.bf16 %v5035_v20  ;;  %v5069_v22 = vmul.f32 %v5065_v24, %v5057_v27  ;;  %v4892_v46 = vperm.slane %v4890_v6, 0  ;;  %3869 = vst [vmem:[#allocation2 + $0x48] sm:$0xff] %v3865_v55  ;;  %v13557_v55 = vld [vmem:[#allocation62_spill] sm:$0xff]  ;;  %v13558_v27 = vld [vmem:[#allocation77_spill] sm:$0xff] }
 0x7d4   : > { %3868 = vst [vmem:[#allocation2 + $0x40] sm:$0xff] %v3864_v37  ;;  %v5070_v56 = vmul.f32 %v5066_v61, %v5058_v14  ;;  %v4893_v36 = vpack.i.b16 %v13548_v63, %v13548_v63  ;;  %v5073_v60 = vmul.f32 %v5065_v24, %v5061_v4  ;;  %v8375_v54 = vunpack.i.h.bf16 %v12071_v0  ;;  %v7404_v37 = vld [vmem:[#allocation2 + $0x240] sm:$0xf] }
 0x7d5   : > { %v5074_v53 = vmul.f32 %v5066_v61, %v5062_v62  ;;  %v8374_v28 = vunpack.i.l.bf16 %v12071_v0  ;;  %3870 = vst [vmem:[#allocation2 + $0x50] sm:$0xff] %v3866_v42  ;;  %v4910_v20 = vunpack.c.l.bf16 %v4892_v46  ;;  %v8395_v31 = vunpack.i.h.bf16 %v12073_v18 }
 0x7d6   : > { %v5076_v7 = vpack.c.bf16 %v5070_v56, %v5069_v22  ;;  %v4895_v23 = vperm.slane %v4893_v36, 0  ;;  %3871 = vst [vmem:[#allocation2 + $0x58] sm:$0xff] %v3867_v44  ;;  %v13549_v3 = vunpack.i.l.bf16 %v11991_v12  ;;  %v13551_v61 = vunpack.i.h.bf16 %v11991_v12  ;;  %v12119_v36 = vld [vmem:[#allocation1] sm:$0xff] }
 0x7d7   : > { %v5078_v6 = vpack.c.bf16 %v5074_v53, %v5073_v60  ;;  %v8394_v17 = vunpack.i.l.bf16 %v12073_v18  ;;  %v13553_v5 = vunpack.i.h.bf16 %v11919_v41  ;;  %v13555_v16 = vunpack.i.l.bf16 %v11919_v41 }
 0x7d8   : > { %v4875_v24 = vsel %vm13550_vm7, %v8374_v28, %v13549_v3  ;;  %v4876_v52 = vsel %vm13552_vm12, %v8375_v54, %v13551_v61  ;;  %5080 = vst [vmem:[#allocation2 + $0x288] sm:$0xff] %v5076_v7  ;;  %v4911_v19 = vunpack.c.l.bf16 %v4895_v23  ;;  %v4141_v14 = vpack.i.b16 %v13558_v27, %v13558_v27  ;;  %v8443_v3 = vpop.permute.xlu2 %8442  ;;  %vm13600_vm7 = vmmov %vm13556_vm1 }
 0x7d9   : > { %v4879_v33 = vpack.c.bf16 %v12026_v25, %v4875_v24  ;;  %v4881_v2 = vpack.c.bf16 %v12018_v57, %v4876_v52  ;;  %v12101_v12 = vsel %vm13554_vm13, %v8395_v31, %v13553_v5  ;;  %5082 = vst [vmem:[#allocation2 + $0x298] sm:$0xff] %v5078_v6  ;;  %v12109_v9 = vsel %vm13556_vm1, %v8394_v17, %v13555_v16  ;;  %v12125_v6 = vld [vmem:[#allocation1 + $0x1b] sm:$0xff]  ;;  %vm13601_vm12 = vmmov %vm13556_vm1 }
 0x7da   : > { %v7405_v25 = vor.u32 %v7748_v10, %v7404_v37  ;;  %v4138_v57 = vpack.i.b16 %v13557_v55, %v13557_v55  ;;  %v4143_v56 = vperm.slane %v4141_v14, 0  ;;  %v5247_v46 = vpack.i.b16 %v12041_v39, %v12041_v39  ;;  %v12121_v37 = vld [vmem:[#allocation1 + $0x9] sm:$0xff]  ;;  %v12123_v10 = vld [vmem:[#allocation1 + $0x12] sm:$0xff]  ;;  %vm13602_vm13 = vmmov %vm13556_vm1 }
 0x7db   : > { %v4902_v42 = vunpack.c.l.bf16 %v4879_v33  ;;  %v4903_v44 = vunpack.c.h.bf16 %v4879_v33  ;;  %v4906_v4 = vunpack.c.l.bf16 %v4881_v2  ;;  %v4907_v62 = vunpack.c.h.bf16 %v4881_v2  ;;  %v13559_v14 = vld [vmem:[#allocation17_spill] sm:$0xff] }
 0x7dc   : > { %6108 = vmatpush.bf16.msra.mxu3 %v7405_v25  ;;  %v4140_v22 = vperm.slane %v4138_v57, 0  ;;  %v5250_v63 = vpack.i.b16 %v12043_v29, %v12043_v29  ;;  %v4155_v61 = vunpack.c.l.bf16 %v4143_v56  ;;  %v5249_v52 = vperm.slane %v5247_v46, 0 }
 0x7dd   : > { %v4914_v60 = vmul.f32 %v4910_v20, %v4902_v42  ;;  %v4915_v53 = vmul.f32 %v4911_v19, %v4903_v44  ;;  %v4918_v7 = vmul.f32 %v4910_v20, %v4906_v4  ;;  %v4919_v23 = vmul.f32 %v4911_v19, %v4907_v62  ;;  %v7097_v19 = vld [vmem:[%s12661_s5 + $0x68] sm:$0xf]  ;;  %v13560_v44 = vld [vmem:[#allocation18_spill] sm:$0xff] }
 0x7de   : > { %v4154_v24 = vunpack.c.l.bf16 %v4140_v22  ;;  %v5252_v39 = vperm.slane %v5250_v63, 0  ;;  %v5253_v29 = vpack.i.b16 %v12045_v1, %v12045_v1  ;;  %v5256_v20 = vpack.i.b16 %v12049_v26, %v12049_v26  ;;  %5344 = vst [vmem:[#allocation1] ss:$9 sm:$0xff] %v7097_v19 }
 0x7df   : > { %v4922_v33 = vpack.c.bf16 %v4915_v53, %v4914_v60  ;;  %v4924_v2 = vpack.c.bf16 %v4919_v23, %v4918_v7  ;;  %v5267_v5 = vunpack.c.l.bf16 %v5249_v52  ;;  %v8445_v25 = vunpack.i.h.bf16 %v8443_v3 }
 0x7e0   : > { %v5268_v16 = vunpack.c.l.bf16 %v5252_v39  ;;  %v8444_v55 = vunpack.i.l.bf16 %v8443_v3  ;;  %v5255_v57 = vperm.slane %v5253_v29, 0  ;;  %v5258_v27 = vperm.slane %v5256_v20, 0 }
 0x7e1   : > { %4926 = vst [vmem:[#allocation2 + $0x220] sm:$0xff] %v4922_v33  ;;  %v3907_v42 = vpack.i.b16 %v13559_v14, %v13559_v14  ;;  %v3910_v1 = vpack.i.b16 %v13560_v44, %v13560_v44  ;;  %v13561_v26 = vunpack.i.h.bf16 %v11449_v38  ;;  %v13563_v62 = vunpack.i.l.bf16 %v11716_v40 }
 0x7e2   : > { %4928 = vst [vmem:[#allocation2 + $0x230] sm:$0xff] %v4924_v2  ;;  %v13565_v56 = vunpack.i.h.bf16 %v11716_v40  ;;  %v13567_v63 = vunpack.i.l.bf16 %v11449_v38  ;;  %v5269_v53 = vunpack.c.l.bf16 %v5255_v57  ;;  %v5270_v7 = vunpack.c.l.bf16 %v5258_v27 }
 0x7e3   : > { %v4116_v4 = vsel %vm13562_vm2, %v13561_v26, %v8445_v25  ;;  %v4113_v22 = vsel %vm13564_vm15, %v8444_v55, %v13563_v62 }
 0x7e4   : > { %v4114_v46 = vsel %vm13566_vm0, %v8445_v25, %v13565_v56  ;;  %v4115_v60 = vsel %vm13568_vm8, %v13567_v63, %v8444_v55  ;;  %v5237_v39 = vpack.c.bf16 %v11749_v47, %v4113_v22  ;;  %v5238_v33 = vpack.c.bf16 %v4116_v4, %v11649_v30 }
 0x7e5   : > { %v4122_v23 = vpack.c.bf16 %v4113_v22, %v4115_v60  ;;  %v4124_v3 = vpack.c.bf16 %v4114_v46, %v4116_v4  ;;  %v5236_v52 = vpack.c.bf16 %v4115_v60, %v11660_v8  ;;  %v5239_v40 = vpack.c.bf16 %v11737_v21, %v4114_v46 }
 0x7e6   : > { %v5261_v14 = vunpack.c.l.bf16 %v5237_v39  ;;  %v5262_v55 = vunpack.c.h.bf16 %v5237_v39  ;;  %v5263_v62 = vunpack.c.l.bf16 %v5238_v33  ;;  %v5264_v8 = vunpack.c.h.bf16 %v5238_v33 }
 0x7e7   : > { %v4146_v2 = vunpack.c.l.bf16 %v4122_v23  ;;  %v4147_v29 = vunpack.c.h.bf16 %v4122_v23  ;;  %v4150_v20 = vunpack.c.l.bf16 %v4124_v3  ;;  %v4151_v19 = vunpack.c.h.bf16 %v4124_v3 }
 0x7e8   : > { %v5259_v38 = vunpack.c.l.bf16 %v5236_v52  ;;  %v5260_v25 = vunpack.c.h.bf16 %v5236_v52  ;;  %v5265_v56 = vunpack.c.l.bf16 %v5239_v40  ;;  %v5266_v47 = vunpack.c.h.bf16 %v5239_v40 }
 0x7e9   : > { %v4158_v57 = vmul.f32 %v4154_v24, %v4146_v2  ;;  %v4159_v27 = vmul.f32 %v4155_v61, %v4147_v29  ;;  %v4162_v44 = vmul.f32 %v4154_v24, %v4150_v20  ;;  %v4163_v26 = vmul.f32 %v4155_v61, %v4151_v19  ;;  %v8388_v29 = vpop.permute.xlu1 %8387  ;;  %v13569_v20 = vld [vmem:[#allocation19_spill] sm:$0xff]  ;;  %v5345_v19 = vld [vmem:[#allocation1] sm:$0xff] }
 0x7ea   : > { %v5271_v4 = vmul.f32 %v5267_v5, %v5259_v38  ;;  %v5272_v21 = vmul.f32 %v5268_v16, %v5260_v25  ;;  %v5273_v46 = vmul.f32 %v5269_v53, %v5261_v14  ;;  %v5274_v63 = vmul.f32 %v5270_v7, %v5262_v55  ;;  %v13570_v25 = vld [vmem:[#allocation20_spill] sm:$0xff]  ;;  %v13572_v55 = vld [vmem:[#allocation9_spill] sm:$0xff] }
 0x7eb   : > { %v4165_v22 = vpack.c.bf16 %v4159_v27, %v4158_v57  ;;  %v4167_v30 = vpack.c.bf16 %v4163_v26, %v4162_v44  ;;  %v5275_v60 = vmul.f32 %v5267_v5, %v5263_v62  ;;  %v5276_v23 = vmul.f32 %v5268_v16, %v5264_v8  ;;  %v13571_v14 = vld [vmem:[#allocation92_spill] sm:$0xff] }
 0x7ec   : > { %v5277_v3 = vmul.f32 %v5269_v53, %v5265_v56  ;;  %v5278_v52 = vmul.f32 %v5270_v7, %v5266_v47  ;;  %v5279_v39 = vpack.c.bf16 %v5272_v21, %v5271_v4  ;;  %v3909_v2 = vperm.slane %v3907_v42, 0  ;;  %v13573_v47 = vld [vmem:[#allocation64_spill] sm:$0xff]  ;;  %v13575_v4 = vld [vmem:[#allocation10_spill] sm:$0xff] }
 0x7ed   : > { %4169 = vst [vmem:[#allocation2 + $0xc8] sm:$0xff] %v4165_v22  ;;  %v5280_v24 = vpack.c.bf16 %v5274_v63, %v5273_v46  ;;  %v5281_v61 = vpack.c.bf16 %v5276_v23, %v5275_v60  ;;  %v3912_v33 = vperm.slane %v3910_v1, 0  ;;  %v3913_v40 = vpack.i.b16 %v13569_v20, %v13569_v20  ;;  %v13581_v20 = vld [vmem:[#allocation11_spill] sm:$0xff] }
 0x7ee   : > { %4171 = vst [vmem:[#allocation2 + $0xd8] sm:$0xff] %v4167_v30  ;;  %v5282_v38 = vpack.c.bf16 %v5278_v52, %v5277_v3  ;;  %v3916_v5 = vpack.i.b16 %v13570_v25, %v13570_v25  ;;  %v3927_v16 = vunpack.c.l.bf16 %v3909_v2  ;;  %v5100_v53 = vpack.i.b16 %v13571_v14, %v13571_v14 }
 0x7ef   : > { %5283 = vst [vmem:[#allocation2 + $0x300] sm:$0xff] %v5279_v39  ;;  %v3915_v42 = vperm.slane %v3913_v40, 0  ;;  %v3928_v7 = vunpack.c.l.bf16 %v3912_v33  ;;  %v5103_v57 = vpack.i.b16 %v13572_v55, %v13572_v55  ;;  %v8390_v1 = vunpack.i.h.bf16 %v8388_v29 }
 0x7f0   : > { %5284 = vst [vmem:[#allocation2 + $0x308] sm:$0xff] %v5280_v24  ;;  %v3918_v27 = vperm.slane %v3916_v5, 0  ;;  %v5102_v44 = vperm.slane %v5100_v53, 0  ;;  %v8389_v26 = vunpack.i.l.bf16 %v8388_v29  ;;  %v5349_v62 = vpack.i.b16 %v5345_v19, %v5345_v19  ;;  %v13579_v29 = vld [vmem:[#allocation12_spill] sm:$0xff]  ;;  %v13582_v19 = vld [vmem:[#allocation65_spill] sm:$0xff] }
 0x7f1   : > { %5285 = vst [vmem:[#allocation2 + $0x310] sm:$0xff] %v5281_v61  ;;  %v3929_v8 = vunpack.c.l.bf16 %v3915_v42  ;;  %v5105_v56 = vperm.slane %v5103_v57, 0  ;;  %v13574_v22 = vunpack.i.h.bf16 %v13573_v47  ;;  %v13576_v21 = vunpack.i.h.bf16 %v13575_v4  ;;  %v13580_v61 = vld [vmem:[#allocation93_spill] sm:$0xff] }
 0x7f2   : > { %5286 = vst [vmem:[#allocation2 + $0x318] sm:$0xff] %v5282_v38  ;;  %v3930_v63 = vunpack.c.l.bf16 %v3918_v27  ;;  %v5116_v60 = vunpack.c.l.bf16 %v5102_v44  ;;  %v13577_v23 = vunpack.i.l.bf16 %v13573_v47  ;;  %v13578_v52 = vunpack.i.l.bf16 %v13575_v4 }
 0x7f3   : > { %v3889_v30 = vsel %vm1021_vm4, %v13574_v22, %v8390_v1  ;;  %v3895_v46 = vsel %vm1021_vm4, %v8390_v1, %v13576_v21  ;;  %v5117_v2 = vunpack.c.l.bf16 %v5105_v56  ;;  %v12186_v14 = vperm.slane %v5349_v62, 0 }
 0x7f4   : > { %v3888_v3 = vsel %vm1021_vm4, %v13577_v23, %v8389_v26  ;;  %v3894_v39 = vsel %vm1021_vm4, %v8389_v26, %v13578_v52  ;;  %v3898_v40 = vpack.c.bf16 %v13581_v20, %v3895_v46  ;;  %v3899_v38 = vpack.c.bf16 %v3889_v30, %v13582_v19  ;;  %v7260_v19 = vld [vmem:[#allocation2 + $0x120] sm:$0xf]  ;;  %vm13585_vm4 = vmmov %vm13556_vm1 }
 0x7f5   : > { %v3896_v24 = vpack.c.bf16 %v13579_v29, %v3894_v39  ;;  %v3897_v33 = vpack.c.bf16 %v3888_v3, %v13580_v61  ;;  %v5084_v25 = vpack.c.bf16 %v3894_v39, %v3888_v3  ;;  %v5086_v5 = vpack.c.bf16 %v3895_v46, %v3889_v30  ;;  %v5346_v3 = vld [vmem:[#allocation1 + $0x9] sm:$0xff] }
 0x7f6   : > { %v3923_v1 = vunpack.c.l.bf16 %v3898_v40  ;;  %v3924_v27 = vunpack.c.h.bf16 %v3898_v40  ;;  %v3925_v44 = vunpack.c.l.bf16 %v3899_v38  ;;  %v3926_v26 = vunpack.c.h.bf16 %v3899_v38  ;;  %v7712_v38 = vld [vmem:[#allocation2 + $0x12c] sm:$0xf0] }
 0x7f7   : > { %v3919_v53 = vunpack.c.l.bf16 %v3896_v24  ;;  %v3920_v42 = vunpack.c.h.bf16 %v3896_v24  ;;  %v3921_v55 = vunpack.c.l.bf16 %v3897_v33  ;;  %v3922_v57 = vunpack.c.h.bf16 %v3897_v33  ;;  %v12188_v24 = vpop.permute.xlu0 %8407 }
 0x7f8   : > { %v3935_v21 = vmul.f32 %v3927_v16, %v3923_v1  ;;  %v3936_v23 = vmul.f32 %v3928_v7, %v3924_v27  ;;  %v3937_v52 = vmul.f32 %v3929_v8, %v3925_v44  ;;  %v3938_v29 = vmul.f32 %v3930_v63, %v3926_v26  ;;  %v8458_v26 = vpop.permute.xlu2 %8457 }
 0x7f9   : > { %v3931_v56 = vmul.f32 %v3927_v16, %v3919_v53  ;;  %v3932_v47 = vmul.f32 %v3928_v7, %v3920_v42  ;;  %v3933_v22 = vmul.f32 %v3929_v8, %v3921_v55  ;;  %v3934_v4 = vmul.f32 %v3930_v63, %v3922_v57 }
 0x7fa   : > { %v5108_v46 = vunpack.c.l.bf16 %v5084_v25  ;;  %v5109_v39 = vunpack.c.h.bf16 %v5084_v25  ;;  %v3941_v61 = vpack.c.bf16 %v3936_v23, %v3935_v21  ;;  %v3942_v33 = vpack.c.bf16 %v3938_v29, %v3937_v52 }
 0x7fb   : > { %v3939_v30 = vpack.c.bf16 %v3932_v47, %v3931_v56  ;;  %v3940_v62 = vpack.c.bf16 %v3934_v4, %v3933_v22  ;;  %v5112_v20 = vunpack.c.l.bf16 %v5086_v5  ;;  %v5113_v40 = vunpack.c.h.bf16 %v5086_v5  ;;  %v13583_v5 = vld [vmem:[#allocation109_spill] sm:$0xff]  ;;  %v13588_v22 = vld [vmem:[#allocation106_spill] sm:$0xff] }
 0x7fc   : > { %v5120_v53 = vmul.f32 %v5116_v60, %v5108_v46  ;;  %v5121_v42 = vmul.f32 %v5117_v2, %v5109_v39  ;;  %v5352_v16 = vpack.i.b16 %v5346_v3, %v5346_v3  ;;  %v5369_v7 = vunpack.c.l.bf16 %v12186_v14  ;;  %3945 = vst [vmem:[#allocation2 + $0x70] sm:$0xff] %v3941_v61 }
 0x7fd   : > { %3943 = vst [vmem:[#allocation2 + $0x60] sm:$0xff] %v3939_v30  ;;  %v5124_v8 = vmul.f32 %v5116_v60, %v5112_v20  ;;  %v5125_v63 = vmul.f32 %v5117_v2, %v5113_v40  ;;  %v8410_v55 = vunpack.i.h.bf16 %v12188_v24  ;;  %v8409_v25 = vunpack.i.l.bf16 %v12188_v24 }
 0x7fe   : > { %3944 = vst [vmem:[#allocation2 + $0x68] sm:$0xff] %v3940_v62  ;;  %v5127_v57 = vpack.c.bf16 %v5121_v42, %v5120_v53  ;;  %v5354_v1 = vperm.slane %v5352_v16, 0  ;;  %v7261_v27 = vor.u32 %v7712_v38, %v7260_v19  ;;  %v4671_v44 = vpack.i.b16 %v13583_v5, %v13583_v5  ;;  %v13589_v62 = vld [vmem:[#allocation102_spill] sm:$0xff] }
 0x7ff   : > { %3946 = vst [vmem:[#allocation2 + $0x78] sm:$0xff] %v3942_v33  ;;  %v5129_v56 = vpack.c.bf16 %v5125_v63, %v5124_v8  ;;  %v13584_v14 = vunpack.i.h.bf16 %v11919_v41  ;;  %v13586_v2 = vunpack.i.l.bf16 %v11919_v41  ;;  %v4674_v4 = vpack.i.b16 %v13588_v22, %v13588_v22  ;;  %v13590_v38 = vld [vmem:[#allocation30_spill] sm:$0xff]  ;;  %v13596_v22 = vld [vmem:[#allocation79_spill] sm:$0xff] }
 0x800   : > { %5131 = vst [vmem:[#allocation2 + $0x2a8] sm:$0xff] %v5127_v57  ;;  %v5370_v21 = vunpack.c.l.bf16 %v5354_v1  ;;  %6095 = vmatpush.bf16.msrb.mxu2 %v7261_v27  ;;  %v4673_v29 = vperm.slane %v4671_v44, 0  ;;  %v8460_v41 = vunpack.i.h.bf16 %v8458_v26  ;;  %v8459_v30 = vunpack.i.l.bf16 %v8458_v26  ;;  %v13593_v5 = vld [vmem:[#allocation70_spill] sm:$0xff] }
 0x801   : > { %v12201_v60 = vsel %vm13585_vm4, %v13584_v14, %v8410_v55  ;;  %v12209_v47 = vsel %vm13587_vm9, %v13586_v2, %v8409_v25  ;;  %5133 = vst [vmem:[#allocation2 + $0x2b8] sm:$0xff] %v5129_v56  ;;  %v4676_v3 = vperm.slane %v4674_v4, 0  ;;  %v4282_v46 = vpack.i.b16 %v13589_v62, %v13589_v62  ;;  %v13597_v62 = vld [vmem:[#allocation67_spill] sm:$0xff] }
 0x802   : > { %v5338_v23 = vpack.c.bf16 %v12209_v47, %v12109_v9  ;;  %v5340_v52 = vpack.c.bf16 %v12201_v60, %v12101_v12  ;;  %v4687_v40 = vunpack.c.l.bf16 %v4673_v29  ;;  %v13591_v53 = vunpack.i.l.bf16 %v13590_v38 }
 0x803   : > { %v4688_v19 = vunpack.c.l.bf16 %v4676_v3  ;;  %v13592_v16 = vunpack.i.h.bf16 %v13590_v38  ;;  %v13594_v44 = vunpack.i.l.bf16 %v13593_v5  ;;  %v13595_v56 = vunpack.i.h.bf16 %v13593_v5 }
 0x804   : > { %v5361_v39 = vunpack.c.l.bf16 %v5338_v23  ;;  %v5362_v61 = vunpack.c.h.bf16 %v5338_v23  ;;  %v5365_v33 = vunpack.c.l.bf16 %v5340_v52  ;;  %v5366_v20 = vunpack.c.h.bf16 %v5340_v52 }
 0x805   : > { %v4646_v42 = vsel %vm1799_vm6, %v13591_v53, %v8459_v30  ;;  %v4647_v8 = vsel %vm1799_vm6, %v13592_v16, %v8460_v41  ;;  %v4652_v26 = vsel %vm1799_vm6, %v8459_v30, %v13594_v44  ;;  %v4653_v14 = vsel %vm1799_vm6, %v8460_v41, %v13595_v56  ;;  %v5348_v53 = vld [vmem:[#allocation1 + $0x1b] sm:$0xff]  ;;  %vm13599_vm6 = vmmov %vm13556_vm1 }
 0x806   : > { %v5373_v63 = vmul.f32 %v5369_v7, %v5361_v39  ;;  %v5374_v57 = vmul.f32 %v5370_v21, %v5362_v61  ;;  %v5377_v1 = vmul.f32 %v5369_v7, %v5365_v33  ;;  %v5378_v27 = vmul.f32 %v5370_v21, %v5366_v20  ;;  %v5347_v21 = vld [vmem:[#allocation1 + $0x12] sm:$0xff]  ;;  %v13598_v39 = vld [vmem:[#allocation25_spill] sm:$0xff] }
 0x807   : > { %v12235_v2 = vperm.slane %v4282_v46, 0  ;;  %v4285_v4 = vpack.i.b16 %v13596_v22, %v13596_v22  ;;  %v4655_v29 = vpack.c.bf16 %v4652_v26, %v4646_v42  ;;  %v4657_v7 = vpack.c.bf16 %v4653_v14, %v4647_v8  ;;  %v12247_v26 = vpop.permute.xlu0 %8422 }
 0x808   : > { %v5381_v23 = vpack.c.bf16 %v5374_v57, %v5373_v63  ;;  %v5383_v52 = vpack.c.bf16 %v5378_v27, %v5377_v1  ;;  %v4288_v30 = vpack.i.b16 %v13597_v62, %v13597_v62  ;;  %v4291_v61 = vpack.i.b16 %v13598_v39, %v13598_v39  ;;  %v8403_v57 = vpop.permute.xlu1 %8402  ;;  %v7744_v39 = vld [vmem:[#allocation2 + $0x22c] sm:$0xf0] }
 0x809   : > { %v12239_v3 = vperm.slane %v4285_v4, 0  ;;  %v4302_v41 = vunpack.c.l.bf16 %v12235_v2  ;;  %v4679_v46 = vunpack.c.l.bf16 %v4655_v29  ;;  %v4680_v33 = vunpack.c.h.bf16 %v4655_v29 }
 0x80a   : > { %5385 = vst [vmem:[#allocation2 + $0x340] sm:$0xff] %v5381_v23  ;;  %v4683_v20 = vunpack.c.l.bf16 %v4657_v7  ;;  %v4684_v38 = vunpack.c.h.bf16 %v4657_v7  ;;  %v4290_v42 = vperm.slane %v4288_v30, 0  ;;  %v4293_v16 = vperm.slane %v4291_v61, 0  ;;  %v7388_v30 = vld [vmem:[#allocation2 + $0x220] sm:$0xf] }
 0x80b   : > { %5387 = vst [vmem:[#allocation2 + $0x350] sm:$0xff] %v5383_v52  ;;  %v4303_v8 = vunpack.c.l.bf16 %v12239_v3  ;;  %v5355_v63 = vpack.i.b16 %v5347_v21, %v5347_v21  ;;  %v4691_v1 = vmul.f32 %v4687_v40, %v4679_v46  ;;  %v4692_v27 = vmul.f32 %v4688_v19, %v4680_v33 }
 0x80c   : > { %v4695_v5 = vmul.f32 %v4687_v40, %v4683_v20  ;;  %v4696_v44 = vmul.f32 %v4688_v19, %v4684_v38  ;;  %v4304_v56 = vunpack.c.l.bf16 %v4290_v42  ;;  %v4305_v14 = vunpack.c.l.bf16 %v4293_v16 }
 0x80d   : > { %v5357_v2 = vperm.slane %v5355_v63, 0  ;;  %v5358_v22 = vpack.i.b16 %v5348_v53, %v5348_v53  ;;  %v4698_v4 = vpack.c.bf16 %v4692_v27, %v4691_v1  ;;  %v8405_v29 = vunpack.i.h.bf16 %v8403_v57 }
 0x80e   : > { %v4700_v23 = vpack.c.bf16 %v4696_v44, %v4695_v5  ;;  %v8404_v52 = vunpack.i.l.bf16 %v8403_v57  ;;  %v8425_v3 = vunpack.i.h.bf16 %v12247_v26  ;;  %v8424_v21 = vunpack.i.l.bf16 %v12247_v26 }
 0x80f   : > { %v5360_v7 = vperm.slane %v5358_v22, 0  ;;  %v5371_v62 = vunpack.c.l.bf16 %v5357_v2  ;;  %4702 = vst [vmem:[#allocation2 + $0x1c8] sm:$0xff] %v4698_v4  ;;  %v4264_v19 = vsel %vm13600_vm7, %v8410_v55, %v8405_v29  ;;  %v4270_v46 = vsel %vm13602_vm13, %v8405_v29, %v8395_v31 }
 0x810   : > { %v4263_v40 = vsel %vm13599_vm6, %v8409_v25, %v8404_v52  ;;  %v4269_v61 = vsel %vm13601_vm12, %v8404_v52, %v8394_v17  ;;  %4704 = vst [vmem:[#allocation2 + $0x1d8] sm:$0xff] %v4700_v23  ;;  %v4273_v24 = vpack.c.bf16 %v12101_v12, %v4270_v46  ;;  %v4274_v55 = vpack.c.bf16 %v4264_v19, %v12201_v60 }
 0x811   : > { %v5372_v33 = vunpack.c.l.bf16 %v5360_v7  ;;  %v4271_v20 = vpack.c.bf16 %v12109_v9, %v4269_v61  ;;  %v4272_v25 = vpack.c.bf16 %v4263_v40, %v12209_v47  ;;  %v5339_v38 = vpack.c.bf16 %v4269_v61, %v4263_v40  ;;  %v8473_v7 = vpop.permute.xlu2 %8472 }
 0x812   : > { %v5341_v53 = vpack.c.bf16 %v4270_v46, %v4264_v19  ;;  %v7389_v42 = vor.u32 %v7744_v39, %v7388_v30  ;;  %v4298_v57 = vunpack.c.l.bf16 %v4273_v24  ;;  %v4299_v1 = vunpack.c.h.bf16 %v4273_v24  ;;  %v13604_v24 = vld [vmem:[#allocation86_spill] sm:$0xff] }
 0x813   : > { %v4294_v16 = vunpack.c.l.bf16 %v4271_v20  ;;  %v4295_v17 = vunpack.c.h.bf16 %v4271_v20  ;;  %v4296_v63 = vunpack.c.l.bf16 %v4272_v25  ;;  %v4297_v18 = vunpack.c.h.bf16 %v4272_v25  ;;  %v13603_v20 = vld [vmem:[#allocation104_spill] sm:$0xff] }
 0x814   : > { %v4300_v31 = vunpack.c.l.bf16 %v4274_v55  ;;  %v4301_v27 = vunpack.c.h.bf16 %v4274_v55  ;;  %6109 = vmatpush.bf16.msra.mxu3 %v7389_v42  ;;  %v4310_v2 = vmul.f32 %v4302_v41, %v4298_v57  ;;  %v4311_v12 = vmul.f32 %v4303_v8, %v4299_v1 }
 0x815   : > { %v4306_v5 = vmul.f32 %v4302_v41, %v4294_v16  ;;  %v4307_v9 = vmul.f32 %v4303_v8, %v4295_v17  ;;  %v4308_v44 = vmul.f32 %v4304_v56, %v4296_v63  ;;  %v4309_v47 = vmul.f32 %v4305_v14, %v4297_v18  ;;  %v13605_v17 = vld [vmem:[#allocation107_spill] sm:$0xff]  ;;  %v8418_v63 = vpop.permute.xlu1 %8417 }
 0x816   : > { %v4312_v22 = vmul.f32 %v4304_v56, %v4300_v31  ;;  %v4313_v60 = vmul.f32 %v4305_v14, %v4301_v27  ;;  %v5363_v29 = vunpack.c.l.bf16 %v5339_v38  ;;  %v5364_v52 = vunpack.c.h.bf16 %v5339_v38 }
 0x817   : > { %v4314_v4 = vpack.c.bf16 %v4307_v9, %v4306_v5  ;;  %v4315_v23 = vpack.c.bf16 %v4309_v47, %v4308_v44  ;;  %v4316_v30 = vpack.c.bf16 %v4311_v12, %v4310_v2  ;;  %v5367_v40 = vunpack.c.l.bf16 %v5341_v53 }
 0x818   : > { %v4317_v39 = vpack.c.bf16 %v4313_v60, %v4312_v22  ;;  %v5368_v19 = vunpack.c.h.bf16 %v5341_v53  ;;  %v5375_v61 = vmul.f32 %v5371_v62, %v5363_v29  ;;  %v5376_v46 = vmul.f32 %v5372_v33, %v5364_v52  ;;  %v13614_v22 = vld [vmem:[#allocation61_spill] sm:$0xff] }
 0x819   : > { %4318 = vst [vmem:[#allocation2 + $0x100] sm:$0xff] %v4314_v4  ;;  %v4438_v25 = vpack.i.b16 %v13603_v20, %v13603_v20  ;;  %v4441_v41 = vpack.i.b16 %v13604_v24, %v13604_v24  ;;  %v5379_v8 = vmul.f32 %v5371_v62, %v5367_v40  ;;  %v8475_v14 = vunpack.i.h.bf16 %v8473_v7 }
 0x81a   : > { %4319 = vst [vmem:[#allocation2 + $0x108] sm:$0xff] %v4315_v23  ;;  %v5380_v56 = vmul.f32 %v5372_v33, %v5368_v19  ;;  %v8474_v55 = vunpack.i.l.bf16 %v8473_v7  ;;  %v5382_v38 = vpack.c.bf16 %v5376_v46, %v5375_v61  ;;  %v4815_v53 = vpack.i.b16 %v13605_v17, %v13605_v17  ;;  %v13615_v7 = vld [vmem:[#allocation22_spill] sm:$0xff] }
 0x81b   : > { %4320 = vst [vmem:[#allocation2 + $0x110] sm:$0xff] %v4316_v30  ;;  %v4440_v42 = vperm.slane %v4438_v25, 0  ;;  %v4443_v16 = vperm.slane %v4441_v41, 0  ;;  %v13606_v57 = vunpack.i.l.bf16 %v11869_v32  ;;  %vm13607_vm1 = vcmp.lt.s32.totalorder %v9252_v13, 8 }
 0x81c   : > { %4321 = vst [vmem:[#allocation2 + $0x118] sm:$0xff] %v4317_v39  ;;  %v5384_v18 = vpack.c.bf16 %v5380_v56, %v5379_v8  ;;  %v13608_v62 = vunpack.i.h.bf16 %v11869_v32  ;;  %vm13609_vm2 = vmmov %vm13607_vm1  ;;  %v13610_v31 = vunpack.i.l.bf16 %v11875_v59  ;;  %v13612_v44 = vunpack.i.h.bf16 %v11875_v59 }
 0x81d   : > { %v4413_v1 = vsel %vm13607_vm1, %v8474_v55, %v13606_v57  ;;  %vm13611_vm15 = vmmov %vm13607_vm1  ;;  %5386 = vst [vmem:[#allocation2 + $0x348] sm:$0xff] %v5382_v38  ;;  %v4454_v5 = vunpack.c.l.bf16 %v4440_v42  ;;  %v4455_v9 = vunpack.c.l.bf16 %v4443_v16  ;;  %v4817_v32 = vperm.slane %v4815_v53, 0 }
 0x81e   : > { %v4414_v33 = vsel %vm13609_vm2, %v8475_v14, %v13608_v62  ;;  %v4415_v27 = vsel %vm13611_vm15, %v13610_v31, %v8474_v55  ;;  %vm13613_vm0 = vmmov %vm13607_vm1  ;;  %5388 = vst [vmem:[#allocation2 + $0x358] sm:$0xff] %v5384_v18  ;;  %v4818_v60 = vpack.i.b16 %v13614_v22, %v13614_v22  ;;  %v8420_v4 = vunpack.i.h.bf16 %v8418_v63  ;;  %v13622_v18 = vld [vmem:[#allocation23_spill] sm:$0xff] }
 0x81f   : > { %v4416_v47 = vsel %vm13613_vm0, %v13612_v44, %v8475_v14  ;;  %v4422_v2 = vpack.c.bf16 %v4413_v1, %v4415_v27  ;;  %v8419_v52 = vunpack.i.l.bf16 %v8418_v63  ;;  %v3757_v30 = vpack.i.b16 %v13615_v7, %v13615_v7  ;;  %v13623_v1 = vld [vmem:[#allocation24_spill] sm:$0xff]  ;;  %v13624_v27 = vld [vmem:[#allocation89_spill] sm:$0xff]  ;;  %v7688_v7 = vld [vmem:[#allocation2 + $0x6c] sm:$0xf0] }
 0x820   : > { %v4424_v12 = vpack.c.bf16 %v4414_v33, %v4416_v47  ;;  %v4820_v59 = vperm.slane %v4818_v60, 0  ;;  %v4835_v19 = vunpack.c.l.bf16 %v4817_v32  ;;  %v13616_v20 = vunpack.i.h.bf16 %v11949_v11 }
 0x821   : > { %v4446_v23 = vunpack.c.l.bf16 %v4422_v2  ;;  %v4447_v29 = vunpack.c.h.bf16 %v4422_v2  ;;  %vm13617_vm8 = vcmp.lt.s32.totalorder %v9252_v13, 120  ;;  %v13620_v38 = vunpack.i.l.bf16 %v11949_v11 }
 0x822   : > { %v4450_v39 = vunpack.c.l.bf16 %v4424_v12  ;;  %v4451_v40 = vunpack.c.h.bf16 %v4424_v12  ;;  %v4801_v25 = vsel %vm13617_vm8, %v13616_v20, %v8420_v4  ;;  %vm13618_vm4 = vmmov %vm13617_vm8  ;;  %v4836_v56 = vunpack.c.l.bf16 %v4820_v59 }
 0x823   : > { %v4458_v61 = vmul.f32 %v4454_v5, %v4446_v23  ;;  %v4459_v46 = vmul.f32 %v4455_v9, %v4447_v29  ;;  %v4798_v24 = vsel %vm13618_vm4, %v8419_v52, %v8424_v21  ;;  %vm13619_vm9 = vmmov %vm13618_vm4  ;;  %v12313_v17 = vperm.slane %v3757_v30, 0  ;;  %v8438_v29 = vpop.permute.xlu0 %8437 }
 0x824   : > { %v4462_v41 = vmul.f32 %v4454_v5, %v4450_v39  ;;  %v4463_v8 = vmul.f32 %v4455_v9, %v4451_v40  ;;  %v4799_v14 = vsel %vm13619_vm9, %v8420_v4, %v8425_v3  ;;  %vm13621_vm6 = vmmov %vm13618_vm4  ;;  %v3760_v57 = vpack.i.b16 %v13622_v18, %v13622_v18  ;;  %v13625_v4 = vld [vmem:[#allocation16_spill] sm:$0xff] }
 0x825   : > { %v4465_v55 = vpack.c.bf16 %v4459_v46, %v4458_v61  ;;  %v4800_v42 = vsel %vm13621_vm6, %v13620_v38, %v8419_v52  ;;  %v4806_v16 = vpack.c.bf16 %v4799_v14, %v4801_v25  ;;  %v3763_v62 = vpack.i.b16 %v13623_v1, %v13623_v1  ;;  %v7164_v52 = vld [vmem:[#allocation2 + $0x60] sm:$0xf]  ;;  %v7780_v46 = vld [vmem:[#allocation2 + $0x34c] sm:$0xf0]  ;;  %vm13636_vm7 = vmmov %vm13618_vm4 }
 0x826   : > { %v4467_v53 = vpack.c.bf16 %v4463_v8, %v4462_v41  ;;  %v4804_v63 = vpack.c.bf16 %v4798_v24, %v4800_v42  ;;  %v3766_v5 = vpack.i.b16 %v13624_v27, %v13624_v27  ;;  %v3777_v9 = vunpack.c.l.bf16 %v12313_v17  ;;  %v7532_v61 = vld [vmem:[#allocation2 + $0x340] sm:$0xf]  ;;  %vm13638_vm12 = vmmov %vm13618_vm4 }
 0x827   : > { %4469 = vst [vmem:[#allocation2 + $0x148] sm:$0xff] %v4465_v55  ;;  %v4831_v33 = vunpack.c.l.bf16 %v4806_v16  ;;  %v4832_v31 = vunpack.c.h.bf16 %v4806_v16  ;;  %v3762_v2 = vperm.slane %v3760_v57, 0  ;;  %v3765_v12 = vperm.slane %v3763_v62, 0  ;;  %v13626_v41 = vld [vmem:[#allocation69_spill] sm:$0xff]  ;;  %vm13640_vm13 = vmmov %vm13618_vm4 }
 0x828   : > { %4471 = vst [vmem:[#allocation2 + $0x158] sm:$0xff] %v4467_v53  ;;  %v4827_v44 = vunpack.c.l.bf16 %v4804_v63  ;;  %v4828_v47 = vunpack.c.h.bf16 %v4804_v63  ;;  %v3768_v60 = vperm.slane %v3766_v5, 0  ;;  %v4998_v23 = vpack.i.b16 %v13625_v4, %v13625_v4 }
 0x829   : > { %v4843_v32 = vmul.f32 %v4835_v19, %v4831_v33  ;;  %v4844_v22 = vmul.f32 %v4836_v56, %v4832_v31  ;;  %v3778_v40 = vunpack.c.l.bf16 %v3762_v2  ;;  %v3779_v59 = vunpack.c.l.bf16 %v3765_v12 }
 0x82a   : > { %v4839_v30 = vmul.f32 %v4835_v19, %v4827_v44  ;;  %v4840_v39 = vmul.f32 %v4836_v56, %v4828_v47  ;;  %v3780_v25 = vunpack.c.l.bf16 %v3768_v60  ;;  %v5000_v24 = vperm.slane %v4998_v23, 0  ;;  %v13627_v19 = vld [vmem:[#allocation34_spill] sm:$0xff] }
 0x82b   : > { %v4849_v20 = vpack.c.bf16 %v4844_v22, %v4843_v32  ;;  %v5001_v8 = vpack.i.b16 %v13626_v41, %v13626_v41  ;;  %v8440_v55 = vunpack.i.h.bf16 %v8438_v29  ;;  %v8439_v38 = vunpack.i.l.bf16 %v8438_v29 }
 0x82c   : > { %v4847_v14 = vpack.c.bf16 %v4840_v39, %v4839_v30  ;;  %v7165_v42 = vor.u32 %v7688_v7, %v7164_v52  ;;  %v5014_v17 = vunpack.c.l.bf16 %v5000_v24  ;;  %v7533_v53 = vor.u32 %v7780_v46, %v7532_v61 }
 0x82d   : > { %4853 = vst [vmem:[#allocation2 + $0x210] sm:$0xff] %v4849_v20  ;;  %v5003_v16 = vperm.slane %v5001_v8, 0  ;;  %v4821_v56 = vpack.i.b16 %v13627_v19, %v13627_v19  ;;  %v13628_v63 = vunpack.i.h.bf16 %v11845_v34  ;;  %v13629_v57 = vunpack.i.l.bf16 %v11845_v34 }
 0x82e   : > { %4851 = vst [vmem:[#allocation2 + $0x200] sm:$0xff] %v4847_v14  ;;  %v13630_v62 = vunpack.i.l.bf16 %v11739_v58  ;;  %v13631_v31 = vunpack.i.h.bf16 %v11739_v58  ;;  %6079 = vmatpush.bf16.msrb.mxu1 %v7165_v42  ;;  %6122 = vmatpush.bf16.msra.mxu0 %v7533_v53  ;;  %vm13705_vm8 = vcmp.lt.s32.totalorder %v9252_v13, 9 }
 0x82f   : > { %v3739_v18 = vsel %vm867_vm10, %v13628_v63, %v8440_v55  ;;  %v3738_v1 = vsel %vm867_vm10, %v13629_v57, %v8439_v38  ;;  %v5015_v5 = vunpack.c.l.bf16 %v5003_v16  ;;  %v12348_v22 = vperm.slane %v4821_v56, 0  ;;  %v13632_v63 = vld [vmem:[#allocation35_spill] sm:$0xff] }
 0x830   : > { %v3744_v33 = vsel %vm867_vm10, %v8439_v38, %v13630_v62  ;;  %v3745_v27 = vsel %vm867_vm10, %v8440_v55, %v13631_v31  ;;  %v3749_v44 = vpack.c.bf16 %v3739_v18, %v11890_v51  ;;  %v3747_v34 = vpack.c.bf16 %v3738_v1, %v11898_v43  ;;  %v8488_v55 = vpop.permute.xlu2 %8487  ;;  %vm13635_vm10 = vmmov %vm13618_vm4 }
 0x831   : > { %v3746_v47 = vpack.c.bf16 %v11771_v45, %v3744_v33  ;;  %v3748_v2 = vpack.c.bf16 %v11763_v50, %v3745_v27  ;;  %v4982_v12 = vpack.c.bf16 %v3744_v33, %v3738_v1  ;;  %v4984_v32 = vpack.c.bf16 %v3745_v27, %v3739_v18  ;;  %v13633_v33 = vld [vmem:[#allocation48_spill] sm:$0xff]  ;;  %v13634_v27 = vld [vmem:[#allocation101_spill] sm:$0xff]  ;;  %vm13707_vm4 = vmmov %vm13705_vm8 }
 0x832   : > { %v3775_v60 = vunpack.c.l.bf16 %v3749_v44  ;;  %v3776_v58 = vunpack.c.h.bf16 %v3749_v44  ;;  %v3771_v29 = vunpack.c.l.bf16 %v3747_v34  ;;  %v3772_v52 = vunpack.c.h.bf16 %v3747_v34  ;;  %vm13710_vm9 = vmmov %vm13707_vm4 }
 0x833   : > { %v3769_v4 = vunpack.c.l.bf16 %v3746_v47  ;;  %v3770_v23 = vunpack.c.h.bf16 %v3746_v47  ;;  %v3773_v7 = vunpack.c.l.bf16 %v3748_v2  ;;  %v3774_v51 = vunpack.c.h.bf16 %v3748_v2  ;;  %vm13712_vm6 = vmmov %vm13707_vm4 }
 0x834   : > { %v3787_v30 = vmul.f32 %v3779_v59, %v3775_v60  ;;  %v3788_v45 = vmul.f32 %v3780_v25, %v3776_v58  ;;  %v3783_v61 = vmul.f32 %v3779_v59, %v3771_v29  ;;  %v3784_v46 = vmul.f32 %v3780_v25, %v3772_v52 }
 0x835   : > { %v3781_v39 = vmul.f32 %v3777_v9, %v3769_v4  ;;  %v3782_v43 = vmul.f32 %v3778_v40, %v3770_v23  ;;  %v3785_v20 = vmul.f32 %v3777_v9, %v3773_v7  ;;  %v3786_v50 = vmul.f32 %v3778_v40, %v3774_v51 }
 0x836   : > { %v3792_v24 = vpack.c.bf16 %v3788_v45, %v3787_v30  ;;  %v5006_v8 = vunpack.c.l.bf16 %v4982_v12  ;;  %v5007_v14 = vunpack.c.h.bf16 %v4982_v12  ;;  %v3790_v38 = vpack.c.bf16 %v3784_v46, %v3783_v61 }
 0x837   : > { %v3789_v41 = vpack.c.bf16 %v3782_v43, %v3781_v39  ;;  %v3791_v42 = vpack.c.bf16 %v3786_v50, %v3785_v20  ;;  %v5010_v16 = vunpack.c.l.bf16 %v4984_v32  ;;  %v5011_v53 = vunpack.c.h.bf16 %v4984_v32  ;;  %v8433_v39 = vpop.permute.xlu1 %8432 }
 0x838   : > { %3796 = vst [vmem:[#allocation2 + $0x38] sm:$0xff] %v3792_v24  ;;  %v5018_v19 = vmul.f32 %v5014_v17, %v5006_v8  ;;  %v5019_v56 = vmul.f32 %v5015_v5, %v5007_v14  ;;  %v4824_v18 = vpack.i.b16 %v13632_v63, %v13632_v63  ;;  %v4837_v59 = vunpack.c.l.bf16 %v12348_v22 }
 0x839   : > { %3793 = vst [vmem:[#allocation2 + $0x20] sm:$0xff] %v3789_v41  ;;  %v5022_v9 = vmul.f32 %v5014_v17, %v5010_v16  ;;  %v5023_v40 = vmul.f32 %v5015_v5, %v5011_v53  ;;  %v8490_v25 = vunpack.i.h.bf16 %v8488_v55  ;;  %v8489_v57 = vunpack.i.l.bf16 %v8488_v55  ;;  %v12381_v41 = vpop.permute.xlu0 %8452  ;;  %v13641_v53 = vld [vmem:[#allocation42_spill] sm:$0xff] }
 0x83a   : > { %3794 = vst [vmem:[#allocation2 + $0x28] sm:$0xff] %v3790_v38  ;;  %v5025_v1 = vpack.c.bf16 %v5019_v56, %v5018_v19  ;;  %v4826_v62 = vperm.slane %v4824_v18, 0  ;;  %v4213_v31 = vpack.i.b16 %v13633_v33, %v13633_v33  ;;  %v4216_v44 = vpack.i.b16 %v13634_v27, %v13634_v27  ;;  %v13642_v56 = vld [vmem:[#allocation83_spill] sm:$0xff] }
 0x83b   : > { %3795 = vst [vmem:[#allocation2 + $0x30] sm:$0xff] %v3791_v42  ;;  %v5027_v47 = vpack.c.bf16 %v5023_v40, %v5022_v9  ;;  %v4796_v34 = vsel %vm13635_vm10, %v8424_v21, %v8489_v57  ;;  %v4797_v17 = vsel %vm13636_vm7, %v8425_v3, %v8490_v25  ;;  %v13637_v5 = vunpack.i.l.bf16 %v11949_v11  ;;  %v13645_v9 = vld [vmem:[#allocation43_spill] sm:$0xff] }
 0x83c   : > { %5029 = vst [vmem:[#allocation2 + $0x268] sm:$0xff] %v5025_v1  ;;  %v4838_v12 = vunpack.c.l.bf16 %v4826_v62  ;;  %v13639_v32 = vunpack.i.h.bf16 %v11949_v11  ;;  %v4215_v58 = vperm.slane %v4213_v31, 0  ;;  %v4218_v26 = vperm.slane %v4216_v44, 0 }
 0x83d   : > { %v4802_v2 = vsel %vm13638_vm12, %v8489_v57, %v13637_v5  ;;  %5031 = vst [vmem:[#allocation2 + $0x278] sm:$0xff] %v5027_v47  ;;  %v5298_v3 = vpack.i.b16 %v12119_v36, %v12119_v36  ;;  %v5301_v4 = vpack.i.b16 %v12121_v37, %v12121_v37  ;;  %v5304_v11 = vpack.i.b16 %v12123_v10, %v12123_v10 }
 0x83e   : > { %v4803_v22 = vsel %vm13640_vm13, %v8490_v25, %v13639_v32  ;;  %v4805_v60 = vpack.c.bf16 %v4802_v2, %v4796_v34  ;;  %v4229_v52 = vunpack.c.l.bf16 %v4215_v58  ;;  %v4230_v30 = vunpack.c.l.bf16 %v4218_v26 }
 0x83f   : > { %v4807_v21 = vpack.c.bf16 %v4803_v22, %v4797_v17  ;;  %v5300_v45 = vperm.slane %v5298_v3, 0  ;;  %v5303_v46 = vperm.slane %v5301_v4, 0  ;;  %v5306_v20 = vperm.slane %v5304_v11, 0 }
 0x840   : > { %v4829_v23 = vunpack.c.l.bf16 %v4805_v60  ;;  %v4830_v29 = vunpack.c.h.bf16 %v4805_v60  ;;  %v5307_v37 = vpack.i.b16 %v12125_v6, %v12125_v6  ;;  %v8435_v55 = vunpack.i.h.bf16 %v8433_v39 }
 0x841   : > { %v4833_v7 = vunpack.c.l.bf16 %v4807_v21  ;;  %v4834_v51 = vunpack.c.h.bf16 %v4807_v21  ;;  %v5318_v24 = vunpack.c.l.bf16 %v5300_v45  ;;  %v5319_v14 = vunpack.c.l.bf16 %v5303_v46 }
 0x842   : > { %v4841_v43 = vmul.f32 %v4837_v59, %v4829_v23  ;;  %v4842_v61 = vmul.f32 %v4838_v12, %v4830_v29  ;;  %v5320_v10 = vunpack.c.l.bf16 %v5306_v20  ;;  %v5309_v42 = vperm.slane %v5307_v37, 0  ;;  %v7148_v20 = vld [vmem:[#allocation2 + $0x40] sm:$0xf] }
 0x843   : > { %v4845_v50 = vmul.f32 %v4837_v59, %v4833_v7  ;;  %v4846_v36 = vmul.f32 %v4838_v12, %v4834_v51  ;;  %v8434_v16 = vunpack.i.l.bf16 %v8433_v39  ;;  %v4746_v19 = vpack.i.b16 %v13641_v53, %v13641_v53  ;;  %v13648_v12 = vld [vmem:[#allocation105_spill] sm:$0xff] }
 0x844   : > { %v4848_v8 = vpack.c.bf16 %v4842_v61, %v4841_v43  ;;  %v13643_v63 = vunpack.i.h.bf16 %v13642_v56  ;;  %v13644_v6 = vunpack.i.h.bf16 %v11513_v15  ;;  %v4749_v40 = vpack.i.b16 %v13645_v9, %v13645_v9  ;;  %v13651_v9 = vld [vmem:[#allocation54_spill] sm:$0xff] }
 0x845   : > { %v4850_v38 = vpack.c.bf16 %v4846_v36, %v4845_v50  ;;  %v8455_v25 = vunpack.i.h.bf16 %v12381_v41  ;;  %v5321_v57 = vunpack.c.l.bf16 %v5309_v42  ;;  %v13646_v1 = vunpack.i.l.bf16 %v11513_v15  ;;  %v7684_v50 = vld [vmem:[#allocation2 + $0x4c] sm:$0xf0] }
 0x846   : > { %4852 = vst [vmem:[#allocation2 + $0x208] sm:$0xff] %v4848_v8  ;;  %v4191_v18 = vsel %vm1329_vm5, %v13643_v63, %v8435_v55  ;;  %v4189_v59 = vsel %vm1329_vm5, %v8435_v55, %v13644_v6  ;;  %v13647_v33 = vunpack.i.l.bf16 %v13642_v56  ;;  %v12408_v32 = vperm.slane %v4746_v19, 0  ;;  %v7766_v19 = vld [vmem:[#allocation2 + $0x2e4] sm:$0xf]  ;;  %v7486_v56 = vld [vmem:[#allocation2 + $0x2f0] sm:$0xf0] }
 0x847   : > { %4854 = vst [vmem:[#allocation2 + $0x218] sm:$0xff] %v4850_v38  ;;  %v4188_v62 = vsel %vm1329_vm5, %v8434_v16, %v13646_v1  ;;  %v4199_v27 = vpack.c.bf16 %v4189_v59, %v4191_v18  ;;  %v5289_v17 = vpack.c.bf16 %v4191_v18, %v11467_v49  ;;  %v5290_v15 = vpack.c.bf16 %v13648_v12, %v4189_v59  ;;  %v7244_v38 = vld [vmem:[#allocation2 + $0x100] sm:$0xf]  ;;  %v13649_v6 = vld [vmem:[#allocation100_spill] sm:$0xff] }
 0x848   : > { %v4190_v31 = vsel %vm1329_vm5, %v13647_v33, %v8434_v16  ;;  %v5288_v34 = vpack.c.bf16 %v11572_v35, %v4188_v62  ;;  %v4751_v16 = vperm.slane %v4749_v40, 0  ;;  %v4762_v53 = vunpack.c.l.bf16 %v12408_v32  ;;  %v13657_v32 = vld [vmem:[#allocation74_spill] sm:$0xff] }
 0x849   : > { %v4197_v44 = vpack.c.bf16 %v4188_v62, %v4190_v31  ;;  %v5287_v47 = vpack.c.bf16 %v4190_v31, %v11475_v48  ;;  %v4225_v5 = vunpack.c.l.bf16 %v4199_v27  ;;  %v4226_v2 = vunpack.c.h.bf16 %v4199_v27 }
 0x84a   : > { %v5312_v4 = vunpack.c.l.bf16 %v5288_v34  ;;  %v5313_v23 = vunpack.c.h.bf16 %v5288_v34  ;;  %v5314_v11 = vunpack.c.l.bf16 %v5289_v17  ;;  %v5315_v35 = vunpack.c.h.bf16 %v5289_v17 }
 0x84b   : > { %v4221_v22 = vunpack.c.l.bf16 %v4197_v44  ;;  %v4222_v60 = vunpack.c.h.bf16 %v4197_v44  ;;  %v5310_v58 = vunpack.c.l.bf16 %v5287_v47  ;;  %v5311_v21 = vunpack.c.h.bf16 %v5287_v47 }
 0x84c   : > { %v4237_v26 = vmul.f32 %v4229_v52, %v4225_v5  ;;  %v4238_v3 = vmul.f32 %v4230_v30, %v4226_v2  ;;  %v5316_v49 = vunpack.c.l.bf16 %v5290_v15  ;;  %v5317_v51 = vunpack.c.h.bf16 %v5290_v15  ;;  %v13656_v5 = vld [vmem:[#allocation75_spill] sm:$0xff] }
 0x84d   : > { %v4233_v29 = vmul.f32 %v4229_v52, %v4221_v22  ;;  %v4234_v48 = vmul.f32 %v4230_v30, %v4222_v60  ;;  %v5322_v45 = vmul.f32 %v5318_v24, %v5310_v58  ;;  %v5323_v43 = vmul.f32 %v5319_v14, %v5311_v21  ;;  %v7708_v52 = vld [vmem:[#allocation2 + $0x10c] sm:$0xf0]  ;;  %v13658_v60 = vld [vmem:[#allocation21_spill] sm:$0xff] }
 0x84e   : > { %v4242_v7 = vpack.c.bf16 %v4238_v3, %v4237_v26  ;;  %v5324_v61 = vmul.f32 %v5320_v10, %v5312_v4  ;;  %v5325_v46 = vmul.f32 %v5321_v57, %v5313_v23  ;;  %v5326_v36 = vmul.f32 %v5318_v24, %v5314_v11 }
 0x84f   : > { %v4240_v39 = vpack.c.bf16 %v4234_v48, %v4233_v29  ;;  %v5327_v37 = vmul.f32 %v5319_v14, %v5315_v35  ;;  %v5328_v8 = vmul.f32 %v5320_v10, %v5316_v49  ;;  %v5329_v55 = vmul.f32 %v5321_v57, %v5317_v51  ;;  %v8448_v35 = vpop.permute.xlu1 %8447 }
 0x850   : > { %4246 = vst [vmem:[#allocation2 + $0xf8] sm:$0xff] %v4242_v7  ;;  %v5330_v30 = vpack.c.bf16 %v5323_v43, %v5322_v45  ;;  %v5331_v42 = vpack.c.bf16 %v5325_v46, %v5324_v61  ;;  %v13650_v59 = vunpack.i.h.bf16 %v13649_v6  ;;  %v8454_v14 = vunpack.i.l.bf16 %v12381_v41 }
 0x851   : > { %4244 = vst [vmem:[#allocation2 + $0xe8] sm:$0xff] %v4240_v39  ;;  %v5332_v63 = vpack.c.bf16 %v5327_v37, %v5326_v36  ;;  %v5333_v18 = vpack.c.bf16 %v5329_v55, %v5328_v8  ;;  %v4763_v10 = vunpack.c.l.bf16 %v4751_v16  ;;  %v13652_v57 = vunpack.i.h.bf16 %v13651_v9  ;;  %v12436_v39 = vpop.permute.xlu0 %8467  ;;  %v13660_v37 = vld [vmem:[#allocation53_spill] sm:$0xff]  ;;  %v13662_v16 = vld [vmem:[#allocation95_spill] sm:$0xff] }
 0x852   : > { %v4722_v24 = vsel %vm1876_vm3, %v13650_v59, %v8455_v25  ;;  %5334 = vst [vmem:[#allocation2 + $0x320] sm:$0xff] %v5330_v30  ;;  %v7149_v1 = vor.u32 %v7684_v50, %v7148_v20  ;;  %v7245_v62 = vor.u32 %v7708_v52, %v7244_v38  ;;  %v13653_v33 = vunpack.i.l.bf16 %v13649_v6  ;;  %v13659_v20 = vld [vmem:[#allocation32_spill] sm:$0xff]  ;;  %v13661_v30 = vld [vmem:[#allocation41_spill] sm:$0xff]  ;;  %v13666_v59 = vld [vmem:[#allocation91_spill] sm:$0xff] }
 0x853   : > { %v4728_v40 = vsel %vm1876_vm3, %v8455_v25, %v13652_v57  ;;  %5335 = vst [vmem:[#allocation2 + $0x328] sm:$0xff] %v5331_v42  ;;  %v13654_v27 = vunpack.i.l.bf16 %v13651_v9  ;;  %v7489_v47 = vor.u32 %v7766_v19, %v7486_v56  ;;  %v13655_v25 = vld [vmem:[#allocation66_spill] sm:$0xff]  ;;  %v3685_v2 = vpack.i.b16 %v13656_v5, %v13656_v5 }
 0x854   : > { %v4721_v31 = vsel %vm1876_vm3, %v13653_v33, %v8454_v14  ;;  %v4732_v44 = vpack.c.bf16 %v4728_v40, %v4722_v24  ;;  %5336 = vst [vmem:[#allocation2 + $0x330] sm:$0xff] %v5332_v63  ;;  %6080 = vmatpush.bf16.msrb.mxu1 %v7149_v1  ;;  %6096 = vmatpush.bf16.msrb.mxu2 %v7245_v62  ;;  %v8450_v55 = vunpack.i.h.bf16 %v8448_v35  ;;  %v8449_v38 = vunpack.i.l.bf16 %v8448_v35  ;;  %v13663_v63 = vld [vmem:[#allocation103_spill] sm:$0xff] }
 0x855   : > { %v4727_v41 = vsel %vm1876_vm3, %v8454_v14, %v13654_v27  ;;  %v3682_v17 = vpack.i.b16 %v13655_v25, %v13655_v25  ;;  %5337 = vst [vmem:[#allocation2 + $0x338] sm:$0xff] %v5333_v18  ;;  %v3688_v22 = vpack.i.b16 %v13657_v32, %v13657_v32  ;;  %v3691_v58 = vpack.i.b16 %v13658_v60, %v13658_v60  ;;  %v13673_v62 = vld [vmem:[#allocation7_spill] sm:$0xff] }
 0x856   : > { %v4730_v34 = vpack.c.bf16 %v4727_v41, %v4721_v31  ;;  %v4758_v12 = vunpack.c.l.bf16 %v4732_v44  ;;  %v4759_v15 = vunpack.c.h.bf16 %v4732_v44  ;;  %v3687_v4 = vperm.slane %v3685_v2, 0  ;;  %v13674_v31 = vld [vmem:[#allocation6_spill] sm:$0xff]  ;;  %v13675_v44 = vld [vmem:[#allocation59_spill] sm:$0xff] }
 0x857   : > { %v3684_v3 = vperm.slane %v3682_v17, 0  ;;  %v3690_v48 = vperm.slane %v3688_v22, 0  ;;  %v3693_v11 = vperm.slane %v3691_v58, 0  ;;  %v4947_v50 = vpack.i.b16 %v13659_v20, %v13659_v20 }
 0x858   : > { %6159 = vmatpush.bf16.msra.mxu2 %v7489_v47  ;;  %v4754_v21 = vunpack.c.l.bf16 %v4730_v34  ;;  %v4755_v26 = vunpack.c.h.bf16 %v4730_v34  ;;  %v4770_v23 = vmul.f32 %v4762_v53, %v4758_v12  ;;  %v4771_v29 = vmul.f32 %v4763_v10, %v4759_v15  ;;  %v13676_v34 = vld [vmem:[#allocation8_spill] sm:$0xff] }
 0x859   : > { %v3702_v51 = vunpack.c.l.bf16 %v3684_v3  ;;  %v3703_v45 = vunpack.c.l.bf16 %v3687_v4  ;;  %v3704_v61 = vunpack.c.l.bf16 %v3690_v48  ;;  %v3705_v46 = vunpack.c.l.bf16 %v3693_v11 }
 0x85a   : > { %v4766_v7 = vmul.f32 %v4762_v53, %v4754_v21  ;;  %v4767_v49 = vmul.f32 %v4763_v10, %v4755_v26  ;;  %v4775_v43 = vpack.c.bf16 %v4771_v29, %v4770_v23  ;;  %v4950_v8 = vpack.i.b16 %v13660_v37, %v13660_v37 }
 0x85b   : > { %v4949_v52 = vperm.slane %v4947_v50, 0  ;;  %v4513_v42 = vpack.i.b16 %v13661_v30, %v13661_v30  ;;  %v4516_v53 = vpack.i.b16 %v13662_v16, %v13662_v16  ;;  %v8470_v19 = vunpack.i.h.bf16 %v12436_v39 }
 0x85c   : > { %v4773_v36 = vpack.c.bf16 %v4767_v49, %v4766_v7  ;;  %4779 = vst [vmem:[#allocation2 + $0x1f8] sm:$0xff] %v4775_v43  ;;  %v4952_v56 = vperm.slane %v4950_v8, 0  ;;  %v13664_v18 = vunpack.i.h.bf16 %v13663_v63  ;;  %vm13665_vm3 = vcmp.lt.s32.totalorder %v9252_v13, 73  ;;  %v7762_v8 = vld [vmem:[#allocation2 + $0x2c4] sm:$0xf] }
 0x85d   : > { %v13667_v24 = vunpack.i.l.bf16 %v13666_v59  ;;  %vm13668_vm5 = vmmov %vm13665_vm3  ;;  %v13669_v10 = vunpack.i.h.bf16 %v13666_v59  ;;  %v4963_v57 = vunpack.c.l.bf16 %v4949_v52  ;;  %v13671_v40 = vunpack.i.l.bf16 %v13663_v63 }
 0x85e   : > { %4777 = vst [vmem:[#allocation2 + $0x1e8] sm:$0xff] %v4773_v36  ;;  %v3670_v6 = vsel %vm13665_vm3, %v8450_v55, %v13664_v18  ;;  %vm13670_vm1 = vmmov %vm13665_vm3  ;;  %v4964_v41 = vunpack.c.l.bf16 %v4952_v56  ;;  %v12467_v37 = vperm.slane %v4513_v42, 0  ;;  %v4518_v16 = vperm.slane %v4516_v53, 0  ;;  %v13677_v56 = vld [vmem:[#allocation45_spill] sm:$0xff] }
 0x85f   : > { %v3663_v14 = vsel %vm13668_vm5, %v13667_v24, %v8449_v38  ;;  %v3664_v9 = vsel %vm13670_vm1, %v13669_v10, %v8450_v55  ;;  %vm13672_vm2 = vmmov %vm13670_vm1  ;;  %v3673_v27 = vpack.c.bf16 %v13674_v31, %v3670_v6  ;;  %v7470_v55 = vld [vmem:[#allocation2 + $0x2d0] sm:$0xf0]  ;;  %v13678_v63 = vunpack.i.h.bf16 %v13677_v56  ;;  %v13679_v42 = vld [vmem:[#allocation113_spill] sm:$0xff] }
 0x860   : > { %v3669_v1 = vsel %vm13672_vm2, %v8449_v38, %v13671_v40  ;;  %v3672_v33 = vpack.c.bf16 %v3663_v14, %v13673_v62  ;;  %v3674_v25 = vpack.c.bf16 %v3664_v9, %v13676_v34  ;;  %v4933_v49 = vpack.c.bf16 %v3670_v6, %v3664_v9  ;;  %v7372_v24 = vld [vmem:[#allocation2 + $0x200] sm:$0xf]  ;;  %v7454_v62 = vld [vmem:[#allocation2 + $0x2b0] sm:$0xf0] }
 0x861   : > { %v3671_v47 = vpack.c.bf16 %v13675_v44, %v3669_v1  ;;  %v4931_v17 = vpack.c.bf16 %v3669_v1, %v3663_v14  ;;  %v3698_v12 = vunpack.c.l.bf16 %v3673_v27  ;;  %v3699_v15 = vunpack.c.h.bf16 %v3673_v27  ;;  %v7740_v14 = vld [vmem:[#allocation2 + $0x20c] sm:$0xf0]  ;;  %v7758_v1 = vld [vmem:[#allocation2 + $0x2a4] sm:$0xf] }
 0x862   : > { %v3696_v5 = vunpack.c.l.bf16 %v3672_v33  ;;  %v3697_v2 = vunpack.c.h.bf16 %v3672_v33  ;;  %v3700_v60 = vunpack.c.l.bf16 %v3674_v25  ;;  %v3701_v58 = vunpack.c.h.bf16 %v3674_v25 }
 0x863   : > { %v3694_v32 = vunpack.c.l.bf16 %v3671_v47  ;;  %v3695_v22 = vunpack.c.h.bf16 %v3671_v47  ;;  %v3710_v3 = vmul.f32 %v3702_v51, %v3698_v12  ;;  %v3711_v4 = vmul.f32 %v3703_v45, %v3699_v15  ;;  %v8463_v47 = vpop.permute.xlu1 %8462 }
 0x864   : > { %v3708_v21 = vmul.f32 %v3704_v61, %v3696_v5  ;;  %v3709_v26 = vmul.f32 %v3705_v46, %v3697_v2  ;;  %v3712_v48 = vmul.f32 %v3704_v61, %v3700_v60  ;;  %v3713_v11 = vmul.f32 %v3705_v46, %v3701_v58  ;;  %v7778_v5 = vld [vmem:[#allocation2 + $0x344] sm:$0xf]  ;;  %v7534_v2 = vld [vmem:[#allocation2 + $0x350] sm:$0xf0] }
 0x865   : > { %v3706_v23 = vmul.f32 %v3702_v51, %v3694_v32  ;;  %v3707_v29 = vmul.f32 %v3703_v45, %v3695_v22  ;;  %v3716_v7 = vpack.c.bf16 %v3711_v4, %v3710_v3  ;;  %v4955_v43 = vunpack.c.l.bf16 %v4931_v17  ;;  %v7132_v51 = vld [vmem:[#allocation2 + $0x20] sm:$0xf]  ;;  %v7680_v45 = vld [vmem:[#allocation2 + $0x2c] sm:$0xf0]  ;;  %v13684_v4 = vld [vmem:[#allocation94_spill] sm:$0xff] }
 0x866   : > { %v3715_v35 = vpack.c.bf16 %v3709_v26, %v3708_v21  ;;  %v3717_v50 = vpack.c.bf16 %v3713_v11, %v3712_v48  ;;  %v4956_v36 = vunpack.c.h.bf16 %v4931_v17  ;;  %v4959_v38 = vunpack.c.l.bf16 %v4933_v49  ;;  %v13683_v26 = vld [vmem:[#allocation108_spill] sm:$0xff] }
 0x867   : > { %v3714_v20 = vpack.c.bf16 %v3707_v29, %v3706_v23  ;;  %v4960_v52 = vunpack.c.h.bf16 %v4933_v49  ;;  %v4967_v30 = vmul.f32 %v4963_v57, %v4955_v43  ;;  %v4529_v46 = vunpack.c.l.bf16 %v12467_v37  ;;  %3720 = vst [vmem:[#allocation2 + $0x10] sm:$0xff] %v3716_v7  ;;  %v13685_v7 = vld [vmem:[#allocation29_spill] sm:$0xff] }
 0x868   : > { %3719 = vst [vmem:[#allocation2 + $0x8] sm:$0xff] %v3715_v35  ;;  %v4968_v61 = vmul.f32 %v4964_v41, %v4956_v36  ;;  %v4489_v18 = vsel %vm1637_vm14, %v8470_v19, %v13678_v63  ;;  %v13680_v6 = vunpack.i.h.bf16 %v13679_v42  ;;  %v4971_v53 = vmul.f32 %v4963_v57, %v4959_v38  ;;  %v13687_v36 = vld [vmem:[#allocation112_spill] sm:$0xff] }
 0x869   : > { %3718 = vst [vmem:[#allocation2] sm:$0xff] %v3714_v20  ;;  %v4972_v10 = vmul.f32 %v4964_v41, %v4960_v52  ;;  %v4530_v9 = vunpack.c.l.bf16 %v4518_v16  ;;  %v8469_v31 = vunpack.i.l.bf16 %v12436_v39  ;;  %v7473_v27 = vor.u32 %v7762_v8, %v7470_v55 }
 0x86a   : > { %v4491_v59 = vsel %vm1637_vm14, %v13680_v6, %v8470_v19  ;;  %3721 = vst [vmem:[#allocation2 + $0x18] sm:$0xff] %v3717_v50  ;;  %v4974_v33 = vpack.c.bf16 %v4968_v61, %v4967_v30  ;;  %v7133_v44 = vor.u32 %v7680_v45, %v7132_v51  ;;  %v7373_v19 = vor.u32 %v7740_v14, %v7372_v24  ;;  %v8483_v61 = vpop.permute.xlu0 %8482 }
 0x86b   : > { %v4499_v40 = vpack.c.bf16 %v4489_v18, %v4491_v59  ;;  %v4976_v34 = vpack.c.bf16 %v4972_v10, %v4971_v53  ;;  %v13681_v57 = vunpack.i.l.bf16 %v13677_v56  ;;  %v13682_v12 = vunpack.i.l.bf16 %v13679_v42  ;;  %6160 = vmatpush.bf16.msra.mxu2 %v7473_v27  ;;  %v13691_v42 = vld [vmem:[#allocation33_spill] sm:$0xff]  ;;  %v13692_v53 = vld [vmem:[#allocation44_spill] sm:$0xff] }
 0x86c   : > { %4978 = vst [vmem:[#allocation2 + $0x248] sm:$0xff] %v4974_v33  ;;  %6081 = vmatpush.bf16.msrb.mxu1 %v7133_v44  ;;  %v7457_v15 = vor.u32 %v7758_v1, %v7454_v62  ;;  %6110 = vmatpush.bf16.msra.mxu3 %v7373_v19  ;;  %v8465_v58 = vunpack.i.h.bf16 %v8463_v47  ;;  %v7537_v21 = vor.u32 %v7778_v5, %v7534_v2  ;;  %v8464_v29 = vunpack.i.l.bf16 %v8463_v47  ;;  %v7754_v10 = vld [vmem:[#allocation2 + $0x284] sm:$0xf]  ;;  %v7438_v33 = vld [vmem:[#allocation2 + $0x290] sm:$0xf0] }
 0x86d   : > { %v4525_v25 = vunpack.c.l.bf16 %v4499_v40  ;;  %v4526_v17 = vunpack.c.h.bf16 %v4499_v40  ;;  %v4488_v41 = vsel %vm1637_vm14, %v8469_v31, %v13681_v57  ;;  %v4490_v39 = vsel %vm1637_vm14, %v13682_v12, %v8469_v31  ;;  %4980 = vst [vmem:[#allocation2 + $0x258] sm:$0xff] %v4976_v34  ;;  %v7516_v31 = vld [vmem:[#allocation2 + $0x320] sm:$0xf] }
 0x86e   : > { %v4497_v60 = vpack.c.bf16 %v4488_v41, %v4490_v39  ;;  %v4588_v3 = vpack.i.b16 %v13683_v26, %v13683_v26  ;;  %v4591_v23 = vpack.i.b16 %v13684_v4, %v13684_v4  ;;  %v13686_v49 = vunpack.i.h.bf16 %v13685_v7  ;;  %v13693_v57 = vld [vmem:[#allocation5_spill] sm:$0xff]  ;;  %v7518_v39 = vld [vmem:[#allocation2 + $0x330] sm:$0xf0] }
 0x86f   : > { %v4537_v32 = vmul.f32 %v4529_v46, %v4525_v25  ;;  %v4538_v22 = vmul.f32 %v4530_v9, %v4526_v17  ;;  %6161 = vmatpush.bf16.msra.mxu2 %v7457_v15  ;;  %v13688_v37 = vunpack.i.l.bf16 %v13687_v36  ;;  %v13689_v55 = vunpack.i.h.bf16 %v13687_v36  ;;  %v7776_v25 = vld [vmem:[#allocation2 + $0x32c] sm:$0xf0]  ;;  %v7774_v17 = vld [vmem:[#allocation2 + $0x324] sm:$0xf]  ;;  %v13701_v36 = vld [vmem:[#allocation98_spill] sm:$0xff] }
 0x870   : > { %v4521_v11 = vunpack.c.l.bf16 %v4497_v60  ;;  %v4522_v35 = vunpack.c.h.bf16 %v4497_v60  ;;  %v4566_v43 = vsel %vm1714_vm11, %v13686_v49, %v8465_v58  ;;  %6178 = vmatpush.bf16.msrb.mxu3 %v7537_v21  ;;  %v4590_v20 = vperm.slane %v4588_v3, 0  ;;  %v7750_v15 = vld [vmem:[#allocation2 + $0x264] sm:$0xf] }
 0x871   : > { %v4542_v48 = vpack.c.bf16 %v4538_v22, %v4537_v32  ;;  %v4593_v50 = vperm.slane %v4591_v23, 0  ;;  %v4563_v8 = vsel %vm1714_vm11, %v8464_v29, %v13688_v37  ;;  %v4564_v38 = vsel %vm1714_vm11, %v8465_v58, %v13689_v55  ;;  %v7422_v32 = vld [vmem:[#allocation2 + $0x270] sm:$0xf0] }
 0x872   : > { %v4533_v52 = vmul.f32 %v4529_v46, %v4521_v11  ;;  %v4534_v30 = vmul.f32 %v4530_v9, %v4522_v35  ;;  %v13690_v16 = vunpack.i.l.bf16 %v13685_v7  ;;  %v4574_v45 = vpack.c.bf16 %v4564_v38, %v4566_v43  ;;  %v7108_v38 = vld [vmem:[%s13702_s30 + $0x8] sm:$0xf] }
 0x873   : > { %4546 = vst [vmem:[#allocation2 + $0x178] sm:$0xff] %v4542_v48  ;;  %v4604_v56 = vunpack.c.l.bf16 %v4590_v20  ;;  %v4605_v63 = vunpack.c.l.bf16 %v4593_v50  ;;  %v4896_v6 = vpack.i.b16 %v13691_v42, %v13691_v42  ;;  %v4899_v46 = vpack.i.b16 %v13692_v53, %v13692_v53  ;;  %v8478_v48 = vpop.permute.xlu1 %8477  ;;  %v13700_v20 = vld [vmem:[#allocation97_spill] sm:$0xff] }
 0x874   : > { %v4565_v51 = vsel %vm1714_vm11, %v13690_v16, %v8464_v29  ;;  %v4540_v59 = vpack.c.bf16 %v4534_v30, %v4533_v52  ;;  %v4600_v24 = vunpack.c.l.bf16 %v4574_v45  ;;  %v4601_v14 = vunpack.c.h.bf16 %v4574_v45  ;;  %v7673_v52 = vld [vmem:[%s13702_s30 + $0x14] sm:$0xf0]  ;;  %v7500_v30 = vld [vmem:[#allocation2 + $0x300] sm:$0xf]  ;;  %v7702_v16 = vld [vmem:[#allocation2 + $0xe4] sm:$0xf] }
 0x875   : > { %v4572_v18 = vpack.c.bf16 %v4563_v8, %v4565_v51  ;;  %v4898_v1 = vperm.slane %v4896_v6, 0  ;;  %v8485_v62 = vunpack.i.h.bf16 %v8483_v61  ;;  %v4901_v47 = vperm.slane %v4899_v46, 0  ;;  %v7230_v51 = vld [vmem:[#allocation2 + $0xf0] sm:$0xf0]  ;;  %v7770_v42 = vld [vmem:[#allocation2 + $0x304] sm:$0xf] }
 0x876   : > { %4544 = vst [vmem:[#allocation2 + $0x168] sm:$0xff] %v4540_v59  ;;  %v4612_v27 = vmul.f32 %v4604_v56, %v4600_v24  ;;  %v4613_v44 = vmul.f32 %v4605_v63, %v4601_v14  ;;  %v8484_v34 = vunpack.i.l.bf16 %v8483_v61  ;;  %v13694_v41 = vunpack.i.h.bf16 %v13693_v57  ;;  %v13703_v24 = vld [vmem:[#allocation46_spill] sm:$0xff] }
 0x877   : > { %v4596_v9 = vunpack.c.l.bf16 %v4572_v18  ;;  %v4597_v40 = vunpack.c.h.bf16 %v4572_v18  ;;  %v4912_v2 = vunpack.c.l.bf16 %v4898_v1  ;;  %vm13695_vm11 = vcmp.lt.s32.totalorder %v9252_v13, 119  ;;  %v7772_v18 = vld [vmem:[#allocation2 + $0x30c] sm:$0xf0]  ;;  %v7406_v1 = vld [vmem:[#allocation2 + $0x250] sm:$0xf0] }
 0x878   : > { %v4872_v12 = vsel %vm13695_vm11, %v13694_v41, %v8485_v62  ;;  %v4617_v22 = vpack.c.bf16 %v4613_v44, %v4612_v27  ;;  %v4913_v60 = vunpack.c.l.bf16 %v4901_v47  ;;  %vm13696_vm14 = vmmov %vm13695_vm11  ;;  %v13697_v21 = vunpack.i.l.bf16 %v13693_v57  ;;  %v13708_v27 = vld [vmem:[#allocation80_spill] sm:$0xff] }
 0x879   : > { %v4608_v19 = vmul.f32 %v4604_v56, %v4596_v9  ;;  %v4609_v5 = vmul.f32 %v4605_v63, %v4597_v40  ;;  %v4878_v58 = vsel %vm13696_vm14, %v8485_v62, %v8375_v54  ;;  %vm13698_vm15 = vmmov %vm13695_vm11  ;;  %v7441_v29 = vor.u32 %v7754_v10, %v7438_v33  ;;  %v7502_v9 = vld [vmem:[#allocation2 + $0x310] sm:$0xf0]  ;;  %v7746_v40 = vld [vmem:[#allocation2 + $0x244] sm:$0xf] }
 0x87a   : > { %v4871_v26 = vsel %vm13698_vm15, %v13697_v21, %v8484_v34  ;;  %v4882_v4 = vpack.c.bf16 %v4878_v58, %v4872_v12  ;;  %vm13699_vm0 = vmmov %vm13695_vm11  ;;  %4621 = vst [vmem:[#allocation2 + $0x198] sm:$0xff] %v4617_v22  ;;  %v7517_v35 = vor.u32 %v7776_v25, %v7516_v31  ;;  %v7521_v7 = vor.u32 %v7774_v17, %v7518_v39  ;;  %v7705_v25 = vld [vmem:[#allocation2 + $0xf4] sm:$0xf0]  ;;  %v7670_v17 = vld [vmem:[%s13702_s30 + $0x4] sm:$0xf] }
 0x87b   : > { %v4615_v3 = vpack.c.bf16 %v4609_v5, %v4608_v19  ;;  %v4877_v23 = vsel %vm13699_vm0, %v8484_v34, %v8374_v28  ;;  %v7425_v49 = vor.u32 %v7750_v15, %v7422_v32  ;;  %6162 = vmatpush.bf16.msra.mxu2 %v7441_v29  ;;  %v4363_v50 = vpack.i.b16 %v13700_v20, %v13700_v20  ;;  %v7236_v34 = vld [vmem:[#allocation2 + $0xe8] sm:$0xf]  ;;  %v7102_v12 = vld [vmem:[%s13702_s30 + $0x10] sm:$0xf0]  ;;  %v7116_v39 = vld [vmem:[#allocation2] sm:$0xf] }
 0x87c   : > { %v4880_v11 = vpack.c.bf16 %v4877_v23, %v4871_v26  ;;  %v4908_v54 = vunpack.c.l.bf16 %v4882_v4  ;;  %v4909_v43 = vunpack.c.h.bf16 %v4882_v4  ;;  %v4366_v0 = vpack.i.b16 %v13701_v36, %v13701_v36  ;;  %6123 = vmatpush.bf16.msra.mxu0 %v7517_v35  ;;  %6179 = vmatpush.bf16.msrb.mxu3 %v7521_v7  ;;  %v7676_v15 = vld [vmem:[#allocation2 + $0xc] sm:$0xf0]  ;;  %v7734_v32 = vld [vmem:[#allocation2 + $0x1e4] sm:$0xf]  ;;  %v7100_v20 = vld [vmem:[%s13702_s30] sm:$0xf] }
 0x87d   : > { %4619 = vst [vmem:[#allocation2 + $0x188] sm:$0xff] %v4615_v3  ;;  %v8480_v28 = vunpack.i.h.bf16 %v8478_v48  ;;  %v8479_v55 = vunpack.i.l.bf16 %v8478_v48  ;;  %v4365_v56 = vperm.slane %v4363_v50, 0  ;;  %v13704_v14 = vunpack.i.h.bf16 %v13703_v24  ;;  %v7698_v26 = vld [vmem:[#allocation2 + $0xc4] sm:$0xf]  ;;  %v7358_v3 = vld [vmem:[#allocation2 + $0x1f0] sm:$0xf0] }
 0x87e   : > { %v4904_v37 = vunpack.c.l.bf16 %v4880_v11  ;;  %v4905_v8 = vunpack.c.h.bf16 %v4880_v11  ;;  %v4920_v45 = vmul.f32 %v4912_v2, %v4908_v54  ;;  %v4921_v61 = vmul.f32 %v4913_v60, %v4909_v43  ;;  %v7214_v48 = vld [vmem:[#allocation2 + $0xd0] sm:$0xf0]  ;;  %v7742_v11 = vld [vmem:[#allocation2 + $0x224] sm:$0xf]  ;;  %v7672_v50 = vld [vmem:[%s13702_s30 + $0xc] sm:$0xf0] }
 0x87f   : > { %v4368_v63 = vperm.slane %v4366_v0, 0  ;;  %v4339_v53 = vsel %vm13705_vm8, %v8480_v28, %v13704_v14  ;;  %v13706_v46 = vunpack.i.l.bf16 %v13703_v24  ;;  %6163 = vmatpush.bf16.msra.mxu2 %v7425_v49  ;;  %v4379_v33 = vunpack.c.l.bf16 %v4365_v56  ;;  %v7390_v43 = vld [vmem:[#allocation2 + $0x230] sm:$0xf0] }
 0x880   : > { %v4916_v6 = vmul.f32 %v4912_v2, %v4904_v37  ;;  %v4917_v59 = vmul.f32 %v4913_v60, %v4905_v8  ;;  %v4925_v62 = vpack.c.bf16 %v4921_v61, %v4920_v45  ;;  %v13709_v44 = vunpack.i.l.bf16 %v13708_v27  ;;  %v7220_v37 = vld [vmem:[#allocation2 + $0xc8] sm:$0xf]  ;;  %v7701_v8 = vld [vmem:[#allocation2 + $0xd4] sm:$0xf0]  ;;  %v7374_v14 = vld [vmem:[#allocation2 + $0x210] sm:$0xf0] }
 0x881   : > { %v4338_v10 = vsel %vm13707_vm4, %v8479_v55, %v13706_v46  ;;  %v4380_v31 = vunpack.c.l.bf16 %v4368_v63  ;;  %v13711_v5 = vunpack.i.h.bf16 %v13708_v27  ;;  %v12556_v41 = vor.u32 %v7673_v52, %v7108_v38  ;;  %v7694_v52 = vld [vmem:[#allocation2 + $0xa4] sm:$0xf]  ;;  %v7697_v46 = vld [vmem:[#allocation2 + $0xb4] sm:$0xf0]  ;;  %v7326_v27 = vld [vmem:[#allocation2 + $0x1b0] sm:$0xf0] }
 0x882   : > { %v4340_v47 = vsel %vm13710_vm9, %v13709_v44, %v8479_v55  ;;  %v4923_v19 = vpack.c.bf16 %v4917_v59, %v4916_v6  ;;  %4929 = vst [vmem:[#allocation2 + $0x238] sm:$0xff] %v4925_v62  ;;  %v7501_v60 = vor.u32 %v7772_v18, %v7500_v30  ;;  %v7505_v58 = vor.u32 %v7770_v42, %v7502_v9  ;;  %v7198_v30 = vld [vmem:[#allocation2 + $0xb0] sm:$0xf0]  ;;  %v7730_v18 = vld [vmem:[#allocation2 + $0x1c4] sm:$0xf] }
 0x883   : > { %v4341_v2 = vsel %vm13712_vm6, %v13711_v5, %v8480_v28  ;;  %v4347_v57 = vpack.c.bf16 %v4338_v10, %v4340_v47  ;;  %v7233_v21 = vor.u32 %v7702_v16, %v7230_v51  ;;  %6111 = vmatmul.bf16.vlgmr.msra.gmra.mxu3 %v12556_v41  ;;  %v7409_v23 = vor.u32 %v7746_v40, %v7406_v1  ;;  %v7671_v16 = vld [vmem:[%s13702_s30 + $0xc] sm:$0xf]  ;;  %v7110_v51 = vld [vmem:[%s13702_s30 + $0x18] sm:$0xf0]  ;;  %v7540_v10 = vld [vmem:[#allocation2 + $0x348] sm:$0xf] }
 0x884   : > { %v4349_v22 = vpack.c.bf16 %v4339_v53, %v4341_v2  ;;  %4927 = vst [vmem:[#allocation2 + $0x228] sm:$0xff] %v4923_v19  ;;  %v7237_v29 = vor.u32 %v7705_v25, %v7236_v34  ;;  %6124 = vmatpush.bf16.msra.mxu0 %v7501_v60  ;;  %6180 = vmatpush.bf16.msrb.mxu3 %v7505_v58  ;;  %v7342_v42 = vld [vmem:[#allocation2 + $0x1d0] sm:$0xf0]  ;;  %v7738_v6 = vld [vmem:[#allocation2 + $0x204] sm:$0xf]  ;;  %vm13713_vm10 = vcmask 392192  }
 0x885   : > { %v4371_v13 = vunpack.c.l.bf16 %v4347_v57  ;;  %v4372_v4 = vunpack.c.h.bf16 %v4347_v57  ;;  %v12562_v49 = vor.u32 %v7670_v17, %v7102_v12  ;;  %v7117_v54 = vor.u32 %v7676_v15, %v7116_v39  ;;  %6164 = vmatpush.bf16.msra.mxu2 %v7409_v23  ;;  %v7204_v53 = vld [vmem:[#allocation2 + $0xa8] sm:$0xf]  ;;  %v7781_v9 = vld [vmem:[#allocation2 + $0x354] sm:$0xf0]  ;;  %v7690_v34 = vld [vmem:[#allocation2 + $0x84] sm:$0xf] }
 0x886   : > { %v4375_v35 = vunpack.c.l.bf16 %v4349_v22  ;;  %v4376_v7 = vunpack.c.h.bf16 %v4349_v22  ;;  %v7361_v38 = vor.u32 %v7734_v32, %v7358_v3  ;;  %v7217_v61 = vor.u32 %v7698_v26, %v7214_v48  ;;  %v7182_v25 = vld [vmem:[#allocation2 + $0x90] sm:$0xf0]  ;;  %v7188_v17 = vld [vmem:[#allocation2 + $0x88] sm:$0xf]  ;;  %v7693_v19 = vld [vmem:[#allocation2 + $0x94] sm:$0xf0] }
 0x887   : > { %v4383_v36 = vmul.f32 %v4379_v33, %v4371_v13  ;;  %v4384_v0 = vmul.f32 %v4380_v31, %v4372_v4  ;;  %6097 = vmatmul.bf16.vlgmr.msrb.gmra.mxu2 %v12562_v49  ;;  %6082 = vmatpush.bf16.msrb.mxu1 %v7117_v54  ;;  %v7393_v56 = vor.u32 %v7742_v11, %v7390_v43  ;;  %v7524_v5 = vld [vmem:[#allocation2 + $0x328] sm:$0xf]  ;;  %v7777_v2 = vld [vmem:[#allocation2 + $0x334] sm:$0xf0]  ;;  %v7722_v39 = vld [vmem:[#allocation2 + $0x184] sm:$0xf] }
 0x888   : > { %6131 = vmatpush.bf16.msrb.mxu0 %v7233_v21  ;;  %v4387_v28 = vmul.f32 %v4379_v33, %v4375_v35  ;;  %v4388_v55 = vmul.f32 %v4380_v31, %v4376_v7  ;;  %6187 = vmatpush.bf16.msra.mxu3 %v7237_v29  ;;  %v12577_v63 = vor.u32 %v7672_v50, %v7100_v20  ;;  %v7726_v31 = vld [vmem:[#allocation2 + $0x1a4] sm:$0xf]  ;;  %v7310_v15 = vld [vmem:[#allocation2 + $0x190] sm:$0xf0]  ;;  %v7172_v21 = vld [vmem:[#allocation2 + $0x68] sm:$0xf] }
 0x889   : > { %v4390_v45 = vpack.c.bf16 %v4384_v0, %v4383_v36  ;;  %v7221_v24 = vor.u32 %v7701_v8, %v7220_v37  ;;  %6165 = vmatpush.bf16.msra.mxu2 %v7393_v56  ;;  %v12579_v40 = vor.u32 %v7671_v16, %v7110_v51  ;;  %v7345_v1 = vor.u32 %v7730_v18, %v7342_v42  ;;  %v7686_v60 = vld [vmem:[#allocation2 + $0x64] sm:$0xf]  ;;  %v7166_v58 = vld [vmem:[#allocation2 + $0x70] sm:$0xf0]  ;;  %v7689_v26 = vld [vmem:[#allocation2 + $0x74] sm:$0xf0] }
 0x88a   : > { %v4392_v59 = vpack.c.bf16 %v4388_v55, %v4387_v28  ;;  %6083 = vmatmul.bf16.vlgmr.msrb.gmra.mxu1 %v12577_v63  ;;  %v7201_v62 = vor.u32 %v7694_v52, %v7198_v30  ;;  %v7377_v33 = vor.u32 %v7738_v6, %v7374_v14  ;;  %v7205_v44 = vor.u32 %v7697_v46, %v7204_v53  ;;  %v7508_v3 = vld [vmem:[#allocation2 + $0x308] sm:$0xf]  ;;  %v13716_v23 = vld [vmem:[#allocation72_spill] sm:$0xff]  ;;  %v7703_v7 = vld [vmem:[#allocation2 + $0xec] sm:$0xf] }
 0x88b   : > { %6145 = vmatpush.bf16.msra.mxu1 %v7361_v38  ;;  %4394 = vst [vmem:[#allocation2 + $0x128] sm:$0xff] %v4390_v45  ;;  %7546 = vmatmul.msk.bf16.vlgmr.msra.gmra.mxu0 %vm13713_vm10, %v12579_v40  ;;  %v7541_v47 = vor.u32 %v7781_v9, %v7540_v10  ;;  %v7329_v57 = vor.u32 %v7726_v31, %v7326_v27  ;;  %v13714_v13 = vld [vmem:[#allocation78_spill] sm:$0xff]  ;;  %v13717_v29 = vmax.f32 %v13716_v23, 0.0  ;;  %v7773_v35 = vld [vmem:[#allocation2 + $0x314] sm:$0xf0]  ;;  %v13718_v43 = vld [vmem:[#allocation73_spill] sm:$0xff] }
 0x88c   : > { %6132 = vmatpush.bf16.msrb.mxu0 %v7217_v61  ;;  %4396 = vst [vmem:[#allocation2 + $0x138] sm:$0xff] %v4392_v59  ;;  %6188 = vmatpush.bf16.msra.mxu3 %v7221_v24  ;;  %v7185_v12 = vor.u32 %v7690_v34, %v7182_v25  ;;  %v7189_v32 = vor.u32 %v7693_v19, %v7188_v17  ;;  %v13715_v4 = vmax.f32 %v13714_v13, 0.0  ;;  %v7238_v54 = vld [vmem:[#allocation2 + $0xf8] sm:$0xf0]  ;;  %v13719_v20 = vmax.f32 %v13718_v43, 0.0  ;;  %v13720_v50 = vld [vmem:[#allocation47_spill] sm:$0xff]  ;;  %vm13722_vm7 = vmmov %vm13713_vm10 }
 0x88d   : > { %6166 = vmatpush.bf16.msra.mxu2 %v7377_v33  ;;  %v7525_v22 = vor.u32 %v7777_v2, %v7524_v5  ;;  %v7313_v11 = vor.u32 %v7722_v39, %v7310_v15  ;;  %v13721_v36 = vmax.f32 %v13720_v50, 0.0  ;;  %v7169_v37 = vor.u32 %v7686_v60, %v7166_v58  ;;  %v7718_v8 = vld [vmem:[#allocation2 + $0x164] sm:$0xf]  ;;  %v7294_v28 = vld [vmem:[#allocation2 + $0x170] sm:$0xf0]  ;;  %vm13723_vm12 = vmmov %vm13722_vm7 }
 0x88e   : > { %v4623_v48 = vpack.c.bf16 %v13717_v29, %v13715_v4  ;;  %v7173_v55 = vor.u32 %v7689_v26, %v7172_v21  ;;  %v7682_v38 = vld [vmem:[#allocation2 + $0x44] sm:$0xf]  ;;  %v7150_v52 = vld [vmem:[#allocation2 + $0x50] sm:$0xf0]  ;;  %v7509_v30 = vor.u32 %v7773_v35, %v7508_v3  ;;  %v7156_v16 = vld [vmem:[#allocation2 + $0x48] sm:$0xf]  ;;  %v7241_v45 = vor.u32 %v7703_v7, %v7238_v54 }
 0x88f   : > { %6146 = vmatpush.bf16.msra.mxu1 %v7345_v1  ;;  %v4625_v0 = vpack.c.bf16 %v13721_v36, %v13719_v20  ;;  %v7685_v51 = vld [vmem:[#allocation2 + $0x54] sm:$0xf0]  ;;  %v7297_v61 = vor.u32 %v7718_v8, %v7294_v28  ;;  %v7699_v56 = vld [vmem:[#allocation2 + $0xcc] sm:$0xf]  ;;  %v7153_v18 = vor.u32 %v7682_v38, %v7150_v52  ;;  %v7222_v42 = vld [vmem:[#allocation2 + $0xd8] sm:$0xf0] }
 0x890   : > { %6133 = vmatpush.bf16.msrb.mxu0 %v7201_v62  ;;  %6189 = vmatpush.bf16.msra.mxu3 %v7205_v44  ;;  %4627 = vst [vmem:[#allocation2 + $0x1a8] sm:$0xff] %v4623_v48  ;;  %v7714_v6 = vld [vmem:[#allocation2 + $0x144] sm:$0xf]  ;;  %v7278_v59 = vld [vmem:[#allocation2 + $0x150] sm:$0xf0]  ;;  %v7157_v24 = vor.u32 %v7685_v51, %v7156_v16  ;;  %v7225_v9 = vor.u32 %v7699_v56, %v7222_v42  ;;  %vm13724_vm13 = vmmov %vm13722_vm7  ;;  %vm13725_vm3 = vcmask 130048  }
 0x891   : > { %6234 = vmatpush.bf16.msrb.mxu2 %v7541_v47  ;;  %4629 = vst [vmem:[#allocation2 + $0x1b8] sm:$0xff] %v4625_v0  ;;  %v7678_v14 = vld [vmem:[#allocation2 + $0x24] sm:$0xf]  ;;  %v7134_v53 = vld [vmem:[#allocation2 + $0x30] sm:$0xf0]  ;;  %v7281_v1 = vor.u32 %v7714_v6, %v7278_v59  ;;  %vm13726_vm5 = vmmov %vm13725_vm3 }
 0x892   : > { %v7140_v46 = vld [vmem:[#allocation2 + $0x28] sm:$0xf]  ;;  %v7681_v10 = vld [vmem:[#allocation2 + $0x34] sm:$0xf0]  ;;  %v7695_v62 = vld [vmem:[#allocation2 + $0xac] sm:$0xf]  ;;  %v7137_v33 = vor.u32 %v7678_v14, %v7134_v53 }
 0x893   : > { %6147 = vmatpush.bf16.msra.mxu1 %v7329_v57  ;;  %7547 = vmatmul.msk.bf16.vlgmr.msrb.gmra.mxu3 %vm13722_vm7, %v12579_v40  ;;  %v7206_v31 = vld [vmem:[#allocation2 + $0xb8] sm:$0xf0]  ;;  %v7710_v27 = vld [vmem:[#allocation2 + $0x124] sm:$0xf]  ;;  %v7262_v44 = vld [vmem:[#allocation2 + $0x130] sm:$0xf0]  ;;  %v7141_v47 = vor.u32 %v7681_v10, %v7140_v46 }
 0x894   : > { %6134 = vmatpush.bf16.msrb.mxu0 %v7185_v12  ;;  %6190 = vmatpush.bf16.msra.mxu3 %v7189_v32  ;;  %v7674_v34 = vld [vmem:[#allocation2 + $0x4] sm:$0xf]  ;;  %v7118_v25 = vld [vmem:[#allocation2 + $0x10] sm:$0xf0]  ;;  %v7124_v17 = vld [vmem:[#allocation2 + $0x8] sm:$0xf]  ;;  %v7209_v57 = vor.u32 %v7695_v62, %v7206_v31  ;;  %v7265_v12 = vor.u32 %v7710_v27, %v7262_v44 }
 0x895   : > { %6235 = vmatpush.bf16.msrb.mxu2 %v7525_v22  ;;  %v7677_v19 = vld [vmem:[#allocation2 + $0x14] sm:$0xf0]  ;;  %v7364_v5 = vld [vmem:[#allocation2 + $0x1e8] sm:$0xf]  ;;  %v7735_v39 = vld [vmem:[#allocation2 + $0x1ec] sm:$0xf]  ;;  %v7121_v32 = vor.u32 %v7674_v34, %v7118_v25 }
 0x896   : > { %v7737_v2 = vld [vmem:[#allocation2 + $0x1f4] sm:$0xf0]  ;;  %v7366_v15 = vld [vmem:[#allocation2 + $0x1f8] sm:$0xf0]  ;;  %v7691_v22 = vld [vmem:[#allocation2 + $0x8c] sm:$0xf]  ;;  %v7125_v58 = vor.u32 %v7677_v19, %v7124_v17 }
 0x897   : > { %6148 = vmatpush.bf16.msra.mxu1 %v7313_v11  ;;  %6167 = vmatmul.bf16.vlgmr.msra.gmra.mxu2 %v12556_v41  ;;  %v7190_v60 = vld [vmem:[#allocation2 + $0x98] sm:$0xf0]  ;;  %v7365_v21 = vor.u32 %v7737_v2, %v7364_v5  ;;  %v7706_v26 = vld [vmem:[#allocation2 + $0x104] sm:$0xf]  ;;  %v7246_v3 = vld [vmem:[#allocation2 + $0x110] sm:$0xf0]  ;;  %v7369_v4 = vor.u32 %v7735_v39, %v7366_v15 }
 0x898   : > { %6135 = vmatpush.bf16.msrb.mxu0 %v7169_v37  ;;  %6191 = vmatpush.bf16.msra.mxu3 %v7173_v55  ;;  %v7348_v13 = vld [vmem:[#allocation2 + $0x1c8] sm:$0xf]  ;;  %v7733_v23 = vld [vmem:[#allocation2 + $0x1d4] sm:$0xf0]  ;;  %v7193_v11 = vor.u32 %v7691_v22, %v7190_v60  ;;  %v7731_v35 = vld [vmem:[#allocation2 + $0x1cc] sm:$0xf]  ;;  %v7249_v54 = vor.u32 %v7706_v26, %v7246_v3 }
 0x899   : > { %6236 = vmatpush.bf16.msrb.mxu2 %v7509_v30  ;;  %v7492_v29 = vld [vmem:[#allocation2 + $0x2e8] sm:$0xf]  ;;  %v7769_v48 = vld [vmem:[#allocation2 + $0x2f4] sm:$0xf0]  ;;  %v7350_v7 = vld [vmem:[#allocation2 + $0x1d8] sm:$0xf0]  ;;  %v7349_v50 = vor.u32 %v7733_v23, %v7348_v13 }
 0x89a   : > { %v7687_v43 = vld [vmem:[#allocation2 + $0x6c] sm:$0xf]  ;;  %v7174_v20 = vld [vmem:[#allocation2 + $0x78] sm:$0xf0]  ;;  %v7493_v36 = vor.u32 %v7769_v48, %v7492_v29  ;;  %v7353_v0 = vor.u32 %v7731_v35, %v7350_v7  ;;  %v7332_v37 = vld [vmem:[#allocation2 + $0x1a8] sm:$0xf] }
 0x89b   : > { %6149 = vmatpush.bf16.msra.mxu1 %v7297_v61  ;;  %v7476_v8 = vld [vmem:[#allocation2 + $0x2c8] sm:$0xf]  ;;  %v7765_v28 = vld [vmem:[#allocation2 + $0x2d4] sm:$0xf0]  ;;  %v7177_v55 = vor.u32 %v7687_v43, %v7174_v20  ;;  %v7727_v38 = vld [vmem:[#allocation2 + $0x1ac] sm:$0xf] }
 0x89c   : > { %6136 = vmatpush.bf16.msrb.mxu0 %v7153_v18  ;;  %6192 = vmatpush.bf16.msra.mxu3 %v7157_v24  ;;  %v7729_v52 = vld [vmem:[#allocation2 + $0x1b4] sm:$0xf0]  ;;  %v7683_v30 = vld [vmem:[#allocation2 + $0x4c] sm:$0xf]  ;;  %v7158_v16 = vld [vmem:[#allocation2 + $0x58] sm:$0xf0] }
 0x89d   : > { %6243 = vmatpush.bf16.msra.mxu2 %v7241_v45  ;;  %v7333_v51 = vor.u32 %v7729_v52, %v7332_v37  ;;  %v7477_v45 = vor.u32 %v7765_v28, %v7476_v8  ;;  %v7334_v61 = vld [vmem:[#allocation2 + $0x1b8] sm:$0xf0]  ;;  %v7316_v56 = vld [vmem:[#allocation2 + $0x188] sm:$0xf]  ;;  %v7725_v42 = vld [vmem:[#allocation2 + $0x194] sm:$0xf0]  ;;  %v7161_v24 = vor.u32 %v7683_v30, %v7158_v16 }
 0x89e   : > { %v7337_v18 = vor.u32 %v7727_v38, %v7334_v61  ;;  %v7460_v6 = vld [vmem:[#allocation2 + $0x2a8] sm:$0xf]  ;;  %v7761_v59 = vld [vmem:[#allocation2 + $0x2b4] sm:$0xf0]  ;;  %v7723_v14 = vld [vmem:[#allocation2 + $0x18c] sm:$0xf] }
 0x89f   : > { %6150 = vmatpush.bf16.msra.mxu1 %v7281_v1  ;;  %v7318_v53 = vld [vmem:[#allocation2 + $0x198] sm:$0xf0]  ;;  %v7679_v46 = vld [vmem:[#allocation2 + $0x2c] sm:$0xf]  ;;  %v7461_v1 = vor.u32 %v7761_v59, %v7460_v6  ;;  %v7300_v62 = vld [vmem:[#allocation2 + $0x168] sm:$0xf] }
 0x8a0   : > { %6137 = vmatpush.bf16.msrb.mxu0 %v7137_v33  ;;  %6193 = vmatpush.bf16.msra.mxu3 %v7141_v47  ;;  %v7142_v10 = vld [vmem:[#allocation2 + $0x38] sm:$0xf0]  ;;  %v7321_v33 = vor.u32 %v7723_v14, %v7318_v53  ;;  %v7721_v31 = vld [vmem:[#allocation2 + $0x174] sm:$0xf0]  ;;  %v7444_v27 = vld [vmem:[#allocation2 + $0x288] sm:$0xf] }
 0x8a1   : > { %6244 = vmatpush.bf16.msra.mxu2 %v7225_v9  ;;  %v7317_v9 = vor.u32 %v7725_v42, %v7316_v56  ;;  %v7757_v44 = vld [vmem:[#allocation2 + $0x294] sm:$0xf0]  ;;  %v7145_v47 = vor.u32 %v7679_v46, %v7142_v10  ;;  %v7719_v34 = vld [vmem:[#allocation2 + $0x16c] sm:$0xf]  ;;  %v7302_v25 = vld [vmem:[#allocation2 + $0x178] sm:$0xf0]  ;;  %v7301_v5 = vor.u32 %v7721_v31, %v7300_v62 }
 0x8a2   : > { %v7675_v17 = vld [vmem:[#allocation2 + $0xc] sm:$0xf]  ;;  %v7126_v19 = vld [vmem:[#allocation2 + $0x18] sm:$0xf0]  ;;  %v7445_v2 = vor.u32 %v7757_v44, %v7444_v27  ;;  %v7717_v39 = vld [vmem:[#allocation2 + $0x154] sm:$0xf0] }
 0x8a3   : > { %6151 = vmatpush.bf16.msra.mxu1 %v7265_v12  ;;  %v7305_v12 = vor.u32 %v7719_v34, %v7302_v25  ;;  %v7428_v15 = vld [vmem:[#allocation2 + $0x268] sm:$0xf]  ;;  %v7129_v22 = vor.u32 %v7675_v17, %v7126_v19  ;;  %v7715_v60 = vld [vmem:[#allocation2 + $0x14c] sm:$0xf]  ;;  %v7749_v29 = vld [vmem:[#allocation2 + $0x254] sm:$0xf0] }
 0x8a4   : > { %6138 = vmatpush.bf16.msrb.mxu0 %v7121_v32  ;;  %6194 = vmatpush.bf16.msra.mxu3 %v7125_v58  ;;  %v7753_v32 = vld [vmem:[#allocation2 + $0x274] sm:$0xf0]  ;;  %v7286_v58 = vld [vmem:[#allocation2 + $0x158] sm:$0xf0]  ;;  %v7268_v3 = vld [vmem:[#allocation2 + $0x128] sm:$0xf] }
 0x8a5   : > { %6245 = vmatpush.bf16.msra.mxu2 %v7209_v57  ;;  %v7284_v57 = vld [vmem:[#allocation2 + $0x148] sm:$0xf]  ;;  %v7429_v26 = vor.u32 %v7753_v32, %v7428_v15  ;;  %v7289_v13 = vor.u32 %v7715_v60, %v7286_v58  ;;  %v7711_v48 = vld [vmem:[#allocation2 + $0x12c] sm:$0xf]  ;;  %v7709_v43 = vld [vmem:[#allocation2 + $0x114] sm:$0xf0] }
 0x8a6   : > { %v7412_v23 = vld [vmem:[#allocation2 + $0x248] sm:$0xf]  ;;  %v7254_v37 = vld [vmem:[#allocation2 + $0x118] sm:$0xf0]  ;;  %v7767_v8 = vld [vmem:[#allocation2 + $0x2ec] sm:$0xf] }
 0x8a7   : > { %6139 = vmatmul.bf16.vlgmr.msrb.gmra.mxu0 %v12577_v63  ;;  %6195 = vmatmul.bf16.vlgmr.msra.gmra.mxu3 %v12577_v63  ;;  %v7413_v7 = vor.u32 %v7749_v29, %v7412_v23  ;;  %v7494_v28 = vld [vmem:[#allocation2 + $0x2f8] sm:$0xf0]  ;;  %v7741_v16 = vld [vmem:[#allocation2 + $0x214] sm:$0xf0]  ;;  %v7779_v61 = vld [vmem:[#allocation2 + $0x34c] sm:$0xf] }
 0x8a8   : > { %6201 = vmatpush.bf16.msra.mxu0 %v7365_v21  ;;  %6257 = vmatpush.bf16.msrb.mxu3 %v7369_v4  ;;  %v7285_v21 = vor.u32 %v7717_v39, %v7284_v57  ;;  %v7713_v4 = vld [vmem:[#allocation2 + $0x134] sm:$0xf0]  ;;  %v7497_v30 = vor.u32 %v7767_v8, %v7494_v28  ;;  %v7542_v56 = vld [vmem:[#allocation2 + $0x358] sm:$0xf0]  ;;  %v7759_v59 = vld [vmem:[#allocation2 + $0x2ac] sm:$0xf] }
 0x8a9   : > { %6246 = vmatpush.bf16.msra.mxu2 %v7193_v11  ;;  %6152 = vmatpush.bf16.msra.mxu1 %v7249_v54  ;;  %v7270_v11 = vld [vmem:[#allocation2 + $0x138] sm:$0xf0]  ;;  %v7269_v35 = vor.u32 %v7713_v4, %v7268_v3  ;;  %v7252_v54 = vld [vmem:[#allocation2 + $0x108] sm:$0xf]  ;;  %v7545_v6 = vor.u32 %v7779_v61, %v7542_v56  ;;  %v7775_v14 = vld [vmem:[#allocation2 + $0x32c] sm:$0xf] }
 0x8aa   : > { %7548 = vmatmul.msk.bf16.vlgmr.msrb.gmra.mxu2 %vm13723_vm12, %v12579_v40  ;;  %v7273_v20 = vor.u32 %v7711_v48, %v7270_v11  ;;  %v7526_v53 = vld [vmem:[#allocation2 + $0x338] sm:$0xf0]  ;;  %v7771_v62 = vld [vmem:[#allocation2 + $0x30c] sm:$0xf]  ;;  %vm13728_vm1 = vmmov %vm13725_vm3 }
 0x8ab   : > { %v7529_v10 = vor.u32 %v7775_v14, %v7526_v53  ;;  %v7751_v44 = vld [vmem:[#allocation2 + $0x26c] sm:$0xf]  ;;  %v7414_v25 = vld [vmem:[#allocation2 + $0x258] sm:$0xf0]  ;;  %vm13729_vm2 = vmmov %vm13728_vm1 }
 0x8ac   : > { %6202 = vmatpush.bf16.msra.mxu0 %v7349_v50  ;;  %6258 = vmatpush.bf16.msrb.mxu3 %v7353_v0  ;;  %v7396_v50 = vld [vmem:[#allocation2 + $0x228] sm:$0xf]  ;;  %v7707_v0 = vld [vmem:[#allocation2 + $0x10c] sm:$0xf] }
 0x8ad   : > { %6215 = vmatpush.bf16.msrb.mxu1 %v7493_v36  ;;  %6247 = vmatpush.bf16.msra.mxu2 %v7177_v55  ;;  %v7745_v36 = vld [vmem:[#allocation2 + $0x234] sm:$0xf0]  ;;  %v7253_v55 = vor.u32 %v7709_v43, %v7252_v54  ;;  %v7257_v52 = vor.u32 %v7707_v0, %v7254_v37  ;;  %v7747_v34 = vld [vmem:[#allocation2 + $0x24c] sm:$0xf] }
 0x8ae   : > { %6153 = vmatmul.bf16.vlgmr.msra.gmra.mxu1 %v12562_v49  ;;  %v7397_v38 = vor.u32 %v7745_v36, %v7396_v50  ;;  %v7417_v17 = vor.u32 %v7747_v34, %v7414_v25  ;;  %v7743_v19 = vld [vmem:[#allocation2 + $0x22c] sm:$0xf]  ;;  %v5506_v50 = vpop.permute.xlu0 %5505 }
 0x8af   : > { %v7739_v57 = vld [vmem:[#allocation2 + $0x20c] sm:$0xf] }
 0x8b0   : > { %6203 = vmatpush.bf16.msra.mxu0 %v7333_v51  ;;  %6259 = vmatpush.bf16.msrb.mxu3 %v7337_v18  ;;  %v7763_v51 = vld [vmem:[#allocation2 + $0x2cc] sm:$0xf] }
 0x8b1   : > { %6216 = vmatpush.bf16.msrb.mxu1 %v7477_v45  ;;  %6248 = vmatpush.bf16.msra.mxu2 %v7161_v24  ;;  %v7478_v45 = vld [vmem:[#allocation2 + $0x2d8] sm:$0xf0] }
 0x8b2   : > { %v7481_v42 = vor.u32 %v7763_v51, %v7478_v45  ;;  %v7462_v24 = vld [vmem:[#allocation2 + $0x2b8] sm:$0xf0]  ;;  %v5511_v51 = vpop.permute.xlu1 %5510 }
 0x8b3   : > { %v7465_v46 = vor.u32 %v7759_v59, %v7462_v24 }
 0x8b4   : > { %6204 = vmatpush.bf16.msra.mxu0 %v7317_v9  ;;  %6260 = vmatpush.bf16.msrb.mxu3 %v7321_v33  ;;  %v7755_v9 = vld [vmem:[#allocation2 + $0x28c] sm:$0xf]  ;;  %v7510_v33 = vld [vmem:[#allocation2 + $0x318] sm:$0xf0] }
 0x8b5   : > { %6217 = vmatpush.bf16.msrb.mxu1 %v7461_v1  ;;  %6249 = vmatpush.bf16.msra.mxu2 %v7145_v47  ;;  %v7446_v1 = vld [vmem:[#allocation2 + $0x298] sm:$0xf0]  ;;  %v7513_v27 = vor.u32 %v7771_v62, %v7510_v33 }
 0x8b6   : > { %v7449_v31 = vor.u32 %v7755_v9, %v7446_v1 }
 0x8b8   : > { %6205 = vmatpush.bf16.msra.mxu0 %v7301_v5  ;;  %6261 = vmatpush.bf16.msrb.mxu3 %v7305_v12  ;;  %v7398_v5 = vld [vmem:[#allocation2 + $0x238] sm:$0xf0] }
 0x8b9   : > { %6218 = vmatpush.bf16.msrb.mxu1 %v7445_v2  ;;  %6250 = vmatpush.bf16.msra.mxu2 %v7129_v22  ;;  %v7401_v2 = vor.u32 %v7743_v19, %v7398_v5  ;;  %v7382_v12 = vld [vmem:[#allocation2 + $0x218] sm:$0xf0] }
 0x8ba   : > { %v7385_v39 = vor.u32 %v7739_v57, %v7382_v12 }
 0x8bc   : > { %6206 = vmatpush.bf16.msra.mxu0 %v7285_v21  ;;  %6251 = vmatmul.bf16.vlgmr.msra.gmra.mxu2 %v12577_v63  ;;  %v7380_v63 = vld [vmem:[#allocation2 + $0x208] sm:$0xf] }
 0x8bd   : > { %6219 = vmatpush.bf16.msrb.mxu1 %v7429_v26  ;;  %6262 = vmatpush.bf16.msrb.mxu3 %v7289_v13  ;;  %v7381_v18 = vor.u32 %v7741_v16, %v7380_v63 }
 0x8c0   : > { %6207 = vmatpush.bf16.msra.mxu0 %v7269_v35 }
 0x8c1   : > { %6220 = vmatpush.bf16.msrb.mxu1 %v7413_v7  ;;  %6263 = vmatpush.bf16.msrb.mxu3 %v7273_v20 }
 0x8c4   : > { %6208 = vmatpush.bf16.msra.mxu0 %v7253_v55 }
 0x8c5   : > { %6221 = vmatpush.bf16.msrb.mxu1 %v7397_v38  ;;  %6264 = vmatpush.bf16.msrb.mxu3 %v7257_v52 }
 0x8c7   : > { %6209 = vmatmul.bf16.vlgmr.msra.gmra.mxu0 %v12562_v49 }
 0x8c8   : > { %6271 = vmatpush.bf16.msrb.mxu0 %v7497_v30  ;;  %6265 = vmatmul.bf16.vlgmr.msrb.gmra.mxu3 %v12562_v49  ;;  %v7430_v49 = vld [vmem:[#allocation2 + $0x278] sm:$0xf0] }
 0x8c9   : > { %6222 = vmatpush.bf16.msrb.mxu1 %v7381_v18  ;;  %v7433_v47 = vor.u32 %v7751_v44, %v7430_v49 }
 0x8cc   : > { %6272 = vmatpush.bf16.msrb.mxu0 %v7481_v42  ;;  %6223 = vmatmul.bf16.vlgmr.msrb.gmra.mxu1 %v12556_v41 }
 0x8cd   : > { %6290 = vmatpush.bf16.msra.mxu1 %v7545_v6 }
 0x8d0   : > { %6273 = vmatpush.bf16.msrb.mxu0 %v7465_v46 }
 0x8d1   : > { %6291 = vmatpush.bf16.msra.mxu1 %v7529_v10 }
 0x8d4   : > { %6274 = vmatpush.bf16.msrb.mxu0 %v7449_v31 }
 0x8d5   : > { %6292 = vmatpush.bf16.msra.mxu1 %v7513_v27 }
 0x8d8   : > { %6275 = vmatpush.bf16.msrb.mxu0 %v7433_v47 }
 0x8dc   : > { %6276 = vmatpush.bf16.msrb.mxu0 %v7417_v17  ;;  %7549 = vmatmul.msk.bf16.vlgmr.msra.gmra.mxu1 %vm13724_vm13, %v12579_v40 }
 0x8e0   : > { %6277 = vmatpush.bf16.msrb.mxu0 %v7401_v2 }
 0x8e4   : > { %6278 = vmatpush.bf16.msrb.mxu0 %v7385_v39 }
 0x8e7   : > { %6279 = vmatmul.bf16.vlgmr.msrb.gmra.mxu0 %v12556_v41 }
 0x906   : > { %v6112_v32 = vpop.f32.mrf.mxu3 }
 0x907   : > { %v6084_v60 = vpop.f32.mrf.mxu1 }
 0x908   : > { %v6126_v58 = vpop.f32.mrf.mxu0  ;;  %v6085_v36 = vadd.f32 %v6084_v60, %v5506_v50 }
 0x90a   : > { %v6098_v15 = vpop.f32.mrf.mxu2 }
 0x90b   : > { %v6099_v28 = vadd.f32 %v6098_v15, %v6085_v36 }
 0x90d   : > { %v6113_v45 = vadd.f32 %v6112_v32, %v6099_v28 }
 0x90e   : > { %v6114_v21 = vpop.f32.mrf.mxu3 }
 0x90f   : > { %v6086_v3 = vpop.f32.mrf.mxu1  ;;  %v6127_v14 = vadd.f32 %v6126_v58, %v6113_v45 }
 0x910   : > { %v6128_v13 = vpop.f32.mrf.mxu0  ;;  %v6087_v56 = vadd.f32 %v6086_v3, %v5511_v51 }
 0x912   : > { %v6100_v22 = vpop.f32.mrf.mxu2 }
 0x913   : > { %v6101_v53 = vadd.f32 %v6100_v22, %v6087_v56 }
 0x915   : > { %v6115_v47 = vadd.f32 %v6114_v21, %v6101_v53 }
 0x916   : > { %v6182_v4 = vpop.f32.mrf.mxu3 }
 0x917   : > { %v6129_v12 = vadd.f32 %v6128_v13, %v6115_v47  ;;  %v6310_v13 = vld [vmem:[%s12670_s14 + $0x8] sm:$0xff] }
 0x91a   : > { %v6168_v26 = vpop.f32.mrf.mxu2 }
 0x91e   : > { %v6184_v48 = vpop.f32.mrf.mxu3 }
 0x922   : > { %v6170_v23 = vpop.f32.mrf.mxu2 }
 0x924   : > { %v6140_v29 = vpop.f32.mrf.mxu0 }
 0x925   : > { %v6141_v37 = vadd.f32 %v6140_v29, %v5506_v50 }
 0x92a   : > { %v6196_v54 = vpop.f32.mrf.mxu3 }
 0x92b   : > { %v6154_v40 = vpop.f32.mrf.mxu1  ;;  %v6197_v55 = vadd.f32 %v6196_v54, %v5506_v50 }
 0x92c   : > { %v6142_v35 = vpop.f32.mrf.mxu0  ;;  %v6155_v8 = vadd.f32 %v6154_v40, %v6141_v37 }
 0x92d   : > { %v6238_v11 = vpop.f32.mrf.mxu2  ;;  %v6143_v18 = vadd.f32 %v6142_v35, %v5511_v51 }
 0x92e   : > { %v6169_v63 = vadd.f32 %v6168_v26, %v6155_v8 }
 0x930   : > { %v6183_v6 = vadd.f32 %v6182_v4, %v6169_v63 }
 0x932   : > { %v6198_v0 = vpop.f32.mrf.mxu3  ;;  %v6299_v31 = vadd.f32 %v6183_v6, %v6127_v14 }
 0x933   : > { %v6156_v7 = vpop.f32.mrf.mxu1  ;;  %v6199_v46 = vadd.f32 %v6198_v0, %v5511_v51 }
 0x934   : > { %v6157_v59 = vadd.f32 %v6156_v7, %v6143_v18 }
 0x935   : > { %v6240_v43 = vpop.f32.mrf.mxu2 }
 0x936   : > { %v6171_v33 = vadd.f32 %v6170_v23, %v6157_v59  ;;  %v6309_v23 = vld [vmem:[%s12670_s14] sm:$0xff] }
 0x938   : > { %v6185_v5 = vadd.f32 %v6184_v48, %v6171_v33 }
 0x93a   : > { %v6304_v22 = vadd.f32 %v6185_v5, %v6129_v12 }
 0x93f   : > { %v6252_v38 = vpop.f32.mrf.mxu2 }
 0x940   : > { %v6253_v24 = vadd.f32 %v6252_v38, %v5506_v50 }
 0x944   : > { %v6210_v41 = vpop.f32.mrf.mxu0 }
 0x945   : > { %v6211_v16 = vadd.f32 %v6210_v41, %v6197_v55 }
 0x947   : > { %v6254_v49 = vpop.f32.mrf.mxu2 }
 0x948   : > { %v6255_v2 = vadd.f32 %v6254_v49, %v5511_v51 }
 0x949   : > { %v6224_v20 = vpop.f32.mrf.mxu1 }
 0x94a   : > { %v6225_v42 = vadd.f32 %v6224_v20, %v6211_v16 }
 0x94b   : > { %v6266_v61 = vpop.f32.mrf.mxu3 }
 0x94c   : > { %v6212_v52 = vpop.f32.mrf.mxu0  ;;  %v6239_v10 = vadd.f32 %v6238_v11, %v6225_v42  ;;  %v6267_v9 = vadd.f32 %v6266_v61, %v6253_v24  ;;  %v6447_v24 = vld [vmem:[%s13727_s26] sm:$0xff] }
 0x94d   : > { %v6213_v27 = vadd.f32 %v6212_v52, %v6199_v46 }
 0x94e   : > { %v6300_v34 = vadd.f32 %v6299_v31, %v6239_v10 }
 0x951   : > { %v6226_v30 = vpop.f32.mrf.mxu1 }
 0x952   : > { %v6227_v25 = vadd.f32 %v6226_v30, %v6213_v27 }
 0x953   : > { %v6268_v19 = vpop.f32.mrf.mxu3 }
 0x954   : > { %v6241_v39 = vadd.f32 %v6240_v43, %v6227_v25  ;;  %v6269_v15 = vadd.f32 %v6268_v19, %v6255_v2 }
 0x956   : > { %v6305_v26 = vadd.f32 %v6304_v22, %v6241_v39  ;;  %v6448_v22 = vld [vmem:[%s13727_s26 + $0x8] sm:$0xff] }
 0x959   : > { %v6294_v1 = vpop.f32.mrf.mxu1 }
 0x961   : > { %v6296_v58 = vpop.f32.mrf.mxu1 }
 0x964   : > { %v6280_v62 = vpop.f32.mrf.mxu0 }
 0x965   : > { %v6281_v44 = vadd.f32 %v6280_v62, %v6267_v9 }
 0x967   : > { %v6295_v17 = vadd.f32 %v6294_v1, %v6281_v44 }
 0x969   : > { %v6301_v57 = vadd.f32 %v6300_v34, %v6295_v17 }
 0x96b   : > { %6302 = vadd.xlane.f32.xlu1 %v6301_v57 }
 0x96c   : > { %v6282_v32 = vpop.f32.mrf.mxu0 }
 0x96d   : > { %v6283_v60 = vadd.f32 %v6282_v32, %v6269_v15  ;;  %v6426_v15 = vld [vmem:[%s13730_s15 + $0x8] sm:$0xff] }
 0x96f   : > { %v6297_v3 = vadd.f32 %v6296_v58, %v6283_v60 }
 0x971   : > { %v6306_v4 = vadd.f32 %v6305_v26, %v6297_v3 }
 0x973   : > { %6307 = vadd.xlane.f32.xlu2 %v6306_v4 }
 0x9de   : > { %v6303_v29 = vpop.xlane.xlu1 %6302 }
 0x9e6   : > { %v6308_v21 = vpop.xlane.xlu2 %6307 }
 0x9e7   : > { %6331 = vmatpush.msrb.mxu1 %v6308_v21 }
 0x9e9   : > { %6332 = vmatpush.msrb.mxu1 %v6303_v29 }
 0x9ea   : > { %7550 = vmatmul.msk.f32.vlgmr.msrb.gmra.mxu1 %vm13725_vm3, %v6309_v23 }
 0x9f2   : > { %7551 = vmatmul.msk.f32.gmra.mxu1 %vm13726_vm5, %v6310_v13 }
 0xa67   : > { %v6334_v40 = vpop.f32.mrf.mxu1 }
 0xa68   : > { %v6340_v35 = vmul.f32 0.0009765625, %v6334_v40 }
 0xa6f   : > { %v6337_v48 = vpop.f32.mrf.mxu1 }
 0xa70   : > { %v6341_v11 = vmul.f32 0.0009765625, %v6337_v48 }
 0xa72   : > { %6349 = vperm.xlu0 %8149, %v6341_v11  }
 0xa7a   : > { %6344 = vperm.xlu0 %8149, %v6340_v35  }
 0xae4   : > { %v6350_v7 = vpop.permute.xlu0 %6349 }
 0xae5   : > { %v12615_v54 = vsub.f32 %v6129_v12, %v6350_v7  ;;  %v12617_v43 = vsub.f32 %v6185_v5, %v6350_v7  ;;  %v12619_v41 = vsub.f32 %v6241_v39, %v6350_v7  ;;  %v12625_v36 = vsub.f32 %v6297_v3, %v6350_v7 }
 0xae7   : > { %v6364_v20 = vmul.f32 %v12615_v54, %v12615_v54  ;;  %v6365_v50 = vmul.f32 %v12617_v43, %v12617_v43  ;;  %v6366_v0 = vmul.f32 %v12619_v41, %v12619_v41  ;;  %v6367_v55 = vmul.f32 %v12625_v36, %v12625_v36 }
 0xae9   : > { %v6373_v37 = vadd.f32 %v6365_v50, %v6364_v20 }
 0xaeb   : > { %v6374_v8 = vadd.f32 %v6373_v37, %v6366_v0 }
 0xaec   : > { %v6345_v28 = vpop.permute.xlu0 %6344 }
 0xaed   : > { %v6352_v38 = vsub.f32 %v6127_v14, %v6345_v28  ;;  %v6353_v52 = vsub.f32 %v6183_v6, %v6345_v28  ;;  %v6354_v30 = vsub.f32 %v6239_v10, %v6345_v28  ;;  %v6375_v63 = vadd.f32 %v6374_v8, %v6367_v55 }
 0xaee   : > { %v6355_v16 = vsub.f32 %v6295_v17, %v6345_v28  ;;  %v6425_v17 = vld [vmem:[%s13730_s15] sm:$0xff] }
 0xaef   : > { %v6360_v51 = vmul.f32 %v6352_v38, %v6352_v38  ;;  %v6361_v45 = vmul.f32 %v6353_v52, %v6353_v52  ;;  %6376 = vadd.xlane.f32.xlu0 %v6375_v63  ;;  %v6362_v61 = vmul.f32 %v6354_v30, %v6354_v30 }
 0xaf0   : > { %v6363_v18 = vmul.f32 %v6355_v16, %v6355_v16 }
 0xaf1   : > { %v6368_v56 = vadd.f32 %v6361_v45, %v6360_v51 }
 0xaf3   : > { %v6369_v42 = vadd.f32 %v6368_v56, %v6362_v61 }
 0xaf5   : > { %v6370_v59 = vadd.f32 %v6369_v42, %v6363_v18 }
 0xaf7   : > { %6371 = vadd.xlane.f32.xlu2 %v6370_v59 }
 0xb03   : > { %6451 = vperm.xlu0 %8149, %v6447_v24  }
 0xb62   : > { %v6377_v53 = vpop.xlane.xlu0 %6376 }
 0xb63   : > { %6392 = vmatpush.msrb.mxu2 %v6377_v53 }
 0xb6a   : > { %v6372_v6 = vpop.xlane.xlu2 %6371 }
 0xb6b   : > { %6393 = vmatpush.msrb.mxu2 %v6372_v6 }
 0xb6c   : > { %7552 = vmatmul.msk.f32.vlgmr.msrb.gmra.mxu2 %vm13728_vm1, %v6309_v23 }
 0xb74   : > { %7553 = vmatmul.msk.f32.gmra.mxu2 %vm13729_vm2, %v6310_v13 }
 0xb75   : > { %v6452_v23 = vpop.permute.xlu0 %6451 }
 0xbef   : > { %v6395_v14 = vpop.f32.mrf.mxu2 }
 0xbf0   : > { %v6401_v46 = vmul.f32 0.0009765625, %v6395_v14 }
 0xbf2   : > { %v6403_v10 = vadd.f32 1e-05, %v6401_v46 }
 0xbf4   : > { %8495 = vrsqrt.f32 %v6403_v10  ;;  %vm6411_vm14 = vweird.f32 %v6403_v10 }
 0xbf7   : > { %v6398_v9 = vpop.f32.mrf.mxu2 }
 0xbf8   : > { %v6402_v1 = vmul.f32 0.0009765625, %v6398_v9 }
 0xbfa   : > { %v8496_v62 = vpop.eup %8495  ;;  %v6404_v33 = vadd.f32 1e-05, %v6402_v1 }
 0xbfb   : > { %v6406_v31 = vmul.f32 %v8496_v62, %v6403_v10  ;;  %vm6412_vm11 = vweird.f32 %v8496_v62 }
 0xbfc   : > { %8497 = vrsqrt.f32 %v6404_v33  ;;  %vm6413_vm15 = vmor %vm6411_vm14, %vm6412_vm11  ;;  %vm6421_vm0 = vweird.f32 %v6404_v33 }
 0xbfd   : > { %v6407_v27 = vmul.f32 %v8496_v62, %v6406_v31 }
 0xbff   : > { %v6408_v44 = vmul.f32 0.5, %v6407_v27 }
 0xc01   : > { %v6409_v49 = vsub.f32 1.5, %v6408_v44 }
 0xc02   : > { %v8498_v47 = vpop.eup %8497 }
 0xc03   : > { %v6410_v34 = vmul.f32 %v8496_v62, %v6409_v49  ;;  %v6416_v25 = vmul.f32 %v8498_v47, %v6404_v33  ;;  %vm6422_vm8 = vweird.f32 %v8498_v47 }
 0xc04   : > { %vm6423_vm4 = vmor %vm6421_vm0, %vm6422_vm8 }
 0xc05   : > { %v6417_v19 = vmul.f32 %v8498_v47, %v6416_v25  ;;  %v6414_v5 = vsel %vm6413_vm15, %v8496_v62, %v6410_v34 }
 0xc06   : > { %v6427_v2 = vmul.f32 %v6425_v17, %v6414_v5 }
 0xc07   : > { %v6418_v57 = vmul.f32 0.5, %v6417_v19 }
 0xc08   : > { %6431 = vperm.xlu1 %8150, %v6427_v2  }
 0xc09   : > { %v6419_v12 = vsub.f32 1.5, %v6418_v57 }
 0xc0b   : > { %v6420_v39 = vmul.f32 %v8498_v47, %v6419_v12 }
 0xc0d   : > { %v6424_v32 = vsel %vm6423_vm4, %v8498_v47, %v6420_v39 }
 0xc0e   : > { %v6428_v60 = vmul.f32 %v6426_v15, %v6424_v32 }
 0xc10   : > { %6456 = vperm.xlu1 %8150, %v6448_v22   ;;  %6436 = vperm.xlu2 %8148, %v6428_v60  }
 0xc6a   : > { %v6437_v11 = vpop.permute.xlu2 %6436 }
 0xc6b   : > { %v6443_v0 = vmul.f32 %v6437_v11, %v12615_v54  ;;  %v6444_v37 = vmul.f32 %v6437_v11, %v12617_v43  ;;  %v6445_v8 = vmul.f32 %v6437_v11, %v12619_v41  ;;  %v6446_v28 = vmul.f32 %v6437_v11, %v12625_v36 }
 0xc7a   : > { %v6432_v58 = vpop.permute.xlu1 %6431 }
 0xc7b   : > { %v6439_v26 = vmul.f32 %v6432_v58, %v6352_v38  ;;  %v6440_v3 = vmul.f32 %v6432_v58, %v6353_v52  ;;  %v6441_v4 = vmul.f32 %v6432_v58, %v6354_v30  ;;  %v6442_v21 = vmul.f32 %v6432_v58, %v6355_v16 }
 0xc7d   : > { %v6459_v29 = vadd.f32 %v6452_v23, %v6439_v26  ;;  %v6460_v13 = vadd.f32 %v6452_v23, %v6440_v3  ;;  %v6461_v40 = vadd.f32 %v6452_v23, %v6441_v4  ;;  %v6462_v48 = vadd.f32 %v6452_v23, %v6442_v21 }
 0xc7f   : > { %v6467_v35 = vmax.f32 %v6459_v29, 0.0  ;;  %v6468_v7 = vmax.f32 %v6460_v13, 0.0  ;;  %v6469_v20 = vmax.f32 %v6461_v40, 0.0  ;;  %v6470_v50 = vmax.f32 %v6462_v48, 0.0 }
 0xc81   : > { %6475 = vst [vmem:[%s511_s19] sm:$0xff] %v6467_v35 }
 0xc82   : > { %6476 = vst [vmem:[%s511_s19 + $0x8] sm:$0xff] %v6468_v7  ;;  %v6457_v55 = vpop.permute.xlu1 %6456 }
 0xc83   : > { %6477 = vst [vmem:[%s511_s19 + $0x10] sm:$0xff] %v6469_v20  ;;  %v6463_v38 = vadd.f32 %v6457_v55, %v6443_v0  ;;  %v6464_v52 = vadd.f32 %v6457_v55, %v6444_v37  ;;  %v6465_v30 = vadd.f32 %v6457_v55, %v6445_v8  ;;  %v6466_v63 = vadd.f32 %v6457_v55, %v6446_v28 }
 0xc84   : > { %6478 = vst [vmem:[%s511_s19 + $0x18] sm:$0xff] %v6470_v50 }
 0xc85   : > { %v6471_v16 = vmax.f32 %v6463_v38, 0.0  ;;  %v6472_v51 = vmax.f32 %v6464_v52, 0.0  ;;  %v6473_v45 = vmax.f32 %v6465_v30, 0.0  ;;  %v6474_v61 = vmax.f32 %v6466_v63, 0.0 }
 0xc87   : > { %6479 = vst [vmem:[%s511_s19 + $0x20] sm:$0xff] %v6471_v16 }
 0xc88   : > { %6480 = vst [vmem:[%s511_s19 + $0x28] sm:$0xff] %v6472_v51 }
 0xc89   : > { %6481 = vst [vmem:[%s511_s19 + $0x30] sm:$0xff] %v6473_v45 }
 0xc8a   : > { %6482 = vst [vmem:[%s511_s19 + $0x38] sm:$0xff] %v6474_v61 }
 0xc8b PF: > { %s13733_s0 = sld [smem:[#allocation3_spill]] }
 0xc91   : > { %s25_s18 = sadd.s32 1, %s13733_s0  }
 0xc92   : > { %p22_p4 = scmp.ge.s32.totalorder %s25_s18, 4  }
 0xc94   :  { %24 = sbr.rel (!%p22_p4) target bundleno = 11 (0xb), region = 145 }

</bundles_post_ra>
